<compile_context>
chip_gen: v6e
topology: v6e:2x2x1
jax: 0.10.0
libtpu: 0.0.40
codegen_flags: <defaults>
</compile_context>

<pallas_src>
import jax
import jax.numpy as jnp
import numpy as np
from jax.experimental import pallas as pl
from jax.experimental.pallas import tpu as pltpu

# Synthetic hyper-parameters (small, shape-consistent).
IN_CHANNELS = 32      # C  (= feat_channels, see note above)
FEAT_CHANNELS = 32    # F
OUT_CHANNELS = 32     # O  (out_channels=None -> in_channels)
NUM_PROPOSALS = 16    # N
SEQ = 8               # S  (input_feature reshaped to (N, S, C))
EPS = 1e-5            # nn.LayerNorm default eps

C, F, O, N, S = IN_CHANNELS, FEAT_CHANNELS, OUT_CHANNELS, NUM_PROPOSALS, SEQ
NS = N * S            # 128 flattened input-feature rows
LW = 2 * F            # 64: packed lane width of all wide tensors
HIGHEST = jax.lax.Precision.HIGHEST

# Row offsets inside the single packed parameter slab (all rows LW lanes wide).
R_W1 = 0               # (2C, LW)  fused [input_layer; dynamic_layer] weight (cols = [out|in])
R_G64 = R_W1 + 2 * C   # (LW, LW)  fused [input_gate | update_gate] weight (top F rows zero)
R_MSEL = R_G64 + LW    # (LW, LW)  block-diag 1/F selector (segmented means on the MXU)
R_FC = R_MSEL + LW     # (F, LW)   fc_layer weight in lanes [0, O)
R_SEL = R_FC + F       # (NS, LW)  S-row-repeat 0/1 selector in lanes [0, N)
R_V = R_SEL + NS       # (16, LW)  packed biases / LayerNorm gammas+betas, one per row
SLAB_ROWS = R_V + 16   # 368

# V-row indices.
V_INL_B, V_DYN_B, V_GATE_B, V_GLN_G, V_GLN_B = 0, 1, 2, 3, 4
V_NOUT_G, V_NOUT_B, V_INOUT_G, V_INOUT_B = 5, 6, 7, 8
V_FC_B, V_FCN_G, V_FCN_B = 9, 10, 11


def _ln(x, g, b):
    """Plain LayerNorm over the last axis (used for the final fc_norm)."""
    mu = jnp.mean(x, axis=-1, keepdims=True)
    var = jnp.mean(jnp.square(x - mu), axis=-1, keepdims=True)
    return (x - mu) * jax.lax.rsqrt(var + EPS) * g + b


def _msel_ln(x, msel, g, b):
    """Segmented LayerNorm of both F-lane halves of a (rows, 2F) tensor.

    The per-half means/variances are computed with a block-diagonal 1/F
    selector matmul on the (otherwise idle) MXU instead of two 32-lane XLU
    reduce chains, and both halves are normalized in one rsqrt/scale pass.
    """
    mu = jnp.dot(x, msel, precision=HIGHEST, preferred_element_type=jnp.float32)
    c = x - mu
    var = jnp.dot(c * c, msel, precision=HIGHEST, preferred_element_type=jnp.float32)
    return c * jax.lax.rsqrt(var + EPS) * g + b


def kernel_updator_kernel(lhs_ref, slab_ref, out_ref):
    # ---- unpack the resident parameter slab (static slices -> cheap views) ----
    w1 = slab_ref[R_W1:R_W1 + 2 * C, :]           # (2C, LW)
    g64 = slab_ref[R_G64:R_G64 + LW, :]           # (LW, LW)
    msel = slab_ref[R_MSEL:R_MSEL + LW, :]        # (LW, LW)
    fc_w = slab_ref[R_FC:R_FC + F, 0:O]           # (F, O)
    sel = slab_ref[R_SEL:R_SEL + NS, 0:N]         # (NS, N)

    def vrow(r, width=LW):
        return slab_ref[R_V + r:R_V + r + 1, 0:width]   # (1, width)

    # ---- stage 1: fused input_layer + dynamic_layer (block-diagonal LHS) ----
    ab = jnp.dot(lhs_ref[...], w1, precision=HIGHEST,
                 preferred_element_type=jnp.float32)            # (NS + N, LW)
    f1 = ab[0:NS, :] + vrow(V_INL_B)        # (NS, LW) = [input_out | input_in]
    p1 = ab[NS:NS + N, :] + vrow(V_DYN_B)   # (N, LW)  = [param_out | param_in]

    lane_n = jax.lax.broadcasted_iota(jnp.int32, (N, LW), 1)
    lane_ns = jax.lax.broadcasted_iota(jnp.int32, (NS, LW), 1)

    # ---- norm_out on param_out (first half); param_in passes through.  Then
    #      ONE (N, 2F) -> (NS, 2F) broadcast over S via a 0/1 selector matmul.
    p_n = _msel_ln(p1, msel, vrow(V_NOUT_G), vrow(V_NOUT_B))
    p2 = jnp.where(lane_n < F, p_n, p1)                          # (N, LW)
    p_b = jnp.dot(sel, p2, precision=HIGHEST,
                  preferred_element_type=jnp.float32)            # (NS, LW)

    # ---- input_norm_out on input_out (first half); input_in passes through.
    f1_n = jnp.where(lane_ns < F,
                     _msel_ln(f1, msel, vrow(V_INOUT_G), vrow(V_INOUT_B)),
                     f1)                                         # (NS, LW)

    # ---- gate_feats = input_in * param_in lives in lanes [F, 2F); the junk
    #      product in lanes [0, F) is killed by the zero top rows of g64.
    gf64 = f1_n * p_b
    gates = jnp.dot(gf64, g64, precision=HIGHEST,
                    preferred_element_type=jnp.float32) + vrow(V_GATE_B)
    # Both gate LayerNorms in one lane-dense segmented pass, then one sigmoid.
    gates = jax.nn.sigmoid(
        _msel_ln(gates, msel, vrow(V_GLN_G), vrow(V_GLN_B)))     # [input_gate | update_gate]

    features = (gates[:, F:LW] * p_b[:, 0:F]        # update_gate * ln(param_out)
                + gates[:, 0:F] * f1_n[:, 0:F])     # input_gate  * ln(input_out)

    # ---- fc_layer -> fc_norm -> ReLU ----
    y = jnp.dot(features, fc_w, precision=HIGHEST,
                preferred_element_type=jnp.float32) + vrow(V_FC_B, O)
    y = _ln(y, vrow(V_FCN_G, O), vrow(V_FCN_B, O))
    # TODO(synk): a feature-major (O, NS) lane-dense store (then transposed in
    # the wrapper) would make this store unmasked; only worth it on v5e.
    out_ref[...] = jnp.maximum(y, 0.0).astype(out_ref.dtype)


def pack_params(p):
    """Pack the 20 small parameter arrays into one resident (368, 64) slab."""

    def swap_halves(a):  # reorder last dim from [in | out] to [out | in]
        return jnp.concatenate([a[..., F:2 * F], a[..., 0:F]], axis=-1)

    w1 = jnp.concatenate(
        [swap_halves(p["inl_w"]), swap_halves(p["dyn_w"])], axis=0)          # (2C, 64)
    g64 = jnp.concatenate(
        [jnp.zeros((F, LW), jnp.float32),
         jnp.concatenate([p["ig_w"], p["ug_w"]], axis=1)], axis=0)           # (64, 64)
    msel = jnp.kron(jnp.eye(2, dtype=jnp.float32),
                    jnp.full((F, F), 1.0 / F, jnp.float32))                  # (64, 64)
    fc_blk = jnp.pad(p["fc_w"], ((0, 0), (0, LW - O)))                       # (32, 64)
    sel = (jnp.arange(NS)[:, None] // S
           == jnp.arange(N)[None, :]).astype(jnp.float32)                    # (128, 16)
    sel_blk = jnp.pad(sel, ((0, 0), (0, LW - N)))                            # (128, 64)

    def vec(x, width):
        x = jnp.asarray(x, jnp.float32).reshape(1, -1)
        return jnp.pad(x, ((0, 0), (0, LW - width)))

    v_rows = [
        swap_halves(p["inl_b"].reshape(1, LW)),                                   # V_INL_B
        swap_halves(p["dyn_b"].reshape(1, LW)),                                   # V_DYN_B
        jnp.concatenate([p["ig_b"].reshape(1, F), p["ug_b"].reshape(1, F)], 1),   # V_GATE_B
        jnp.concatenate([p["inin_g"].reshape(1, F), p["nin_g"].reshape(1, F)], 1),  # V_GLN_G
        jnp.concatenate([p["inin_b"].reshape(1, F), p["nin_b"].reshape(1, F)], 1),  # V_GLN_B
        vec(p["nout_g"], F), vec(p["nout_b"], F),
        vec(p["inout_g"], F), vec(p["inout_b"], F),
        vec(p["fc_b"], O), vec(p["fcn_g"], O), vec(p["fcn_b"], O),
    ]
    v_blk = jnp.concatenate(
        v_rows + [jnp.zeros((16 - len(v_rows), LW), jnp.float32)], axis=0)   # (16, 64)

    slab = jnp.concatenate([w1, g64, msel, fc_blk, sel_blk, v_blk], axis=0)
    assert slab.shape == (SLAB_ROWS, LW)
    return slab


def kernel_updator(update_feature, input_feature, slab):
    upd = update_feature.reshape(N, C).astype(jnp.float32)
    x_flat = input_feature.reshape(NS, C).astype(jnp.float32)
    # Block-diagonal LHS for the fused stage-1 matmul: [x | 0] over [0 | upd].
    lhs = jnp.concatenate(
        [jnp.pad(x_flat, ((0, 0), (0, C))),
         jnp.pad(upd, ((0, 0), (C, 0)))], axis=0)                 # (NS + N, 2C)

    out_flat = pl.pallas_call(
        kernel_updator_kernel,
        out_shape=jax.ShapeDtypeStruct((NS, O), jnp.float32),
        grid=(1,),
        in_specs=[
            pl.BlockSpec((NS + N, 2 * C), lambda i: (0, 0)),      # packed activations
            pl.BlockSpec((SLAB_ROWS, LW), lambda i: (0, 0)),      # resident parameter slab
        ],
        out_specs=pl.BlockSpec((NS, O), lambda i: (0, 0)),
        compiler_params=pltpu.CompilerParams(
            dimension_semantics=("arbitrary",)),
    )(lhs, slab)
    return out_flat.reshape(N, S, O)


def init_params(key):
    keys = jax.random.split(key, 5)

    def lin(k, fan_in, fan_out):
        kw, kb = jax.random.split(k)
        scale = 1.0 / np.sqrt(fan_in)
        w = jax.random.uniform(kw, (fan_in, fan_out), jnp.float32, -scale, scale)
        b = jax.random.uniform(kb, (1, fan_out), jnp.float32, -scale, scale)
        return w, b

    p = {}
    p["dyn_w"], p["dyn_b"] = lin(keys[0], C, 2 * F)   # dynamic_layer
    p["inl_w"], p["inl_b"] = lin(keys[1], C, 2 * F)   # input_layer
    p["ig_w"], p["ig_b"] = lin(keys[2], C, F)         # input_gate
    p["ug_w"], p["ug_b"] = lin(keys[3], C, F)         # update_gate
    p["fc_w"], p["fc_b"] = lin(keys[4], F, O)         # fc_layer
    # LayerNorm params (PyTorch default init: gamma=1, beta=0), stored as (1, dim)
    for name, dim in [("nin", F), ("nout", F), ("inin", F), ("inout", F), ("fcn", O)]:
        p[name + "_g"] = jnp.ones((1, dim), jnp.float32)
        p[name + "_b"] = jnp.zeros((1, dim), jnp.float32)
    return p


def reference(update_feature, input_feature, p):
    """Pure-JAX replica of the PyTorch forward for verification."""
    uf = update_feature.reshape(-1, IN_CHANNELS)
    n = uf.shape[0]

    def mm(a, b):
        return jnp.matmul(a, b, precision=HIGHEST)

    def ln(x, g, b):
        mu = x.mean(-1, keepdims=True)
        var = ((x - mu) ** 2).mean(-1, keepdims=True)
        return (x - mu) / jnp.sqrt(var + EPS) * g + b

    params = mm(uf, p["dyn_w"]) + p["dyn_b"]
    param_in = params[:, :F]
    param_out = params[:, -F:]
    inf = input_feature.reshape(n, -1, FEAT_CHANNELS)
    input_feats = mm(inf, p["inl_w"]) + p["inl_b"]
    input_in = input_feats[..., :F]
    input_out = input_feats[..., -F:]
    gate_feats = input_in * param_in[:, None, :]
    input_gate = jax.nn.sigmoid(
        ln(mm(gate_feats, p["ig_w"]) + p["ig_b"], p["inin_g"], p["inin_b"]))
    update_gate = jax.nn.sigmoid(
        ln(mm(gate_feats, p["ug_w"]) + p["ug_b"], p["nin_g"], p["nin_b"]))
    param_out = ln(param_out, p["nout_g"], p["nout_b"])
    input_out = ln(input_out, p["inout_g"], p["inout_b"])
    feats = update_gate * param_out[:, None, :] + input_gate * input_out
    feats = mm(feats, p["fc_w"]) + p["fc_b"]
    feats = ln(feats, p["fcn_g"], p["fcn_b"])
    return jax.nn.relu(feats)


if __name__ == "__main__":
    key = jax.random.PRNGKey(0)
    k_params, k_upd, k_inp = jax.random.split(key, 3)
    params = init_params(k_params)
    update_feature = jax.random.normal(
        k_upd, (NUM_PROPOSALS, IN_CHANNELS), jnp.float32)
    input_feature = jax.random.normal(
        k_inp, (NUM_PROPOSALS, SEQ, IN_CHANNELS), jnp.float32)

    # One-time host-side packing of the 20 small params into one resident slab.
    slab = pack_params(params)

    run = jax.jit(kernel_updator)
    out = run(update_feature, input_feature, slab)
    out = jax.block_until_ready(out)

    ref = reference(update_feature, input_feature, params)
    np.testing.assert_allclose(np.asarray(out), np.asarray(ref),
                               rtol=1e-4, atol=2e-4)
    print("KERNEL_OK")
</pallas_src>

<mosaic_0001>
module attributes {stable_mosaic.version = 11 : i64} {
  func.func @kernel_updator_kernel(%arg0: i32, %arg1: memref<144x64xf32, #tpu.memory_space<vmem>>, %arg2: memref<368x64xf32, #tpu.memory_space<vmem>>, %arg3: memref<128x32xf32, #tpu.memory_space<vmem>>) attributes {dimension_semantics = [#tpu.dimension_semantics<arbitrary>], iteration_bounds = array<i64: 1>, scalar_prefetch = 0 : i64, scratch_operands = 0 : i64, tpu.core_type = #tpu.core_type<tc>, window_params = [{pipeline_mode = #tpu.pipeline_mode<synchronous>, transform_indices = @transform_0, window_bounds = array<i64: 144, 64>}, {pipeline_mode = #tpu.pipeline_mode<synchronous>, transform_indices = @transform_1, window_bounds = array<i64: 368, 64>}, {pipeline_mode = #tpu.pipeline_mode<synchronous>, transform_indices = @transform_2, window_bounds = array<i64: 128, 32>}]} {
    %c0 = arith.constant 0 : index
    %c0_0 = arith.constant 0 : index
    %0 = vector.load %arg2[%c0, %c0_0] : memref<368x64xf32, #tpu.memory_space<vmem>>, vector<64x64xf32>
    %c64 = arith.constant 64 : index
    %c0_1 = arith.constant 0 : index
    %1 = vector.load %arg2[%c64, %c0_1] : memref<368x64xf32, #tpu.memory_space<vmem>>, vector<64x64xf32>
    %c128 = arith.constant 128 : index
    %c0_2 = arith.constant 0 : index
    %2 = vector.load %arg2[%c128, %c0_2] : memref<368x64xf32, #tpu.memory_space<vmem>>, vector<64x64xf32>
    %c192 = arith.constant 192 : index
    %c0_3 = arith.constant 0 : index
    %3 = vector.load %arg2[%c192, %c0_3] : memref<368x64xf32, #tpu.memory_space<vmem>>, vector<32x32xf32>
    %c224 = arith.constant 224 : index
    %c0_4 = arith.constant 0 : index
    %4 = vector.load %arg2[%c224, %c0_4] : memref<368x64xf32, #tpu.memory_space<vmem>>, vector<128x16xf32>
    %c0_5 = arith.constant 0 : index
    %c0_6 = arith.constant 0 : index
    %5 = vector.load %arg1[%c0_5, %c0_6] : memref<144x64xf32, #tpu.memory_space<vmem>>, vector<144x64xf32>
    %cst = arith.constant dense<0.000000e+00> : vector<144x64xf32>
    %6 = tpu.matmul %5, %0, %cst {dimension_numbers = #tpu.dot_dimension_numbers<[1], [0], [0], [1], [0, 0, 1, 1], [], []>, precision = #tpu.contract_precision<fp32>} : vector<144x64xf32>, vector<64x64xf32>, vector<144x64xf32> -> vector<144x64xf32>
    %7 = vector.extract_strided_slice %6 {offsets = [0, 0], sizes = [128, 64], strides = [1, 1]} : vector<144x64xf32> to vector<128x64xf32>
    %c352 = arith.constant 352 : index
    %c0_7 = arith.constant 0 : index
    %8 = vector.load %arg2[%c352, %c0_7] : memref<368x64xf32, #tpu.memory_space<vmem>>, vector<1x64xf32>
    %9 = vector.broadcast %8 : vector<1x64xf32> to vector<128x64xf32>
    %10 = arith.addf %7, %9 : vector<128x64xf32>
    %11 = vector.extract_strided_slice %6 {offsets = [128, 0], sizes = [16, 64], strides = [1, 1]} : vector<144x64xf32> to vector<16x64xf32>
    %c353 = arith.constant 353 : index
    %c0_8 = arith.constant 0 : index
    %12 = vector.load %arg2[%c353, %c0_8] : memref<368x64xf32, #tpu.memory_space<vmem>>, vector<1x64xf32>
    %13 = vector.broadcast %12 : vector<1x64xf32> to vector<16x64xf32>
    %14 = arith.addf %11, %13 : vector<16x64xf32>
    %15 = tpu.iota {dimensions = array<i32: 1>} : vector<16x64xi32>
    %16 = tpu.iota {dimensions = array<i32: 1>} : vector<128x64xi32>
    %c357 = arith.constant 357 : index
    %c0_9 = arith.constant 0 : index
    %17 = vector.load %arg2[%c357, %c0_9] : memref<368x64xf32, #tpu.memory_space<vmem>>, vector<1x64xf32>
    %c358 = arith.constant 358 : index
    %c0_10 = arith.constant 0 : index
    %18 = vector.load %arg2[%c358, %c0_10] : memref<368x64xf32, #tpu.memory_space<vmem>>, vector<1x64xf32>
    %cst_11 = arith.constant dense<0.000000e+00> : vector<16x64xf32>
    %19 = tpu.matmul %14, %2, %cst_11 {dimension_numbers = #tpu.dot_dimension_numbers<[1], [0], [0], [1], [0, 0, 1, 1], [], []>, precision = #tpu.contract_precision<fp32>} : vector<16x64xf32>, vector<64x64xf32>, vector<16x64xf32> -> vector<16x64xf32>
    %20 = arith.subf %14, %19 : vector<16x64xf32>
    %21 = arith.mulf %20, %20 : vector<16x64xf32>
    %cst_12 = arith.constant dense<0.000000e+00> : vector<16x64xf32>
    %22 = tpu.matmul %21, %2, %cst_12 {dimension_numbers = #tpu.dot_dimension_numbers<[1], [0], [0], [1], [0, 0, 1, 1], [], []>, precision = #tpu.contract_precision<fp32>} : vector<16x64xf32>, vector<64x64xf32>, vector<16x64xf32> -> vector<16x64xf32>
    %cst_13 = arith.constant 9.99999974E-6 : f32
    %23 = vector.broadcast %cst_13 : f32 to vector<16x64xf32>
    %24 = arith.addf %22, %23 : vector<16x64xf32>
    %25 = math.rsqrt %24 : vector<16x64xf32>
    %26 = arith.mulf %20, %25 : vector<16x64xf32>
    %27 = vector.broadcast %17 : vector<1x64xf32> to vector<16x64xf32>
    %28 = arith.mulf %26, %27 : vector<16x64xf32>
    %29 = vector.broadcast %18 : vector<1x64xf32> to vector<16x64xf32>
    %30 = arith.addf %28, %29 : vector<16x64xf32>
    %c32_i32 = arith.constant 32 : i32
    %31 = vector.broadcast %c32_i32 : i32 to vector<16x64xi32>
    %32 = arith.cmpi slt, %15, %31 : vector<16x64xi32>
    %33 = arith.select %32, %30, %14 : vector<16x64xi1>, vector<16x64xf32>
    %cst_14 = arith.constant dense<0.000000e+00> : vector<128x64xf32>
    %34 = tpu.matmul %4, %33, %cst_14 {dimension_numbers = #tpu.dot_dimension_numbers<[1], [0], [0], [1], [0, 0, 1, 1], [], []>, precision = #tpu.contract_precision<fp32>} : vector<128x16xf32>, vector<16x64xf32>, vector<128x64xf32> -> vector<128x64xf32>
    %c32_i32_15 = arith.constant 32 : i32
    %35 = vector.broadcast %c32_i32_15 : i32 to vector<128x64xi32>
    %36 = arith.cmpi slt, %16, %35 : vector<128x64xi32>
    %c359 = arith.constant 359 : index
    %c0_16 = arith.constant 0 : index
    %37 = vector.load %arg2[%c359, %c0_16] : memref<368x64xf32, #tpu.memory_space<vmem>>, vector<1x64xf32>
    %c360 = arith.constant 360 : index
    %c0_17 = arith.constant 0 : index
    %38 = vector.load %arg2[%c360, %c0_17] : memref<368x64xf32, #tpu.memory_space<vmem>>, vector<1x64xf32>
    %cst_18 = arith.constant dense<0.000000e+00> : vector<128x64xf32>
    %39 = tpu.matmul %10, %2, %cst_18 {dimension_numbers = #tpu.dot_dimension_numbers<[1], [0], [0], [1], [0, 0, 1, 1], [], []>, precision = #tpu.contract_precision<fp32>} : vector<128x64xf32>, vector<64x64xf32>, vector<128x64xf32> -> vector<128x64xf32>
    %40 = arith.subf %10, %39 : vector<128x64xf32>
    %41 = arith.mulf %40, %40 : vector<128x64xf32>
    %cst_19 = arith.constant dense<0.000000e+00> : vector<128x64xf32>
    %42 = tpu.matmul %41, %2, %cst_19 {dimension_numbers = #tpu.dot_dimension_numbers<[1], [0], [0], [1], [0, 0, 1, 1], [], []>, precision = #tpu.contract_precision<fp32>} : vector<128x64xf32>, vector<64x64xf32>, vector<128x64xf32> -> vector<128x64xf32>
    %cst_20 = arith.constant 9.99999974E-6 : f32
    %43 = vector.broadcast %cst_20 : f32 to vector<128x64xf32>
    %44 = arith.addf %42, %43 : vector<128x64xf32>
    %45 = math.rsqrt %44 : vector<128x64xf32>
    %46 = arith.mulf %40, %45 : vector<128x64xf32>
    %47 = vector.broadcast %37 : vector<1x64xf32> to vector<128x64xf32>
    %48 = arith.mulf %46, %47 : vector<128x64xf32>
    %49 = vector.broadcast %38 : vector<1x64xf32> to vector<128x64xf32>
    %50 = arith.addf %48, %49 : vector<128x64xf32>
    %51 = arith.select %36, %50, %10 : vector<128x64xi1>, vector<128x64xf32>
    %52 = arith.mulf %51, %34 : vector<128x64xf32>
    %cst_21 = arith.constant dense<0.000000e+00> : vector<128x64xf32>
    %53 = tpu.matmul %52, %1, %cst_21 {dimension_numbers = #tpu.dot_dimension_numbers<[1], [0], [0], [1], [0, 0, 1, 1], [], []>, precision = #tpu.contract_precision<fp32>} : vector<128x64xf32>, vector<64x64xf32>, vector<128x64xf32> -> vector<128x64xf32>
    %c354 = arith.constant 354 : index
    %c0_22 = arith.constant 0 : index
    %54 = vector.load %arg2[%c354, %c0_22] : memref<368x64xf32, #tpu.memory_space<vmem>>, vector<1x64xf32>
    %55 = vector.broadcast %54 : vector<1x64xf32> to vector<128x64xf32>
    %56 = arith.addf %53, %55 : vector<128x64xf32>
    %c355 = arith.constant 355 : index
    %c0_23 = arith.constant 0 : index
    %57 = vector.load %arg2[%c355, %c0_23] : memref<368x64xf32, #tpu.memory_space<vmem>>, vector<1x64xf32>
    %c356 = arith.constant 356 : index
    %c0_24 = arith.constant 0 : index
    %58 = vector.load %arg2[%c356, %c0_24] : memref<368x64xf32, #tpu.memory_space<vmem>>, vector<1x64xf32>
    %cst_25 = arith.constant dense<0.000000e+00> : vector<128x64xf32>
    %59 = tpu.matmul %56, %2, %cst_25 {dimension_numbers = #tpu.dot_dimension_numbers<[1], [0], [0], [1], [0, 0, 1, 1], [], []>, precision = #tpu.contract_precision<fp32>} : vector<128x64xf32>, vector<64x64xf32>, vector<128x64xf32> -> vector<128x64xf32>
    %60 = arith.subf %56, %59 : vector<128x64xf32>
    %61 = arith.mulf %60, %60 : vector<128x64xf32>
    %cst_26 = arith.constant dense<0.000000e+00> : vector<128x64xf32>
    %62 = tpu.matmul %61, %2, %cst_26 {dimension_numbers = #tpu.dot_dimension_numbers<[1], [0], [0], [1], [0, 0, 1, 1], [], []>, precision = #tpu.contract_precision<fp32>} : vector<128x64xf32>, vector<64x64xf32>, vector<128x64xf32> -> vector<128x64xf32>
    %cst_27 = arith.constant 9.99999974E-6 : f32
    %63 = vector.broadcast %cst_27 : f32 to vector<128x64xf32>
    %64 = arith.addf %62, %63 : vector<128x64xf32>
    %65 = math.rsqrt %64 : vector<128x64xf32>
    %66 = arith.mulf %60, %65 : vector<128x64xf32>
    %67 = vector.broadcast %57 : vector<1x64xf32> to vector<128x64xf32>
    %68 = arith.mulf %66, %67 : vector<128x64xf32>
    %69 = vector.broadcast %58 : vector<1x64xf32> to vector<128x64xf32>
    %70 = arith.addf %68, %69 : vector<128x64xf32>
    %71 = arith.negf %70 : vector<128x64xf32>
    %72 = math.exp %71 : vector<128x64xf32>
    %cst_28 = arith.constant 1.000000e+00 : f32
    %73 = vector.broadcast %cst_28 : f32 to vector<128x64xf32>
    %74 = arith.addf %73, %72 : vector<128x64xf32>
    %75 = arith.divf %73, %74 : vector<128x64xf32>
    %76 = vector.extract_strided_slice %75 {offsets = [0, 32], sizes = [128, 32], strides = [1, 1]} : vector<128x64xf32> to vector<128x32xf32>
    %77 = vector.extract_strided_slice %34 {offsets = [0, 0], sizes = [128, 32], strides = [1, 1]} : vector<128x64xf32> to vector<128x32xf32>
    %78 = arith.mulf %76, %77 : vector<128x32xf32>
    %79 = vector.extract_strided_slice %75 {offsets = [0, 0], sizes = [128, 32], strides = [1, 1]} : vector<128x64xf32> to vector<128x32xf32>
    %80 = vector.extract_strided_slice %51 {offsets = [0, 0], sizes = [128, 32], strides = [1, 1]} : vector<128x64xf32> to vector<128x32xf32>
    %81 = arith.mulf %79, %80 : vector<128x32xf32>
    %82 = arith.addf %78, %81 : vector<128x32xf32>
    %cst_29 = arith.constant dense<0.000000e+00> : vector<128x32xf32>
    %83 = tpu.matmul %82, %3, %cst_29 {dimension_numbers = #tpu.dot_dimension_numbers<[1], [0], [0], [1], [0, 0, 1, 1], [], []>, precision = #tpu.contract_precision<fp32>} : vector<128x32xf32>, vector<32x32xf32>, vector<128x32xf32> -> vector<128x32xf32>
    %c361 = arith.constant 361 : index
    %c0_30 = arith.constant 0 : index
    %84 = vector.load %arg2[%c361, %c0_30] : memref<368x64xf32, #tpu.memory_space<vmem>>, vector<1x32xf32>
    %85 = vector.broadcast %84 : vector<1x32xf32> to vector<128x32xf32>
    %86 = arith.addf %83, %85 : vector<128x32xf32>
    %c362 = arith.constant 362 : index
    %c0_31 = arith.constant 0 : index
    %87 = vector.load %arg2[%c362, %c0_31] : memref<368x64xf32, #tpu.memory_space<vmem>>, vector<1x32xf32>
    %c363 = arith.constant 363 : index
    %c0_32 = arith.constant 0 : index
    %88 = vector.load %arg2[%c363, %c0_32] : memref<368x64xf32, #tpu.memory_space<vmem>>, vector<1x32xf32>
    %cst_33 = arith.constant dense<0.000000e+00> : vector<128xf32>
    %89 = vector.multi_reduction <add>, %86, %cst_33 [1] : vector<128x32xf32> to vector<128xf32>
    %90 = vector.shape_cast %89 : vector<128xf32> to vector<128x1xf32>
    %cst_34 = arith.constant 3.200000e+01 : f32
    %91 = vector.broadcast %cst_34 : f32 to vector<128x1xf32>
    %92 = arith.divf %90, %91 : vector<128x1xf32>
    %93 = vector.broadcast %92 : vector<128x1xf32> to vector<128x32xf32>
    %94 = arith.subf %86, %93 : vector<128x32xf32>
    %95 = arith.mulf %94, %94 : vector<128x32xf32>
    %cst_35 = arith.constant dense<0.000000e+00> : vector<128xf32>
    %96 = vector.multi_reduction <add>, %95, %cst_35 [1] : vector<128x32xf32> to vector<128xf32>
    %97 = vector.shape_cast %96 : vector<128xf32> to vector<128x1xf32>
    %cst_36 = arith.constant 3.200000e+01 : f32
    %98 = vector.broadcast %cst_36 : f32 to vector<128x1xf32>
    %99 = arith.divf %97, %98 : vector<128x1xf32>
    %100 = vector.broadcast %92 : vector<128x1xf32> to vector<128x32xf32>
    %101 = arith.subf %86, %100 : vector<128x32xf32>
    %cst_37 = arith.constant 9.99999974E-6 : f32
    %102 = vector.broadcast %cst_37 : f32 to vector<128x1xf32>
    %103 = arith.addf %99, %102 : vector<128x1xf32>
    %104 = math.rsqrt %103 : vector<128x1xf32>
    %105 = vector.broadcast %104 : vector<128x1xf32> to vector<128x32xf32>
    %106 = arith.mulf %101, %105 : vector<128x32xf32>
    %107 = vector.broadcast %87 : vector<1x32xf32> to vector<128x32xf32>
    %108 = arith.mulf %106, %107 : vector<128x32xf32>
    %109 = vector.broadcast %88 : vector<1x32xf32> to vector<128x32xf32>
    %110 = arith.addf %108, %109 : vector<128x32xf32>
    %cst_38 = arith.constant 0.000000e+00 : f32
    %111 = vector.broadcast %cst_38 : f32 to vector<128x32xf32>
    %112 = arith.maximumf %110, %111 : vector<128x32xf32>
    %c0_39 = arith.constant 0 : index
    %c0_40 = arith.constant 0 : index
    %113 = vector.load %arg3[%c0_39, %c0_40] : memref<128x32xf32, #tpu.memory_space<vmem>>, vector<128x32xf32>
    tpu.vector_store %arg3[%c0_39, %c0_40], %112 {strides = array<i32>} : memref<128x32xf32, #tpu.memory_space<vmem>>, vector<128x32xf32>,
    return
  }
  func.func @transform_0(%arg0: i32) -> (i32, i32) {
    %c0_i32 = arith.constant 0 : i32
    %c0_i32_0 = arith.constant 0 : i32
    %c0_i32_1 = arith.constant 0 : i32
    return %c0_i32, %c0_i32_0 : i32, i32
  }
  func.func @transform_1(%arg0: i32) -> (i32, i32) {
    %c0_i32 = arith.constant 0 : i32
    %c0_i32_0 = arith.constant 0 : i32
    %c0_i32_1 = arith.constant 0 : i32
    return %c0_i32, %c0_i32_0 : i32, i32
  }
  func.func @transform_2(%arg0: i32) -> (i32, i32) {
    %c0_i32 = arith.constant 0 : i32
    %c0_i32_0 = arith.constant 0 : i32
    %c0_i32_1 = arith.constant 0 : i32
    return %c0_i32, %c0_i32_0 : i32, i32
  }
}

</mosaic_0001>

<bundles_post_ra>
// kernel: kernel_updator.1
= control target key start
LH: loop header
LB: loop body
LE: loop exit
PB: predicated region body
PF: predicated region fallthrough
CT: control target
= control target key end

     0   :  { %vm74_vm0 = vcmask 523264   ;;  %s20878_s0 = inlined_call_operand.vmem [shape: f32[144,64], index: 0, kind: input, shape index: {}]   ;;  %s20879_s1 = inlined_call_operand.vmem [shape: f32[368,64], index: 1, kind: input, shape index: {}]   ;;  %s20880_s2 = inlined_call_operand.hbm [shape: f32[128,32], index: 2, kind: output, shape index: {}]  }
   0x1   :  { %v19_v0 = vld [vmem:[%s20879_s1 + $0x38] sm:$0xff]  ;;  %v18_v1 = vld [vmem:[%s20879_s1 + $0x30] sm:$0xff]  ;;  %v17_v2 = vld [vmem:[%s20879_s1 + $0x28] sm:$0xff] }
   0x2   :  { %v15481_v3 = vand.u32 4294901760, %v19_v0  ;;  %v15483_v4 = vand.u32 4294901760, %v18_v1  ;;  %v15485_v5 = vand.u32 4294901760, %v17_v2  ;;  %v16_v6 = vld [vmem:[%s20879_s1 + $0x20] sm:$0xff]  ;;  %v15_v7 = vld [vmem:[%s20879_s1 + $0x18] sm:$0xff]  ;;  %v14_v8 = vld [vmem:[%s20879_s1 + $0x10] sm:$0xff] }
   0x3   :  { %v15496_v9 = vand.u32 4294901760, %v16_v6  ;;  %v15498_v10 = vand.u32 4294901760, %v15_v7  ;;  %v15500_v11 = vand.u32 4294901760, %v14_v8  ;;  %v13_v12 = vld [vmem:[%s20879_s1 + $0x8] sm:$0xff]  ;;  %v15508_v13 = vld [vmem:[%s20879_s1] sm:$0xff]  ;;  %v58_v40 = vld [vmem:[%s20878_s0 + $0x10] sm:$0xff] }
   0x4   :  { %v56_v14 = vld [vmem:[%s20878_s0] sm:$0xff]  ;;  %13215 = vmatprep.subr.mxu0 %v15481_v3  ;;  %v15515_v15 = vsub.f32 %v19_v0, %v15481_v3  ;;  %v15518_v16 = vsub.f32 %v18_v1, %v15483_v4  ;;  %v15520_v17 = vand.u32 4294901760, %v13_v12  ;;  %v15523_v18 = vsub.f32 %v17_v2, %v15485_v5  ;;  %v57_v19 = vld [vmem:[%s20878_s0 + $0x8] sm:$0xff]  ;;  %v59_v41 = vld [vmem:[%s20878_s0 + $0x18] sm:$0xff] }
   0x5   :  { %13216 = vmatpush3.msra.mxu0 %v15481_v3  ;;  %v15530_v20 = vand.u32 4294901760, %v15508_v13  ;;  %v15533_v21 = vsub.f32 %v16_v6, %v15496_v9  ;;  %v76_v22 = vsel %vm74_vm0, %v56_v14, 0  ;;  %v79_v23 = vsel %vm74_vm0, %v57_v19, 0 }
   0x6   :  { %13217 = vmatprep.subr.mxu0 %v15483_v4  ;;  %v15539_v24 = vand.u32 4294901760, %v15515_v15  ;;  %v15542_v25 = vand.u32 4294901760, %v15518_v16  ;;  %v15545_v26 = vand.u32 4294901760, %v15523_v18  ;;  %v15547_v27 = vand.u32 4294901760, %v76_v22 }
   0x7   :  { %13218 = vmatpush3.msra.mxu0 %v15483_v4  ;;  %v15551_v28 = vand.u32 4294901760, %v15533_v21  ;;  %v15553_v29 = vand.u32 4294901760, %v79_v23  ;;  %v15556_v30 = vsub.f32 %v15_v7, %v15498_v10  ;;  %v15559_v31 = vsub.f32 %v14_v8, %v15500_v11 }
   0x8   :  { %21271 = vst [vmem:[#allocation5_spill] sm:$0xff] %v15547_v27  ;;  %13219 = vmatprep.subr.mxu0 %v15485_v5  ;;  %v402_v32 = vsub.f32 %v15515_v15, %v15539_v24  ;;  %v409_v33 = vsub.f32 %v15518_v16, %v15542_v25  ;;  %v416_v34 = vsub.f32 %v15523_v18, %v15545_v26 }
   0x9   :  { %21272 = vst [vmem:[#allocation6_spill] sm:$0xff] %v15553_v29  ;;  %v15569_v35 = vsub.f32 %v76_v22, %v15547_v27  ;;  %13220 = vmatpush3.msra.mxu0 %v15485_v5  ;;  %v423_v36 = vsub.f32 %v15533_v21, %v15551_v28  ;;  %v15575_v37 = vsub.f32 %v79_v23, %v15553_v29  ;;  %v15578_v38 = vand.u32 4294901760, %v15556_v30 }
   0xa   :  { %v15581_v39 = vand.u32 4294901760, %v15559_v31  ;;  %13274 = vmatprep.mubr.f32.mxu1 %v15547_v27  ;;  %13221 = vmatprep.subr.mxu0 %v15496_v9  ;;  %v403_v42 = vand.u32 4294901760, %v402_v32  ;;  %v410_v43 = vand.u32 4294901760, %v409_v33  ;;  %v417_v44 = vand.u32 4294901760, %v416_v34 }
   0xb   :  { %v20890_v45 = vand.u32 4294901760, %v15569_v35 }
   0xc   :  { %7 = vsyncpa [#allocation3], 0  ;;  %13222 = vmatpush3.msra.mxu0 %v15496_v9  ;;  %v424_v46 = vand.u32 4294901760, %v423_v36  ;;  %v20888_v47 = vand.u32 4294901760, %v15575_v37  ;;  %v430_v48 = vsub.f32 %v15556_v30, %v15578_v38  ;;  %v437_v49 = vsub.f32 %v15559_v31, %v15581_v39  ;;  %13258 = vmatprep.subr.mxu1 %v403_v42  ;;  %v60_v54 = vld [vmem:[%s20878_s0 + $0x20] sm:$0xff]  ;;  %v61_v55 = vld [vmem:[%s20878_s0 + $0x28] sm:$0xff] }
   0xd   :  { %13223 = vmatprep.subr.mxu0 %v15498_v10  ;;  %v205_v50 = vsub.f32 %v15569_v35, %v20890_v45  ;;  %v82_v51 = vsel %vm74_vm0, %v58_v40, 0  ;;  %v85_v52 = vsel %vm74_vm0, %v59_v41, 0  ;;  %v15605_v53 = vsub.f32 %v13_v12, %v15520_v17  ;;  %13259 = vmatpush3.msra.mxu1 %v403_v42  ;;  %v62_v0 = vld [vmem:[%s20878_s0 + $0x30] sm:$0xff]  ;;  %v63_v1 = vld [vmem:[%s20878_s0 + $0x38] sm:$0xff]  ;;  %v64_v34 = vld [vmem:[%s20878_s0 + $0x40] sm:$0xff]  ;;  %s15452_s3 = smov 32  }
   0xe   :  { %13224 = vmatpush3.msra.mxu0 %v15498_v10  ;;  %v215_v56 = vsub.f32 %v15575_v37, %v20888_v47  ;;  %v431_v57 = vand.u32 4294901760, %v430_v48  ;;  %v15617_v58 = vand.u32 4294901760, %v437_v49  ;;  %v15619_v59 = vand.u32 4294901760, %v82_v51  ;;  %13260 = vmatprep.subr.mxu1 %v410_v43  ;;  %s15453_s8 = smov 96  }
   0xf   :  { %13225 = vmatprep.subr.mxu0 %v15500_v11  ;;  %v206_v60 = vand.u32 4294901760, %v205_v50  ;;  %v15622_v61 = vand.u32 4294901760, %v85_v52  ;;  %v15625_v62 = vand.u32 4294901760, %v15605_v53  ;;  %v15629_v63 = vsub.f32 %v15508_v13, %v15530_v20  ;;  %13261 = vmatpush3.msra.mxu1 %v410_v43  ;;  %v65_v50 = vld [vmem:[%s20878_s0 + $0x48] sm:$0xff] }
  0x10   :  { %21273 = vst [vmem:[#allocation7_spill] sm:$0xff] %v15619_v59  ;;  %13226 = vmatpush3.msra.mxu0 %v15500_v11  ;;  %v216_v2 = vand.u32 4294901760, %v215_v56  ;;  %v15639_v6 = vsub.f32 %v82_v51, %v15619_v59  ;;  %v88_v7 = vsel %vm74_vm0, %v60_v54, 0  ;;  %v91_v8 = vsel %vm74_vm0, %v61_v55, 0  ;;  %13262 = vmatprep.subr.mxu1 %v417_v44 }
  0x11   :  { %21274 = vst [vmem:[#allocation8_spill] sm:$0xff] %v15622_v61  ;;  %13227 = vmatprep.subr.mxu0 %v15520_v17  ;;  %v15645_v12 = vsub.f32 %v85_v52, %v15622_v61  ;;  %v444_v13 = vsub.f32 %v15605_v53, %v15625_v62  ;;  %v15650_v14 = vand.u32 4294901760, %v15629_v63  ;;  %v15652_v19 = vand.u32 4294901760, %v88_v7  ;;  %13263 = vmatpush3.msra.mxu1 %v417_v44 }
  0x12   :  { %13228 = vmatpush3.msra.mxu0 %v15520_v17  ;;  %v20886_v22 = vand.u32 4294901760, %v15639_v6  ;;  %v15656_v23 = vand.u32 4294901760, %v91_v8  ;;  %v94_v32 = vsel %vm74_vm0, %v62_v0, 0  ;;  %v97_v33 = vsel %vm74_vm0, %v63_v1, 0  ;;  %13264 = vmatprep.subr.mxu1 %v424_v46  ;;  %v66_v1 = vld [vmem:[%s20878_s0 + $0x50] sm:$0xff] }
  0x13   :  { %21275 = vst [vmem:[#allocation9_spill] sm:$0xff] %v15652_v19  ;;  %13229 = vmatprep.subr.mxu0 %v15530_v20  ;;  %v20885_v36 = vand.u32 4294901760, %v15645_v12  ;;  %v445_v40 = vand.u32 4294901760, %v444_v13  ;;  %v451_v41 = vsub.f32 %v15629_v63, %v15650_v14  ;;  %v15668_v42 = vsub.f32 %v88_v7, %v15652_v19  ;;  %13231 = vmatprep.mubr.f32.mxu0 %v206_v60 }
  0x14   :  { %13230 = vmatpush3.msra.mxu0 %v15530_v20  ;;  %v225_v43 = vsub.f32 %v15639_v6, %v20886_v22  ;;  %v15675_v44 = vsub.f32 %v91_v8, %v15656_v23  ;;  %v15677_v48 = vand.u32 4294901760, %v94_v32  ;;  %v15679_v49 = vand.u32 4294901760, %v97_v33  ;;  %13265 = vmatpush3.msra.mxu1 %v424_v46 }
  0x15   :  { %13232 = vmatmul.mubr.f32.vlgmr.msra.gmra.mxu0 %v216_v2  ;;  %v235_v51 = vsub.f32 %v15645_v12, %v20885_v36  ;;  %v452_v52 = vand.u32 4294901760, %v451_v41  ;;  %v20882_v54 = vand.u32 4294901760, %v15668_v42  ;;  %v100_v55 = vsel %vm74_vm0, %v64_v34, 0  ;;  %13266 = vmatprep.subr.mxu1 %v431_v57  ;;  %v67_v2 = vld [vmem:[%s20878_s0 + $0x58] sm:$0xff] }
  0x16   :  { %v226_v56 = vand.u32 4294901760, %v225_v43  ;;  %13301 = vmatprep.subr.mxu0 %v15515_v15  ;;  %v20881_v60 = vand.u32 4294901760, %v15675_v44  ;;  %v15692_v0 = vsub.f32 %v94_v32, %v15677_v48  ;;  %v15695_v46 = vsub.f32 %v97_v33, %v15679_v49  ;;  %13267 = vmatpush3.msra.mxu1 %v431_v57 }
  0x17   :  { %v236_v7 = vand.u32 4294901760, %v235_v51  ;;  %v245_v8 = vsub.f32 %v15668_v42, %v20882_v54  ;;  %13302 = vmatpush3.msra.mxu0 %v15515_v15  ;;  %v15707_v13 = vand.u32 4294901760, %v100_v55  ;;  %v103_v32 = vsel %vm74_vm0, %v65_v50, 0  ;;  %13268 = vmatprep.subr.mxu1 %v15617_v58  ;;  %v68_v15 = vld [vmem:[%s20878_s0 + $0x60] sm:$0xff] }
  0x18   :  { %13234 = vmatprep.mubr.f32.mxu0 %v226_v56  ;;  %v255_v33 = vsub.f32 %v15675_v44, %v20881_v60  ;;  %v20884_v57 = vand.u32 4294901760, %v15692_v0  ;;  %v20883_v34 = vand.u32 4294901760, %v15695_v46  ;;  %v15716_v41 = vand.u32 4294901760, %v103_v32  ;;  %13269 = vmatpush3.msra.mxu1 %v15617_v58 }
  0x19   :  { %13235 = vmatmul.mubr.f32.gmra.mxu0 %v236_v7  ;;  %v246_v43 = vand.u32 4294901760, %v245_v8  ;;  %v15723_v50 = vsub.f32 %v100_v55, %v15707_v13  ;;  %v106_v51 = vsel %vm74_vm0, %v66_v1, 0  ;;  %v109_v56 = vsel %vm74_vm0, %v67_v2, 0  ;;  %13270 = vmatprep.subr.mxu1 %v445_v40  ;;  %v69_v55 = vld [vmem:[%s20878_s0 + $0x68] sm:$0xff] }
  0x1a   :  { %v256_v60 = vand.u32 4294901760, %v255_v33  ;;  %v265_v54 = vsub.f32 %v15692_v0, %v20884_v57  ;;  %13303 = vmatprep.subr.mxu0 %v15518_v16  ;;  %v275_v58 = vsub.f32 %v15695_v46, %v20883_v34  ;;  %v15735_v7 = vsub.f32 %v103_v32, %v15716_v41  ;;  %13271 = vmatpush3.msra.mxu1 %v445_v40  ;;  %v70_v34 = vld [vmem:[%s20878_s0 + $0x70] sm:$0xff] }
  0x1b   :  { %13237 = vmatprep.mubr.f32.mxu0 %v246_v43  ;;  %v20887_v1 = vand.u32 4294901760, %v15723_v50  ;;  %v15741_v2 = vand.u32 4294901760, %v106_v51  ;;  %v15743_v8 = vand.u32 4294901760, %v109_v56  ;;  %v112_v33 = vsel %vm74_vm0, %v68_v15, 0  ;;  %13272 = vmatprep.subr.mxu1 %v452_v52 }
  0x1c   :  { %v266_v32 = vand.u32 4294901760, %v265_v54  ;;  %v276_v57 = vand.u32 4294901760, %v275_v58  ;;  %13304 = vmatpush3.msra.mxu0 %v15518_v16  ;;  %v20889_v40 = vand.u32 4294901760, %v15735_v7  ;;  %v15751_v43 = vand.u32 4294901760, %v112_v33  ;;  %13273 = vmatpush3.msra.mxu1 %v452_v52  ;;  %v71_v16 = vld [vmem:[%s20878_s0 + $0x78] sm:$0xff] }
  0x1d   :  { %13238 = vmatmul.mubr.f32.gmra.mxu0 %v256_v60  ;;  %v285_v36 = vsub.f32 %v15723_v50, %v20887_v1  ;;  %v15757_v15 = vsub.f32 %v106_v51, %v15741_v2  ;;  %v15760_v22 = vsub.f32 %v109_v56, %v15743_v8  ;;  %v115_v54 = vsel %vm74_vm0, %v69_v55, 0  ;;  %13275 = vmatmul.mubr.f32.vlgmr.msra.gmra.mxu1 %v15553_v29 }
  0x1e   :  { %13344 = vmatprep.subr.mxu1 %v15481_v3  ;;  %v295_v52 = vsub.f32 %v15735_v7, %v20889_v40  ;;  %v15772_v60 = vsub.f32 %v112_v33, %v15751_v43  ;;  %v15774_v51 = vand.u32 4294901760, %v115_v54  ;;  %v118_v56 = vsel %vm74_vm0, %v70_v34, 0  ;;  %13240 = vmatprep.mubr.f32.mxu0 %v266_v32  ;;  %v72_v40 = vld [vmem:[%s20878_s0 + $0x80] sm:$0xff]  ;;  %v73_v33 = vld [vmem:[%s20878_s0 + $0x88] sm:$0xff] }
  0x1f   :  { %13345 = vmatpush3.msra.mxu1 %v15481_v3  ;;  %v286_v58 = vand.u32 4294901760, %v285_v36  ;;  %v20895_v55 = vand.u32 4294901760, %v15757_v15  ;;  %v15780_v47 = vand.u32 4294901760, %v118_v56  ;;  %13277 = vmatprep.mubr.f32.mxu1 %v15619_v59  ;;  %v121_v45 = vsel %vm74_vm0, %v71_v16, 0 }
  0x20   :  { %13346 = vmatprep.subr.mxu1 %v15483_v4  ;;  %v296_v34 = vand.u32 4294901760, %v295_v52  ;;  %v15792_v32 = vsub.f32 %v115_v54, %v15774_v51  ;;  %v21276_v29 = vand.u32 4294901760, %v15760_v22  ;;  %v15805_v36 = vand.u32 4294901760, %v121_v45  ;;  %13305 = vmatprep.subr.mxu0 %v15523_v18 }
  0x21   :  { %13241 = vmatmul.mubr.f32.gmra.mxu0 %v276_v57  ;;  %13347 = vmatpush3.msra.mxu1 %v15483_v4  ;;  %v305_v1 = vsub.f32 %v15757_v15, %v20895_v55  ;;  %v15803_v52 = vsub.f32 %v118_v56, %v15780_v47  ;;  %v21277_v57 = vand.u32 4294901760, %v15772_v60  ;;  %v124_v55 = vsel %vm74_vm0, %v72_v40, 0 }
  0x22   :  { %v315_v59 = vsub.f32 %v15760_v22, %v21276_v29  ;;  %13278 = vmatmul.mubr.f32.gmra.mxu1 %v15622_v61  ;;  %13243 = vmatprep.mubr.f32.mxu0 %v286_v58  ;;  %v334_v16 = vand.u32 4294901760, %v15792_v32  ;;  %v127_v27 = vsel %vm74_vm0, %v73_v33, 0  ;;  %v15818_v61 = vsub.f32 %v121_v45, %v15805_v36 }
  0x23   :  { %v325_v54 = vsub.f32 %v15772_v60, %v21277_v57  ;;  %13280 = vmatprep.mubr.f32.mxu1 %v15652_v19  ;;  %v306_v29 = vand.u32 4294901760, %v305_v1  ;;  %v344_v56 = vand.u32 4294901760, %v15803_v52  ;;  %13306 = vmatpush3.msra.mxu0 %v15523_v18  ;;  %v15822_v58 = vand.u32 4294901760, %v124_v55 }
  0x24   :  { %13348 = vmatprep.subr.mxu1 %v15485_v5  ;;  %v15824_v57 = vand.u32 4294901760, %v127_v27  ;;  %v316_v40 = vand.u32 4294901760, %v315_v59  ;;  %v335_v1 = vsub.f32 %v15792_v32, %v334_v16  ;;  %v354_v33 = vand.u32 4294901760, %v15818_v61  ;;  %13307 = vmatprep.subr.mxu0 %v15533_v21 }
  0x25   :  { %13244 = vmatmul.mubr.f32.gmra.mxu0 %v296_v34  ;;  %13349 = vmatpush3.msra.mxu1 %v15485_v5  ;;  %v326_v18 = vand.u32 4294901760, %v325_v54  ;;  %v345_v45 = vsub.f32 %v15803_v52, %v344_v56  ;;  %v15836_v19 = vsub.f32 %v124_v55, %v15822_v58  ;;  %vm2624_vm1 = vcmask 130048  }
  0x26   :  { %13281 = vmatmul.mubr.f32.gmra.mxu1 %v15656_v23  ;;  %13246 = vmatprep.mubr.f32.mxu0 %v306_v29  ;;  %v15839_v34 = vsub.f32 %v127_v27, %v15824_v57  ;;  %v336_v54 = vand.u32 4294901760, %v335_v1  ;;  %v355_v55 = vsub.f32 %v15818_v61, %v354_v33  ;;  %vm10501_vm3 = vcmask 261120  }
  0x27   :  { %13283 = vmatprep.mubr.f32.mxu1 %v15677_v48  ;;  %13308 = vmatpush3.msra.mxu0 %v15533_v21  ;;  %v364_v59 = vand.u32 4294901760, %v15836_v19  ;;  %v346_v29 = vand.u32 4294901760, %v345_v45 }
  0x28   :  { %13350 = vmatprep.subr.mxu1 %v15496_v9  ;;  %v374_v27 = vand.u32 4294901760, %v15839_v34  ;;  %13309 = vmatprep.subr.mxu0 %v15556_v30 }
  0x29   :  { %13247 = vmatmul.mubr.f32.gmra.mxu0 %v316_v40  ;;  %13351 = vmatpush3.msra.mxu1 %v15496_v9  ;;  %v365_v21 = vsub.f32 %v15836_v19, %v364_v59  ;;  %v356_v40 = vand.u32 4294901760, %v355_v55 }
  0x2a   :  { %13284 = vmatmul.mubr.f32.gmra.mxu1 %v15679_v49  ;;  %13249 = vmatprep.mubr.f32.mxu0 %v326_v18  ;;  %v375_v1 = vsub.f32 %v15839_v34, %v374_v27 }
  0x2b   :  { %13286 = vmatprep.mubr.f32.mxu1 %v15707_v13  ;;  %13310 = vmatpush3.msra.mxu0 %v15556_v30  ;;  %v366_v18 = vand.u32 4294901760, %v365_v21 }
  0x2c   :  { %13352 = vmatprep.subr.mxu1 %v15498_v10  ;;  %13311 = vmatprep.subr.mxu0 %v15559_v31  ;;  %v376_v30 = vand.u32 4294901760, %v375_v1 }
  0x2d   :  { %13250 = vmatmul.mubr.f32.gmra.mxu0 %v336_v54  ;;  %13353 = vmatpush3.msra.mxu1 %v15498_v10 }
  0x2e   :  { %13287 = vmatmul.mubr.f32.gmra.mxu1 %v15716_v41  ;;  %13252 = vmatprep.mubr.f32.mxu0 %v346_v29 }
  0x2f   :  { %13289 = vmatprep.mubr.f32.mxu1 %v15741_v2  ;;  %13312 = vmatpush3.msra.mxu0 %v15559_v31  ;;  %v21278_v31 = vand.u32 4294901760, %v15569_v35 }
  0x30   :  { %13354 = vmatprep.subr.mxu1 %v15500_v11  ;;  %13313 = vmatprep.subr.mxu0 %v15605_v53 }
  0x31   :  { %13253 = vmatmul.mubr.f32.gmra.mxu0 %v356_v40  ;;  %13355 = vmatpush3.msra.mxu1 %v15500_v11 }
  0x32   :  { %13290 = vmatmul.mubr.f32.gmra.mxu1 %v15743_v8  ;;  %13255 = vmatprep.mubr.f32.mxu0 %v366_v18 }
  0x33   :  { %13292 = vmatprep.mubr.f32.mxu1 %v15751_v43  ;;  %13314 = vmatpush3.msra.mxu0 %v15605_v53  ;;  %v21280_v53 = vand.u32 4294901760, %v15639_v6 }
  0x34   :  { %13356 = vmatprep.subr.mxu1 %v15520_v17  ;;  %13315 = vmatprep.subr.mxu0 %v15629_v63 }
  0x35   :  { %13256 = vmatmul.mubr.f32.gmra.mxu0 %v376_v30  ;;  %13357 = vmatpush3.msra.mxu1 %v15520_v17 }
  0x36   :  { %13293 = vmatmul.mubr.f32.gmra.mxu1 %v15774_v51  ;;  %13316 = vmatpush3.msra.mxu0 %v15629_v63  ;;  %v34_v63 = vld [vmem:[%s20879_s1 + $0xb0] sm:$0xff] }
  0x37   :  { %13295 = vmatprep.mubr.f32.mxu1 %v15780_v47  ;;  %13317 = vmatprep.mubr.f32.mxu0 %v15569_v35  ;;  %v21282_v35 = vand.u32 4294901760, %v15668_v42 }
  0x38   :  { %13387 = vmatprep.subr.mxu0 %v15539_v24  ;;  %13358 = vmatprep.subr.mxu1 %v15530_v20 }
  0x39   :  { %13318 = vmatmul.mubr.f32.vlgmr.msra.gmra.mxu0 %v15575_v37  ;;  %13359 = vmatpush3.msra.mxu1 %v15530_v20 }
  0x3a   :  { %13296 = vmatmul.mubr.f32.gmra.mxu1 %v15805_v36  ;;  %13320 = vmatprep.mubr.f32.mxu0 %v15639_v6  ;;  %v16018_v6 = vand.u32 4294901760, %v34_v63 }
  0x3b   :  { %13298 = vmatprep.mubr.f32.mxu1 %v15822_v58  ;;  %13388 = vmatpush3.msra.mxu0 %v15539_v24  ;;  %v21279_v24 = vand.u32 4294901760, %v15575_v37  ;;  %v21290_v37 = vand.u32 4294901760, %v15772_v60 }
  0x3c   :  { %13430 = vmatprep.subr.mxu1 %v15481_v3  ;;  %13389 = vmatprep.subr.mxu0 %v15542_v25 }
  0x3d   :  { %13321 = vmatmul.mubr.f32.gmra.mxu0 %v15645_v12 }
  0x3e   :  { %13299 = vmatmul.mubr.f32.gmra.mxu1 %v15824_v57  ;;  %13323 = vmatprep.mubr.f32.mxu0 %v15668_v42 }
  0x3f   :  { %13360 = vmatprep.mubr.f32.mxu1 %v21278_v31  ;;  %13390 = vmatpush3.msra.mxu0 %v15542_v25  ;;  %v21281_v25 = vand.u32 4294901760, %v15645_v12  ;;  %v33_v12 = vld [vmem:[%s20879_s1 + $0xa8] sm:$0xff] }
  0x40   :  { %13391 = vmatprep.subr.mxu0 %v15545_v26 }
  0x41   :  { %13324 = vmatmul.mubr.f32.gmra.mxu0 %v15675_v44 }
  0x42   :  { %13361 = vmatmul.mubr.f32.vlgmr.msra.gmra.mxu1 %v21279_v24  ;;  %13326 = vmatprep.mubr.f32.mxu0 %v15692_v0 }
  0x43   :  { %13431 = vmatpush3.msra.mxu1 %v15481_v3  ;;  %13363 = vmatprep.mubr.f32.mxu1 %v21280_v53  ;;  %v21283_v3 = vand.u32 4294901760, %v15675_v44 }
  0x44   :  { %13432 = vmatprep.subr.mxu1 %v15483_v4  ;;  %13392 = vmatpush3.msra.mxu0 %v15545_v26  ;;  %v21286_v26 = vand.u32 4294901760, %v15723_v50 }
  0x45   :  { %13327 = vmatmul.mubr.f32.gmra.mxu0 %v15695_v46  ;;  %13433 = vmatpush3.msra.mxu1 %v15483_v4  ;;  %v21284_v4 = vand.u32 4294901760, %v15692_v0  ;;  %v31_v0 = vld [vmem:[%s20879_s1 + $0x98] sm:$0xff] }
  0x46   :  { %13364 = vmatmul.mubr.f32.gmra.mxu1 %v21281_v25  ;;  %13329 = vmatprep.mubr.f32.mxu0 %v15723_v50 }
  0x47   :  { %13366 = vmatprep.mubr.f32.mxu1 %v21282_v35  ;;  %13434 = vmatprep.subr.mxu1 %v15485_v5 }
  0x48   :  { %13435 = vmatpush3.msra.mxu1 %v15485_v5  ;;  %13393 = vmatprep.subr.mxu0 %v15551_v28  ;;  %v21285_v5 = vand.u32 4294901760, %v15695_v46 }
  0x49   :  { %13330 = vmatmul.mubr.f32.gmra.mxu0 %v15735_v7  ;;  %13436 = vmatprep.subr.mxu1 %v15496_v9 }
  0x4a   :  { %13367 = vmatmul.mubr.f32.gmra.mxu1 %v21283_v3  ;;  %13332 = vmatprep.mubr.f32.mxu0 %v15757_v15 }
  0x4b   :  { %13369 = vmatprep.mubr.f32.mxu1 %v21284_v4  ;;  %13394 = vmatpush3.msra.mxu0 %v15551_v28  ;;  %v21288_v28 = vand.u32 4294901760, %v15757_v15 }
  0x4c   :  { %13437 = vmatpush3.msra.mxu1 %v15496_v9  ;;  %13395 = vmatprep.subr.mxu0 %v15578_v38  ;;  %v21287_v9 = vand.u32 4294901760, %v15735_v7  ;;  %v16064_v7 = vand.u32 4294901760, %v31_v0 }
  0x4d   :  { %13333 = vmatmul.mubr.f32.gmra.mxu0 %v15760_v22  ;;  %13438 = vmatprep.subr.mxu1 %v15498_v10 }
  0x4e   :  { %13370 = vmatmul.mubr.f32.gmra.mxu1 %v21285_v5  ;;  %13335 = vmatprep.mubr.f32.mxu0 %v15772_v60  ;;  %21308 = vst [vmem:[#allocation17_spill] sm:$0xff] %v16064_v7 }
  0x4f   :  { %13372 = vmatprep.mubr.f32.mxu1 %v21286_v26  ;;  %13396 = vmatpush3.msra.mxu0 %v15578_v38  ;;  %v21292_v38 = vld [vmem:[#allocation6_spill] sm:$0xff] }
  0x50   :  { %13439 = vmatpush3.msra.mxu1 %v15498_v10  ;;  %13397 = vmatprep.subr.mxu0 %v15581_v39  ;;  %v21289_v10 = vand.u32 4294901760, %v15760_v22  ;;  %v16031_v22 = vand.u32 4294901760, %v33_v12 }
  0x51   :  { %13336 = vmatmul.mubr.f32.gmra.mxu0 %v15792_v32  ;;  %13440 = vmatprep.subr.mxu1 %v15500_v11 }
  0x52   :  { %13373 = vmatmul.mubr.f32.gmra.mxu1 %v21287_v9  ;;  %13338 = vmatprep.mubr.f32.mxu0 %v15803_v52  ;;  %21301 = vst [vmem:[#allocation10_spill] sm:$0xff] %v16031_v22 }
  0x53   :  { %13375 = vmatprep.mubr.f32.mxu1 %v21288_v28  ;;  %13398 = vmatpush3.msra.mxu0 %v15581_v39  ;;  %v21294_v39 = vld [vmem:[#allocation8_spill] sm:$0xff] }
  0x54   :  { %13399 = vmatprep.subr.mxu0 %v15625_v62  ;;  %13441 = vmatpush3.msra.mxu1 %v15500_v11  ;;  %v21291_v11 = vld [vmem:[#allocation5_spill] sm:$0xff] }
  0x55   :  { %13339 = vmatmul.mubr.f32.gmra.mxu0 %v15818_v61  ;;  %13442 = vmatprep.subr.mxu1 %v15520_v17 }
  0x56   :  { %13376 = vmatmul.mubr.f32.gmra.mxu1 %v21289_v10  ;;  %13341 = vmatprep.mubr.f32.mxu0 %v15836_v19  ;;  %v16029_v19 = vsub.f32 %v34_v63, %v16018_v6 }
  0x57   :  { %13378 = vmatprep.mubr.f32.mxu1 %v21290_v37  ;;  %13400 = vmatpush3.msra.mxu0 %v15625_v62  ;;  %v21295_v62 = vld [vmem:[#allocation9_spill] sm:$0xff] }
  0x58   :  { %13401 = vmatprep.subr.mxu0 %v15650_v14  ;;  %13443 = vmatpush3.msra.mxu1 %v15520_v17  ;;  %v21293_v17 = vld [vmem:[#allocation7_spill] sm:$0xff]  ;;  %21300 = vst [vmem:[#allocation9_spill] sm:$0xff] %v16029_v19  ;;  %v16040_v44 = vand.u32 4294901760, %v16029_v19 }
  0x59   :  { %13342 = vmatmul.mubr.f32.gmra.mxu0 %v15839_v34  ;;  %13444 = vmatprep.subr.mxu1 %v15530_v20  ;;  %21298 = vst [vmem:[#allocation7_spill] sm:$0xff] %v16018_v6 }
  0x5a   :  { %13379 = vmatmul.mubr.f32.gmra.mxu1 %v334_v16  ;;  %13402 = vmatpush3.msra.mxu0 %v15650_v14  ;;  %21302 = vst [vmem:[#allocation11_spill] sm:$0xff] %v16040_v44 }
  0x5b   :  { %13381 = vmatprep.mubr.f32.mxu1 %v344_v56  ;;  %13403 = vmatprep.mubr.f32.mxu0 %v21291_v11 }
  0x5c   :  { %13445 = vmatpush3.msra.mxu1 %v15530_v20  ;;  %v35_v20 = vld [vmem:[%s20879_s1 + $0xb8] sm:$0xff] }
  0x5d   :  { %13404 = vmatmul.mubr.f32.vlgmr.msra.gmra.mxu0 %v21292_v38  ;;  %v16009_v61 = vand.u32 4294901760, %v35_v20 }
  0x5e   :  { %13382 = vmatmul.mubr.f32.gmra.mxu1 %v354_v33  ;;  %13406 = vmatprep.mubr.f32.mxu0 %v21293_v17 }
  0x5f   :  { %13384 = vmatprep.mubr.f32.mxu1 %v364_v59  ;;  %21296 = vst [vmem:[#allocation5_spill] sm:$0xff] %v16009_v61  ;;  %13473 = vmatprep.subr.mxu0 %v16009_v61 }
  0x60   :  { %13474 = vmatpush3.msra.mxu0 %v16009_v61 }
  0x61   :  { %13407 = vmatmul.mubr.f32.gmra.mxu0 %v21294_v39  ;;  %13475 = vmatprep.subr.mxu0 %v16018_v6 }
  0x62   :  { %13385 = vmatmul.mubr.f32.gmra.mxu1 %v374_v27  ;;  %13409 = vmatprep.mubr.f32.mxu0 %v21295_v62 }
  0x63   :  { %13446 = vmatprep.mubr.f32.mxu1 %v21291_v11  ;;  %13476 = vmatpush3.msra.mxu0 %v16018_v6 }
  0x64   :  { %13477 = vmatprep.subr.mxu0 %v16031_v22 }
  0x65   :  { %13410 = vmatmul.mubr.f32.gmra.mxu0 %v15656_v23 }
  0x66   :  { %13447 = vmatmul.mubr.f32.vlgmr.msra.gmra.mxu1 %v21292_v38  ;;  %13412 = vmatprep.mubr.f32.mxu0 %v15677_v48 }
  0x67   :  { %13449 = vmatprep.mubr.f32.mxu1 %v21293_v17  ;;  %13478 = vmatpush3.msra.mxu0 %v16031_v22 }
  0x69   :  { %13413 = vmatmul.mubr.f32.gmra.mxu0 %v15679_v49 }
  0x6a   :  { %13450 = vmatmul.mubr.f32.gmra.mxu1 %v21294_v39  ;;  %13415 = vmatprep.mubr.f32.mxu0 %v15707_v13 }
  0x6b   :  { %13452 = vmatprep.mubr.f32.mxu1 %v21295_v62 }
  0x6d   :  { %13416 = vmatmul.mubr.f32.gmra.mxu0 %v15716_v41 }
  0x6e   :  { %13453 = vmatmul.mubr.f32.gmra.mxu1 %v15656_v23  ;;  %13418 = vmatprep.mubr.f32.mxu0 %v15741_v2  ;;  %v32_v23 = vld [vmem:[%s20879_s1 + $0xa0] sm:$0xff] }
  0x6f   :  { %13455 = vmatprep.mubr.f32.mxu1 %v15677_v48  ;;  %v16044_v48 = vsub.f32 %v33_v12, %v16031_v22 }
  0x71   :  { %13419 = vmatmul.mubr.f32.gmra.mxu0 %v15743_v8  ;;  %21303 = vst [vmem:[#allocation12_spill] sm:$0xff] %v16044_v48 }
  0x72   :  { %13456 = vmatmul.mubr.f32.gmra.mxu1 %v15679_v49  ;;  %13421 = vmatprep.mubr.f32.mxu0 %v15751_v43  ;;  %v16046_v49 = vand.u32 4294901760, %v32_v23 }
  0x73   :  { %13458 = vmatprep.mubr.f32.mxu1 %v15707_v13  ;;  %v1555_v13 = vsub.f32 %v16029_v19, %v16040_v44 }
  0x74   :  { %21304 = vst [vmem:[#allocation13_spill] sm:$0xff] %v16046_v49  ;;  %13479 = vmatprep.subr.mxu0 %v16046_v49  ;;  %v16061_v50 = vsub.f32 %v32_v23, %v16046_v49 }
  0x75   :  { %13422 = vmatmul.mubr.f32.gmra.mxu0 %v15774_v51 }
  0x76   :  { %13459 = vmatmul.mubr.f32.gmra.mxu1 %v15716_v41  ;;  %13424 = vmatprep.mubr.f32.mxu0 %v15780_v47  ;;  %v16057_v41 = vand.u32 4294901760, %v16044_v48  ;;  %21307 = vst [vmem:[#allocation16_spill] sm:$0xff] %v16061_v50  ;;  %v16075_v15 = vand.u32 4294901760, %v16061_v50 }
  0x77   :  { %13461 = vmatprep.mubr.f32.mxu1 %v15741_v2  ;;  %13480 = vmatpush3.msra.mxu0 %v16046_v49  ;;  %v30_v2 = vld [vmem:[%s20879_s1 + $0x90] sm:$0xff] }
  0x78   :  { %21306 = vst [vmem:[#allocation15_spill] sm:$0xff] %v16057_v41  ;;  %21310 = vst [vmem:[#allocation19_spill] sm:$0xff] %v16075_v15  ;;  %v16077_v60 = vand.u32 4294901760, %v30_v2  ;;  %13481 = vmatprep.subr.mxu0 %v16064_v7  ;;  %v1569_v52 = vsub.f32 %v16061_v50, %v16075_v15 }
  0x79   :  { %13425 = vmatmul.mubr.f32.gmra.mxu0 %v15805_v36 }
  0x7a   :  { %13462 = vmatmul.mubr.f32.gmra.mxu1 %v15743_v8  ;;  %13427 = vmatprep.mubr.f32.mxu0 %v15822_v58  ;;  %v16070_v8 = vand.u32 4294901760, %v1555_v13  ;;  %21311 = vst [vmem:[#allocation20_spill] sm:$0xff] %v16077_v60  ;;  %v16094_v16 = vsub.f32 %v30_v2, %v16077_v60  ;;  %v16107_v33 = vand.u32 4294901760, %v1569_v52 }
  0x7b   :  { %13464 = vmatprep.mubr.f32.mxu1 %v15751_v43  ;;  %v1562_v43 = vsub.f32 %v16044_v48, %v16057_v41  ;;  %13482 = vmatpush3.msra.mxu0 %v16064_v7 }
  0x7c   :  { %21309 = vst [vmem:[#allocation18_spill] sm:$0xff] %v16070_v8  ;;  %21314 = vst [vmem:[#allocation23_spill] sm:$0xff] %v16094_v16  ;;  %13483 = vmatprep.subr.mxu0 %v16077_v60  ;;  %v16110_v45 = vand.u32 4294901760, %v16094_v16 }
  0x7d   :  { %13428 = vmatmul.mubr.f32.gmra.mxu0 %v15824_v57  ;;  %v16088_v32 = vand.u32 4294901760, %v1562_v43  ;;  %21317 = vst [vmem:[#allocation26_spill] sm:$0xff] %v16107_v33 }
  0x7e   :  { %13465 = vmatmul.mubr.f32.gmra.mxu1 %v15774_v51  ;;  %v16082_v51 = vsub.f32 %v31_v0, %v16064_v7  ;;  %21318 = vst [vmem:[#allocation27_spill] sm:$0xff] %v16110_v45  ;;  %13484 = vmatpush3.msra.mxu0 %v16077_v60  ;;  %v1583_v55 = vsub.f32 %v16094_v16, %v16110_v45 }
  0x7f   :  { %13467 = vmatprep.mubr.f32.mxu1 %v15780_v47  ;;  %v16016_v47 = vsub.f32 %v35_v20, %v16009_v61  ;;  %21313 = vst [vmem:[#allocation22_spill] sm:$0xff] %v16088_v32 }
  0x80   :  { %21312 = vst [vmem:[#allocation21_spill] sm:$0xff] %v16082_v51  ;;  %v16136_v40 = vand.u32 4294901760, %v1583_v55 }
  0x81   :  { %21297 = vst [vmem:[#allocation6_spill] sm:$0xff] %v16016_v47  ;;  %v16025_v14 = vand.u32 4294901760, %v16016_v47 }
  0x82   :  { %13468 = vmatmul.mubr.f32.gmra.mxu1 %v15805_v36  ;;  %v29_v36 = vld [vmem:[%s20879_s1 + $0x88] sm:$0xff]  ;;  %21324 = vst [vmem:[#allocation33_spill] sm:$0xff] %v16136_v40 }
  0x83   :  { %13470 = vmatprep.mubr.f32.mxu1 %v15822_v58  ;;  %21299 = vst [vmem:[#allocation8_spill] sm:$0xff] %v16025_v14  ;;  %v1548_v42 = vsub.f32 %v16016_v47, %v16025_v14  ;;  %v16096_v56 = vand.u32 4294901760, %v29_v36  ;;  %v16100_v58 = vand.u32 4294901760, %v16082_v51 }
  0x85   :  { %v16052_v46 = vand.u32 4294901760, %v1548_v42  ;;  %21315 = vst [vmem:[#allocation24_spill] sm:$0xff] %v16096_v56  ;;  %21316 = vst [vmem:[#allocation25_spill] sm:$0xff] %v16100_v58  ;;  %v16113_v34 = vsub.f32 %v29_v36, %v16096_v56  ;;  %v1576_v54 = vsub.f32 %v16082_v51, %v16100_v58  ;;  %13485 = vmatprep.subr.mxu0 %v16096_v56 }
  0x86   :  { %13471 = vmatmul.mubr.f32.gmra.mxu1 %v15824_v57  ;;  %v28_v57 = vld [vmem:[%s20879_s1 + $0x80] sm:$0xff]  ;;  %13486 = vmatpush3.msra.mxu0 %v16096_v56 }
  0x87   :  { %21305 = vst [vmem:[#allocation14_spill] sm:$0xff] %v16052_v46  ;;  %13492 = vmatprep.subr.mxu1 %v16052_v46  ;;  %21319 = vst [vmem:[#allocation28_spill] sm:$0xff] %v16113_v34  ;;  %v16116_v59 = vand.u32 4294901760, %v28_v57  ;;  %v16126_v27 = vand.u32 4294901760, %v16113_v34  ;;  %v16133_v21 = vand.u32 4294901760, %v1576_v54 }
  0x88   :  { %13493 = vmatpush3.msra.mxu1 %v16052_v46 }
  0x89   :  { %13494 = vmatprep.subr.mxu1 %v16070_v8  ;;  %21320 = vst [vmem:[#allocation29_spill] sm:$0xff] %v16116_v59  ;;  %21321 = vst [vmem:[#allocation30_spill] sm:$0xff] %v16126_v27  ;;  %v16129_v29 = vsub.f32 %v28_v57, %v16116_v59  ;;  %13487 = vmatprep.subr.mxu0 %v16116_v59  ;;  %v1590_v1 = vsub.f32 %v16113_v34, %v16126_v27 }
  0x8a   :  { %13495 = vmatpush3.msra.mxu1 %v16070_v8  ;;  %21323 = vst [vmem:[#allocation32_spill] sm:$0xff] %v16133_v21  ;;  %13488 = vmatpush3.msra.mxu0 %v16116_v59 }
  0x8b   :  { %13496 = vmatprep.subr.mxu1 %v16088_v32  ;;  %21322 = vst [vmem:[#allocation31_spill] sm:$0xff] %v16129_v29  ;;  %v16141_v18 = vand.u32 4294901760, %v16129_v29  ;;  %13511 = vmatprep.subr.mxu0 %v16016_v47  ;;  %v16147_v30 = vand.u32 4294901760, %v1590_v1 }
  0x8c   :  { %13497 = vmatpush3.msra.mxu1 %v16088_v32 }
  0x8d   :  { %13498 = vmatprep.subr.mxu1 %v16107_v33  ;;  %21325 = vst [vmem:[#allocation34_spill] sm:$0xff] %v16141_v18  ;;  %21326 = vst [vmem:[#allocation35_spill] sm:$0xff] %v16147_v30  ;;  %v1597_v31 = vsub.f32 %v16129_v29, %v16141_v18 }
  0x8e   :  { %13499 = vmatpush3.msra.mxu1 %v16107_v33 }
  0x8f   :  { %13500 = vmatprep.subr.mxu1 %v16133_v21  ;;  %v16153_v24 = vand.u32 4294901760, %v1597_v31 }
  0x90   :  { %13501 = vmatpush3.msra.mxu1 %v16133_v21 }
  0x91   :  { %13502 = vmatprep.subr.mxu1 %v16136_v40  ;;  %21327 = vst [vmem:[#allocation36_spill] sm:$0xff] %v16153_v24 }
  0x92   :  { %13503 = vmatpush3.msra.mxu1 %v16136_v40 }
  0x93   :  { %13504 = vmatprep.subr.mxu1 %v16147_v30 }
  0x94   :  { %13505 = vmatpush3.msra.mxu1 %v16147_v30 }
  0x95   :  { %13506 = vmatprep.subr.mxu1 %v16153_v24 }
  0x96   :  { %13507 = vmatpush3.msra.mxu1 %v16153_v24 }
  0x97   :  { %13530 = vmatprep.subr.mxu1 %v16009_v61 }
  0xd5   :  { %v13233_v53 = vpop.f32.mrf.mxu0 }
  0xd7   :  { %v16160_v25 = vpop.f32.mrf.mxu0 }
  0xd9   :  { %v13236_v35 = vpop.f32.mrf.mxu0 }
  0xdb   :  { %v16162_v3 = vpop.f32.mrf.mxu0 }
  0xdc   :  { %21328 = vst [vmem:[#allocation37_spill] sm:$0xff] %v16162_v3 }
  0xdd   :  { %v13239_v4 = vpop.f32.mrf.mxu0  ;;  %v13276_v5 = vpop.f32.mrf.mxu1 }
  0xde   :  { %v496_v26 = vadd.f32 %v13276_v5, %v13233_v53 }
  0xdf   :  { %v16164_v9 = vpop.f32.mrf.mxu0  ;;  %v16166_v28 = vpop.f32.mrf.mxu1 }
  0xe0   :  { %21329 = vst [vmem:[#allocation38_spill] sm:$0xff] %v16164_v9 }
  0xe1   :  { %v13242_v10 = vpop.f32.mrf.mxu0 }
  0xe2   :  { %v13279_v37 = vpop.f32.mrf.mxu1 }
  0xe3   :  { %v508_v11 = vadd.f32 %v13279_v37, %v13236_v35  ;;  %v16168_v38 = vpop.f32.mrf.mxu0 }
  0xe4   :  { %21330 = vst [vmem:[#allocation39_spill] sm:$0xff] %v16168_v38  ;;  %v16170_v17 = vpop.f32.mrf.mxu1 }
  0xe5   :  { %21331 = vst [vmem:[#allocation40_spill] sm:$0xff] %v16170_v17  ;;  %v13245_v39 = vpop.f32.mrf.mxu0 }
  0xe6   :  { %v13282_v62 = vpop.f32.mrf.mxu1 }
  0xe7   :  { %v520_v20 = vadd.f32 %v13282_v62, %v13239_v4  ;;  %v16172_v63 = vpop.f32.mrf.mxu0 }
  0xe8   :  { %21332 = vst [vmem:[#allocation41_spill] sm:$0xff] %v16172_v63  ;;  %v16174_v12 = vpop.f32.mrf.mxu1 }
  0xe9   :  { %21333 = vst [vmem:[#allocation42_spill] sm:$0xff] %v16174_v12  ;;  %v13248_v23 = vpop.f32.mrf.mxu0 }
  0xea   :  { %v13285_v42 = vpop.f32.mrf.mxu1 }
  0xeb   :  { %v532_v0 = vadd.f32 %v13285_v42, %v13242_v10  ;;  %v16176_v13 = vpop.f32.mrf.mxu0 }
  0xec   :  { %21334 = vst [vmem:[#allocation43_spill] sm:$0xff] %v16176_v13  ;;  %v16178_v2 = vpop.f32.mrf.mxu1 }
  0xed   :  { %21335 = vst [vmem:[#allocation44_spill] sm:$0xff] %v16178_v2  ;;  %v13251_v43 = vpop.f32.mrf.mxu0 }
  0xee   :  { %v13288_v36 = vpop.f32.mrf.mxu1 }
  0xef   :  { %v544_v52 = vadd.f32 %v13288_v36, %v13245_v39  ;;  %v16180_v57 = vpop.f32.mrf.mxu0 }
  0xf0   :  { %21336 = vst [vmem:[#allocation45_spill] sm:$0xff] %v16180_v57  ;;  %v16182_v54 = vpop.f32.mrf.mxu1 }
  0xf1   :  { %21337 = vst [vmem:[#allocation46_spill] sm:$0xff] %v16182_v54  ;;  %v13254_v55 = vpop.f32.mrf.mxu0 }
  0xf2   :  { %v13291_v1 = vpop.f32.mrf.mxu1 }
  0xf3   :  { %v556_v31 = vadd.f32 %v13291_v1, %v13248_v23  ;;  %v16184_v53 = vpop.f32.mrf.mxu0 }
  0xf4   :  { %21338 = vst [vmem:[#allocation47_spill] sm:$0xff] %v16184_v53  ;;  %v16186_v35 = vpop.f32.mrf.mxu1 }
  0xf5   :  { %21339 = vst [vmem:[#allocation48_spill] sm:$0xff] %v16186_v35  ;;  %v13257_v4 = vpop.f32.mrf.mxu0 }
  0xf6   :  { %v13294_v5 = vpop.f32.mrf.mxu1 }
  0xf7   :  { %v568_v10 = vadd.f32 %v13294_v5, %v13251_v43  ;;  %v16188_v37 = vpop.f32.mrf.mxu0 }
  0xf8   :  { %v16190_v62 = vpop.f32.mrf.mxu1 }
  0xf9   :  { %21340 = vst [vmem:[#allocation49_spill] sm:$0xff] %v16190_v62  ;;  %v13319_v42 = vpop.f32.mrf.mxu0 }
  0xfa   :  { %v13297_v39 = vpop.f32.mrf.mxu1  ;;  %v687_v36 = vadd.f32 %v13319_v42, %v496_v26 }
  0xfb   :  { %v580_v57 = vadd.f32 %v13297_v39, %v13254_v55  ;;  %v16192_v13 = vpop.f32.mrf.mxu0 }
  0xfc   :  { %21341 = vst [vmem:[#allocation50_spill] sm:$0xff] %v16192_v13  ;;  %v16194_v54 = vpop.f32.mrf.mxu1 }
  0xfd   :  { %21342 = vst [vmem:[#allocation51_spill] sm:$0xff] %v16194_v54  ;;  %v13322_v23 = vpop.f32.mrf.mxu0 }
  0xfe   :  { %v13300_v1 = vpop.f32.mrf.mxu1  ;;  %v701_v53 = vadd.f32 %v13322_v23, %v508_v11 }
  0xff   :  { %v16196_v63 = vadd.f32 %v13300_v1, %v13257_v4  ;;  %v16198_v35 = vpop.f32.mrf.mxu0 }
 0x100   :  { %21343 = vst [vmem:[#allocation52_spill] sm:$0xff] %v16198_v35  ;;  %v16200_v43 = vpop.f32.mrf.mxu1 }
 0x101   :  { %v13325_v5 = vpop.f32.mrf.mxu0 }
 0x102   :  { %v715_v2 = vadd.f32 %v13325_v5, %v520_v20  ;;  %v13362_v62 = vpop.f32.mrf.mxu1 }
 0x103   :  { %v888_v38 = vadd.f32 %v13362_v62, %v687_v36  ;;  %v16202_v12 = vpop.f32.mrf.mxu0 }
 0x104   :  { %21344 = vst [vmem:[#allocation53_spill] sm:$0xff] %v16202_v12  ;;  %v16204_v26 = vpop.f32.mrf.mxu1 }
 0x105   :  { %21345 = vst [vmem:[#allocation54_spill] sm:$0xff] %v16204_v26  ;;  %v13328_v55 = vpop.f32.mrf.mxu0 }
 0x106   :  { %v729_v42 = vadd.f32 %v13328_v55, %v532_v0  ;;  %v13365_v39 = vpop.f32.mrf.mxu1 }
 0x107   :  { %v904_v54 = vadd.f32 %v13365_v39, %v701_v53  ;;  %v16206_v9 = vpop.f32.mrf.mxu0 }
 0x108   :  { %21346 = vst [vmem:[#allocation55_spill] sm:$0xff] %v16206_v9  ;;  %v16208_v11 = vpop.f32.mrf.mxu1 }
 0x109   :  { %21347 = vst [vmem:[#allocation56_spill] sm:$0xff] %v16208_v11  ;;  %v13331_v4 = vpop.f32.mrf.mxu0 }
 0x10a   :  { %v743_v23 = vadd.f32 %v13331_v4, %v544_v52  ;;  %v13368_v1 = vpop.f32.mrf.mxu1 }
 0x10b   :  { %v920_v35 = vadd.f32 %v13368_v1, %v715_v2  ;;  %v16210_v17 = vpop.f32.mrf.mxu0 }
 0x10c   :  { %21348 = vst [vmem:[#allocation57_spill] sm:$0xff] %v16210_v17  ;;  %v16212_v20 = vpop.f32.mrf.mxu1 }
 0x10d   :  { %21349 = vst [vmem:[#allocation58_spill] sm:$0xff] %v16212_v20  ;;  %v13334_v62 = vpop.f32.mrf.mxu0 }
 0x10e   :  { %v757_v36 = vadd.f32 %v13334_v62, %v556_v31  ;;  %v13371_v5 = vpop.f32.mrf.mxu1 }
 0x10f   :  { %v936_v12 = vadd.f32 %v13371_v5, %v729_v42  ;;  %v16214_v26 = vpop.f32.mrf.mxu0 }
 0x110   :  { %21350 = vst [vmem:[#allocation59_spill] sm:$0xff] %v16214_v26  ;;  %v16216_v0 = vpop.f32.mrf.mxu1 }
 0x111   :  { %21351 = vst [vmem:[#allocation60_spill] sm:$0xff] %v16216_v0  ;;  %v13337_v53 = vpop.f32.mrf.mxu0 }
 0x112   :  { %v771_v55 = vadd.f32 %v13337_v53, %v568_v10  ;;  %v13374_v39 = vpop.f32.mrf.mxu1 }
 0x113   :  { %v952_v9 = vadd.f32 %v13374_v39, %v743_v23  ;;  %v16218_v11 = vpop.f32.mrf.mxu0 }
 0x114   :  { %21352 = vst [vmem:[#allocation61_spill] sm:$0xff] %v16218_v11  ;;  %v16220_v52 = vpop.f32.mrf.mxu1 }
 0x115   :  { %21353 = vst [vmem:[#allocation62_spill] sm:$0xff] %v16220_v52  ;;  %v13340_v2 = vpop.f32.mrf.mxu0 }
 0x116   :  { %v785_v4 = vadd.f32 %v13340_v2, %v580_v57  ;;  %v13377_v1 = vpop.f32.mrf.mxu1 }
 0x117   :  { %v968_v17 = vadd.f32 %v13377_v1, %v757_v36  ;;  %v16222_v20 = vpop.f32.mrf.mxu0 }
 0x118   :  { %21354 = vst [vmem:[#allocation63_spill] sm:$0xff] %v16222_v20  ;;  %v16224_v31 = vpop.f32.mrf.mxu1 }
 0x119   :  { %21355 = vst [vmem:[#allocation64_spill] sm:$0xff] %v16224_v31  ;;  %v13343_v42 = vpop.f32.mrf.mxu0 }
 0x11a   :  { %v13380_v62 = vpop.f32.mrf.mxu1 }
 0x11b   :  { %v984_v5 = vadd.f32 %v13380_v62, %v771_v55  ;;  %v791_v26 = vpop.f32.mrf.mxu0 }
 0x11c   :  { %v16226_v0 = vpop.f32.mrf.mxu1 }
 0x11d   :  { %21356 = vst [vmem:[#allocation65_spill] sm:$0xff] %v16226_v0  ;;  %v13405_v10 = vpop.f32.mrf.mxu0 }
 0x11e   :  { %v13383_v23 = vpop.f32.mrf.mxu1  ;;  %v1117_v53 = vadd.f32 %v13405_v10, %v888_v38 }
 0x11f   :  { %v1000_v39 = vadd.f32 %v13383_v23, %v785_v4  ;;  %v16228_v11 = vpop.f32.mrf.mxu0 }
 0x120   :  { %21357 = vst [vmem:[#allocation66_spill] sm:$0xff] %v16228_v11  ;;  %v16230_v52 = vpop.f32.mrf.mxu1 }
 0x121   :  { %21358 = vst [vmem:[#allocation67_spill] sm:$0xff] %v16230_v52  ;;  %v13408_v57 = vpop.f32.mrf.mxu0 }
 0x122   :  { %v13386_v36 = vpop.f32.mrf.mxu1  ;;  %v1129_v2 = vadd.f32 %v13408_v57, %v904_v54 }
 0x123   :  { %v16232_v1 = vpop.f32.mrf.mxu0 }
 0x124   :  { %21359 = vst [vmem:[#allocation68_spill] sm:$0xff] %v16232_v1  ;;  %v1007_v20 = vpop.f32.mrf.mxu1 }
 0x125   :  { %v13411_v31 = vpop.f32.mrf.mxu0 }
 0x126   :  { %v1141_v3 = vadd.f32 %v13411_v31, %v920_v35  ;;  %v13448_v55 = vpop.f32.mrf.mxu1 }
 0x127   :  { %v16234_v62 = vadd.f32 %v13448_v55, %v1117_v53  ;;  %v16236_v0 = vpop.f32.mrf.mxu0 }
 0x128   :  { %21361 = vst [vmem:[#allocation70_spill] sm:$0xff] %v16236_v0  ;;  %v16238_v13 = vpop.f32.mrf.mxu1 }
 0x129   :  { %21360 = vst [vmem:[#allocation69_spill] sm:$0xff] %v16234_v62  ;;  %v13414_v38 = vpop.f32.mrf.mxu0 }
 0x12a   :  { %v1153_v4 = vadd.f32 %v13414_v38, %v936_v12  ;;  %v13451_v10 = vpop.f32.mrf.mxu1 }
 0x12b   :  { %v16240_v23 = vadd.f32 %v13451_v10, %v1129_v2  ;;  %v16242_v52 = vpop.f32.mrf.mxu0 }
 0x12c   :  { %21363 = vst [vmem:[#allocation72_spill] sm:$0xff] %v16242_v52  ;;  %v16244_v54 = vpop.f32.mrf.mxu1 }
 0x12d   :  { %21362 = vst [vmem:[#allocation71_spill] sm:$0xff] %v16240_v23  ;;  %v13417_v57 = vpop.f32.mrf.mxu0 }
 0x12e   :  { %v1165_v1 = vadd.f32 %v13417_v57, %v952_v9  ;;  %v13454_v11 = vpop.f32.mrf.mxu1 }
 0x12f   :  { %v16246_v35 = vadd.f32 %v13454_v11, %v1141_v3  ;;  %v16248_v31 = vpop.f32.mrf.mxu0 }
 0x130   :  { %21365 = vst [vmem:[#allocation74_spill] sm:$0xff] %v16248_v31  ;;  %v16250_v53 = vpop.f32.mrf.mxu1 }
 0x131   :  { %21364 = vst [vmem:[#allocation73_spill] sm:$0xff] %v16246_v35  ;;  %v13420_v55 = vpop.f32.mrf.mxu0 }
 0x132   :  { %v1177_v0 = vadd.f32 %v13420_v55, %v968_v17  ;;  %v13457_v62 = vpop.f32.mrf.mxu1 }
 0x133   :  { %v16252_v12 = vadd.f32 %v13457_v62, %v1153_v4  ;;  %v16254_v2 = vpop.f32.mrf.mxu0 }
 0x134   :  { %21366 = vst [vmem:[#allocation75_spill] sm:$0xff] %v16254_v2  ;;  %v16256_v38 = vpop.f32.mrf.mxu1 }
 0x135   :  { %v13423_v10 = vpop.f32.mrf.mxu0 }
 0x136   :  { %v1189_v23 = vadd.f32 %v13423_v10, %v984_v5  ;;  %v13460_v52 = vpop.f32.mrf.mxu1 }
 0x137   :  { %v16258_v9 = vadd.f32 %v13460_v52, %v1165_v1  ;;  %v16260_v3 = vpop.f32.mrf.mxu0  ;;  %v586_v52 = vadd.f32 %v16200_v43, %v16188_v37  ;;  %v799_v1 = vadd.f32 %v13343_v42, %v16196_v63 }
 0x138   :  { %21368 = vst [vmem:[#allocation77_spill] sm:$0xff] %v16260_v3  ;;  %v16262_v11 = vpop.f32.mrf.mxu1 }
 0x139   :  { %21367 = vst [vmem:[#allocation76_spill] sm:$0xff] %v16258_v9  ;;  %v13426_v57 = vpop.f32.mrf.mxu0 }
 0x13a   :  { %v1201_v31 = vadd.f32 %v13426_v57, %v1000_v39  ;;  %v13463_v35 = vpop.f32.mrf.mxu1  ;;  %v792_v39 = vadd.f32 %v791_v26, %v586_v52  ;;  %v1016_v57 = vadd.f32 %v13386_v36, %v799_v1 }
 0x13b   :  { %v16264_v17 = vadd.f32 %v13463_v35, %v1177_v0  ;;  %v16266_v62 = vpop.f32.mrf.mxu0 }
 0x13c   :  { %21370 = vst [vmem:[#allocation79_spill] sm:$0xff] %v16266_v62  ;;  %v16268_v4 = vpop.f32.mrf.mxu1 }
 0x13d   :  { %21369 = vst [vmem:[#allocation78_spill] sm:$0xff] %v16264_v17  ;;  %21371 = vst [vmem:[#allocation80_spill] sm:$0xff] %v16268_v4  ;;  %v13429_v5 = vpop.f32.mrf.mxu0  ;;  %v1008_v17 = vadd.f32 %v1007_v20, %v792_v39 }
 0x13e   :  { %v13466_v55 = vpop.f32.mrf.mxu1  ;;  %v1213_v9 = vadd.f32 %v13429_v5, %v1016_v57 }
 0x13f   :  { %v16270_v2 = vadd.f32 %v13466_v55, %v1189_v23  ;;  %v1206_v35 = vpop.f32.mrf.mxu0  ;;  %v11964_v55 = vld [vmem:[%s20879_s1 + $0x161] ss:$0 sm:$0xff] }
 0x140   :  { %v16272_v10 = vpop.f32.mrf.mxu1 }
 0x141   :  { %21372 = vst [vmem:[#allocation81_spill] sm:$0xff] %v16270_v2  ;;  %21373 = vst [vmem:[#allocation82_spill] sm:$0xff] %v16272_v10  ;;  %v1207_v2 = vadd.f32 %v1206_v35, %v1008_v17 }
 0x142   :  { %v13469_v3 = vpop.f32.mrf.mxu1 }
 0x143   :  { %v16277_v0 = vadd.f32 %v13469_v3, %v1201_v31 }
 0x144   :  { %v16279_v62 = vpop.f32.mrf.mxu1 }
 0x145   :  { %21374 = vst [vmem:[#allocation83_spill] sm:$0xff] %v16277_v0  ;;  %21375 = vst [vmem:[#allocation84_spill] sm:$0xff] %v16279_v62 }
 0x146   :  { %v13472_v23 = vpop.f32.mrf.mxu1 }
 0x147   :  { %v1394_v10 = vadd.f32 %v13472_v23, %v1213_v9 }
 0x148   :  { %v1387_v37 = vpop.f32.mrf.mxu1 }
 0x149   :  { %v16284_v43 = vadd.f32 %v11964_v55, %v1394_v10  ;;  %v1388_v63 = vadd.f32 %v1387_v37, %v1207_v2 }
 0x14b   :  { %v1433_v26 = vsel %vm74_vm0, %v16284_v43, 0  ;;  %v16288_v42 = vadd.f32 %v11964_v55, %v1388_v63 }
 0x14c   :  { %v16290_v36 = vand.u32 4294901760, %v1433_v26 }
 0x14d   :  { %v1430_v20 = vsel %vm74_vm0, %v16288_v42, 0 }
 0x14e   :  { %v1519_v31 = vsub.f32 %v1433_v26, %v16290_v36  ;;  %v1508_v3 = vand.u32 4294901760, %v1430_v20 }
 0x150   :  { %v1520_v5 = vand.u32 4294901760, %v1519_v31  ;;  %13508 = vmatprep.mubr.f32.mxu1 %v1508_v3  ;;  %v1509_v9 = vsub.f32 %v1430_v20, %v1508_v3 }
 0x151   :  { %13509 = vmatmul.mubr.f32.vlgmr.msra.gmra.mxu1 %v16290_v36 }
 0x152   :  { %13531 = vmatpush3.msra.mxu1 %v16009_v61  ;;  %v1510_v2 = vand.u32 4294901760, %v1509_v9  ;;  %v1521_v17 = vsub.f32 %v1519_v31, %v1520_v5 }
 0x153   :  { %13532 = vmatprep.subr.mxu1 %v16018_v6 }
 0x154   :  { %13533 = vmatpush3.msra.mxu1 %v16018_v6  ;;  %13546 = vmatprep.mubr.f32.mxu1 %v1510_v2  ;;  %v1511_v10 = vsub.f32 %v1509_v9, %v1510_v2  ;;  %v1522_v1 = vand.u32 4294901760, %v1521_v17 }
 0x155   :  { %13534 = vmatprep.subr.mxu1 %v16031_v22 }
 0x156   :  { %13535 = vmatpush3.msra.mxu1 %v16031_v22  ;;  %v1512_v52 = vand.u32 4294901760, %v1511_v10 }
 0x157   :  { %13536 = vmatprep.subr.mxu1 %v16046_v49 }
 0x158   :  { %13537 = vmatpush3.msra.mxu1 %v16046_v49  ;;  %13489 = vmatprep.mubr.f32.mxu0 %v1512_v52 }
 0x159   :  { %13538 = vmatprep.subr.mxu1 %v16064_v7  ;;  %13490 = vmatmul.mubr.f32.vlgmr.msra.gmra.mxu0 %v1522_v1 }
 0x15a   :  { %13512 = vmatpush3.msra.mxu0 %v16016_v47  ;;  %13539 = vmatpush3.msra.mxu1 %v16064_v7 }
 0x15b   :  { %13513 = vmatprep.subr.mxu0 %v16029_v19  ;;  %13527 = vmatprep.mubr.f32.mxu0 %v1509_v9 }
 0x15c   :  { %13540 = vmatprep.subr.mxu1 %v16077_v60  ;;  %13514 = vmatpush3.msra.mxu0 %v16029_v19 }
 0x15d   :  { %13541 = vmatpush3.msra.mxu1 %v16077_v60  ;;  %13515 = vmatprep.subr.mxu0 %v16044_v48 }
 0x15e   :  { %13542 = vmatprep.subr.mxu1 %v16096_v56  ;;  %13516 = vmatpush3.msra.mxu0 %v16044_v48 }
 0x15f   :  { %13543 = vmatpush3.msra.mxu1 %v16096_v56  ;;  %13517 = vmatprep.subr.mxu0 %v16061_v50 }
 0x160   :  { %13544 = vmatprep.subr.mxu1 %v16116_v59  ;;  %13518 = vmatpush3.msra.mxu0 %v16061_v50 }
 0x161   :  { %13545 = vmatpush3.msra.mxu1 %v16116_v59  ;;  %13519 = vmatprep.subr.mxu0 %v16082_v51 }
 0x162   :  { %13547 = vmatmul.mubr.f32.vlgmr.msra.gmra.mxu1 %v1520_v5  ;;  %13568 = vmatprep.subr.mxu1 %v16009_v61 }
 0x163   :  { %13520 = vmatpush3.msra.mxu0 %v16082_v51  ;;  %13569 = vmatpush3.msra.mxu1 %v16009_v61 }
 0x164   :  { %13584 = vmatprep.mubr.f32.mxu1 %v1508_v3  ;;  %13521 = vmatprep.subr.mxu0 %v16094_v16 }
 0x165   :  { %13570 = vmatprep.subr.mxu1 %v16018_v6  ;;  %13522 = vmatpush3.msra.mxu0 %v16094_v16 }
 0x166   :  { %13571 = vmatpush3.msra.mxu1 %v16018_v6  ;;  %13523 = vmatprep.subr.mxu0 %v16113_v34 }
 0x167   :  { %13572 = vmatprep.subr.mxu1 %v16031_v22  ;;  %13524 = vmatpush3.msra.mxu0 %v16113_v34 }
 0x168   :  { %13573 = vmatpush3.msra.mxu1 %v16031_v22  ;;  %13525 = vmatprep.subr.mxu0 %v16129_v29 }
 0x169   :  { %13574 = vmatprep.subr.mxu1 %v16046_v49  ;;  %13526 = vmatpush3.msra.mxu0 %v16129_v29 }
 0x16a   :  { %13575 = vmatpush3.msra.mxu1 %v16046_v49  ;;  %13528 = vmatmul.mubr.f32.vlgmr.msra.gmra.mxu0 %v1519_v31 }
 0x16b   :  { %13549 = vmatprep.subr.mxu0 %v16025_v14  ;;  %13576 = vmatprep.subr.mxu1 %v16064_v7 }
 0x16c   :  { %13550 = vmatpush3.msra.mxu0 %v16025_v14  ;;  %13565 = vmatprep.mubr.f32.mxu0 %v1508_v3 }
 0x16d   :  { %13577 = vmatpush3.msra.mxu1 %v16064_v7  ;;  %13551 = vmatprep.subr.mxu0 %v16040_v44 }
 0x16e   :  { %13578 = vmatprep.subr.mxu1 %v16077_v60  ;;  %13552 = vmatpush3.msra.mxu0 %v16040_v44 }
 0x16f   :  { %13579 = vmatpush3.msra.mxu1 %v16077_v60  ;;  %13553 = vmatprep.subr.mxu0 %v16057_v41 }
 0x170   :  { %13580 = vmatprep.subr.mxu1 %v16096_v56  ;;  %13554 = vmatpush3.msra.mxu0 %v16057_v41 }
 0x171   :  { %13581 = vmatpush3.msra.mxu1 %v16096_v56  ;;  %13555 = vmatprep.subr.mxu0 %v16075_v15 }
 0x172   :  { %13582 = vmatprep.subr.mxu1 %v16116_v59  ;;  %13556 = vmatpush3.msra.mxu0 %v16075_v15 }
 0x173   :  { %13583 = vmatpush3.msra.mxu1 %v16116_v59  ;;  %13557 = vmatprep.subr.mxu0 %v16100_v58 }
 0x174   :  { %13585 = vmatmul.mubr.f32.vlgmr.msra.gmra.mxu1 %v16290_v36  ;;  %13558 = vmatpush3.msra.mxu0 %v16100_v58 }
 0x175   :  { %13559 = vmatprep.subr.mxu0 %v16110_v45  ;;  %13606 = vmatprep.subr.mxu1 %v16052_v46 }
 0x176   :  { %13560 = vmatpush3.msra.mxu0 %v16110_v45  ;;  %13607 = vmatpush3.msra.mxu1 %v16052_v46 }
 0x177   :  { %13561 = vmatprep.subr.mxu0 %v16126_v27  ;;  %13608 = vmatprep.subr.mxu1 %v16070_v8 }
 0x178   :  { %13562 = vmatpush3.msra.mxu0 %v16126_v27  ;;  %13609 = vmatpush3.msra.mxu1 %v16070_v8 }
 0x179   :  { %13563 = vmatprep.subr.mxu0 %v16141_v18  ;;  %13610 = vmatprep.subr.mxu1 %v16088_v32 }
 0x17a   :  { %13564 = vmatpush3.msra.mxu0 %v16141_v18  ;;  %13611 = vmatpush3.msra.mxu1 %v16088_v32 }
 0x17b   :  { %13566 = vmatmul.mubr.f32.vlgmr.msra.gmra.mxu0 %v16290_v36  ;;  %13612 = vmatprep.subr.mxu1 %v16107_v33 }
 0x17c   :  { %13613 = vmatpush3.msra.mxu1 %v16107_v33  ;;  %13587 = vmatprep.subr.mxu0 %v16009_v61 }
 0x17d   :  { %13614 = vmatprep.subr.mxu1 %v16133_v21  ;;  %13588 = vmatpush3.msra.mxu0 %v16009_v61 }
 0x17e   :  { %13615 = vmatpush3.msra.mxu1 %v16133_v21  ;;  %13589 = vmatprep.subr.mxu0 %v16018_v6 }
 0x17f   :  { %13616 = vmatprep.subr.mxu1 %v16136_v40  ;;  %13590 = vmatpush3.msra.mxu0 %v16018_v6 }
 0x180   :  { %13617 = vmatpush3.msra.mxu1 %v16136_v40  ;;  %13591 = vmatprep.subr.mxu0 %v16031_v22 }
 0x181   :  { %13618 = vmatprep.subr.mxu1 %v16147_v30  ;;  %13592 = vmatpush3.msra.mxu0 %v16031_v22 }
 0x182   :  { %13619 = vmatpush3.msra.mxu1 %v16147_v30  ;;  %13593 = vmatprep.subr.mxu0 %v16046_v49 }
 0x183   :  { %13620 = vmatprep.subr.mxu1 %v16153_v24  ;;  %13594 = vmatpush3.msra.mxu0 %v16046_v49 }
 0x184   :  { %13621 = vmatpush3.msra.mxu1 %v16153_v24  ;;  %13595 = vmatprep.subr.mxu0 %v16064_v7 }
 0x185   :  { %13644 = vmatprep.subr.mxu1 %v16009_v61  ;;  %13596 = vmatpush3.msra.mxu0 %v16064_v7 }
 0x186   :  { %13597 = vmatprep.subr.mxu0 %v16077_v60 }
 0x187   :  { %13598 = vmatpush3.msra.mxu0 %v16077_v60 }
 0x188   :  { %13599 = vmatprep.subr.mxu0 %v16096_v56 }
 0x189   :  { %13600 = vmatpush3.msra.mxu0 %v16096_v56 }
 0x18a   :  { %13601 = vmatprep.subr.mxu0 %v16116_v59 }
 0x18b   :  { %13602 = vmatpush3.msra.mxu0 %v16116_v59 }
 0x18c   :  { %13625 = vmatprep.subr.mxu0 %v16016_v47 }
 0x211   :  { %v13510_v57 = vpop.f32.mrf.mxu1 }
 0x213   :  { %v1635_v55 = vpop.f32.mrf.mxu1 }
 0x219   :  { %v13491_v39 = vpop.f32.mrf.mxu0 }
 0x21a   :  { %v1642_v37 = vadd.f32 %v13510_v57, %v13491_v39 }
 0x21b   :  { %v1514_v35 = vpop.f32.mrf.mxu0 }
 0x21c   :  { %v1636_v36 = vadd.f32 %v1635_v55, %v1514_v35 }
 0x222   :  { %v13548_v63 = vpop.f32.mrf.mxu1 }
 0x224   :  { %v1817_v3 = vpop.f32.mrf.mxu1 }
 0x22a   :  { %v13529_v23 = vpop.f32.mrf.mxu0 }
 0x22b   :  { %v1737_v20 = vadd.f32 %v13529_v23, %v1642_v37 }
 0x22c   :  { %v1729_v26 = vpop.f32.mrf.mxu0 }
 0x22d   :  { %v1730_v31 = vadd.f32 %v1729_v26, %v1636_v36  ;;  %v1826_v5 = vadd.f32 %v13548_v63, %v1737_v20 }
 0x22f   :  { %v1818_v10 = vadd.f32 %v1817_v3, %v1730_v31 }
 0x234   :  { %v13586_v9 = vpop.f32.mrf.mxu1 }
 0x236   :  { %v2005_v0 = vpop.f32.mrf.mxu1 }
 0x23b   :  { %v13567_v2 = vpop.f32.mrf.mxu0 }
 0x23c   :  { %v1927_v17 = vadd.f32 %v13567_v2, %v1826_v5  ;;  %v40_v5 = vld [vmem:[%s20879_s1 + $0xe0] sm:$0xff] }
 0x23d   :  { %v1920_v52 = vpop.f32.mrf.mxu0 }
 0x23e   :  { %v2012_v1 = vadd.f32 %v13586_v9, %v1927_v17  ;;  %v1921_v24 = vadd.f32 %v1920_v52, %v1818_v10  ;;  %v2626_v9 = vsel %vm2624_vm1, %v40_v5, 0 }
 0x23f   :  { %v16478_v2 = vand.u32 4294901760, %v2626_v9 }
 0x240   :  { %v16395_v30 = vsub.f32 %v16284_v43, %v2012_v1  ;;  %v2006_v62 = vadd.f32 %v2005_v0, %v1921_v24 }
 0x241   :  { %v16481_v17 = vsub.f32 %v2626_v9, %v16478_v2 }
 0x242   :  { %v2018_v39 = vmul.f32 %v16395_v30, %v16395_v30  ;;  %v16400_v57 = vsub.f32 %v16288_v42, %v2006_v62 }
 0x243   :  { %v20908_v10 = vand.u32 4294901760, %v16481_v17 }
 0x244   :  { %v2017_v35 = vmul.f32 %v16400_v57, %v16400_v57  ;;  %v2023_v23 = vsel %vm74_vm0, %v2018_v39, 0 }
 0x245   :  { %v16405_v55 = vand.u32 4294901760, %v2023_v23  ;;  %v2743_v52 = vsub.f32 %v16481_v17, %v20908_v10 }
 0x246   :  { %v2020_v37 = vsel %vm74_vm0, %v2017_v35, 0 }
 0x247   :  { %v2098_v63 = vand.u32 4294901760, %v2020_v37  ;;  %v2109_v26 = vsub.f32 %v2023_v23, %v16405_v55  ;;  %v2744_v1 = vand.u32 4294901760, %v2743_v52 }
 0x249   :  { %13622 = vmatprep.mubr.f32.mxu1 %v2098_v63  ;;  %v2099_v24 = vsub.f32 %v2020_v37, %v2098_v63  ;;  %v2110_v0 = vand.u32 4294901760, %v2109_v26 }
 0x24a   :  { %13623 = vmatmul.mubr.f32.vlgmr.msra.gmra.mxu1 %v16405_v55 }
 0x24b   :  { %13645 = vmatpush3.msra.mxu1 %v16009_v61  ;;  %v2100_v62 = vand.u32 4294901760, %v2099_v24  ;;  %v2111_v36 = vsub.f32 %v2109_v26, %v2110_v0 }
 0x24c   :  { %13646 = vmatprep.subr.mxu1 %v16018_v6 }
 0x24d   :  { %13647 = vmatpush3.msra.mxu1 %v16018_v6  ;;  %13660 = vmatprep.mubr.f32.mxu1 %v2100_v62  ;;  %v2101_v20 = vsub.f32 %v2099_v24, %v2100_v62  ;;  %v2112_v3 = vand.u32 4294901760, %v2111_v36 }
 0x24e   :  { %13648 = vmatprep.subr.mxu1 %v16031_v22 }
 0x24f   :  { %13649 = vmatpush3.msra.mxu1 %v16031_v22  ;;  %v2102_v31 = vand.u32 4294901760, %v2101_v20 }
 0x250   :  { %13650 = vmatprep.subr.mxu1 %v16046_v49 }
 0x251   :  { %13651 = vmatpush3.msra.mxu1 %v16046_v49  ;;  %13603 = vmatprep.mubr.f32.mxu0 %v2102_v31 }
 0x252   :  { %13652 = vmatprep.subr.mxu1 %v16064_v7  ;;  %13604 = vmatmul.mubr.f32.vlgmr.msra.gmra.mxu0 %v2112_v3 }
 0x253   :  { %13626 = vmatpush3.msra.mxu0 %v16016_v47  ;;  %13653 = vmatpush3.msra.mxu1 %v16064_v7 }
 0x254   :  { %13627 = vmatprep.subr.mxu0 %v16029_v19  ;;  %13641 = vmatprep.mubr.f32.mxu0 %v2099_v24 }
 0x255   :  { %13654 = vmatprep.subr.mxu1 %v16077_v60  ;;  %13628 = vmatpush3.msra.mxu0 %v16029_v19 }
 0x256   :  { %13655 = vmatpush3.msra.mxu1 %v16077_v60  ;;  %13629 = vmatprep.subr.mxu0 %v16044_v48 }
 0x257   :  { %13656 = vmatprep.subr.mxu1 %v16096_v56  ;;  %13630 = vmatpush3.msra.mxu0 %v16044_v48 }
 0x258   :  { %13657 = vmatpush3.msra.mxu1 %v16096_v56  ;;  %13631 = vmatprep.subr.mxu0 %v16061_v50 }
 0x259   :  { %13658 = vmatprep.subr.mxu1 %v16116_v59  ;;  %13632 = vmatpush3.msra.mxu0 %v16061_v50 }
 0x25a   :  { %13659 = vmatpush3.msra.mxu1 %v16116_v59  ;;  %13633 = vmatprep.subr.mxu0 %v16082_v51 }
 0x25b   :  { %13661 = vmatmul.mubr.f32.vlgmr.msra.gmra.mxu1 %v2110_v0  ;;  %13682 = vmatprep.subr.mxu1 %v16009_v61 }
 0x25c   :  { %13634 = vmatpush3.msra.mxu0 %v16082_v51  ;;  %13683 = vmatpush3.msra.mxu1 %v16009_v61 }
 0x25d   :  { %13698 = vmatprep.mubr.f32.mxu1 %v2098_v63  ;;  %13635 = vmatprep.subr.mxu0 %v16094_v16 }
 0x25e   :  { %13684 = vmatprep.subr.mxu1 %v16018_v6  ;;  %13636 = vmatpush3.msra.mxu0 %v16094_v16 }
 0x25f   :  { %13685 = vmatpush3.msra.mxu1 %v16018_v6  ;;  %13637 = vmatprep.subr.mxu0 %v16113_v34 }
 0x260   :  { %13686 = vmatprep.subr.mxu1 %v16031_v22  ;;  %13638 = vmatpush3.msra.mxu0 %v16113_v34 }
 0x261   :  { %13687 = vmatpush3.msra.mxu1 %v16031_v22  ;;  %13639 = vmatprep.subr.mxu0 %v16129_v29 }
 0x262   :  { %13688 = vmatprep.subr.mxu1 %v16046_v49  ;;  %13640 = vmatpush3.msra.mxu0 %v16129_v29 }
 0x263   :  { %13689 = vmatpush3.msra.mxu1 %v16046_v49  ;;  %13642 = vmatmul.mubr.f32.vlgmr.msra.gmra.mxu0 %v2109_v26 }
 0x264   :  { %13663 = vmatprep.subr.mxu0 %v16025_v14  ;;  %13690 = vmatprep.subr.mxu1 %v16064_v7 }
 0x265   :  { %13664 = vmatpush3.msra.mxu0 %v16025_v14  ;;  %13679 = vmatprep.mubr.f32.mxu0 %v2098_v63 }
 0x266   :  { %13691 = vmatpush3.msra.mxu1 %v16064_v7  ;;  %13665 = vmatprep.subr.mxu0 %v16040_v44 }
 0x267   :  { %13692 = vmatprep.subr.mxu1 %v16077_v60  ;;  %13666 = vmatpush3.msra.mxu0 %v16040_v44 }
 0x268   :  { %13693 = vmatpush3.msra.mxu1 %v16077_v60  ;;  %13667 = vmatprep.subr.mxu0 %v16057_v41 }
 0x269   :  { %13694 = vmatprep.subr.mxu1 %v16096_v56  ;;  %13668 = vmatpush3.msra.mxu0 %v16057_v41 }
 0x26a   :  { %13695 = vmatpush3.msra.mxu1 %v16096_v56  ;;  %13669 = vmatprep.subr.mxu0 %v16075_v15 }
 0x26b   :  { %13696 = vmatprep.subr.mxu1 %v16116_v59  ;;  %13670 = vmatpush3.msra.mxu0 %v16075_v15 }
 0x26c   :  { %13697 = vmatpush3.msra.mxu1 %v16116_v59  ;;  %13671 = vmatprep.subr.mxu0 %v16100_v58 }
 0x26d   :  { %13699 = vmatmul.mubr.f32.vlgmr.msra.gmra.mxu1 %v16405_v55  ;;  %13672 = vmatpush3.msra.mxu0 %v16100_v58 }
 0x26e   :  { %13673 = vmatprep.subr.mxu0 %v16110_v45  ;;  %13733 = vmatprep.mubr.f32.mxu1 %v16478_v2 }
 0x26f   :  { %13674 = vmatpush3.msra.mxu0 %v16110_v45 }
 0x270   :  { %13675 = vmatprep.subr.mxu0 %v16126_v27 }
 0x271   :  { %13676 = vmatpush3.msra.mxu0 %v16126_v27 }
 0x272   :  { %13677 = vmatprep.subr.mxu0 %v16141_v18 }
 0x273   :  { %13678 = vmatpush3.msra.mxu0 %v16141_v18 }
 0x274   :  { %13680 = vmatmul.mubr.f32.vlgmr.msra.gmra.mxu0 %v16405_v55 }
 0x275   :  { %13705 = vmatprep.mubr.f32.mxu0 %v2744_v1 }
 0x30a   :  { %v13624_v35 = vpop.f32.mrf.mxu1 }
 0x30c   :  { %v2225_v26 = vpop.f32.mrf.mxu1 }
 0x312   :  { %v13605_v39 = vpop.f32.mrf.mxu0 }
 0x313   :  { %v2115_v55 = vadd.f32 1e-05, %v13605_v39 }
 0x314   :  { %v2104_v23 = vpop.f32.mrf.mxu0 }
 0x315   :  { %v2105_v63 = vadd.f32 1e-05, %v2104_v23  ;;  %v2232_v24 = vadd.f32 %v13624_v35, %v2115_v55  ;;  %v41_v35 = vld [vmem:[%s20879_s1 + $0xe8] sm:$0xff]  ;;  %v42_v23 = vld [vmem:[%s20879_s1 + $0xf0] sm:$0xff] }
 0x316   :  { %v2629_v55 = vsel %vm2624_vm1, %v41_v35, 0 }
 0x317   :  { %v2226_v20 = vadd.f32 %v2225_v26, %v2105_v63  ;;  %v45_v63 = vld [vmem:[%s20879_s1 + $0x108] sm:$0xff]  ;;  %v46_v26 = vld [vmem:[%s20879_s1 + $0x110] sm:$0xff] }
 0x31b   :  { %v13662_v0 = vpop.f32.mrf.mxu1 }
 0x31d   :  { %v2407_v3 = vpop.f32.mrf.mxu1 }
 0x323   :  { %v13643_v37 = vpop.f32.mrf.mxu0 }
 0x324   :  { %v2327_v36 = vadd.f32 %v13643_v37, %v2232_v24  ;;  %v1425_v24 = vlaneseq }
 0x325   :  { %v2319_v62 = vpop.f32.mrf.mxu0 }
 0x326   :  { %v2320_v31 = vadd.f32 %v2319_v62, %v2226_v20  ;;  %v2416_v5 = vadd.f32 %v13662_v0, %v2327_v36  ;;  %v2641_v36 = vsel %vm2624_vm1, %v45_v63, 0  ;;  %v11966_v63 = vld [vmem:[%s20879_s1 + $0x166] ss:$0 sm:$0xff] }
 0x328   :  { %v2408_v52 = vadd.f32 %v2407_v3, %v2320_v31  ;;  %v2644_v3 = vsel %vm2624_vm1, %v46_v26, 0 }
 0x32d   :  { %v13700_v9 = vpop.f32.mrf.mxu1 }
 0x32f   :  { %v2595_v58 = vpop.f32.mrf.mxu1 }
 0x334   :  { %v13681_v18 = vpop.f32.mrf.mxu0 }
 0x335   :  { %v2517_v10 = vadd.f32 %v13681_v18, %v2416_v5  ;;  %v43_v18 = vld [vmem:[%s20879_s1 + $0xf8] sm:$0xff] }
 0x336   :  { %v2510_v1 = vpop.f32.mrf.mxu0  ;;  %v47_v5 = vld [vmem:[%s20879_s1 + $0x118] sm:$0xff] }
 0x337   :  { %v2602_v27 = vadd.f32 %v13700_v9, %v2517_v10  ;;  %v2511_v45 = vadd.f32 %v2510_v1, %v2408_v52  ;;  %v2632_v10 = vsel %vm2624_vm1, %v42_v23, 0  ;;  %v11965_v1 = vld [vmem:[%s20879_s1 + $0x165] ss:$0 sm:$0xff]  ;;  %v16537_v23 = vand.u32 4294901760, %v2641_v36 }
 0x338   :  { %v16505_v37 = vand.u32 4294901760, %v2632_v10 }
 0x339   :  { %15266 = vrsqrt.f32 %v2602_v27  ;;  %v2596_v39 = vadd.f32 %v2595_v58, %v2511_v45  ;;  %v2635_v27 = vsel %vm2624_vm1, %v43_v18, 0  ;;  %v44_v58 = vld [vmem:[%s20879_s1 + $0x100] sm:$0xff]  ;;  %v16503_v45 = vand.u32 4294901760, %v2629_v55 }
 0x33a   :  { %v16513_v0 = vand.u32 4294901760, %v2635_v27  ;;  %v2638_v62 = vsel %vm2624_vm1, %v44_v58, 0  ;;  %v16521_v31 = vsub.f32 %v2632_v10, %v16505_v37  ;;  %v2647_v10 = vsel %vm2624_vm1, %v47_v5, 0 }
 0x33b   :  { %15268 = vrsqrt.f32 %v2596_v39  ;;  %v16518_v20 = vsub.f32 %v2629_v55, %v16503_v45  ;;  %v16527_v9 = vand.u32 4294901760, %v2638_v62  ;;  %v16532_v39 = vand.u32 127, %v1425_v24  ;;  %v49_v24 = vld [vmem:[%s20879_s1 + $0x128] sm:$0xff] }
 0x33c   :  { %v16535_v35 = vsub.f32 %v2635_v27, %v16513_v0  ;;  %v16540_v55 = vand.u32 4294901760, %v2644_v3  ;;  %v48_v27 = vld [vmem:[%s20879_s1 + $0x120] sm:$0xff]  ;;  %v16558_v41 = vsub.f32 %v2641_v36, %v16537_v23  ;;  %v16560_v26 = vand.u32 4294901760, %v2647_v10 }
 0x33d   :  { %21376 = vst [vmem:[#allocation85_spill] sm:$0xff] %v16532_v39  ;;  %vm2621_vm2 = vcmp.lt.s32.totalorder %v16532_v39, 32  ;;  %v21377_v36 = vand.u32 4294901760, %v16518_v20  ;;  %v21378_v14 = vand.u32 4294901760, %v16521_v31 }
 0x33f   :  { %v2753_v5 = vsub.f32 %v16518_v20, %v21377_v36  ;;  %v2763_v29 = vsub.f32 %v16521_v31, %v21378_v14  ;;  %v51_v14 = vld [vmem:[%s20879_s1 + $0x138] sm:$0xff] }
 0x346   :  { %v15267_v52 = vpop.eup %15266 }
 0x347   :  { %v2608_v18 = vmul.f32 %v15267_v52, %v16395_v30  ;;  %v16553_v52 = vsub.f32 %v2638_v62, %v16527_v9  ;;  %v2650_v62 = vsel %vm2624_vm1, %v48_v27, 0 }
 0x348   :  { %v15269_v58 = vpop.eup %15268  ;;  %v16588_v36 = vand.u32 4294901760, %v2650_v62 }
 0x349   :  { %v2614_v15 = vmul.f32 %v11965_v1, %v2608_v18  ;;  %v2607_v30 = vmul.f32 %v15269_v58, %v16400_v57  ;;  %v16566_v57 = vsub.f32 %v2644_v3, %v16540_v55  ;;  %v50_v58 = vld [vmem:[%s20879_s1 + $0x130] sm:$0xff] }
 0x34a   :  { %v2656_v51 = vsel %vm2624_vm1, %v50_v58, 0 }
 0x34b   :  { %v2620_v44 = vadd.f32 %v11966_v63, %v2614_v15  ;;  %v2613_v18 = vmul.f32 %v11965_v1, %v2607_v30  ;;  %v2653_v1 = vsel %vm2624_vm1, %v49_v24, 0  ;;  %v21379_v30 = vand.u32 4294901760, %v16535_v35 }
 0x34c   :  { %v16600_v24 = vsub.f32 %v2647_v10, %v16560_v26  ;;  %v16609_v39 = vand.u32 4294901760, %v2653_v1 }
 0x34d   :  { %v2619_v34 = vadd.f32 %v11966_v63, %v2613_v18  ;;  %v2623_v15 = vsel %vm2621_vm2, %v2620_v44, %v16284_v43  ;;  %v2773_v16 = vsub.f32 %v16535_v35, %v21379_v30  ;;  %v52_v18 = vld [vmem:[%s20879_s1 + $0x140] sm:$0xff]  ;;  %v2754_v30 = vand.u32 4294901760, %v2753_v5 }
 0x34e   :  { %v16583_v27 = vand.u32 4294901760, %v2623_v15  ;;  %v16615_v63 = vand.u32 4294901760, %v2656_v51  ;;  %v2659_v43 = vsel %vm2624_vm1, %v51_v14, 0  ;;  %v2662_v48 = vsel %vm2624_vm1, %v52_v18, 0  ;;  %v54_v18 = vld [vmem:[%s20879_s1 + $0x150] sm:$0xff] }
 0x34f   :  { %v2622_v44 = vsel %vm2621_vm2, %v2619_v34, %v16288_v42  ;;  %v2764_v34 = vand.u32 4294901760, %v2763_v29  ;;  %v21380_v42 = vand.u32 4294901760, %v16553_v52  ;;  %v53_v29 = vld [vmem:[%s20879_s1 + $0x148] sm:$0xff]  ;;  %v21381_v14 = vand.u32 4294901760, %v16558_v41 }
 0x350   :  { %13701 = vmatprep.subr.mxu0 %v16583_v27  ;;  %v16606_v58 = vand.u32 4294901760, %v2622_v44  ;;  %v2930_v3 = vsub.f32 %v2623_v15, %v16583_v27  ;;  %v16623_v15 = vsub.f32 %v2650_v62, %v16588_v36  ;;  %v16649_v62 = vsub.f32 %v2656_v51, %v16615_v63 }
 0x351   :  { %13702 = vmatpush3.msra.mxu0 %v16583_v27  ;;  %v2783_v10 = vsub.f32 %v16553_v52, %v21380_v42  ;;  %v2774_v42 = vand.u32 4294901760, %v2773_v16  ;;  %v2793_v19 = vsub.f32 %v16558_v41, %v21381_v14  ;;  %v16644_v16 = vsub.f32 %v2653_v1, %v16609_v39 }
 0x352   :  { %13703 = vmatprep.subr.mxu0 %v16606_v58  ;;  %v2937_v50 = vsub.f32 %v2622_v44, %v16606_v58  ;;  %v16620_v5 = vand.u32 4294901760, %v2930_v3  ;;  %v21382_v44 = vand.u32 4294901760, %v16566_v57  ;;  %v16646_v14 = vand.u32 4294901760, %v2659_v43 }
 0x353   :  { %13704 = vmatpush3.msra.mxu0 %v16606_v58  ;;  %v16651_v40 = vand.u32 4294901760, %v2662_v48  ;;  %v2668_v1 = vsel %vm2624_vm1, %v54_v18, 0 }
 0x354   :  { %v2803_v47 = vsub.f32 %v16566_v57, %v21382_v44  ;;  %13706 = vmatmul.mubr.f32.vlgmr.msra.gmra.mxu0 %v2754_v30  ;;  %13757 = vmatprep.subr.mxu0 %v2930_v3  ;;  %v2932_v59 = vsub.f32 %v2930_v3, %v16620_v5  ;;  %v16641_v56 = vand.u32 4294901760, %v2937_v50  ;;  %v2784_v44 = vand.u32 4294901760, %v2783_v10 }
 0x355   :  { %13758 = vmatpush3.msra.mxu0 %v2930_v3  ;;  %13708 = vmatprep.mubr.f32.mxu0 %v2764_v34  ;;  %v2665_v30 = vsel %vm2624_vm1, %v53_v29, 0  ;;  %v55_v3 = vld [vmem:[%s20879_s1 + $0x158] sm:$0xff]  ;;  %v2794_v34 = vand.u32 4294901760, %v2793_v19  ;;  %v21383_v10 = vand.u32 4294901760, %v16600_v24  ;;  %v20953_v29 = vand.u32 4294901760, %v16644_v16 }
 0x356   :  { %13759 = vmatprep.subr.mxu0 %v2937_v50  ;;  %v2933_v60 = vand.u32 4294901760, %v2932_v59  ;;  %v2939_v21 = vsub.f32 %v2937_v50, %v16641_v56  ;;  %v2804_v51 = vand.u32 4294901760, %v2803_v47  ;;  %v16665_v4 = vsub.f32 %v2659_v43, %v16646_v14 }
 0x357   :  { %13760 = vmatpush3.msra.mxu0 %v2937_v50  ;;  %v2813_v7 = vsub.f32 %v16600_v24, %v21383_v10  ;;  %v16667_v18 = vand.u32 4294901760, %v2665_v30  ;;  %v16672_v47 = vsub.f32 %v2662_v48, %v16651_v40  ;;  %v16674_v50 = vand.u32 4294901760, %v2668_v1 }
 0x358   :  { %13709 = vmatmul.mubr.f32.gmra.mxu0 %v2774_v42  ;;  %13729 = vmatprep.subr.mxu1 %v2933_v60  ;;  %v2940_v59 = vand.u32 4294901760, %v2939_v21  ;;  %v2671_v42 = vsel %vm2624_vm1, %v55_v3, 0  ;;  %v21384_v21 = vand.u32 4294901760, %v16623_v15  ;;  %v2833_v48 = vsub.f32 %v16644_v16, %v20953_v29 }
 0x359   :  { %13813 = vmatprep.subr.mxu0 %v16620_v5  ;;  %13730 = vmatpush3.msra.mxu1 %v2933_v60  ;;  %v2814_v10 = vand.u32 4294901760, %v2813_v7  ;;  %v20954_v60 = vand.u32 4294901760, %v16665_v4  ;;  %v16686_v19 = vsub.f32 %v2665_v30, %v16667_v18  ;;  %v16688_v3 = vand.u32 4294901760, %v2671_v42 }
 0x35a   :  { %13731 = vmatprep.subr.mxu1 %v2940_v59  ;;  %13711 = vmatprep.mubr.f32.mxu0 %v2784_v44  ;;  %v2823_v43 = vsub.f32 %v16623_v15, %v21384_v21  ;;  %v21385_v44 = vand.u32 4294901760, %v16649_v62 }
 0x35b   :  { %13732 = vmatpush3.msra.mxu1 %v2940_v59  ;;  %v16696_v59 = vsub.f32 %v2668_v1, %v16674_v50  ;;  %v2853_v21 = vsub.f32 %v16665_v4, %v20954_v60  ;;  %v16707_v1 = vsub.f32 %v2671_v42, %v16688_v3 }
 0x35c   :  { %13712 = vmatmul.mubr.f32.gmra.mxu0 %v2794_v34  ;;  %13734 = vmatmul.mubr.f32.vlgmr.msra.gmra.mxu1 %v16503_v45  ;;  %v2843_v7 = vsub.f32 %v16649_v62, %v21385_v44  ;;  %v20955_v34 = vand.u32 4294901760, %v16672_v47  ;;  %v2824_v30 = vand.u32 4294901760, %v2823_v43  ;;  %v2872_v44 = vand.u32 4294901760, %v16686_v19 }
 0x35d   :  { %13785 = vmatprep.subr.mxu1 %v16583_v27  ;;  %13714 = vmatprep.mubr.f32.mxu0 %v2804_v51  ;;  %v2834_v51 = vand.u32 4294901760, %v2833_v48  ;;  %v2854_v48 = vand.u32 4294901760, %v2853_v21  ;;  %v2892_v60 = vand.u32 4294901760, %v16707_v1 }
 0x35e   :  { %13786 = vmatpush3.msra.mxu1 %v16583_v27  ;;  %13736 = vmatprep.mubr.f32.mxu1 %v16505_v37  ;;  %v2844_v43 = vand.u32 4294901760, %v2843_v7  ;;  %v2863_v29 = vsub.f32 %v16672_v47, %v20955_v34  ;;  %v2873_v42 = vsub.f32 %v16686_v19, %v2872_v44 }
 0x35f   :  { %13787 = vmatprep.subr.mxu1 %v16606_v58 }
 0x360   :  { %13788 = vmatpush3.msra.mxu1 %v16606_v58  ;;  %13715 = vmatmul.mubr.f32.gmra.mxu0 %v2814_v10  ;;  %v2882_v10 = vand.u32 4294901760, %v16696_v59  ;;  %v2864_v7 = vand.u32 4294901760, %v2863_v29 }
 0x361   :  { %13737 = vmatmul.mubr.f32.gmra.mxu1 %v16513_v0  ;;  %13841 = vmatprep.subr.mxu1 %v16583_v27 }
 0x362   :  { %13717 = vmatprep.mubr.f32.mxu0 %v2824_v30  ;;  %13739 = vmatprep.mubr.f32.mxu1 %v16527_v9  ;;  %v2883_v34 = vsub.f32 %v16696_v59, %v2882_v10  ;;  %v2874_v30 = vand.u32 4294901760, %v2873_v42  ;;  %v21399_v42 = vld [vmem:[#allocation40_spill] sm:$0xff] }
 0x364   :  { %13718 = vmatmul.mubr.f32.gmra.mxu0 %v2834_v51  ;;  %v2893_v51 = vsub.f32 %v16707_v1, %v2892_v60  ;;  %v2884_v21 = vand.u32 4294901760, %v2883_v34  ;;  %v21386_v34 = vand.u32 4294901760, %v16481_v17 }
 0x365   :  { %13740 = vmatmul.mubr.f32.gmra.mxu1 %v16537_v23  ;;  %13720 = vmatprep.mubr.f32.mxu0 %v2844_v43 }
 0x366   :  { %13742 = vmatprep.mubr.f32.mxu1 %v16540_v55  ;;  %v2894_v29 = vand.u32 4294901760, %v2893_v51  ;;  %v21401_v51 = vand.u32 4294901760, %v16665_v4 }
 0x368   :  { %13721 = vmatmul.mubr.f32.gmra.mxu0 %v2854_v48  ;;  %v21398_v48 = vld [vmem:[#allocation37_spill] sm:$0xff] }
 0x369   :  { %13743 = vmatmul.mubr.f32.gmra.mxu1 %v16560_v26  ;;  %13723 = vmatprep.mubr.f32.mxu0 %v2864_v7  ;;  %v502_v7 = vadd.f32 %v21399_v42, %v21398_v48  ;;  %v21417_v48 = vld [vmem:[#allocation70_spill] sm:$0xff] }
 0x36a   :  { %13745 = vmatprep.mubr.f32.mxu1 %v16588_v36 }
 0x36c   :  { %13724 = vmatmul.mubr.f32.gmra.mxu0 %v2874_v30 }
 0x36d   :  { %13746 = vmatmul.mubr.f32.gmra.mxu1 %v16609_v39  ;;  %13726 = vmatprep.mubr.f32.mxu0 %v2884_v21 }
 0x36e   :  { %13748 = vmatprep.mubr.f32.mxu1 %v16615_v63 }
 0x370   :  { %13727 = vmatmul.mubr.f32.gmra.mxu0 %v2894_v29  ;;  %v21405_v29 = vld [vmem:[#allocation38_spill] sm:$0xff] }
 0x371   :  { %13749 = vmatmul.mubr.f32.gmra.mxu1 %v16646_v14  ;;  %13761 = vmatprep.mubr.f32.mxu0 %v16481_v17  ;;  %v21389_v17 = vand.u32 4294901760, %v16535_v35 }
 0x372   :  { %13751 = vmatprep.mubr.f32.mxu1 %v16651_v40 }
 0x374   :  { %13762 = vmatmul.mubr.f32.vlgmr.msra.gmra.mxu0 %v16518_v20 }
 0x375   :  { %13752 = vmatmul.mubr.f32.gmra.mxu1 %v16667_v18  ;;  %13814 = vmatpush3.msra.mxu0 %v16620_v5  ;;  %v21387_v5 = vand.u32 4294901760, %v16518_v20  ;;  %v21390_v20 = vand.u32 4294901760, %v16553_v52 }
 0x376   :  { %13815 = vmatprep.subr.mxu0 %v16641_v56  ;;  %13754 = vmatprep.mubr.f32.mxu1 %v16674_v50 }
 0x377   :  { %13816 = vmatpush3.msra.mxu0 %v16641_v56  ;;  %13764 = vmatprep.mubr.f32.mxu0 %v16521_v31  ;;  %v21388_v56 = vand.u32 4294901760, %v16521_v31  ;;  %v21391_v31 = vand.u32 4294901760, %v16558_v41 }
 0x378   :  { %13765 = vmatmul.mubr.f32.gmra.mxu0 %v16535_v35  ;;  %13869 = vmatprep.subr.mxu0 %v16009_v61  ;;  %v21393_v35 = vand.u32 4294901760, %v16600_v24 }
 0x379   :  { %13755 = vmatmul.mubr.f32.gmra.mxu1 %v16688_v3  ;;  %13767 = vmatprep.mubr.f32.mxu0 %v16553_v52  ;;  %v21394_v52 = vand.u32 4294901760, %v16623_v15 }
 0x37a   :  { %13789 = vmatprep.mubr.f32.mxu1 %v21386_v34  ;;  %v21406_v34 = vld [vmem:[#allocation42_spill] sm:$0xff] }
 0x37c   :  { %13768 = vmatmul.mubr.f32.gmra.mxu0 %v16558_v41  ;;  %v490_v41 = vadd.f32 %v16166_v28, %v16160_v25  ;;  %v21402_v25 = vld [vmem:[#allocation52_spill] sm:$0xff] }
 0x37d   :  { %13790 = vmatmul.mubr.f32.vlgmr.msra.gmra.mxu1 %v21387_v5  ;;  %13770 = vmatprep.mubr.f32.mxu0 %v16566_v57  ;;  %v694_v28 = vadd.f32 %v21402_v25, %v502_v7  ;;  %v514_v5 = vadd.f32 %v21406_v34, %v21405_v29  ;;  %v21424_v29 = vld [vmem:[#allocation71_spill] sm:$0xff] }
 0x37e   :  { %13842 = vmatpush3.msra.mxu1 %v16583_v27  ;;  %13792 = vmatprep.mubr.f32.mxu1 %v21388_v56  ;;  %v21392_v27 = vand.u32 4294901760, %v16566_v57  ;;  %v21396_v57 = vand.u32 4294901760, %v16649_v62  ;;  %v21407_v56 = vld [vmem:[#allocation56_spill] sm:$0xff] }
 0x37f   :  { %13843 = vmatprep.subr.mxu1 %v16606_v58 }
 0x380   :  { %13844 = vmatpush3.msra.mxu1 %v16606_v58  ;;  %13771 = vmatmul.mubr.f32.gmra.mxu0 %v16600_v24  ;;  %v21395_v58 = vand.u32 4294901760, %v16644_v16  ;;  %v21397_v24 = vld [vmem:[#allocation50_spill] sm:$0xff] }
 0x381   :  { %13793 = vmatmul.mubr.f32.gmra.mxu1 %v21389_v17  ;;  %13773 = vmatprep.mubr.f32.mxu0 %v16623_v15  ;;  %v680_v43 = vadd.f32 %v21397_v24, %v490_v41  ;;  %v21400_v15 = vld [vmem:[#allocation54_spill] sm:$0xff]  ;;  %v896_v17 = vadd.f32 %v21407_v56, %v694_v28  ;;  %v21415_v24 = vld [vmem:[#allocation69_spill] sm:$0xff] }
 0x382   :  { %13795 = vmatprep.mubr.f32.mxu1 %v21390_v20  ;;  %13909 = vmatprep.subr.mxu1 %v16052_v46 }
 0x383   :  { %v880_v30 = vadd.f32 %v21400_v15, %v680_v43  ;;  %v21419_v15 = vld [vmem:[#allocation41_spill] sm:$0xff] }
 0x384   :  { %13774 = vmatmul.mubr.f32.gmra.mxu0 %v16644_v16  ;;  %v21403_v16 = vand.u32 4294901760, %v16672_v47 }
 0x385   :  { %13796 = vmatmul.mubr.f32.gmra.mxu1 %v21391_v31  ;;  %13776 = vmatprep.mubr.f32.mxu0 %v16649_v62  ;;  %v21404_v62 = vld [vmem:[#allocation66_spill] sm:$0xff] }
 0x386   :  { %13798 = vmatprep.mubr.f32.mxu1 %v21392_v27  ;;  %v1111_v21 = vadd.f32 %v21404_v62, %v880_v30  ;;  %v21420_v30 = vld [vmem:[#allocation46_spill] sm:$0xff] }
 0x388   :  { %13777 = vmatmul.mubr.f32.gmra.mxu0 %v16665_v4  ;;  %v1292_v20 = vadd.f32 %v16238_v13, %v1111_v21  ;;  %v21408_v4 = vld [vmem:[#allocation53_spill] sm:$0xff] }
 0x389   :  { %13799 = vmatmul.mubr.f32.gmra.mxu1 %v21393_v35  ;;  %13779 = vmatprep.mubr.f32.mxu0 %v16672_v47  ;;  %v708_v31 = vadd.f32 %v21408_v4, %v514_v5  ;;  %v21409_v47 = vld [vmem:[#allocation68_spill] sm:$0xff]  ;;  %v21410_v35 = vld [vmem:[#allocation39_spill] sm:$0xff]  ;;  %v16814_v13 = vld [vmem:[%s20879_s1 + $0x160] ss:$0 sm:$0xff] }
 0x38a   :  { %13801 = vmatprep.mubr.f32.mxu1 %v21394_v52  ;;  %v1123_v27 = vadd.f32 %v21409_v47, %v896_v17  ;;  %v21411_v52 = vld [vmem:[#allocation44_spill] sm:$0xff]  ;;  %v16829_v43 = vadd.f32 %v16814_v13, %v21415_v24  ;;  %v16853_v34 = vadd.f32 %v16814_v13, %v21424_v29  ;;  %v21428_v17 = vld [vmem:[#allocation62_spill] sm:$0xff] }
 0x38b   :  { %v526_v41 = vadd.f32 %v21411_v52, %v21410_v35  ;;  %v21427_v5 = vld [vmem:[#allocation48_spill] sm:$0xff]  ;;  %v21431_v52 = vld [vmem:[#allocation73_spill] sm:$0xff] }
 0x38c   :  { %13780 = vmatmul.mubr.f32.gmra.mxu0 %v16686_v19  ;;  %v21412_v19 = vld [vmem:[#allocation58_spill] sm:$0xff]  ;;  %21416 = vst [vmem:[#allocation37_spill] sm:$0xff] %v16829_v43  ;;  %v3783_v21 = vsel %vm74_vm0, %v16829_v43, 0  ;;  %21425 = vst [vmem:[#allocation54_spill] sm:$0xff] %v16853_v34  ;;  %v3789_v35 = vsel %vm74_vm0, %v16853_v34, 0 }
 0x38d   :  { %13802 = vmatmul.mubr.f32.gmra.mxu1 %v21395_v58  ;;  %13782 = vmatprep.mubr.f32.mxu0 %v16696_v59  ;;  %v1304_v58 = vadd.f32 %v16244_v54, %v1123_v27  ;;  %v21413_v59 = vld [vmem:[#allocation55_spill] sm:$0xff]  ;;  %v21418_v54 = vld [vmem:[#allocation60_spill] sm:$0xff] }
 0x38e   :  { %13804 = vmatprep.mubr.f32.mxu1 %v21396_v57  ;;  %v16822_v57 = vadd.f32 %v16814_v13, %v1292_v20 }
 0x390   :  { %13783 = vmatmul.mubr.f32.gmra.mxu0 %v16707_v1  ;;  %21414 = vst [vmem:[#allocation50_spill] sm:$0xff] %v16822_v57  ;;  %v538_v1 = vadd.f32 %v21420_v30, %v21419_v15  ;;  %v3780_v25 = vsel %vm74_vm0, %v16822_v57, 0  ;;  %v16907_v30 = vand.u32 4294901760, %v3789_v35 }
 0x391   :  { %13805 = vmatmul.mubr.f32.gmra.mxu1 %v21401_v51  ;;  %13817 = vmatprep.mubr.f32.mxu0 %v16478_v2  ;;  %v16863_v4 = vand.u32 4294901760, %v3780_v25 }
 0x392   :  { %13807 = vmatprep.mubr.f32.mxu1 %v21403_v16  ;;  %v21423_v16 = vld [vmem:[#allocation57_spill] sm:$0xff] }
 0x393   :  { %v736_v62 = vadd.f32 %v21423_v16, %v538_v1  ;;  %v21438_v1 = vld [vmem:[#allocation61_spill] sm:$0xff]  ;;  %v21441_v16 = vld [vmem:[#allocation47_spill] sm:$0xff] }
 0x394   :  { %13818 = vmatmul.mubr.f32.vlgmr.msra.gmra.mxu0 %v16503_v45 }
 0x395   :  { %13808 = vmatmul.mubr.f32.gmra.mxu1 %v2872_v44  ;;  %13820 = vmatprep.mubr.f32.mxu0 %v16505_v37  ;;  %v912_v44 = vadd.f32 %v21412_v19, %v708_v31  ;;  %v944_v20 = vadd.f32 %v21428_v17, %v736_v62  ;;  %v21433_v19 = vld [vmem:[#allocation74_spill] sm:$0xff]  ;;  %v21442_v62 = vld [vmem:[#allocation51_spill] sm:$0xff] }
 0x396   :  { %13810 = vmatprep.mubr.f32.mxu1 %v2882_v10  ;;  %13870 = vmatpush3.msra.mxu0 %v16009_v61  ;;  %v722_v10 = vadd.f32 %v21413_v59, %v526_v41  ;;  %v16881_v41 = vadd.f32 %v16814_v13, %v21431_v52  ;;  %v21435_v59 = vld [vmem:[#allocation49_spill] sm:$0xff] }
 0x397   :  { %13871 = vmatprep.subr.mxu0 %v16018_v6  ;;  %v1135_v42 = vadd.f32 %v21417_v48, %v912_v44  ;;  %v1159_v44 = vadd.f32 %v21433_v19, %v944_v20  ;;  %v21437_v48 = vld [vmem:[#allocation64_spill] sm:$0xff] }
 0x398   :  { %13821 = vmatmul.mubr.f32.gmra.mxu0 %v16513_v0  ;;  %v928_v7 = vadd.f32 %v21418_v54, %v722_v10  ;;  %21432 = vst [vmem:[#allocation66_spill] sm:$0xff] %v16881_v41  ;;  %v21447_v20 = vld [vmem:[#allocation32_spill] sm:$0xff] }
 0x399   :  { %13811 = vmatmul.mubr.f32.gmra.mxu1 %v2892_v60  ;;  %13823 = vmatprep.mubr.f32.mxu0 %v16527_v9  ;;  %v16839_v60 = vadd.f32 %v16814_v13, %v1304_v58  ;;  %v1316_v51 = vadd.f32 %v16250_v53, %v1135_v42  ;;  %v21426_v53 = vld [vmem:[#allocation43_spill] sm:$0xff]  ;;  %v21434_v58 = vld [vmem:[#allocation45_spill] sm:$0xff] }
 0x39a   :  { %13845 = vmatprep.mubr.f32.mxu1 %v16478_v2  ;;  %13872 = vmatpush3.msra.mxu0 %v16018_v6  ;;  %v21422_v2 = vld [vmem:[#allocation72_spill] sm:$0xff]  ;;  %v550_v56 = vadd.f32 %v21427_v5, %v21426_v53  ;;  %v21443_v53 = vld [vmem:[#allocation17_spill] sm:$0xff] }
 0x39b   :  { %13873 = vmatprep.subr.mxu0 %v16031_v22  ;;  %21421 = vst [vmem:[#allocation40_spill] sm:$0xff] %v16839_v60  ;;  %v1147_v28 = vadd.f32 %v21422_v2, %v928_v7  ;;  %v3786_v31 = vsel %vm74_vm0, %v16839_v60, 0  ;;  %v16868_v47 = vadd.f32 %v16814_v13, %v1316_v51  ;;  %v16902_v7 = vsub.f32 %v3780_v25, %v16863_v4  ;;  %v21440_v25 = vld [vmem:[#allocation75_spill] sm:$0xff]  ;;  %v21444_v5 = vld [vmem:[#allocation65_spill] sm:$0xff] }
 0x39c   :  { %13824 = vmatmul.mubr.f32.gmra.mxu0 %v16537_v23  ;;  %v16888_v10 = vand.u32 4294901760, %v3786_v31  ;;  %v16916_v2 = vadd.f32 %v16814_v13, %v16252_v12 }
 0x39d   :  { %13846 = vmatmul.mubr.f32.vlgmr.msra.gmra.mxu1 %v16503_v45  ;;  %13826 = vmatprep.mubr.f32.mxu0 %v16540_v55  ;;  %v1328_v45 = vadd.f32 %v16256_v38, %v1147_v28  ;;  %21429 = vst [vmem:[#allocation52_spill] sm:$0xff] %v16868_v47  ;;  %v21430_v38 = vld [vmem:[#allocation59_spill] sm:$0xff]  ;;  %v3792_v54 = vsel %vm74_vm0, %v16868_v47, 0  ;;  %v21477_v47 = vld [vmem:[#allocation9_spill] sm:$0xff] }
 0x39e   :  { %13910 = vmatpush3.msra.mxu1 %v16052_v46  ;;  %13848 = vmatprep.mubr.f32.mxu1 %v16505_v37  ;;  %v16872_v37 = vand.u32 4294901760, %v3783_v21  ;;  %v750_v27 = vadd.f32 %v21430_v38, %v550_v56  ;;  %21439 = vst [vmem:[#allocation42_spill] sm:$0xff] %v16916_v2  ;;  %v16930_v12 = vsub.f32 %v3786_v31, %v16888_v10  ;;  %v20957_v38 = vand.u32 4294901760, %v16902_v7 }
 0x39f   :  { %13911 = vmatprep.subr.mxu1 %v16070_v8  ;;  %13874 = vmatpush3.msra.mxu0 %v16031_v22  ;;  %v16891_v24 = vadd.f32 %v16814_v13, %v1328_v45  ;;  %v21446_v45 = vld [vmem:[#allocation80_spill] sm:$0xff]  ;;  %v16943_v31 = vsub.f32 %v3789_v35, %v16907_v30  ;;  %v21452_v35 = vld [vmem:[#allocation67_spill] sm:$0xff] }
 0x3a0   :  { %13827 = vmatmul.mubr.f32.gmra.mxu0 %v16560_v26  ;;  %13912 = vmatpush3.msra.mxu1 %v16070_v8  ;;  %v960_v42 = vadd.f32 %v21437_v48, %v750_v27  ;;  %v16905_v15 = vsub.f32 %v3783_v21, %v16872_v37  ;;  %v16923_v21 = vand.u32 4294901760, %v3792_v54  ;;  %v21448_v27 = vld [vmem:[#allocation63_spill] sm:$0xff] }
 0x3a1   :  { %13849 = vmatmul.mubr.f32.gmra.mxu1 %v16513_v0  ;;  %13829 = vmatprep.mubr.f32.mxu0 %v16588_v36  ;;  %v562_v0 = vadd.f32 %v21435_v59, %v21434_v58  ;;  %21436 = vst [vmem:[#allocation38_spill] sm:$0xff] %v16891_v24  ;;  %v3798_v29 = vsel %vm74_vm0, %v16891_v24, 0  ;;  %v3801_v58 = vsel %vm74_vm0, %v16916_v2, 0 }
 0x3a2   :  { %13851 = vmatprep.mubr.f32.mxu1 %v16527_v9  ;;  %13913 = vmatprep.subr.mxu1 %v16088_v32  ;;  %v1340_v9 = vadd.f32 %v16262_v11, %v1159_v44  ;;  %v3795_v11 = vsel %vm74_vm0, %v16881_v41, 0  ;;  %v1171_v28 = vadd.f32 %v21440_v25, %v960_v42  ;;  %v20956_v19 = vand.u32 4294901760, %v16905_v15  ;;  %v21451_v42 = vld [vmem:[#allocation77_spill] sm:$0xff] }
 0x3a3   :  { %13914 = vmatpush3.msra.mxu1 %v16088_v32  ;;  %13875 = vmatprep.subr.mxu0 %v16046_v49  ;;  %v764_v51 = vadd.f32 %v21438_v1, %v562_v0  ;;  %v16945_v44 = vand.u32 4294901760, %v3795_v11  ;;  %v16951_v59 = vand.u32 4294901760, %v3798_v29  ;;  %v21449_v0 = vld [vmem:[#allocation76_spill] sm:$0xff]  ;;  %v16965_v25 = vsub.f32 %v3792_v54, %v16923_v21 }
 0x3a4   :  { %13830 = vmatmul.mubr.f32.gmra.mxu0 %v16609_v39  ;;  %13915 = vmatprep.subr.mxu1 %v16107_v33  ;;  %v1352_v17 = vadd.f32 %v21446_v45, %v1171_v28  ;;  %v16955_v48 = vadd.f32 %v16814_v13, %v21449_v0  ;;  %v3913_v54 = vsub.f32 %v16905_v15, %v20956_v19  ;;  %v16984_v45 = vand.u32 4294901760, %v3801_v58 }
 0x3a5   :  { %13852 = vmatmul.mubr.f32.gmra.mxu1 %v16537_v23  ;;  %13832 = vmatprep.mubr.f32.mxu0 %v16615_v63  ;;  %v574_v23 = vadd.f32 %v21442_v62, %v21441_v16  ;;  %v976_v56 = vadd.f32 %v21444_v5, %v764_v51  ;;  %v20960_v51 = vand.u32 4294901760, %v16930_v12  ;;  %v3903_v5 = vsub.f32 %v16902_v7, %v20957_v38  ;;  %v21463_v38 = vld [vmem:[#allocation35_spill] sm:$0xff] }
 0x3a6   :  { %13854 = vmatprep.mubr.f32.mxu1 %v16540_v55  ;;  %13876 = vmatpush3.msra.mxu0 %v16046_v49  ;;  %v16934_v55 = vadd.f32 %v16814_v13, %v1340_v9  ;;  %21450 = vst [vmem:[#allocation53_spill] sm:$0xff] %v16955_v48  ;;  %v16970_v16 = vadd.f32 %v16814_v13, %v1352_v17  ;;  %v3914_v17 = vand.u32 4294901760, %v3913_v54 }
 0x3a7   :  { %13916 = vmatpush3.msra.mxu1 %v16107_v33  ;;  %13877 = vmatprep.subr.mxu0 %v21443_v53  ;;  %v778_v52 = vadd.f32 %v21448_v27, %v574_v23  ;;  %v1183_v9 = vadd.f32 %v21451_v42, %v976_v56  ;;  %v21456_v23 = vld [vmem:[#allocation33_spill] sm:$0xff]  ;;  %v16982_v56 = vsub.f32 %v3795_v11, %v16945_v44  ;;  %v3807_v27 = vsel %vm74_vm0, %v16955_v48, 0  ;;  %v21459_v42 = vld [vmem:[#allocation79_spill] sm:$0xff] }
 0x3a8   :  { %21445 = vst [vmem:[#allocation56_spill] sm:$0xff] %v16934_v55  ;;  %13833 = vmatmul.mubr.f32.gmra.mxu0 %v16646_v14  ;;  %13917 = vmatprep.subr.mxu1 %v21447_v20  ;;  %v3804_v28 = vsel %vm74_vm0, %v16934_v55, 0  ;;  %21454 = vst [vmem:[#allocation68_spill] sm:$0xff] %v16970_v16  ;;  %v16999_v11 = vsub.f32 %v3798_v29, %v16951_v59  ;;  %v21462_v29 = vld [vmem:[#allocation84_spill] sm:$0xff]  ;;  %v3904_v19 = vand.u32 4294901760, %v3903_v5  ;;  %v17017_v55 = vand.u32 4294901760, %v3807_v27 }
 0x3a9   :  { %13855 = vmatmul.mubr.f32.gmra.mxu1 %v16560_v26  ;;  %13835 = vmatprep.mubr.f32.mxu0 %v16651_v40  ;;  %v992_v1 = vadd.f32 %v21452_v35, %v778_v52  ;;  %v21453_v26 = vld [vmem:[#allocation20_spill] sm:$0xff]  ;;  %v21457_v52 = vld [vmem:[#allocation78_spill] sm:$0xff] }
 0x3aa   :  { %13857 = vmatprep.mubr.f32.mxu1 %v16588_v36  ;;  %13878 = vmatpush3.msra.mxu0 %v21443_v53  ;;  %v21455_v36 = vld [vmem:[#allocation82_spill] sm:$0xff]  ;;  %v16993_v0 = vadd.f32 %v16814_v13, %v21457_v52  ;;  %v21460_v35 = vld [vmem:[#allocation24_spill] sm:$0xff]  ;;  %v21474_v24 = vand.u32 4294901760, %v16999_v11 }
 0x3ab   :  { %13918 = vmatpush3.msra.mxu1 %v21447_v20  ;;  %13879 = vmatprep.subr.mxu0 %v21453_v26  ;;  %v1364_v62 = vadd.f32 %v21455_v36, %v1183_v9  ;;  %v1195_v9 = vadd.f32 %v21459_v42, %v992_v1  ;;  %v3923_v36 = vsub.f32 %v16930_v12, %v20960_v51  ;;  %v21464_v51 = vand.u32 4294901760, %v16943_v31 }
 0x3ac   :  { %13836 = vmatmul.mubr.f32.gmra.mxu0 %v16667_v18  ;;  %13919 = vmatprep.subr.mxu1 %v21456_v23  ;;  %21458 = vst [vmem:[#allocation39_spill] sm:$0xff] %v16993_v0  ;;  %v3813_v5 = vsel %vm74_vm0, %v16993_v0, 0 }
 0x3ad   :  { %13858 = vmatmul.mubr.f32.gmra.mxu1 %v16609_v39  ;;  %13838 = vmatprep.mubr.f32.mxu0 %v16674_v50  ;;  %v17001_v39 = vand.u32 4294901760, %v3804_v28  ;;  %v17012_v1 = vadd.f32 %v16814_v13, %v1364_v62  ;;  %v1376_v42 = vadd.f32 %v21462_v29, %v1195_v9  ;;  %v3933_v52 = vsub.f32 %v16943_v31, %v21464_v51  ;;  %v21465_v29 = vld [vmem:[#allocation81_spill] sm:$0xff] }
 0x3ae   :  { %13860 = vmatprep.mubr.f32.mxu1 %v16615_v63  ;;  %13880 = vmatpush3.msra.mxu0 %v21453_v26  ;;  %v3810_v63 = vsel %vm74_vm0, %v16970_v16, 0  ;;  %v17026_v9 = vsub.f32 %v3801_v58, %v16984_v45  ;;  %v17032_v54 = vadd.f32 %v16814_v13, %v21465_v29  ;;  %v3924_v58 = vand.u32 4294901760, %v3923_v36 }
 0x3af   :  { %13881 = vmatprep.subr.mxu0 %v21460_v35  ;;  %13920 = vmatpush3.msra.mxu1 %v21456_v23  ;;  %21461 = vst [vmem:[#allocation44_spill] sm:$0xff] %v17012_v1  ;;  %v17036_v48 = vand.u32 4294901760, %v3810_v63  ;;  %v21468_v51 = vand.u32 4294901760, %v16965_v25  ;;  %v17044_v0 = vsub.f32 %v3804_v28, %v17001_v39  ;;  %v17049_v29 = vadd.f32 %v16814_v13, %v1376_v42 }
 0x3b0   :  { %13839 = vmatmul.mubr.f32.gmra.mxu0 %v16688_v3  ;;  %13921 = vmatprep.subr.mxu1 %v21463_v38  ;;  %21466 = vst [vmem:[#allocation58_spill] sm:$0xff] %v17032_v54  ;;  %v17055_v36 = vand.u32 4294901760, %v3813_v5  ;;  %v21470_v28 = vand.u32 4294901760, %v16982_v56  ;;  %v3819_v42 = vsel %vm74_vm0, %v17032_v54, 0  ;;  %v21475_v54 = vld [vmem:[#allocation6_spill] sm:$0xff] }
 0x3b1   :  { %13861 = vmatmul.mubr.f32.gmra.mxu1 %v16646_v14  ;;  %13882 = vmatpush3.msra.mxu0 %v21460_v35  ;;  %v21467_v14 = vld [vmem:[#allocation29_spill] sm:$0xff]  ;;  %v3943_v62 = vsub.f32 %v16965_v25, %v21468_v51  ;;  %21469 = vst [vmem:[#allocation55_spill] sm:$0xff] %v17049_v29  ;;  %v3934_v51 = vand.u32 4294901760, %v3933_v52  ;;  %v17087_v52 = vand.u32 4294901760, %v3819_v42 }
 0x3b2   :  { %13885 = vmatprep.mubr.f32.mxu0 %v3904_v19  ;;  %13883 = vmatprep.subr.mxu0 %v21467_v14  ;;  %v3816_v19 = vsel %vm74_vm0, %v17012_v1, 0  ;;  %v3953_v16 = vsub.f32 %v16982_v56, %v21470_v28  ;;  %v21471_v1 = vld [vmem:[#allocation83_spill] sm:$0xff] }
 0x3b3   :  { %13863 = vmatprep.mubr.f32.mxu1 %v16651_v40  ;;  %13884 = vmatpush3.msra.mxu0 %v21467_v14  ;;  %v17053_v40 = vsub.f32 %v3807_v27, %v17017_v55  ;;  %v21473_v27 = vld [vmem:[#allocation36_spill] sm:$0xff]  ;;  %v3944_v28 = vand.u32 4294901760, %v3943_v62 }
 0x3b4   :  { %13886 = vmatmul.mubr.f32.vlgmr.msra.gmra.mxu0 %v3914_v17  ;;  %13922 = vmatpush3.msra.mxu1 %v21463_v38  ;;  %v17065_v17 = vadd.f32 %v16814_v13, %v21471_v1  ;;  %v17079_v1 = vsub.f32 %v3810_v63, %v17036_v48  ;;  %v3954_v62 = vand.u32 4294901760, %v3953_v16 }
 0x3b5   :  { %13864 = vmatmul.mubr.f32.gmra.mxu1 %v16667_v18  ;;  %13888 = vmatprep.mubr.f32.mxu0 %v3924_v58  ;;  %v3963_v18 = vsub.f32 %v16999_v11, %v21474_v24  ;;  %v17073_v58 = vand.u32 4294901760, %v3816_v19  ;;  %v17085_v24 = vsub.f32 %v3813_v5, %v17055_v36 }
 0x3b6   :  { %21472 = vst [vmem:[#allocation69_spill] sm:$0xff] %v17065_v17  ;;  %13866 = vmatprep.mubr.f32.mxu1 %v16674_v50  ;;  %13923 = vmatprep.subr.mxu1 %v21473_v27  ;;  %v3822_v50 = vsel %vm74_vm0, %v17049_v29, 0  ;;  %v3825_v13 = vsel %vm74_vm0, %v17065_v17, 0 }
 0x3b7   :  { %13924 = vmatpush3.msra.mxu1 %v21473_v27  ;;  %13949 = vmatprep.subr.mxu0 %v21475_v54  ;;  %v3964_v63 = vand.u32 4294901760, %v3963_v18  ;;  %v17098_v2 = vand.u32 4294901760, %v3822_v50  ;;  %v17106_v17 = vsub.f32 %v3816_v19, %v17073_v58  ;;  %v17109_v18 = vsub.f32 %v3819_v42, %v17087_v52 }
 0x3b8   :  { %13889 = vmatmul.mubr.f32.gmra.mxu0 %v3934_v51  ;;  %13989 = vmatprep.subr.mxu1 %v16009_v61  ;;  %v21476_v51 = vand.u32 4294901760, %v17026_v9  ;;  %v20985_v19 = vand.u32 4294901760, %v17085_v24 }
 0x3b9   :  { %13867 = vmatmul.mubr.f32.gmra.mxu1 %v16688_v3  ;;  %13891 = vmatprep.mubr.f32.mxu0 %v3944_v28  ;;  %v21478_v3 = vand.u32 4294901760, %v17044_v0  ;;  %v20988_v41 = vand.u32 4294901760, %v17106_v17  ;;  %v17127_v60 = vsub.f32 %v3822_v50, %v17098_v2  ;;  %v20987_v50 = vand.u32 4294901760, %v17109_v18 }
 0x3ba   :  { %13925 = vmatprep.mubr.f32.mxu1 %v16863_v4  ;;  %13950 = vmatpush3.msra.mxu0 %v21475_v54  ;;  %v3973_v29 = vsub.f32 %v17026_v9, %v21476_v51  ;;  %v17112_v51 = vand.u32 4294901760, %v3825_v13 }
 0x3bb   :  { %13951 = vmatprep.subr.mxu0 %v21477_v47  ;;  %v3983_v16 = vsub.f32 %v17044_v0, %v21478_v3  ;;  %v21479_v3 = vand.u32 4294901760, %v17053_v40 }
 0x3bc   :  { %13892 = vmatmul.mubr.f32.gmra.mxu0 %v3954_v62  ;;  %v3974_v5 = vand.u32 4294901760, %v3973_v29  ;;  %v21480_v62 = vand.u32 4294901760, %v17079_v1  ;;  %v17132_v29 = vsub.f32 %v3825_v13, %v17112_v51  ;;  %v4023_v13 = vsub.f32 %v17106_v17, %v20988_v41 }
 0x3bd   :  { %13926 = vmatmul.mubr.f32.vlgmr.msra.gmra.mxu1 %v16872_v37  ;;  %13894 = vmatprep.mubr.f32.mxu0 %v3964_v63  ;;  %v3993_v28 = vsub.f32 %v17053_v40, %v21479_v3  ;;  %v3984_v42 = vand.u32 4294901760, %v3983_v16  ;;  %v21481_v16 = vld [vmem:[#allocation12_spill] sm:$0xff] }
 0x3be   :  { %13928 = vmatprep.mubr.f32.mxu1 %v16888_v10  ;;  %13990 = vmatpush3.msra.mxu1 %v16009_v61  ;;  %v4003_v63 = vsub.f32 %v17079_v1, %v21480_v62  ;;  %v4013_v62 = vsub.f32 %v17085_v24, %v20985_v19 }
 0x3bf   :  { %13952 = vmatpush3.msra.mxu0 %v21477_v47  ;;  %13991 = vmatprep.subr.mxu1 %v16018_v6  ;;  %v3994_v3 = vand.u32 4294901760, %v3993_v28  ;;  %v21482_v28 = vld [vmem:[#allocation16_spill] sm:$0xff] }
 0x3c0   :  { %13895 = vmatmul.mubr.f32.gmra.mxu0 %v3974_v5  ;;  %13992 = vmatpush3.msra.mxu1 %v16018_v6  ;;  %v4004_v5 = vand.u32 4294901760, %v4003_v63  ;;  %v4014_v19 = vand.u32 4294901760, %v4013_v62  ;;  %v4033_v63 = vsub.f32 %v17109_v18, %v20987_v50  ;;  %v21483_v62 = vld [vmem:[#allocation21_spill] sm:$0xff] }
 0x3c1   :  { %13929 = vmatmul.mubr.f32.gmra.mxu1 %v16907_v30  ;;  %13897 = vmatprep.mubr.f32.mxu0 %v3984_v42  ;;  %v4042_v42 = vand.u32 4294901760, %v17127_v60 }
 0x3c2   :  { %13931 = vmatprep.mubr.f32.mxu1 %v16923_v21  ;;  %13953 = vmatprep.subr.mxu0 %v21481_v16  ;;  %v4034_v50 = vand.u32 4294901760, %v4033_v63 }
 0x3c3   :  { %13954 = vmatpush3.msra.mxu0 %v21481_v16  ;;  %13993 = vmatprep.subr.mxu1 %v16031_v22  ;;  %v20989_v16 = vand.u32 4294901760, %v17132_v29 }
 0x3c4   :  { %13898 = vmatmul.mubr.f32.gmra.mxu0 %v3994_v3  ;;  %13994 = vmatpush3.msra.mxu1 %v16031_v22  ;;  %v4024_v3 = vand.u32 4294901760, %v4023_v13 }
 0x3c5   :  { %13932 = vmatmul.mubr.f32.gmra.mxu1 %v16945_v44  ;;  %13900 = vmatprep.mubr.f32.mxu0 %v4004_v5  ;;  %v4043_v5 = vsub.f32 %v17127_v60, %v4042_v42  ;;  %v4053_v41 = vsub.f32 %v17132_v29, %v20989_v16  ;;  %v21491_v16 = vand.u32 4294901760, %v16930_v12 }
 0x3c6   :  { %13934 = vmatprep.mubr.f32.mxu1 %v16951_v59  ;;  %13955 = vmatprep.subr.mxu0 %v21482_v28 }
 0x3c7   :  { %13956 = vmatpush3.msra.mxu0 %v21482_v28  ;;  %13995 = vmatprep.subr.mxu1 %v16046_v49  ;;  %v4044_v13 = vand.u32 4294901760, %v4043_v5  ;;  %v4054_v63 = vand.u32 4294901760, %v4053_v41  ;;  %v21487_v41 = vld [vmem:[#allocation8_spill] sm:$0xff]  ;;  %v21488_v5 = vand.u32 4294901760, %v16902_v7 }
 0x3c8   :  { %13901 = vmatmul.mubr.f32.gmra.mxu0 %v4014_v19  ;;  %13996 = vmatpush3.msra.mxu1 %v16046_v49  ;;  %v21484_v19 = vld [vmem:[#allocation23_spill] sm:$0xff] }
 0x3c9   :  { %13935 = vmatmul.mubr.f32.gmra.mxu1 %v16984_v45  ;;  %13903 = vmatprep.mubr.f32.mxu0 %v4024_v3  ;;  %v21485_v3 = vld [vmem:[#allocation28_spill] sm:$0xff] }
 0x3ca   :  { %13937 = vmatprep.mubr.f32.mxu1 %v17001_v39  ;;  %13957 = vmatprep.subr.mxu0 %v21483_v62 }
 0x3cb   :  { %13958 = vmatpush3.msra.mxu0 %v21483_v62  ;;  %13997 = vmatprep.subr.mxu1 %v21443_v53 }
 0x3cc   :  { %13904 = vmatmul.mubr.f32.gmra.mxu0 %v4034_v50  ;;  %13998 = vmatpush3.msra.mxu1 %v21443_v53  ;;  %v21486_v50 = vld [vmem:[#allocation31_spill] sm:$0xff] }
 0x3cd   :  { %13938 = vmatmul.mubr.f32.gmra.mxu1 %v17017_v55  ;;  %13906 = vmatprep.mubr.f32.mxu0 %v4044_v13  ;;  %v21489_v13 = vld [vmem:[#allocation11_spill] sm:$0xff] }
 0x3ce   :  { %13940 = vmatprep.mubr.f32.mxu1 %v17036_v48  ;;  %13959 = vmatprep.subr.mxu0 %v21484_v19 }
 0x3cf   :  { %13960 = vmatpush3.msra.mxu0 %v21484_v19  ;;  %13999 = vmatprep.subr.mxu1 %v21453_v26 }
 0x3d0   :  { %13907 = vmatmul.mubr.f32.gmra.mxu0 %v4054_v63  ;;  %13961 = vmatprep.subr.mxu0 %v21485_v3  ;;  %v21490_v63 = vand.u32 4294901760, %v16905_v15 }
 0x3d1   :  { %13941 = vmatmul.mubr.f32.gmra.mxu1 %v17055_v36  ;;  %13962 = vmatpush3.msra.mxu0 %v21485_v3 }
 0x3d2   :  { %13943 = vmatprep.mubr.f32.mxu1 %v17073_v58  ;;  %13965 = vmatprep.mubr.f32.mxu0 %v16902_v7  ;;  %v21492_v7 = vld [vmem:[#allocation15_spill] sm:$0xff] }
 0x3d3   :  { %14000 = vmatpush3.msra.mxu1 %v21453_v26  ;;  %13963 = vmatprep.subr.mxu0 %v21486_v50 }
 0x3d4   :  { %13964 = vmatpush3.msra.mxu0 %v21486_v50  ;;  %14001 = vmatprep.subr.mxu1 %v21460_v35 }
 0x3d5   :  { %13944 = vmatmul.mubr.f32.gmra.mxu1 %v17087_v52  ;;  %13966 = vmatmul.mubr.f32.vlgmr.msra.gmra.mxu0 %v16905_v15  ;;  %v21494_v15 = vand.u32 4294901760, %v16965_v25 }
 0x3d6   :  { %13946 = vmatprep.mubr.f32.mxu1 %v17098_v2  ;;  %13968 = vmatprep.mubr.f32.mxu0 %v16930_v12  ;;  %v21495_v12 = vld [vmem:[#allocation19_spill] sm:$0xff] }
 0x3d7   :  { %14002 = vmatpush3.msra.mxu1 %v21460_v35  ;;  %14029 = vmatprep.subr.mxu0 %v21487_v41 }
 0x3d8   :  { %14003 = vmatprep.subr.mxu1 %v21467_v14  ;;  %14030 = vmatpush3.msra.mxu0 %v21487_v41 }
 0x3d9   :  { %13947 = vmatmul.mubr.f32.gmra.mxu1 %v17112_v51  ;;  %13969 = vmatmul.mubr.f32.gmra.mxu0 %v16943_v31 }
 0x3da   :  { %13971 = vmatprep.mubr.f32.mxu0 %v16965_v25  ;;  %14004 = vmatpush3.msra.mxu1 %v21467_v14  ;;  %v21498_v25 = vld [vmem:[#allocation25_spill] sm:$0xff] }
 0x3db   :  { %14005 = vmatprep.mubr.f32.mxu1 %v21488_v5  ;;  %14069 = vmatprep.subr.mxu1 %v16009_v61  ;;  %v21493_v5 = vand.u32 4294901760, %v16943_v31  ;;  %v21497_v31 = vand.u32 4294901760, %v16999_v11 }
 0x3dc   :  { %14031 = vmatprep.subr.mxu0 %v21489_v13 }
 0x3dd   :  { %13972 = vmatmul.mubr.f32.gmra.mxu0 %v16982_v56  ;;  %14006 = vmatmul.mubr.f32.vlgmr.msra.gmra.mxu1 %v21490_v63  ;;  %v21499_v63 = vand.u32 4294901760, %v17026_v9 }
 0x3de   :  { %13974 = vmatprep.mubr.f32.mxu0 %v16999_v11  ;;  %14008 = vmatprep.mubr.f32.mxu1 %v21491_v16  ;;  %v21496_v16 = vand.u32 4294901760, %v16982_v56  ;;  %v21500_v56 = vand.u32 4294901760, %v17044_v0  ;;  %v21501_v11 = vld [vmem:[#allocation27_spill] sm:$0xff] }
 0x3df   :  { %14070 = vmatpush3.msra.mxu1 %v16009_v61  ;;  %14032 = vmatpush3.msra.mxu0 %v21489_v13 }
 0x3e0   :  { %14071 = vmatprep.subr.mxu1 %v16018_v6  ;;  %14033 = vmatprep.subr.mxu0 %v21492_v7 }
 0x3e1   :  { %13975 = vmatmul.mubr.f32.gmra.mxu0 %v17026_v9  ;;  %14009 = vmatmul.mubr.f32.gmra.mxu1 %v21493_v5  ;;  %v21502_v5 = vand.u32 4294901760, %v17053_v40  ;;  %v21503_v9 = vand.u32 4294901760, %v17079_v1 }
 0x3e2   :  { %13977 = vmatprep.mubr.f32.mxu0 %v17044_v0  ;;  %14011 = vmatprep.mubr.f32.mxu1 %v21494_v15  ;;  %v21504_v0 = vld [vmem:[#allocation30_spill] sm:$0xff]  ;;  %v21505_v15 = vand.u32 4294901760, %v17085_v24 }
 0x3e3   :  { %14072 = vmatpush3.msra.mxu1 %v16018_v6  ;;  %14034 = vmatpush3.msra.mxu0 %v21492_v7 }
 0x3e4   :  { %14073 = vmatprep.subr.mxu1 %v16031_v22  ;;  %14035 = vmatprep.subr.mxu0 %v21495_v12 }
 0x3e5   :  { %13978 = vmatmul.mubr.f32.gmra.mxu0 %v17053_v40  ;;  %14012 = vmatmul.mubr.f32.gmra.mxu1 %v21496_v16  ;;  %v21506_v40 = vand.u32 4294901760, %v17106_v17  ;;  %v21508_v16 = vand.u32 4294901760, %v17109_v18 }
 0x3e6   :  { %13980 = vmatprep.mubr.f32.mxu0 %v17079_v1  ;;  %14014 = vmatprep.mubr.f32.mxu1 %v21497_v31  ;;  %v21507_v1 = vld [vmem:[#allocation34_spill] sm:$0xff] }
 0x3e7   :  { %14074 = vmatpush3.msra.mxu1 %v16031_v22  ;;  %14036 = vmatpush3.msra.mxu0 %v21495_v12 }
 0x3e8   :  { %14075 = vmatprep.subr.mxu1 %v16046_v49  ;;  %14037 = vmatprep.subr.mxu0 %v21498_v25 }
 0x3e9   :  { %13981 = vmatmul.mubr.f32.gmra.mxu0 %v17085_v24  ;;  %14015 = vmatmul.mubr.f32.gmra.mxu1 %v21499_v63 }
 0x3ea   :  { %13983 = vmatprep.mubr.f32.mxu0 %v17106_v17  ;;  %14017 = vmatprep.mubr.f32.mxu1 %v21500_v56  ;;  %v21509_v17 = vand.u32 4294901760, %v17132_v29 }
 0x3eb   :  { %14076 = vmatpush3.msra.mxu1 %v16046_v49  ;;  %14038 = vmatpush3.msra.mxu0 %v21498_v25 }
 0x3ec   :  { %14077 = vmatprep.subr.mxu1 %v21443_v53  ;;  %14039 = vmatprep.subr.mxu0 %v21501_v11 }
 0x3ed   :  { %13984 = vmatmul.mubr.f32.gmra.mxu0 %v17109_v18  ;;  %14018 = vmatmul.mubr.f32.gmra.mxu1 %v21502_v5 }
 0x3ee   :  { %13986 = vmatprep.mubr.f32.mxu0 %v17127_v60  ;;  %14020 = vmatprep.mubr.f32.mxu1 %v21503_v9 }
 0x3ef   :  { %14078 = vmatpush3.msra.mxu1 %v21443_v53  ;;  %14040 = vmatpush3.msra.mxu0 %v21501_v11 }
 0x3f0   :  { %14041 = vmatprep.subr.mxu0 %v21504_v0  ;;  %14079 = vmatprep.subr.mxu1 %v21453_v26 }
 0x3f1   :  { %13987 = vmatmul.mubr.f32.gmra.mxu0 %v17132_v29  ;;  %14021 = vmatmul.mubr.f32.gmra.mxu1 %v21505_v15 }
 0x3f2   :  { %14023 = vmatprep.mubr.f32.mxu1 %v21506_v40  ;;  %14042 = vmatpush3.msra.mxu0 %v21504_v0 }
 0x3f3   :  { %14045 = vmatprep.mubr.f32.mxu0 %v16863_v4  ;;  %14080 = vmatpush3.msra.mxu1 %v21453_v26 }
 0x3f4   :  { %14043 = vmatprep.subr.mxu0 %v21507_v1  ;;  %14081 = vmatprep.subr.mxu1 %v21460_v35 }
 0x3f5   :  { %14044 = vmatpush3.msra.mxu0 %v21507_v1  ;;  %14024 = vmatmul.mubr.f32.gmra.mxu1 %v21508_v16 }
 0x3f6   :  { %14046 = vmatmul.mubr.f32.vlgmr.msra.gmra.mxu0 %v16872_v37  ;;  %14026 = vmatprep.mubr.f32.mxu1 %v4042_v42 }
 0x3f7   :  { %14048 = vmatprep.mubr.f32.mxu0 %v16888_v10  ;;  %14082 = vmatpush3.msra.mxu1 %v21460_v35 }
 0x3f8   :  { %14083 = vmatprep.subr.mxu1 %v21467_v14  ;;  %14109 = vmatprep.subr.mxu0 %v16009_v61 }
 0x3f9   :  { %14027 = vmatmul.mubr.f32.gmra.mxu1 %v21509_v17  ;;  %14110 = vmatpush3.msra.mxu0 %v16009_v61 }
 0x3fa   :  { %14049 = vmatmul.mubr.f32.gmra.mxu0 %v16907_v30  ;;  %14084 = vmatpush3.msra.mxu1 %v21467_v14 }
 0x3fb   :  { %14051 = vmatprep.mubr.f32.mxu0 %v16923_v21  ;;  %14085 = vmatprep.mubr.f32.mxu1 %v16863_v4 }
 0x3fc   :  { %14149 = vmatprep.subr.mxu1 %v16052_v46  ;;  %14111 = vmatprep.subr.mxu0 %v16018_v6 }
 0x3fd   :  { %14086 = vmatmul.mubr.f32.vlgmr.msra.gmra.mxu1 %v16872_v37  ;;  %14112 = vmatpush3.msra.mxu0 %v16018_v6 }
 0x3fe   :  { %14052 = vmatmul.mubr.f32.gmra.mxu0 %v16945_v44  ;;  %14088 = vmatprep.mubr.f32.mxu1 %v16888_v10 }
 0x3ff   :  { %14054 = vmatprep.mubr.f32.mxu0 %v16951_v59  ;;  %14150 = vmatpush3.msra.mxu1 %v16052_v46 }
 0x400   :  { %14151 = vmatprep.subr.mxu1 %v16070_v8  ;;  %14113 = vmatprep.subr.mxu0 %v16031_v22 }
 0x401   :  { %14089 = vmatmul.mubr.f32.gmra.mxu1 %v16907_v30  ;;  %14114 = vmatpush3.msra.mxu0 %v16031_v22 }
 0x402   :  { %14055 = vmatmul.mubr.f32.gmra.mxu0 %v16984_v45  ;;  %14091 = vmatprep.mubr.f32.mxu1 %v16923_v21 }
 0x403   :  { %14057 = vmatprep.mubr.f32.mxu0 %v17001_v39  ;;  %14152 = vmatpush3.msra.mxu1 %v16070_v8 }
 0x404   :  { %14153 = vmatprep.subr.mxu1 %v16088_v32  ;;  %14115 = vmatprep.subr.mxu0 %v16046_v49 }
 0x405   :  { %14092 = vmatmul.mubr.f32.gmra.mxu1 %v16945_v44  ;;  %14116 = vmatpush3.msra.mxu0 %v16046_v49 }
 0x406   :  { %14058 = vmatmul.mubr.f32.gmra.mxu0 %v17017_v55  ;;  %14094 = vmatprep.mubr.f32.mxu1 %v16951_v59 }
 0x407   :  { %14060 = vmatprep.mubr.f32.mxu0 %v17036_v48  ;;  %14154 = vmatpush3.msra.mxu1 %v16088_v32 }
 0x408   :  { %14155 = vmatprep.subr.mxu1 %v16107_v33  ;;  %14117 = vmatprep.subr.mxu0 %v21443_v53 }
 0x409   :  { %14095 = vmatmul.mubr.f32.gmra.mxu1 %v16984_v45  ;;  %14118 = vmatpush3.msra.mxu0 %v21443_v53 }
 0x40a   :  { %14061 = vmatmul.mubr.f32.gmra.mxu0 %v17055_v36  ;;  %14097 = vmatprep.mubr.f32.mxu1 %v17001_v39 }
 0x40b   :  { %14063 = vmatprep.mubr.f32.mxu0 %v17073_v58  ;;  %14156 = vmatpush3.msra.mxu1 %v16107_v33 }
 0x40c   :  { %14157 = vmatprep.subr.mxu1 %v21447_v20  ;;  %14119 = vmatprep.subr.mxu0 %v21453_v26 }
 0x40d   :  { %14098 = vmatmul.mubr.f32.gmra.mxu1 %v17017_v55  ;;  %14120 = vmatpush3.msra.mxu0 %v21453_v26 }
 0x40e   :  { %14064 = vmatmul.mubr.f32.gmra.mxu0 %v17087_v52  ;;  %14100 = vmatprep.mubr.f32.mxu1 %v17036_v48 }
 0x40f   :  { %14066 = vmatprep.mubr.f32.mxu0 %v17098_v2  ;;  %14158 = vmatpush3.msra.mxu1 %v21447_v20 }
 0x410   :  { %14159 = vmatprep.subr.mxu1 %v21456_v23  ;;  %14121 = vmatprep.subr.mxu0 %v21460_v35 }
 0x411   :  { %14101 = vmatmul.mubr.f32.gmra.mxu1 %v17055_v36  ;;  %14122 = vmatpush3.msra.mxu0 %v21460_v35 }
 0x412   :  { %14067 = vmatmul.mubr.f32.gmra.mxu0 %v17112_v51  ;;  %14103 = vmatprep.mubr.f32.mxu1 %v17073_v58 }
 0x413   :  { %14160 = vmatpush3.msra.mxu1 %v21456_v23  ;;  %14123 = vmatprep.subr.mxu0 %v21467_v14 }
 0x414   :  { %v17324_v60 = vpop.f32.mrf.mxu0  ;;  %14161 = vmatprep.subr.mxu1 %v21463_v38  ;;  %14124 = vmatpush3.msra.mxu0 %v21467_v14 }
 0x415   :  { %14104 = vmatmul.mubr.f32.gmra.mxu1 %v17087_v52  ;;  %14189 = vmatprep.subr.mxu0 %v21475_v54 }
 0x416   :  { %14106 = vmatprep.mubr.f32.mxu1 %v17098_v2  ;;  %v17331_v4 = vpop.f32.mrf.mxu0  ;;  %14162 = vmatpush3.msra.mxu1 %v21463_v38 }
 0x417   :  { %14163 = vmatprep.subr.mxu1 %v21473_v27 }
 0x418   :  { %v17335_v37 = vpop.f32.mrf.mxu0  ;;  %14164 = vmatpush3.msra.mxu1 %v21473_v27 }
 0x419   :  { %14107 = vmatmul.mubr.f32.gmra.mxu1 %v17112_v51  ;;  %14229 = vmatprep.subr.mxu1 %v16009_v61 }
 0x41a   :  { %v17340_v10 = vpop.f32.mrf.mxu0 }
 0x41c   :  { %v17342_v30 = vpop.f32.mrf.mxu0  ;;  %v13735_v21 = vpop.f32.mrf.mxu1 }
 0x41d   :  { %v2984_v57 = vadd.f32 %v13735_v21, %v17324_v60 }
 0x41e   :  { %v17344_v2 = vpop.f32.mrf.mxu0  ;;  %v17346_v55 = vpop.f32.mrf.mxu1 }
 0x420   :  { %v17348_v44 = vpop.f32.mrf.mxu0 }
 0x421   :  { %v13738_v59 = vpop.f32.mrf.mxu1 }
 0x422   :  { %v17350_v48 = vpop.f32.mrf.mxu0 }
 0x423   :  { %v17352_v45 = vpop.f32.mrf.mxu1 }
 0x424   :  { %v17354_v39 = vpop.f32.mrf.mxu0 }
 0x425   :  { %v17356_v36 = vpop.f32.mrf.mxu1 }
 0x426   :  { %v17358_v52 = vpop.f32.mrf.mxu0 }
 0x427   :  { %v17360_v58 = vpop.f32.mrf.mxu1 }
 0x428   :  { %v17362_v24 = vpop.f32.mrf.mxu0 }
 0x429   :  { %v17364_v18 = vpop.f32.mrf.mxu1 }
 0x42a   :  { %v17366_v51 = vpop.f32.mrf.mxu0 }
 0x42b   :  { %v17368_v29 = vpop.f32.mrf.mxu1 }
 0x42c   :  { %v17370_v42 = vpop.f32.mrf.mxu0 }
 0x42d   :  { %v17372_v31 = vpop.f32.mrf.mxu1 }
 0x42e   :  { %v17374_v63 = vpop.f32.mrf.mxu0 }
 0x42f   :  { %21510 = vst [vmem:[#allocation70_spill] sm:$0xff] %v17374_v63  ;;  %v17376_v56 = vpop.f32.mrf.mxu1 }
 0x430   :  { %v13728_v5 = vpop.f32.mrf.mxu0 }
 0x431   :  { %v17378_v9 = vpop.f32.mrf.mxu1 }
 0x432   :  { %v17380_v15 = vpop.f32.mrf.mxu0 }
 0x433   :  { %21511 = vst [vmem:[#allocation60_spill] sm:$0xff] %v17380_v15  ;;  %v17382_v40 = vpop.f32.mrf.mxu1 }
 0x434   :  { %v13763_v16 = vpop.f32.mrf.mxu0 }
 0x435   :  { %v17384_v17 = vpop.f32.mrf.mxu1  ;;  %v3151_v15 = vadd.f32 %v13763_v16, %v2984_v57  ;;  %v2990_v57 = vadd.f32 %v17352_v45, %v17340_v10 }
 0x436   :  { %v3143_v27 = vpop.f32.mrf.mxu0 }
 0x437   :  { %v17386_v38 = vpop.f32.mrf.mxu1 }
 0x438   :  { %21512 = vst [vmem:[#allocation41_spill] sm:$0xff] %v17386_v38  ;;  %v13766_v23 = vpop.f32.mrf.mxu0 }
 0x439   :  { %v13756_v20 = vpop.f32.mrf.mxu1 }
 0x43a   :  { %v3068_v33 = vadd.f32 %v13756_v20, %v13728_v5  ;;  %v3157_v32 = vpop.f32.mrf.mxu0 }
 0x43b   :  { %v17388_v8 = vpop.f32.mrf.mxu1 }
 0x43c   :  { %21513 = vst [vmem:[#allocation46_spill] sm:$0xff] %v17388_v8  ;;  %v13769_v46 = vpop.f32.mrf.mxu0 }
 0x43d   :  { %v13791_v1 = vpop.f32.mrf.mxu1 }
 0x43e   :  { %v17390_v0 = vpop.f32.mrf.mxu0  ;;  %v3332_v63 = vadd.f32 %v13791_v1, %v3151_v15  ;;  %v3158_v1 = vadd.f32 %v3157_v32, %v2990_v57 }
 0x43f   :  { %v3323_v11 = vpop.f32.mrf.mxu1 }
 0x440   :  { %v17392_v25 = vpop.f32.mrf.mxu0 }
 0x441   :  { %v13794_v12 = vpop.f32.mrf.mxu1 }
 0x442   :  { %v17394_v7 = vpop.f32.mrf.mxu0 }
 0x443   :  { %v3339_v13 = vpop.f32.mrf.mxu1 }
 0x444   :  { %v17396_v41 = vpop.f32.mrf.mxu0 }
 0x445   :  { %v13797_v50 = vpop.f32.mrf.mxu1 }
 0x446   :  { %v17398_v3 = vpop.f32.mrf.mxu0 }
 0x447   :  { %v17400_v20 = vpop.f32.mrf.mxu1 }
 0x448   :  { %v17402_v5 = vpop.f32.mrf.mxu0 }
 0x449   :  { %v17404_v19 = vpop.f32.mrf.mxu1 }
 0x44a   :  { %v17406_v14 = vpop.f32.mrf.mxu0 }
 0x44b   :  { %21514 = vst [vmem:[#allocation72_spill] sm:$0xff] %v17406_v14  ;;  %v17408_v62 = vpop.f32.mrf.mxu1 }
 0x44c   :  { %v17410_v28 = vpop.f32.mrf.mxu0 }
 0x44d   :  { %21515 = vst [vmem:[#allocation57_spill] sm:$0xff] %v17410_v28  ;;  %v17412_v35 = vpop.f32.mrf.mxu1 }
 0x44e   :  { %v17414_v47 = vpop.f32.mrf.mxu0 }
 0x44f   :  { %21516 = vst [vmem:[#allocation71_spill] sm:$0xff] %v17414_v47  ;;  %v17416_v54 = vpop.f32.mrf.mxu1 }
 0x450   :  { %v13784_v26 = vpop.f32.mrf.mxu0 }
 0x451   :  { %v3249_v53 = vadd.f32 %v13784_v26, %v3068_v33  ;;  %v17418_v49 = vpop.f32.mrf.mxu1  ;;  %v2978_v33 = vadd.f32 %v17346_v55, %v17331_v4  ;;  %v2996_v26 = vadd.f32 %v13738_v59, %v17335_v37 }
 0x452   :  { %v17420_v22 = vpop.f32.mrf.mxu0 }
 0x453   :  { %21517 = vst [vmem:[#allocation43_spill] sm:$0xff] %v17420_v22  ;;  %v17422_v6 = vpop.f32.mrf.mxu1  ;;  %v3165_v14 = vadd.f32 %v13766_v23, %v2996_v26  ;;  %v3002_v23 = vadd.f32 %v17360_v58, %v17344_v2  ;;  %v3032_v2 = vadd.f32 %v17372_v31, %v17354_v39 }
 0x454   :  { %21518 = vst [vmem:[#allocation48_spill] sm:$0xff] %v17422_v6  ;;  %v13819_v61 = vpop.f32.mrf.mxu0 }
 0x455   :  { %v17424_v34 = vpop.f32.mrf.mxu1  ;;  %v3527_v60 = vadd.f32 %v13819_v61, %v3332_v63  ;;  %v3348_v55 = vadd.f32 %v13794_v12, %v3165_v14  ;;  %v3340_v12 = vadd.f32 %v3339_v13, %v3158_v1  ;;  %v21530_v1 = vld [vmem:[#allocation72_spill] sm:$0xff] }
 0x456   :  { %21519 = vst [vmem:[#allocation62_spill] sm:$0xff] %v17424_v34  ;;  %v3520_v43 = vpop.f32.mrf.mxu0  ;;  %v3144_v34 = vadd.f32 %v3143_v27, %v2978_v33  ;;  %v3207_v33 = vadd.f32 %v17396_v41, %v3032_v2 }
 0x457   :  { %v17427_v8 = vpop.f32.mrf.mxu1 }
 0x458   :  { %21520 = vst [vmem:[#allocation59_spill] sm:$0xff] %v17427_v8  ;;  %v13822_v47 = vpop.f32.mrf.mxu0  ;;  %v3008_v8 = vadd.f32 %v17356_v36, %v17342_v30  ;;  %v3324_v4 = vadd.f32 %v3323_v11, %v3144_v34  ;;  %v3020_v34 = vadd.f32 %v17364_v18, %v17348_v44  ;;  %v3396_v41 = vadd.f32 %v17412_v35, %v3207_v33 }
 0x459   :  { %v13812_v38 = vpop.f32.mrf.mxu1  ;;  %v3539_v27 = vadd.f32 %v13822_v47, %v3348_v55  ;;  %v3038_v35 = vadd.f32 %v17382_v40, %v17366_v51 }
 0x45a   :  { %v17432_v22 = vadd.f32 %v13812_v38, %v3249_v53  ;;  %v3532_v6 = vpop.f32.mrf.mxu0  ;;  %v3179_v59 = vadd.f32 %v13769_v46, %v3008_v8  ;;  %v3521_v15 = vadd.f32 %v3520_v43, %v3324_v4  ;;  %v3172_v8 = vadd.f32 %v17390_v0, %v3002_v23 }
 0x45b   :  { %v17434_v28 = vpop.f32.mrf.mxu1  ;;  %v3193_v47 = vadd.f32 %v17392_v25, %v3020_v34  ;;  %v3533_v30 = vadd.f32 %v3532_v6, %v3340_v12 }
 0x45c   :  { %v13825_v21 = vpop.f32.mrf.mxu0  ;;  %v3364_v11 = vadd.f32 %v13797_v50, %v3179_v59  ;;  %v3014_v50 = vadd.f32 %v17368_v29, %v17350_v48  ;;  %v3356_v0 = vadd.f32 %v17400_v20, %v3172_v8  ;;  %v3044_v29 = vadd.f32 %v17378_v9, %v17362_v24 }
 0x45d   :  { %v13847_v16 = vpop.f32.mrf.mxu1  ;;  %v3380_v25 = vadd.f32 %v17404_v19, %v3193_v47  ;;  %v3026_v19 = vadd.f32 %v17376_v56, %v17358_v52  ;;  %v3056_v24 = vadd.f32 %v17384_v17, %v17370_v42  ;;  %v3214_v59 = vadd.f32 %v21530_v1, %v3038_v35  ;;  %v21533_v42 = vld [vmem:[#allocation41_spill] sm:$0xff] }
 0x45e   :  { %v17440_v37 = vadd.f32 %v13847_v16, %v3527_v60  ;;  %v3544_v53 = vpop.f32.mrf.mxu0  ;;  %v3551_v45 = vadd.f32 %v13825_v21, %v3364_v11  ;;  %v3186_v18 = vadd.f32 %v17394_v7, %v3014_v50  ;;  %v3221_v4 = vadd.f32 %v17402_v5, %v3044_v29  ;;  %v21535_v11 = vld [vmem:[#allocation62_spill] sm:$0xff] }
 0x45f   :  { %v3683_v38 = vpop.f32.mrf.mxu1  ;;  %v3545_v26 = vadd.f32 %v3544_v53, %v3356_v0  ;;  %v3200_v57 = vadd.f32 %v17398_v3, %v3026_v19  ;;  %v21539_v0 = vld [vmem:[#allocation60_spill] sm:$0xff]  ;;  %v21544_v19 = vld [vmem:[#allocation43_spill] sm:$0xff] }
 0x460   :  { %21521 = vst [vmem:[#allocation73_spill] sm:$0xff] %v17440_v37  ;;  %10290 = vrot.lane.b32.xlu0 %v17440_v37, %s15452_s3  ;;  %v13828_v61 = vpop.f32.mrf.mxu0  ;;  %v17448_v10 = vadd.f32 %v3683_v38, %v3521_v15  ;;  %v3372_v7 = vadd.f32 %v17408_v62, %v3186_v18  ;;  %v3412_v9 = vadd.f32 %v17418_v49, %v3221_v4  ;;  %v21532_v49 = vld [vmem:[#allocation70_spill] sm:$0xff]  ;;  %v21541_v18 = vld [vmem:[#allocation59_spill] sm:$0xff] }
 0x461   :  { %v13850_v14 = vpop.f32.mrf.mxu1  ;;  %v3563_v48 = vadd.f32 %v13828_v61, %v3380_v25  ;;  %v3388_v3 = vadd.f32 %v17416_v54, %v3200_v57  ;;  %v3050_v40 = vadd.f32 %v21533_v42, %v21532_v49  ;;  %v21540_v25 = vld [vmem:[#allocation46_spill] sm:$0xff] }
 0x462   :  { %21522 = vst [vmem:[#allocation74_spill] sm:$0xff] %v17448_v10  ;;  %v17450_v32 = vadd.f32 %v13850_v14, %v3539_v27  ;;  %v3556_v46 = vpop.f32.mrf.mxu0  ;;  %v21531_v27 = vld [vmem:[#allocation57_spill] sm:$0xff]  ;;  %v21534_v14 = vld [vmem:[#allocation48_spill] sm:$0xff] }
 0x463   :  { %v3695_v43 = vpop.f32.mrf.mxu1  ;;  %v3557_v55 = vadd.f32 %v3556_v46, %v3372_v7  ;;  %v3235_v61 = vadd.f32 %v21531_v27, %v3056_v24  ;;  %v3404_v12 = vadd.f32 %v21534_v14, %v3214_v59 }
 0x464   :  { %21523 = vst [vmem:[#allocation45_spill] sm:$0xff] %v17450_v32  ;;  %10294 = vrot.lane.b32.xlu1 %v17450_v32, %s15452_s3  ;;  %10288 = vrot.lane.b32.xlu0 %v17448_v10, %s15452_s3  ;;  %v13831_v13 = vpop.f32.mrf.mxu0  ;;  %v17464_v6 = vadd.f32 %v3695_v43, %v3533_v30 }
 0x465   :  { %v13853_v44 = vpop.f32.mrf.mxu1  ;;  %v3575_v52 = vadd.f32 %v13831_v13, %v3396_v41  ;;  %v3428_v46 = vadd.f32 %v21535_v11, %v3235_v61 }
 0x466   :  { %21524 = vst [vmem:[#allocation49_spill] sm:$0xff] %v17464_v6  ;;  %v17466_v36 = vadd.f32 %v13853_v44, %v3551_v45  ;;  %v3568_v58 = vpop.f32.mrf.mxu0  ;;  %v21538_v45 = vld [vmem:[#allocation71_spill] sm:$0xff] }
 0x467   :  { %v3707_v63 = vpop.f32.mrf.mxu1  ;;  %v3569_v23 = vadd.f32 %v3568_v58, %v3388_v3  ;;  %v3228_v13 = vadd.f32 %v21538_v45, %v3050_v40  ;;  %v3062_v58 = vadd.f32 %v21540_v25, %v21539_v0 }
 0x468   :  { %21525 = vst [vmem:[#allocation64_spill] sm:$0xff] %v17466_v36  ;;  %10298 = vrot.lane.b32.xlu1 %v17466_v36, %s15452_s3  ;;  %10292 = vrot.lane.b32.xlu0 %v17464_v6, %s15452_s3  ;;  %v13834_v39 = vpop.f32.mrf.mxu0  ;;  %v17480_v20 = vadd.f32 %v3707_v63, %v3545_v26 }
 0x469   :  { %v13856_v31 = vpop.f32.mrf.mxu1  ;;  %v3587_v51 = vadd.f32 %v13834_v39, %v3412_v9  ;;  %v3420_v63 = vadd.f32 %v21541_v18, %v3228_v13  ;;  %v3242_v29 = vadd.f32 %v21544_v19, %v3062_v58 }
 0x46a   :  { %21526 = vst [vmem:[#allocation61_spill] sm:$0xff] %v17480_v20  ;;  %v17482_v60 = vadd.f32 %v13856_v31, %v3563_v48  ;;  %v3580_v21 = vpop.f32.mrf.mxu0 }
 0x46b   :  { %v3719_v16 = vpop.f32.mrf.mxu1  ;;  %v3581_v50 = vadd.f32 %v3580_v21, %v3404_v12  ;;  %v3436_v21 = vadd.f32 %v17434_v28, %v3242_v29 }
 0x46c   :  { %21527 = vst [vmem:[#allocation75_spill] sm:$0xff] %v17482_v60  ;;  %10302 = vrot.lane.b32.xlu1 %v17482_v60, %s15452_s3  ;;  %10296 = vrot.lane.b32.xlu0 %v17480_v20, %s15452_s3  ;;  %v13837_v62 = vpop.f32.mrf.mxu0  ;;  %v17496_v5 = vadd.f32 %v3719_v16, %v3557_v55 }
 0x46d   :  { %v13859_v56 = vpop.f32.mrf.mxu1  ;;  %v3599_v2 = vadd.f32 %v13837_v62, %v3428_v46 }
 0x46e   :  { %21528 = vst [vmem:[#allocation47_spill] sm:$0xff] %v17496_v5  ;;  %v17498_v53 = vadd.f32 %v13859_v56, %v3575_v52  ;;  %v3592_v38 = vpop.f32.mrf.mxu0 }
 0x46f   :  { %v3731_v15 = vpop.f32.mrf.mxu1  ;;  %v3593_v31 = vadd.f32 %v3592_v38, %v3420_v63 }
 0x470   :  { %21529 = vst [vmem:[#allocation51_spill] sm:$0xff] %v17498_v53  ;;  %10306 = vrot.lane.b32.xlu1 %v17498_v53, %s15452_s3  ;;  %10300 = vrot.lane.b32.xlu0 %v17496_v5, %s15452_s3  ;;  %v13840_v54 = vpop.f32.mrf.mxu0  ;;  %v17511_v8 = vadd.f32 %v3731_v15, %v3569_v23 }
 0x471   :  { %v3611_v17 = vadd.f32 %v13840_v54, %v17432_v22  ;;  %v13862_v34 = vpop.f32.mrf.mxu1 }
 0x472   :  { %21536 = vst [vmem:[#allocation65_spill] sm:$0xff] %v17511_v8  ;;  %v17513_v43 = vadd.f32 %v13862_v34, %v3587_v51  ;;  %v3604_v47 = vpop.f32.mrf.mxu0 }
 0x473   :  { %v3743_v30 = vpop.f32.mrf.mxu1  ;;  %v3605_v52 = vadd.f32 %v3604_v47, %v3436_v21 }
 0x474   :  { %21537 = vst [vmem:[#allocation80_spill] sm:$0xff] %v17513_v43  ;;  %10310 = vrot.lane.b32.xlu1 %v17513_v43, %s15452_s3  ;;  %10304 = vrot.lane.b32.xlu0 %v17511_v8, %s15452_s3  ;;  %v17520_v22 = vpop.f32.mrf.mxu0  ;;  %v17525_v33 = vadd.f32 %v3743_v30, %v3581_v50 }
 0x475   :  { %v13865_v44 = vpop.f32.mrf.mxu1 }
 0x476   :  { %21542 = vst [vmem:[#allocation63_spill] sm:$0xff] %v17525_v33  ;;  %v17527_v26 = vadd.f32 %v13865_v44, %v3599_v2  ;;  %v17529_v48 = vpop.f32.mrf.mxu0 }
 0x477   :  { %v3755_v39 = vpop.f32.mrf.mxu1 }
 0x478   :  { %21543 = vst [vmem:[#allocation76_spill] sm:$0xff] %v17527_v26  ;;  %10314 = vrot.lane.b32.xlu1 %v17527_v26, %s15452_s3  ;;  %10308 = vrot.lane.b32.xlu0 %v17525_v33, %s15452_s3  ;;  %v17536_v7 = vpop.f32.mrf.mxu0  ;;  %v17539_v57 = vadd.f32 %v3755_v39, %v3593_v31 }
 0x479   :  { %v13868_v41 = vpop.f32.mrf.mxu1 }
 0x47a   :  { %21545 = vst [vmem:[#allocation77_spill] sm:$0xff] %v17539_v57  ;;  %v17541_v16 = vadd.f32 %v13868_v41, %v3611_v17  ;;  %v17543_v4 = vpop.f32.mrf.mxu0 }
 0x47b   :  { %v3767_v55 = vpop.f32.mrf.mxu1 }
 0x47c   :  { %21546 = vst [vmem:[#allocation67_spill] sm:$0xff] %v17541_v16  ;;  %10312 = vrot.lane.b32.xlu0 %v17539_v57, %s15452_s3  ;;  %v17547_v62 = vpop.f32.mrf.mxu0  ;;  %v17549_v24 = vadd.f32 %v3767_v55, %v3605_v52 }
 0x47d   :  { %21547 = vst [vmem:[#allocation82_spill] sm:$0xff] %v17547_v62  ;;  %v13927_v35 = vpop.f32.mrf.mxu1 }
 0x47e   :  { %21548 = vst [vmem:[#allocation78_spill] sm:$0xff] %v17549_v24  ;;  %v3946_v56 = vpop.f32.mrf.mxu0  ;;  %v4174_v6 = vadd.f32 %v13927_v35, %v17520_v22 }
 0x47f   :  { %v4167_v3 = vpop.f32.mrf.mxu1 }
 0x480   :  { %10316 = vrot.lane.b32.xlu0 %v17549_v24, %s15452_s3  ;;  %v13896_v28 = vpop.f32.mrf.mxu0  ;;  %v4168_v10 = vadd.f32 %v4167_v3, %v17529_v48 }
 0x481   :  { %v13930_v9 = vpop.f32.mrf.mxu1 }
 0x482   :  { %v3966_v38 = vpop.f32.mrf.mxu0  ;;  %v4186_v37 = vadd.f32 %v13930_v9, %v17536_v7 }
 0x483   :  { %v4179_v1 = vpop.f32.mrf.mxu1 }
 0x484   :  { %v13899_v59 = vpop.f32.mrf.mxu0  ;;  %v4180_v62 = vadd.f32 %v4179_v1, %v17543_v4 }
 0x485   :  { %v13933_v15 = vpop.f32.mrf.mxu1 }
 0x486   :  { %v3986_v27 = vpop.f32.mrf.mxu0 }
 0x487   :  { %v4191_v61 = vpop.f32.mrf.mxu1 }
 0x488   :  { %v13902_v23 = vpop.f32.mrf.mxu0 }
 0x489   :  { %v13936_v51 = vpop.f32.mrf.mxu1 }
 0x48a   :  { %v4006_v54 = vpop.f32.mrf.mxu0  ;;  %v4210_v3 = vadd.f32 %v13936_v51, %v13896_v28 }
 0x48b   :  { %v4203_v49 = vpop.f32.mrf.mxu1 }
 0x48c   :  { %v13905_v42 = vpop.f32.mrf.mxu0  ;;  %v4204_v48 = vadd.f32 %v4203_v49, %v3966_v38 }
 0x48d   :  { %v13939_v40 = vpop.f32.mrf.mxu1 }
 0x48e   :  { %v4026_v17 = vpop.f32.mrf.mxu0  ;;  %v4222_v7 = vadd.f32 %v13939_v40, %v13899_v59 }
 0x48f   :  { %v4215_v34 = vpop.f32.mrf.mxu1 }
 0x490   :  { %v13908_v14 = vpop.f32.mrf.mxu0  ;;  %v4216_v1 = vadd.f32 %v4215_v34, %v3986_v27 }
 0x491   :  { %v13942_v12 = vpop.f32.mrf.mxu1 }
 0x492   :  { %v4046_v11 = vpop.f32.mrf.mxu0  ;;  %v4234_v4 = vadd.f32 %v13942_v12, %v13902_v23 }
 0x493   :  { %v4227_v46 = vpop.f32.mrf.mxu1 }
 0x495   :  { %v13945_v47 = vpop.f32.mrf.mxu1  ;;  %v13967_v30 = vpop.f32.mrf.mxu0 }
 0x497   :  { %v4239_v45 = vpop.f32.mrf.mxu1  ;;  %v4345_v13 = vpop.f32.mrf.mxu0 }
 0x498   :  { %v4240_v28 = vadd.f32 %v4239_v45, %v4026_v17  ;;  %v4346_v51 = vadd.f32 %v4345_v13, %v4168_v10 }
 0x499   :  { %v13948_v50 = vpop.f32.mrf.mxu1  ;;  %v13970_v2 = vpop.f32.mrf.mxu0 }
 0x49a   :  { %v4258_v38 = vadd.f32 %v13948_v50, %v13908_v14  ;;  %v4367_v40 = vadd.f32 %v13970_v2, %v4186_v37 }
 0x49b   :  { %v4251_v44 = vpop.f32.mrf.mxu1  ;;  %v4359_v0 = vpop.f32.mrf.mxu0 }
 0x49c   :  { %v4252_v59 = vadd.f32 %v4251_v44, %v4046_v11  ;;  %v4360_v27 = vadd.f32 %v4359_v0, %v4180_v62 }
 0x49d   :  { %v13973_v25 = vpop.f32.mrf.mxu0  ;;  %v14007_v58 = vpop.f32.mrf.mxu1 }
 0x49f   :  { %v4373_v18 = vpop.f32.mrf.mxu0  ;;  %v4531_v63 = vpop.f32.mrf.mxu1 }
 0x4a1   :  { %v13976_v39 = vpop.f32.mrf.mxu0  ;;  %v14010_v19 = vpop.f32.mrf.mxu1 }
 0x4a3   :  { %v4387_v29 = vpop.f32.mrf.mxu0  ;;  %v4547_v31 = vpop.f32.mrf.mxu1 }
 0x4a4   :  { %v4548_v17 = vadd.f32 %v4547_v31, %v4360_v27  ;;  %v21552_v31 = vld [vmem:[#allocation37_spill] sm:$0xff] }
 0x4a5   :  { %v13979_v41 = vpop.f32.mrf.mxu0  ;;  %v14013_v21 = vpop.f32.mrf.mxu1 }
 0x4a6   :  { %v4409_v13 = vadd.f32 %v13979_v41, %v4222_v7 }
 0x4a7   :  { %v4401_v55 = vpop.f32.mrf.mxu0  ;;  %v4563_v52 = vpop.f32.mrf.mxu1 }
 0x4a8   :  { %v4402_v50 = vadd.f32 %v4401_v55, %v4216_v1 }
 0x4a9   :  { %v13982_v16 = vpop.f32.mrf.mxu0  ;;  %v14016_v24 = vpop.f32.mrf.mxu1 }
 0x4aa   :  { %v4423_v11 = vadd.f32 %v13982_v16, %v4234_v4 }
 0x4ab   :  { %v4415_v26 = vpop.f32.mrf.mxu0  ;;  %v4579_v57 = vpop.f32.mrf.mxu1 }
 0x4ad   :  { %v13985_v43 = vpop.f32.mrf.mxu0  ;;  %v14019_v33 = vpop.f32.mrf.mxu1 }
 0x4af   :  { %v4429_v53 = vpop.f32.mrf.mxu0  ;;  %v4595_v8 = vpop.f32.mrf.mxu1 }
 0x4b0   :  { %v4596_v55 = vadd.f32 %v4595_v8, %v4402_v50 }
 0x4b1   :  { %v13988_v60 = vpop.f32.mrf.mxu0  ;;  %v14022_v5 = vpop.f32.mrf.mxu1 }
 0x4b3   :  { %v4443_v36 = vpop.f32.mrf.mxu0  ;;  %v17553_v20 = vpop.f32.mrf.mxu1 }
 0x4b4   :  { %21549 = vst [vmem:[#allocation79_spill] sm:$0xff] %v17553_v20  ;;  %v21551_v20 = vld [vmem:[#allocation82_spill] sm:$0xff]  ;;  %v4444_v16 = vadd.f32 %v4443_v36, %v4252_v59 }
 0x4b5   :  { %v17556_v32 = vpop.f32.mrf.mxu1  ;;  %v4198_v22 = vadd.f32 %v13933_v15, %v21551_v20  ;;  %v4228_v15 = vadd.f32 %v4227_v46, %v4006_v54  ;;  %v4353_v20 = vadd.f32 %v13967_v30, %v4174_v6  ;;  %v4532_v54 = vadd.f32 %v4531_v63, %v4346_v51 }
 0x4b6   :  { %21550 = vst [vmem:[#allocation84_spill] sm:$0xff] %v17556_v32  ;;  %v14047_v35 = vpop.f32.mrf.mxu0  ;;  %v4192_v32 = vadd.f32 %v4191_v61, %v3946_v56  ;;  %v4246_v61 = vadd.f32 %v13945_v47, %v13905_v42  ;;  %v4395_v6 = vadd.f32 %v13976_v39, %v4210_v3  ;;  %v4556_v42 = vadd.f32 %v14010_v19, %v4367_v40 }
 0x4b7   :  { %v4627_v9 = vpop.f32.mrf.mxu1  ;;  %v4540_v34 = vadd.f32 %v14007_v58, %v4353_v20  ;;  %v4381_v23 = vadd.f32 %v13973_v25, %v4198_v22  ;;  %v4388_v47 = vadd.f32 %v4387_v29, %v4204_v48  ;;  %v4416_v25 = vadd.f32 %v4415_v26, %v4228_v15  ;;  %v21558_v20 = vld [vmem:[#allocation54_spill] sm:$0xff] }
 0x4b8   :  { %v4746_v56 = vpop.f32.mrf.mxu0  ;;  %v4374_v46 = vadd.f32 %v4373_v18, %v4192_v32  ;;  %v4588_v44 = vadd.f32 %v14016_v24, %v4395_v6  ;;  %v4437_v18 = vadd.f32 %v13985_v43, %v4246_v61  ;;  %v4604_v63 = vadd.f32 %v14019_v33, %v4409_v13  ;;  %v21554_v43 = vld [vmem:[#allocation50_spill] sm:$0xff] }
 0x4b9   :  { %v14028_v49 = vpop.f32.mrf.mxu1  ;;  %v4753_v45 = vadd.f32 %v14047_v35, %v4540_v34  ;;  %v4572_v14 = vadd.f32 %v14013_v21, %v4381_v23  ;;  %v4747_v62 = vadd.f32 %v4746_v56, %v4532_v54  ;;  %v4580_v32 = vadd.f32 %v4579_v57, %v4388_v47 }
 0x4ba   :  { %v14050_v12 = vpop.f32.mrf.mxu0  ;;  %v4564_v2 = vadd.f32 %v4563_v52, %v4374_v46  ;;  %v4430_v19 = vadd.f32 %v4429_v53, %v4240_v28  ;;  %v4451_v52 = vadd.f32 %v13988_v60, %v4258_v38  ;;  %v17565_v35 = vadd.f32 %v14022_v5, %v4423_v11 }
 0x4bb   :  { %v4643_v30 = vpop.f32.mrf.mxu1  ;;  %v4765_v29 = vadd.f32 %v14050_v12, %v4556_v42  ;;  %v21556_v48 = vld [vmem:[#allocation79_spill] sm:$0xff]  ;;  %v21560_v12 = vld [vmem:[#allocation40_spill] sm:$0xff] }
 0x4bc   :  { %v4758_v10 = vpop.f32.mrf.mxu0  ;;  %v17573_v7 = vadd.f32 %v21556_v48, %v4416_v25  ;;  %v17578_v60 = vadd.f32 %v4627_v9, %v4430_v19  ;;  %v17586_v51 = vadd.f32 %v14028_v49, %v4451_v52  ;;  %v17588_v38 = vadd.f32 %v4643_v30, %v4444_v16  ;;  %v21564_v25 = vld [vmem:[#allocation52_spill] sm:$0xff]  ;;  %v21566_v52 = vld [vmem:[#allocation5_spill] sm:$0xff]  ;;  %v21569_v48 = vld [vmem:[#allocation7_spill] sm:$0xff] }
 0x4bd   :  { %v14087_v37 = vpop.f32.mrf.mxu1  ;;  %v4759_v3 = vadd.f32 %v4758_v10, %v4548_v17  ;;  %v21557_v1 = vld [vmem:[#allocation84_spill] sm:$0xff]  ;;  %v21562_v10 = vld [vmem:[#allocation66_spill] sm:$0xff] }
 0x4be   :  { %v14053_v0 = vpop.f32.mrf.mxu0  ;;  %v4922_v58 = vadd.f32 %v14087_v37, %v4753_v45  ;;  %v17576_v4 = vadd.f32 %v21557_v1, %v4437_v18 }
 0x4bf   :  { %v4915_v39 = vpop.f32.mrf.mxu1  ;;  %v4777_v5 = vadd.f32 %v14053_v0, %v4572_v14 }
 0x4c0   :  { %v17563_v22 = vsub.f32 %v21552_v31, %v4922_v58  ;;  %v4770_v41 = vpop.f32.mrf.mxu0  ;;  %v4916_v21 = vadd.f32 %v4915_v39, %v4747_v62 }
 0x4c1   :  { %v14090_v24 = vpop.f32.mrf.mxu1  ;;  %v4771_v9 = vadd.f32 %v4770_v41, %v4564_v2 }
 0x4c2   :  { %21553 = vst [vmem:[#allocation81_spill] sm:$0xff] %v17563_v22  ;;  %v5026_v26 = vmul.f32 %v17563_v22, %v17563_v22  ;;  %v17570_v33 = vsub.f32 %v21554_v43, %v4916_v21  ;;  %v14056_v53 = vpop.f32.mrf.mxu0  ;;  %v4934_v57 = vadd.f32 %v14090_v24, %v4765_v29 }
 0x4c3   :  { %v4927_v36 = vpop.f32.mrf.mxu1  ;;  %v4789_v49 = vadd.f32 %v14056_v53, %v4588_v44 }
 0x4c4   :  { %21555 = vst [vmem:[#allocation83_spill] sm:$0xff] %v17570_v33  ;;  %v5045_v8 = vsel %vm74_vm0, %v5026_v26, 0  ;;  %v5025_v15 = vmul.f32 %v17570_v33, %v17570_v33  ;;  %v17584_v56 = vsub.f32 %v21558_v20, %v4934_v57  ;;  %v4782_v61 = vpop.f32.mrf.mxu0  ;;  %v4928_v28 = vadd.f32 %v4927_v36, %v4759_v3  ;;  %v21567_v3 = vld [vmem:[#allocation42_spill] sm:$0xff] }
 0x4c5   :  { %v17590_v40 = vand.u32 4294901760, %v5045_v8  ;;  %v14093_v59 = vpop.f32.mrf.mxu1  ;;  %v4783_v30 = vadd.f32 %v4782_v61, %v4580_v32 }
 0x4c6   :  { %21559 = vst [vmem:[#allocation72_spill] sm:$0xff] %v17584_v56  ;;  %v5042_v27 = vsel %vm74_vm0, %v5025_v15, 0  ;;  %v5028_v34 = vmul.f32 %v17584_v56, %v17584_v56  ;;  %v17596_v23 = vsub.f32 %v21560_v12, %v4928_v28  ;;  %v14059_v46 = vpop.f32.mrf.mxu0  ;;  %v4946_v54 = vadd.f32 %v14093_v59, %v4777_v5  ;;  %v21570_v28 = vld [vmem:[#allocation38_spill] sm:$0xff] }
 0x4c7   :  { %v17599_v6 = vsub.f32 %v5045_v8, %v17590_v40  ;;  %v4939_v42 = vpop.f32.mrf.mxu1  ;;  %v17601_v47 = vand.u32 4294901760, %v5042_v27  ;;  %v4801_v11 = vadd.f32 %v14059_v46, %v4604_v63 }
 0x4c8   :  { %21561 = vst [vmem:[#allocation57_spill] sm:$0xff] %v17596_v23  ;;  %v5051_v17 = vsel %vm74_vm0, %v5028_v34, 0  ;;  %v5027_v45 = vmul.f32 %v17596_v23, %v17596_v23  ;;  %v17607_v13 = vsub.f32 %v21562_v10, %v4946_v54  ;;  %v4794_v14 = vpop.f32.mrf.mxu0  ;;  %v4940_v50 = vadd.f32 %v4939_v42, %v4771_v9  ;;  %v21600_v10 = vld [vmem:[#allocation23_spill] sm:$0xff] }
 0x4c9   :  { %v21051_v2 = vand.u32 4294901760, %v17599_v6  ;;  %v17610_v37 = vand.u32 4294901760, %v5051_v17  ;;  %v14096_v44 = vpop.f32.mrf.mxu1  ;;  %14165 = vmatprep.mubr.f32.mxu1 %v17601_v47  ;;  %v17614_v62 = vsub.f32 %v5042_v27, %v17601_v47  ;;  %v4795_v29 = vadd.f32 %v4794_v14, %v4596_v55 }
 0x4ca   :  { %21563 = vst [vmem:[#allocation70_spill] sm:$0xff] %v17607_v13  ;;  %v5048_v0 = vsel %vm74_vm0, %v5027_v45, 0  ;;  %v5030_v58 = vmul.f32 %v17607_v13, %v17607_v13  ;;  %v17620_v32 = vsub.f32 %v21564_v25, %v4940_v50  ;;  %v14062_v18 = vpop.f32.mrf.mxu0  ;;  %v4958_v39 = vadd.f32 %v14096_v44, %v4789_v49  ;;  %14166 = vmatmul.mubr.f32.vlgmr.msra.gmra.mxu1 %v17590_v40  ;;  %v21573_v45 = vld [vmem:[#allocation53_spill] sm:$0xff] }
 0x4cb   :  { %v5175_v63 = vsub.f32 %v17599_v6, %v21051_v2  ;;  %v17627_v19 = vsub.f32 %v5051_v17, %v17610_v37  ;;  %v4951_v41 = vpop.f32.mrf.mxu1  ;;  %v17629_v21 = vand.u32 4294901760, %v5048_v0  ;;  %14230 = vmatpush3.msra.mxu1 %v21566_v52  ;;  %v4813_v55 = vadd.f32 %v14062_v18, %v17565_v35  ;;  %v21572_v35 = vld [vmem:[#allocation10_spill] sm:$0xff] }
 0x4cc   :  { %21565 = vst [vmem:[#allocation41_spill] sm:$0xff] %v17620_v32  ;;  %v5057_v16 = vsel %vm74_vm0, %v5030_v58, 0  ;;  %v5029_v24 = vmul.f32 %v17620_v32, %v17620_v32  ;;  %v17636_v26 = vsub.f32 %v21567_v3, %v4958_v39  ;;  %v4806_v53 = vpop.f32.mrf.mxu0  ;;  %v4952_v57 = vadd.f32 %v4951_v41, %v4783_v30  ;;  %14231 = vmatprep.subr.mxu1 %v21569_v48  ;;  %v21592_v3 = vld [vmem:[#allocation16_spill] sm:$0xff] }
 0x4cd   :  { %v5176_v1 = vand.u32 4294901760, %v5175_v63  ;;  %v17639_v5 = vand.u32 4294901760, %v5057_v16  ;;  %v14099_v36 = vpop.f32.mrf.mxu1  ;;  %14168 = vmatprep.mubr.f32.mxu1 %v17629_v21  ;;  %v21052_v8 = vand.u32 4294901760, %v17614_v62  ;;  %14232 = vmatpush3.msra.mxu1 %v21569_v48  ;;  %v4807_v46 = vadd.f32 %v4806_v53, %v17573_v7 }
 0x4ce   :  { %21568 = vst [vmem:[#allocation48_spill] sm:$0xff] %v17636_v26  ;;  %v17646_v15 = vsel %vm74_vm0, %v5029_v24, 0  ;;  %v5032_v61 = vmul.f32 %v17636_v26, %v17636_v26  ;;  %v17651_v9 = vsub.f32 %v21570_v28, %v4952_v57  ;;  %v14065_v59 = vpop.f32.mrf.mxu0  ;;  %v4970_v27 = vadd.f32 %v14099_v36, %v4801_v11  ;;  %14169 = vmatmul.mubr.f32.gmra.mxu1 %v17610_v37  ;;  %v21575_v11 = vld [vmem:[#allocation13_spill] sm:$0xff] }
 0x4cf   :  { %14233 = vmatprep.subr.mxu1 %v21572_v35  ;;  %v17656_v34 = vsub.f32 %v5057_v16, %v17639_v5  ;;  %v4963_v54 = vpop.f32.mrf.mxu1  ;;  %v5165_v49 = vsub.f32 %v17614_v62, %v21052_v8  ;;  %v17663_v30 = vand.u32 4294901760, %v17646_v15  ;;  %v4825_v58 = vadd.f32 %v14065_v59, %v17576_v4  ;;  %v21576_v16 = vld [vmem:[#allocation56_spill] sm:$0xff]  ;;  %v21578_v57 = vld [vmem:[#allocation17_spill] sm:$0xff] }
 0x4d0   :  { %21571 = vst [vmem:[#allocation62_spill] sm:$0xff] %v17651_v9  ;;  %14234 = vmatpush3.msra.mxu1 %v21572_v35  ;;  %v5063_v42 = vsel %vm74_vm0, %v5032_v61, 0  ;;  %v5031_v17 = vmul.f32 %v17651_v9, %v17651_v9  ;;  %v17670_v14 = vsub.f32 %v21573_v45, %v4970_v27  ;;  %v4818_v50 = vpop.f32.mrf.mxu0  ;;  %v4964_v7 = vadd.f32 %v4963_v54, %v4795_v29 }
 0x4d1   :  { %14235 = vmatprep.subr.mxu1 %v21575_v11  ;;  %v17673_v44 = vand.u32 4294901760, %v5063_v42  ;;  %v14102_v18 = vpop.f32.mrf.mxu1  ;;  %v5166_v39 = vand.u32 4294901760, %v5165_v49  ;;  %14171 = vmatprep.mubr.f32.mxu1 %v17663_v30  ;;  %v17678_v63 = vsub.f32 %v5048_v0, %v17629_v21  ;;  %v4819_v36 = vadd.f32 %v4818_v50, %v17578_v60  ;;  %v21579_v49 = vld [vmem:[#allocation39_spill] sm:$0xff]  ;;  %v21581_v50 = vld [vmem:[#allocation20_spill] sm:$0xff] }
 0x4d2   :  { %21574 = vst [vmem:[#allocation71_spill] sm:$0xff] %v17670_v14  ;;  %14236 = vmatpush3.msra.mxu1 %v21575_v11  ;;  %v17682_v41 = vsel %vm74_vm0, %v5031_v17, 0  ;;  %v5034_v29 = vmul.f32 %v17670_v14, %v17670_v14  ;;  %v17687_v24 = vsub.f32 %v21576_v16, %v4964_v7  ;;  %v14068_v53 = vpop.f32.mrf.mxu0  ;;  %v4982_v4 = vadd.f32 %v14102_v18, %v4813_v55 }
 0x4d3   :  { %14172 = vmatmul.mubr.f32.gmra.mxu1 %v17639_v5  ;;  %14237 = vmatprep.subr.mxu1 %v21578_v57  ;;  %v17692_v0 = vsub.f32 %v5063_v42, %v17673_v44  ;;  %v4975_v61 = vpop.f32.mrf.mxu1  ;;  %v21053_v59 = vand.u32 4294901760, %v17678_v63  ;;  %v17697_v27 = vand.u32 4294901760, %v17682_v41  ;;  %v4837_v18 = vadd.f32 %v14068_v53, %v17586_v51  ;;  %v21585_v53 = vld [vmem:[#allocation9_spill] sm:$0xff] }
 0x4d4   :  { %21577 = vst [vmem:[#allocation60_spill] sm:$0xff] %v17687_v24  ;;  %14125 = vmatprep.mubr.f32.mxu0 %v5166_v39  ;;  %14238 = vmatpush3.msra.mxu1 %v21578_v57  ;;  %v5069_v55 = vsel %vm74_vm0, %v5034_v29, 0  ;;  %v5033_v54 = vmul.f32 %v17687_v24, %v17687_v24  ;;  %v17704_v17 = vsub.f32 %v21579_v49, %v4982_v4  ;;  %v4830_v42 = vpop.f32.mrf.mxu0  ;;  %v21582_v39 = vld [vmem:[#allocation6_spill] sm:$0xff]  ;;  %v21054_v4 = vand.u32 4294901760, %v17627_v19 }
 0x4d5   :  { %14126 = vmatmul.mubr.f32.vlgmr.msra.gmra.mxu0 %v5176_v1  ;;  %v4976_v60 = vadd.f32 %v4975_v61, %v4807_v46  ;;  %14239 = vmatprep.subr.mxu1 %v21581_v50  ;;  %v17707_v7 = vand.u32 4294901760, %v5069_v55  ;;  %v14105_v2 = vpop.f32.mrf.mxu1  ;;  %v5185_v29 = vsub.f32 %v17678_v63, %v21053_v59  ;;  %v21583_v61 = vld [vmem:[#allocation68_spill] sm:$0xff]  ;;  %v4831_v59 = vadd.f32 %v4830_v42, %v17588_v38  ;;  %v21586_v38 = vld [vmem:[#allocation58_spill] sm:$0xff] }
 0x4d6   :  { %21580 = vst [vmem:[#allocation46_spill] sm:$0xff] %v17704_v17  ;;  %14190 = vmatpush3.msra.mxu0 %v21582_v39  ;;  %14174 = vmatprep.mubr.f32.mxu1 %v17697_v27  ;;  %v17717_v1 = vsel %vm74_vm0, %v5033_v54, 0  ;;  %v5036_v46 = vmul.f32 %v17704_v17, %v17704_v17  ;;  %v4994_v51 = vadd.f32 %v14105_v2, %v4825_v58  ;;  %v21595_v28 = vand.u32 4294901760, %v17656_v34 }
 0x4d7   :  { %v17722_v8 = vsub.f32 %v21583_v61, %v4976_v60  ;;  %14175 = vmatmul.mubr.f32.gmra.mxu1 %v17673_v44  ;;  %14191 = vmatprep.subr.mxu0 %v21585_v53  ;;  %v5186_v39 = vand.u32 4294901760, %v5185_v29  ;;  %v5195_v49 = vsub.f32 %v17627_v19, %v21054_v4  ;;  %v4987_v54 = vpop.f32.mrf.mxu1  ;;  %v17733_v45 = vsub.f32 %v17646_v15, %v17663_v30  ;;  %v21588_v29 = vld [vmem:[#allocation12_spill] sm:$0xff] }
 0x4d8   :  { %14192 = vmatpush3.msra.mxu0 %v21585_v53  ;;  %14240 = vmatpush3.msra.mxu1 %v21581_v50  ;;  %v5075_v2 = vsel %vm74_vm0, %v5036_v46, 0  ;;  %v17740_v42 = vsub.f32 %v21586_v38, %v4994_v51  ;;  %v4988_v60 = vadd.f32 %v4987_v54, %v4819_v36  ;;  %v21589_v4 = vld [vmem:[#allocation24_spill] sm:$0xff]  ;;  %v17745_v53 = vsub.f32 %v5069_v55, %v17707_v7 }
 0x4d9   :  { %21584 = vst [vmem:[#allocation59_spill] sm:$0xff] %v17722_v8  ;;  %v5035_v58 = vmul.f32 %v17722_v8, %v17722_v8  ;;  %14193 = vmatprep.subr.mxu0 %v21588_v29  ;;  %14241 = vmatprep.subr.mxu1 %v21589_v4  ;;  %v5196_v15 = vand.u32 4294901760, %v5195_v49  ;;  %v14108_v61 = vpop.f32.mrf.mxu1  ;;  %v21058_v16 = vand.u32 4294901760, %v17733_v45  ;;  %v17749_v46 = vand.u32 4294901760, %v17717_v1  ;;  %v21590_v54 = vld [vmem:[#allocation44_spill] sm:$0xff]  ;;  %v21596_v8 = vld [vmem:[#allocation21_spill] sm:$0xff] }
 0x4da   :  { %21587 = vst [vmem:[#allocation43_spill] sm:$0xff] %v17740_v42  ;;  %14128 = vmatprep.mubr.f32.mxu0 %v5186_v39  ;;  %14194 = vmatpush3.msra.mxu0 %v21588_v29  ;;  %v17752_v51 = vand.u32 4294901760, %v5075_v2  ;;  %v5038_v36 = vmul.f32 %v17740_v42, %v17740_v42  ;;  %v17757_v38 = vsub.f32 %v21590_v54, %v4988_v60 }
 0x4db   :  { %v5006_v55 = vadd.f32 %v14108_v61, %v4837_v18  ;;  %14195 = vmatprep.subr.mxu0 %v21592_v3  ;;  %14242 = vmatpush3.msra.mxu1 %v21589_v4  ;;  %v5072_v49 = vsel %vm74_vm0, %v5035_v58, 0  ;;  %v5205_v39 = vsub.f32 %v17733_v45, %v21058_v16  ;;  %v4999_v42 = vpop.f32.mrf.mxu1  ;;  %v17769_v60 = vsub.f32 %v17682_v41, %v17697_v27  ;;  %v21593_v58 = vld [vmem:[#allocation69_spill] sm:$0xff] }
 0x4dc   :  { %21591 = vst [vmem:[#allocation82_spill] sm:$0xff] %v17757_v38  ;;  %14129 = vmatmul.mubr.f32.gmra.mxu0 %v5196_v15  ;;  %14177 = vmatprep.mubr.f32.mxu1 %v17749_v46  ;;  %v5081_v18 = vsel %vm74_vm0, %v5038_v36, 0  ;;  %v5037_v61 = vmul.f32 %v17757_v38, %v17757_v38  ;;  %v5000_v16 = vadd.f32 %v4999_v42, %v4831_v59  ;;  %v21597_v38 = vld [vmem:[#allocation29_spill] sm:$0xff]  ;;  %v21598_v42 = vld [vmem:[#allocation55_spill] sm:$0xff] }
 0x4dd   :  { %v17775_v15 = vsub.f32 %v21593_v58, %v5006_v55  ;;  %14178 = vmatmul.mubr.f32.gmra.mxu1 %v17707_v7  ;;  %14196 = vmatpush3.msra.mxu0 %v21592_v3  ;;  %v17779_v54 = vand.u32 4294901760, %v5081_v18  ;;  %v5206_v29 = vand.u32 4294901760, %v5205_v39  ;;  %v5215_v41 = vsub.f32 %v17656_v34, %v21595_v28 }
 0x4de   :  { %v21064_v36 = vand.u32 4294901760, %v17769_v60  ;;  %14197 = vmatprep.subr.mxu0 %v21596_v8  ;;  %14243 = vmatprep.subr.mxu1 %v21597_v38  ;;  %v5078_v55 = vsel %vm74_vm0, %v5037_v61, 0  ;;  %v17791_v3 = vsub.f32 %v21598_v42, %v5000_v16  ;;  %v17793_v58 = vand.u32 4294901760, %v5072_v49 }
 0x4df   :  { %21594 = vst [vmem:[#allocation79_spill] sm:$0xff] %v17775_v15  ;;  %v5040_v59 = vmul.f32 %v17775_v15, %v17775_v15  ;;  %14198 = vmatpush3.msra.mxu0 %v21596_v8  ;;  %14244 = vmatpush3.msra.mxu1 %v21597_v38  ;;  %v17798_v28 = vsub.f32 %v5075_v2, %v17752_v51  ;;  %v5216_v39 = vand.u32 4294901760, %v5215_v41  ;;  %v21067_v15 = vand.u32 4294901760, %v17692_v0 }
 0x4e0   :  { %21599 = vst [vmem:[#allocation84_spill] sm:$0xff] %v17791_v3  ;;  %14131 = vmatprep.mubr.f32.mxu0 %v5206_v29  ;;  %v5225_v61 = vsub.f32 %v17769_v60, %v21064_v36  ;;  %14199 = vmatprep.subr.mxu0 %v21600_v10  ;;  %v5039_v8 = vmul.f32 %v17791_v3, %v17791_v3  ;;  %v17813_v29 = vand.u32 4294901760, %v5078_v55  ;;  %v21070_v42 = vand.u32 4294901760, %v17745_v53 }
 0x4e1   :  { %v5087_v16 = vsel %vm74_vm0, %v5040_v59, 0  ;;  %14180 = vmatprep.mubr.f32.mxu1 %v17793_v58  ;;  %v17811_v2 = vsub.f32 %v17717_v1, %v17749_v46  ;;  %14200 = vmatpush3.msra.mxu0 %v21600_v10  ;;  %v17817_v41 = vsub.f32 %v5081_v18, %v17779_v54  ;;  %v5235_v59 = vsub.f32 %v17692_v0, %v21067_v15 }
 0x4e2   :  { %14132 = vmatmul.mubr.f32.gmra.mxu0 %v5216_v39  ;;  %v5226_v36 = vand.u32 4294901760, %v5225_v61  ;;  %14181 = vmatmul.mubr.f32.gmra.mxu1 %v17752_v51  ;;  %v17824_v3 = vand.u32 4294901760, %v5087_v16  ;;  %v5084_v1 = vsel %vm74_vm0, %v5039_v8, 0  ;;  %v17830_v18 = vsub.f32 %v5072_v49, %v17793_v58  ;;  %v21601_v39 = vld [vmem:[#allocation28_spill] sm:$0xff] }
 0x4e3   :  { %v21071_v17 = vand.u32 4294901760, %v17811_v2  ;;  %14183 = vmatprep.mubr.f32.mxu1 %v17813_v29  ;;  %14201 = vmatprep.subr.mxu0 %v21601_v39  ;;  %v5236_v61 = vand.u32 4294901760, %v5235_v59  ;;  %v5255_v15 = vsub.f32 %v17745_v53, %v21070_v42  ;;  %v17836_v10 = vand.u32 4294901760, %v5084_v1 }
 0x4e4   :  { %14134 = vmatprep.mubr.f32.mxu0 %v5226_v36  ;;  %14202 = vmatpush3.msra.mxu0 %v21601_v39  ;;  %v21075_v49 = vand.u32 4294901760, %v17830_v18  ;;  %v17845_v24 = vsub.f32 %v5078_v55, %v17813_v29  ;;  %v21602_v36 = vld [vmem:[#allocation31_spill] sm:$0xff]  ;;  %v17854_v42 = vsub.f32 %v5087_v16, %v17824_v3  ;;  %v21603_v39 = vand.u32 4294901760, %v17798_v28 }
 0x4e5   :  { %v5245_v8 = vsub.f32 %v17811_v2, %v21071_v17  ;;  %14203 = vmatprep.subr.mxu0 %v21602_v36  ;;  %14309 = vmatprep.subr.mxu1 %v21566_v52  ;;  %v17851_v59 = vsub.f32 %v5084_v1, %v17836_v10  ;;  %v5294_v14 = vand.u32 4294901760, %v17817_v41 }
 0x4e6   :  { %14135 = vmatmul.mubr.f32.gmra.mxu0 %v5236_v61  ;;  %14184 = vmatmul.mubr.f32.gmra.mxu1 %v17779_v54  ;;  %v5265_v17 = vsub.f32 %v17830_v18, %v21075_v49  ;;  %v5284_v55 = vand.u32 4294901760, %v17845_v24  ;;  %v5256_v61 = vand.u32 4294901760, %v5255_v15  ;;  %v5275_v1 = vsub.f32 %v17798_v28, %v21603_v39 }
 0x4e7   :  { %v5246_v25 = vand.u32 4294901760, %v5245_v8  ;;  %14186 = vmatprep.mubr.f32.mxu1 %v17836_v10  ;;  %14204 = vmatpush3.msra.mxu0 %v21602_v36  ;;  %v5304_v16 = vand.u32 4294901760, %v17851_v59  ;;  %v21604_v8 = vld [vmem:[#allocation8_spill] sm:$0xff]  ;;  %v21605_v15 = vand.u32 4294901760, %v17614_v62  ;;  %v5295_v26 = vsub.f32 %v17817_v41, %v5294_v14 }
 0x4e8   :  { %14269 = vmatprep.subr.mxu0 %v21604_v8  ;;  %v5266_v9 = vand.u32 4294901760, %v5265_v17  ;;  %v5285_v49 = vsub.f32 %v17845_v24, %v5284_v55  ;;  %v5276_v12 = vand.u32 4294901760, %v5275_v1  ;;  %v5314_v20 = vand.u32 4294901760, %v17854_v42 }
 0x4e9   :  { %14137 = vmatprep.mubr.f32.mxu0 %v5246_v25  ;;  %v5305_v39 = vsub.f32 %v17851_v59, %v5304_v16  ;;  %v21606_v25 = vand.u32 4294901760, %v17599_v6  ;;  %v21607_v17 = vand.u32 4294901760, %v17678_v63  ;;  %v21611_v1 = vand.u32 4294901760, %v17769_v60 }
 0x4ea   :  { %14138 = vmatmul.mubr.f32.gmra.mxu0 %v5256_v61  ;;  %14187 = vmatmul.mubr.f32.gmra.mxu1 %v17824_v3  ;;  %v5286_v36 = vand.u32 4294901760, %v5285_v49  ;;  %v5296_v61 = vand.u32 4294901760, %v5295_v26  ;;  %v21608_v49 = vand.u32 4294901760, %v17627_v19  ;;  %v21610_v26 = vand.u32 4294901760, %v17656_v34 }
 0x4eb   :  { %14140 = vmatprep.mubr.f32.mxu0 %v5266_v9  ;;  %14245 = vmatprep.mubr.f32.mxu1 %v21605_v15  ;;  %v5306_v9 = vand.u32 4294901760, %v5305_v39  ;;  %v5315_v15 = vsub.f32 %v17854_v42, %v5314_v20  ;;  %v21612_v39 = vand.u32 4294901760, %v17692_v0 }
 0x4ee   :  { %14141 = vmatmul.mubr.f32.gmra.mxu0 %v5276_v12  ;;  %14246 = vmatmul.mubr.f32.vlgmr.msra.gmra.mxu1 %v21606_v25  ;;  %v21609_v12 = vand.u32 4294901760, %v17733_v45  ;;  %v21613_v25 = vld [vmem:[#allocation11_spill] sm:$0xff] }
 0x4ef   :  { %14143 = vmatprep.mubr.f32.mxu0 %v5286_v36  ;;  %14248 = vmatprep.mubr.f32.mxu1 %v21607_v17  ;;  %v5316_v36 = vand.u32 4294901760, %v5315_v15  ;;  %v21616_v17 = vld [vmem:[#allocation15_spill] sm:$0xff] }
 0x4f0   :  { %14310 = vmatpush3.msra.mxu1 %v21566_v52 }
 0x4f1   :  { %14311 = vmatprep.subr.mxu1 %v21569_v48 }
 0x4f2   :  { %14144 = vmatmul.mubr.f32.gmra.mxu0 %v5296_v61  ;;  %14249 = vmatmul.mubr.f32.gmra.mxu1 %v21608_v49 }
 0x4f3   :  { %14146 = vmatprep.mubr.f32.mxu0 %v5306_v9  ;;  %14251 = vmatprep.mubr.f32.mxu1 %v21609_v12  ;;  %v21618_v9 = vld [vmem:[#allocation19_spill] sm:$0xff] }
 0x4f4   :  { %14312 = vmatpush3.msra.mxu1 %v21569_v48 }
 0x4f5   :  { %14313 = vmatprep.subr.mxu1 %v21572_v35 }
 0x4f6   :  { %14147 = vmatmul.mubr.f32.gmra.mxu0 %v5316_v36  ;;  %14252 = vmatmul.mubr.f32.gmra.mxu1 %v21610_v26  ;;  %v20_v36 = vld [vmem:[%s20879_s1 + $0x40] sm:$0xff] }
 0x4f7   :  { %14205 = vmatprep.mubr.f32.mxu0 %v17614_v62  ;;  %14254 = vmatprep.mubr.f32.mxu1 %v21611_v1  ;;  %v21614_v62 = vand.u32 4294901760, %v17811_v2 }
 0x4f8   :  { %14314 = vmatpush3.msra.mxu1 %v21572_v35 }
 0x4f9   :  { %14315 = vmatprep.subr.mxu1 %v21575_v11 }
 0x4fa   :  { %14206 = vmatmul.mubr.f32.vlgmr.msra.gmra.mxu0 %v17599_v6  ;;  %14255 = vmatmul.mubr.f32.gmra.mxu1 %v21612_v39  ;;  %v21615_v6 = vand.u32 4294901760, %v17745_v53 }
 0x4fb   :  { %14208 = vmatprep.mubr.f32.mxu0 %v17678_v63  ;;  %14270 = vmatpush3.msra.mxu0 %v21604_v8  ;;  %v21617_v63 = vand.u32 4294901760, %v17830_v18 }
 0x4fc   :  { %14271 = vmatprep.subr.mxu0 %v21613_v25  ;;  %14257 = vmatprep.mubr.f32.mxu1 %v21614_v62  ;;  %v18073_v62 = vand.u32 4294901760, %v20_v36 }
 0x4fd   :  { %14272 = vmatpush3.msra.mxu0 %v21613_v25  ;;  %14316 = vmatpush3.msra.mxu1 %v21575_v11 }
 0x4fe   :  { %14209 = vmatmul.mubr.f32.gmra.mxu0 %v17627_v19  ;;  %14258 = vmatmul.mubr.f32.gmra.mxu1 %v21615_v6  ;;  %v21619_v19 = vand.u32 4294901760, %v17798_v28  ;;  %21644 = vst [vmem:[#allocation106_spill] sm:$0xff] %v18073_v62 }
 0x4ff   :  { %14211 = vmatprep.mubr.f32.mxu0 %v17733_v45  ;;  %14273 = vmatprep.subr.mxu0 %v21616_v17  ;;  %v21620_v45 = vld [vmem:[#allocation25_spill] sm:$0xff] }
 0x500   :  { %14260 = vmatprep.mubr.f32.mxu1 %v21617_v63  ;;  %14274 = vmatpush3.msra.mxu0 %v21616_v17 }
 0x501   :  { %14275 = vmatprep.subr.mxu0 %v21618_v9  ;;  %14317 = vmatprep.subr.mxu1 %v21578_v57 }
 0x502   :  { %14212 = vmatmul.mubr.f32.gmra.mxu0 %v17656_v34  ;;  %14261 = vmatmul.mubr.f32.gmra.mxu1 %v21619_v19  ;;  %v21621_v34 = vld [vmem:[#allocation27_spill] sm:$0xff] }
 0x503   :  { %14214 = vmatprep.mubr.f32.mxu0 %v17769_v60  ;;  %14263 = vmatprep.mubr.f32.mxu1 %v5284_v55  ;;  %v21_v55 = vld [vmem:[%s20879_s1 + $0x48] sm:$0xff] }
 0x504   :  { %14276 = vmatpush3.msra.mxu0 %v21618_v9  ;;  %14318 = vmatpush3.msra.mxu1 %v21578_v57  ;;  %v18057_v49 = vand.u32 4294901760, %v21_v55 }
 0x505   :  { %14277 = vmatprep.subr.mxu0 %v21620_v45  ;;  %14319 = vmatprep.subr.mxu1 %v21581_v50 }
 0x506   :  { %14215 = vmatmul.mubr.f32.gmra.mxu0 %v17692_v0  ;;  %14264 = vmatmul.mubr.f32.gmra.mxu1 %v5294_v14  ;;  %v21622_v14 = vld [vmem:[#allocation30_spill] sm:$0xff]  ;;  %21640 = vst [vmem:[#allocation102_spill] sm:$0xff] %v18057_v49  ;;  %v18070_v39 = vsub.f32 %v21_v55, %v18057_v49 }
 0x507   :  { %14217 = vmatprep.mubr.f32.mxu0 %v17811_v2  ;;  %14266 = vmatprep.mubr.f32.mxu1 %v5304_v16 }
 0x508   :  { %14278 = vmatpush3.msra.mxu0 %v21620_v45  ;;  %14320 = vmatpush3.msra.mxu1 %v21581_v50  ;;  %21643 = vst [vmem:[#allocation105_spill] sm:$0xff] %v18070_v39  ;;  %v18081_v19 = vand.u32 4294901760, %v18070_v39 }
 0x509   :  { %14279 = vmatprep.subr.mxu0 %v21621_v34  ;;  %14321 = vmatprep.subr.mxu1 %v21589_v4 }
 0x50a   :  { %14218 = vmatmul.mubr.f32.gmra.mxu0 %v17745_v53  ;;  %14267 = vmatmul.mubr.f32.gmra.mxu1 %v5314_v20  ;;  %v21623_v20 = vld [vmem:[#allocation34_spill] sm:$0xff]  ;;  %21645 = vst [vmem:[#allocation107_spill] sm:$0xff] %v18081_v19 }
 0x50b   :  { %14220 = vmatprep.mubr.f32.mxu0 %v17830_v18  ;;  %14280 = vmatpush3.msra.mxu0 %v21621_v34 }
 0x50c   :  { %14322 = vmatpush3.msra.mxu1 %v21589_v4  ;;  %14325 = vmatprep.mubr.f32.mxu1 %v17601_v47 }
 0x50d   :  { %14323 = vmatprep.subr.mxu1 %v21597_v38  ;;  %14281 = vmatprep.subr.mxu0 %v21622_v14 }
 0x50e   :  { %14221 = vmatmul.mubr.f32.gmra.mxu0 %v17798_v28  ;;  %14324 = vmatpush3.msra.mxu1 %v21597_v38  ;;  %v22_v28 = vld [vmem:[%s20879_s1 + $0x50] sm:$0xff] }
 0x50f   :  { %14223 = vmatprep.mubr.f32.mxu0 %v17845_v24  ;;  %14326 = vmatmul.mubr.f32.vlgmr.msra.gmra.mxu1 %v17590_v40  ;;  %v24_v24 = vld [vmem:[%s20879_s1 + $0x60] sm:$0xff]  ;;  %v18042_v18 = vand.u32 4294901760, %v22_v28 }
 0x510   :  { %14282 = vmatpush3.msra.mxu0 %v21622_v14  ;;  %14328 = vmatprep.mubr.f32.mxu1 %v17629_v21  ;;  %v18016_v53 = vand.u32 4294901760, %v24_v24 }
 0x511   :  { %14283 = vmatprep.subr.mxu0 %v21623_v20  ;;  %21637 = vst [vmem:[#allocation99_spill] sm:$0xff] %v18042_v18  ;;  %v18055_v15 = vsub.f32 %v22_v28, %v18042_v18 }
 0x512   :  { %14224 = vmatmul.mubr.f32.gmra.mxu0 %v17817_v41  ;;  %21632 = vst [vmem:[#allocation94_spill] sm:$0xff] %v18016_v53 }
 0x513   :  { %14226 = vmatprep.mubr.f32.mxu0 %v17851_v59  ;;  %14329 = vmatmul.mubr.f32.gmra.mxu1 %v17610_v37  ;;  %21639 = vst [vmem:[#allocation101_spill] sm:$0xff] %v18055_v15  ;;  %v18067_v1 = vand.u32 4294901760, %v18055_v15 }
 0x514   :  { %14284 = vmatpush3.msra.mxu0 %v21623_v20  ;;  %14331 = vmatprep.mubr.f32.mxu1 %v17663_v30 }
 0x515   :  { %21642 = vst [vmem:[#allocation104_spill] sm:$0xff] %v18067_v1  ;;  %v6716_v63 = vsub.f32 %v18055_v15, %v18067_v1 }
 0x516   :  { %14227 = vmatmul.mubr.f32.gmra.mxu0 %v17854_v42 }
 0x517   :  { %14285 = vmatprep.mubr.f32.mxu0 %v17601_v47  ;;  %14332 = vmatmul.mubr.f32.gmra.mxu1 %v17639_v5 }
 0x518   :  { %14334 = vmatprep.mubr.f32.mxu1 %v17697_v27 }
 0x51a   :  { %14286 = vmatmul.mubr.f32.vlgmr.msra.gmra.mxu0 %v17590_v40  ;;  %v27_v40 = vld [vmem:[%s20879_s1 + $0x78] sm:$0xff] }
 0x51b   :  { %14288 = vmatprep.mubr.f32.mxu0 %v17629_v21  ;;  %14335 = vmatmul.mubr.f32.gmra.mxu1 %v17673_v44  ;;  %v17979_v47 = vand.u32 4294901760, %v27_v40 }
 0x51c   :  { %14337 = vmatprep.mubr.f32.mxu1 %v17749_v46 }
 0x51d   :  { %21624 = vst [vmem:[#allocation86_spill] sm:$0xff] %v17979_v47  ;;  %14349 = vmatprep.subr.mxu0 %v17979_v47  ;;  %v17986_v21 = vsub.f32 %v27_v40, %v17979_v47  ;;  %v18084_v40 = vsub.f32 %v20_v36, %v18073_v62 }
 0x51e   :  { %14289 = vmatmul.mubr.f32.gmra.mxu0 %v17610_v37  ;;  %v26_v37 = vld [vmem:[%s20879_s1 + $0x70] sm:$0xff] }
 0x51f   :  { %14291 = vmatprep.mubr.f32.mxu0 %v17663_v30  ;;  %14338 = vmatmul.mubr.f32.gmra.mxu1 %v17707_v7  ;;  %21625 = vst [vmem:[#allocation87_spill] sm:$0xff] %v17986_v21  ;;  %21646 = vst [vmem:[#allocation108_spill] sm:$0xff] %v18084_v40 }
 0x520   :  { %14340 = vmatprep.mubr.f32.mxu1 %v17793_v58  ;;  %14350 = vmatpush3.msra.mxu0 %v17979_v47 }
 0x522   :  { %14292 = vmatmul.mubr.f32.gmra.mxu0 %v17639_v5  ;;  %v17988_v5 = vand.u32 4294901760, %v26_v37 }
 0x523   :  { %14294 = vmatprep.mubr.f32.mxu0 %v17697_v27  ;;  %14341 = vmatmul.mubr.f32.gmra.mxu1 %v17752_v51 }
 0x524   :  { %14343 = vmatprep.mubr.f32.mxu1 %v17813_v29  ;;  %21626 = vst [vmem:[#allocation88_spill] sm:$0xff] %v17988_v5  ;;  %14351 = vmatprep.subr.mxu0 %v17988_v5  ;;  %v17999_v30 = vsub.f32 %v26_v37, %v17988_v5 }
 0x525   :  { %14352 = vmatpush3.msra.mxu0 %v17988_v5 }
 0x526   :  { %14295 = vmatmul.mubr.f32.gmra.mxu0 %v17673_v44  ;;  %21628 = vst [vmem:[#allocation90_spill] sm:$0xff] %v17999_v30  ;;  %v18010_v27 = vand.u32 4294901760, %v17999_v30 }
 0x527   :  { %14297 = vmatprep.mubr.f32.mxu0 %v17749_v46  ;;  %14344 = vmatmul.mubr.f32.gmra.mxu1 %v17779_v54  ;;  %v23_v46 = vld [vmem:[%s20879_s1 + $0x58] sm:$0xff] }
 0x528   :  { %14346 = vmatprep.mubr.f32.mxu1 %v17836_v10  ;;  %21630 = vst [vmem:[#allocation92_spill] sm:$0xff] %v18010_v27  ;;  %v18032_v42 = vand.u32 4294901760, %v23_v46 }
 0x52a   :  { %14298 = vmatmul.mubr.f32.gmra.mxu0 %v17707_v7  ;;  %21635 = vst [vmem:[#allocation97_spill] sm:$0xff] %v18032_v42  ;;  %v18046_v59 = vsub.f32 %v23_v46, %v18032_v42 }
 0x52b   :  { %14300 = vmatprep.mubr.f32.mxu0 %v17793_v58  ;;  %14347 = vmatmul.mubr.f32.gmra.mxu1 %v17824_v3  ;;  %v18029_v58 = vsub.f32 %v24_v24, %v18016_v53  ;;  %v6723_v24 = vsub.f32 %v18070_v39, %v18081_v19 }
 0x52c   :  { %21638 = vst [vmem:[#allocation100_spill] sm:$0xff] %v18046_v59  ;;  %v18060_v12 = vand.u32 4294901760, %v18046_v59 }
 0x52d   :  { %21634 = vst [vmem:[#allocation96_spill] sm:$0xff] %v18029_v58  ;;  %v18040_v41 = vand.u32 4294901760, %v18029_v58  ;;  %v6724_v46 = vand.u32 4294901760, %v6723_v24 }
 0x52e   :  { %14301 = vmatmul.mubr.f32.gmra.mxu0 %v17752_v51  ;;  %21641 = vst [vmem:[#allocation103_spill] sm:$0xff] %v18060_v12  ;;  %v6709_v6 = vsub.f32 %v18046_v59, %v18060_v12 }
 0x52f   :  { %14303 = vmatprep.mubr.f32.mxu0 %v17813_v29  ;;  %21636 = vst [vmem:[#allocation98_spill] sm:$0xff] %v18040_v41  ;;  %v6702_v61 = vsub.f32 %v18029_v58, %v18040_v41 }
 0x530   :  { %v6710_v37 = vand.u32 4294901760, %v6709_v6 }
 0x531   :  { %v6703_v26 = vand.u32 4294901760, %v6702_v61 }
 0x532   :  { %14304 = vmatmul.mubr.f32.gmra.mxu0 %v17779_v54  ;;  %v6688_v54 = vsub.f32 %v17999_v30, %v18010_v27 }
 0x533   :  { %14306 = vmatprep.mubr.f32.mxu0 %v17836_v10  ;;  %v25_v10 = vld [vmem:[%s20879_s1 + $0x68] sm:$0xff] }
 0x534   :  { %v18001_v44 = vand.u32 4294901760, %v25_v10  ;;  %v6689_v2 = vand.u32 4294901760, %v6688_v54 }
 0x536   :  { %14307 = vmatmul.mubr.f32.gmra.mxu0 %v17824_v3  ;;  %v17995_v3 = vand.u32 4294901760, %v17986_v21  ;;  %21629 = vst [vmem:[#allocation91_spill] sm:$0xff] %v18001_v44  ;;  %14353 = vmatprep.subr.mxu0 %v18001_v44  ;;  %v18014_v7 = vsub.f32 %v25_v10, %v18001_v44  ;;  %v6717_v10 = vand.u32 4294901760, %v6716_v63 }
 0x537   :  { %14354 = vmatpush3.msra.mxu0 %v18001_v44 }
 0x538   :  { %21627 = vst [vmem:[#allocation89_spill] sm:$0xff] %v17995_v3  ;;  %v6681_v0 = vsub.f32 %v17986_v21, %v17995_v3  ;;  %21631 = vst [vmem:[#allocation93_spill] sm:$0xff] %v18014_v7  ;;  %v18025_v60 = vand.u32 4294901760, %v18014_v7  ;;  %14355 = vmatprep.subr.mxu0 %v18016_v53 }
 0x539   :  { %14356 = vmatpush3.msra.mxu0 %v18016_v53 }
 0x53a   :  { %v6682_v51 = vand.u32 4294901760, %v6681_v0  ;;  %21633 = vst [vmem:[#allocation95_spill] sm:$0xff] %v18025_v60  ;;  %v6695_v29 = vsub.f32 %v18014_v7, %v18025_v60  ;;  %14357 = vmatprep.subr.mxu0 %v18032_v42  ;;  %v18091_v0 = vand.u32 4294901760, %v18084_v40 }
 0x53b   :  { %14358 = vmatpush3.msra.mxu0 %v18032_v42 }
 0x53c   :  { %14389 = vmatprep.subr.mxu1 %v6682_v51  ;;  %v6696_v16 = vand.u32 4294901760, %v6695_v29  ;;  %14359 = vmatprep.subr.mxu0 %v18042_v18  ;;  %21647 = vst [vmem:[#allocation109_spill] sm:$0xff] %v18091_v0 }
 0x53d   :  { %14390 = vmatpush3.msra.mxu1 %v6682_v51  ;;  %14360 = vmatpush3.msra.mxu0 %v18042_v18  ;;  %v6730_v51 = vsub.f32 %v18084_v40, %v18091_v0 }
 0x53e   :  { %14391 = vmatprep.subr.mxu1 %v6689_v2  ;;  %14361 = vmatprep.subr.mxu0 %v18057_v49 }
 0x53f   :  { %14392 = vmatpush3.msra.mxu1 %v6689_v2  ;;  %14362 = vmatpush3.msra.mxu0 %v18057_v49  ;;  %v6731_v54 = vand.u32 4294901760, %v6730_v51 }
 0x540   :  { %14393 = vmatprep.subr.mxu1 %v6696_v16  ;;  %14363 = vmatprep.subr.mxu0 %v18073_v62 }
 0x541   :  { %14394 = vmatpush3.msra.mxu1 %v6696_v16  ;;  %14364 = vmatpush3.msra.mxu0 %v18073_v62 }
 0x542   :  { %14395 = vmatprep.subr.mxu1 %v6703_v26  ;;  %14429 = vmatprep.subr.mxu0 %v17986_v21 }
 0x543   :  { %14396 = vmatpush3.msra.mxu1 %v6703_v26 }
 0x544   :  { %14397 = vmatprep.subr.mxu1 %v6710_v37 }
 0x545   :  { %14398 = vmatpush3.msra.mxu1 %v6710_v37 }
 0x546   :  { %14399 = vmatprep.subr.mxu1 %v6717_v10 }
 0x547   :  { %14400 = vmatpush3.msra.mxu1 %v6717_v10 }
 0x548   :  { %14401 = vmatprep.subr.mxu1 %v6724_v46 }
 0x549   :  { %14402 = vmatpush3.msra.mxu1 %v6724_v46 }
 0x54a   :  { %14403 = vmatprep.subr.mxu1 %v6731_v54 }
 0x54b   :  { %14404 = vmatpush3.msra.mxu1 %v6731_v54 }
 0x54c   :  { %14469 = vmatprep.subr.mxu1 %v17979_v47 }
 0x58a   :  { %v18098_v28 = vpop.f32.mrf.mxu1 }
 0x58c   :  { %v18100_v2 = vpop.f32.mrf.mxu1 }
 0x58e   :  { %v18102_v29 = vpop.f32.mrf.mxu1 }
 0x590   :  { %v18104_v55 = vpop.f32.mrf.mxu1 }
 0x593   :  { %v18106_v16 = vpop.f32.mrf.mxu1 }
 0x595   :  { %v14127_v61 = vpop.f32.mrf.mxu0  ;;  %v18108_v36 = vpop.f32.mrf.mxu1 }
 0x596   :  { %v5179_v47 = vadd.f32 1e-05, %v14127_v61 }
 0x597   :  { %v18110_v26 = vpop.f32.mrf.mxu1  ;;  %v5168_v6 = vpop.f32.mrf.mxu0 }
 0x598   :  { %v5169_v13 = vadd.f32 1e-05, %v5168_v6 }
 0x599   :  { %v18112_v63 = vpop.f32.mrf.mxu1 }
 0x59c   :  { %v14130_v37 = vpop.f32.mrf.mxu0 }
 0x59d   :  { %v14179_v10 = vpop.f32.mrf.mxu1  ;;  %v5199_v56 = vadd.f32 1e-05, %v14130_v37 }
 0x59e   :  { %v18114_v24 = vpop.f32.mrf.mxu0 }
 0x59f   :  { %v18116_v46 = vpop.f32.mrf.mxu1  ;;  %v5448_v22 = vadd.f32 %v18102_v29, %v5199_v56 }
 0x5a2   :  { %v18118_v51 = vpop.f32.mrf.mxu0  ;;  %v14182_v54 = vpop.f32.mrf.mxu1 }
 0x5a4   :  { %v18120_v20 = vpop.f32.mrf.mxu0  ;;  %v18122_v14 = vpop.f32.mrf.mxu1 }
 0x5a5   :  { %v5209_v37 = vadd.f32 1e-05, %v18120_v20 }
 0x5a6   :  { %v18124_v34 = vpop.f32.mrf.mxu0  ;;  %v14185_v45 = vpop.f32.mrf.mxu1 }
 0x5a7   :  { %v5454_v20 = vadd.f32 %v18108_v36, %v5209_v37 }
 0x5a8   :  { %v18126_v9 = vpop.f32.mrf.mxu0  ;;  %v18128_v17 = vpop.f32.mrf.mxu1 }
 0x5a9   :  { %v5229_v29 = vadd.f32 1e-05, %v18126_v9 }
 0x5aa   :  { %v14139_v25 = vpop.f32.mrf.mxu0  ;;  %v14188_v8 = vpop.f32.mrf.mxu1 }
 0x5ab   :  { %v5259_v38 = vadd.f32 1e-05, %v14139_v25 }
 0x5ac   :  { %v18130_v4 = vpop.f32.mrf.mxu0  ;;  %v18132_v50 = vpop.f32.mrf.mxu1 }
 0x5ad   :  { %21648 = vst [vmem:[#allocation110_spill] sm:$0xff] %v18132_v50  ;;  %v18134_v57 = vadd.f32 %v14179_v10, %v5259_v38  ;;  %v5249_v9 = vadd.f32 1e-05, %v18130_v4 }
 0x5ae   :  { %v14142_v11 = vpop.f32.mrf.mxu0  ;;  %v14247_v35 = vpop.f32.mrf.mxu1 }
 0x5af   :  { %v5279_v48 = vadd.f32 1e-05, %v14142_v11 }
 0x5b0   :  { %v18136_v52 = vpop.f32.mrf.mxu0  ;;  %v18138_v0 = vpop.f32.mrf.mxu1 }
 0x5b1   :  { %v18140_v19 = vadd.f32 %v14182_v54, %v5279_v48  ;;  %v5269_v4 = vadd.f32 1e-05, %v18136_v52 }
 0x5b2   :  { %v14145_v1 = vpop.f32.mrf.mxu0  ;;  %v18142_v12 = vpop.f32.mrf.mxu1 }
 0x5b3   :  { %v5299_v41 = vadd.f32 1e-05, %v14145_v1 }
 0x5b4   :  { %v18144_v25 = vpop.f32.mrf.mxu0  ;;  %v18146_v60 = vpop.f32.mrf.mxu1 }
 0x5b5   :  { %v18148_v27 = vadd.f32 %v14185_v45, %v5299_v41 }
 0x5b6   :  { %v14148_v38 = vpop.f32.mrf.mxu0  ;;  %v18150_v10 = vpop.f32.mrf.mxu1 }
 0x5b7   :  { %v5319_v11 = vadd.f32 1e-05, %v14148_v38 }
 0x5b8   :  { %v18152_v3 = vpop.f32.mrf.mxu0  ;;  %v18154_v40 = vpop.f32.mrf.mxu1 }
 0x5b9   :  { %v18156_v48 = vadd.f32 %v14188_v8, %v5319_v11 }
 0x5ba   :  { %v14207_v54 = vpop.f32.mrf.mxu0  ;;  %v18158_v62 = vpop.f32.mrf.mxu1 }
 0x5bb   :  { %21649 = vst [vmem:[#allocation111_spill] sm:$0xff] %v18156_v48  ;;  %v5219_v48 = vadd.f32 1e-05, %v18118_v51 }
 0x5bc   :  { %v5607_v1 = vpop.f32.mrf.mxu0  ;;  %v18160_v39 = vpop.f32.mrf.mxu1 }
 0x5be   :  { %v14210_v49 = vpop.f32.mrf.mxu0  ;;  %v18162_v15 = vpop.f32.mrf.mxu1 }
 0x5c0   :  { %v5621_v45 = vpop.f32.mrf.mxu0  ;;  %v18164_v41 = vpop.f32.mrf.mxu1 }
 0x5c2   :  { %v14213_v59 = vpop.f32.mrf.mxu0  ;;  %v18166_v38 = vpop.f32.mrf.mxu1 }
 0x5c3   :  { %21650 = vst [vmem:[#allocation112_spill] sm:$0xff] %v18166_v38 }
 0x5c4   :  { %v5635_v18 = vpop.f32.mrf.mxu0  ;;  %v18168_v58 = vpop.f32.mrf.mxu1 }
 0x5c5   :  { %21651 = vst [vmem:[#allocation113_spill] sm:$0xff] %v18168_v58 }
 0x5c6   :  { %v14216_v8 = vpop.f32.mrf.mxu0  ;;  %v18170_v11 = vpop.f32.mrf.mxu1 }
 0x5c7   :  { %21652 = vst [vmem:[#allocation114_spill] sm:$0xff] %v18170_v11 }
 0x5c8   :  { %v18172_v7 = vpop.f32.mrf.mxu0  ;;  %v18174_v42 = vpop.f32.mrf.mxu1 }
 0x5c9   :  { %21653 = vst [vmem:[#allocation115_spill] sm:$0xff] %v18174_v42  ;;  %v5436_v42 = vadd.f32 %v18098_v28, %v5179_v47 }
 0x5ca   :  { %v18176_v30 = vpop.f32.mrf.mxu0  ;;  %v18178_v21 = vpop.f32.mrf.mxu1 }
 0x5cb   :  { %21654 = vst [vmem:[#allocation116_spill] sm:$0xff] %v18178_v21  ;;  %v5189_v21 = vadd.f32 1e-05, %v18114_v24  ;;  %v5615_v58 = vadd.f32 %v14207_v54, %v5436_v42  ;;  %v5629_v24 = vadd.f32 %v14210_v49, %v5448_v22 }
 0x5cc   :  { %v18180_v53 = vpop.f32.mrf.mxu0  ;;  %v18182_v44 = vpop.f32.mrf.mxu1 }
 0x5cd   :  { %21655 = vst [vmem:[#allocation117_spill] sm:$0xff] %v18182_v44  ;;  %v5430_v44 = vadd.f32 %v18100_v2, %v5169_v13  ;;  %v5442_v47 = vadd.f32 %v18104_v55, %v5189_v21  ;;  %v5239_v13 = vadd.f32 1e-05, %v18124_v34 }
 0x5ce   :  { %v18184_v5 = vpop.f32.mrf.mxu0 }
 0x5cf   :  { %v14327_v32 = vpop.f32.mrf.mxu1  ;;  %v5608_v6 = vadd.f32 %v5607_v1, %v5430_v44  ;;  %v5622_v2 = vadd.f32 %v5621_v45, %v5442_v47  ;;  %v5472_v34 = vadd.f32 %v18110_v26, %v5239_v13  ;;  %v5289_v13 = vadd.f32 1e-05, %v18144_v25 }
 0x5d0   :  { %v18186_v43 = vpop.f32.mrf.mxu0  ;;  %v5685_v25 = vadd.f32 %v18184_v5, %v18140_v19  ;;  %v21660_v5 = vld [vmem:[#allocation81_spill] sm:$0xff] }
 0x5d1   :  { %v6177_v31 = vpop.f32.mrf.mxu1  ;;  %v5794_v44 = vadd.f32 %v18138_v0, %v5608_v6  ;;  %v5657_v36 = vadd.f32 %v14216_v8, %v5472_v34  ;;  %v5478_v8 = vadd.f32 %v18116_v46, %v5249_v9  ;;  %v21661_v34 = vld [vmem:[#allocation111_spill] sm:$0xff] }
 0x5d2   :  { %v18188_v23 = vpop.f32.mrf.mxu0 }
 0x5d3   :  { %v14330_v11 = vpop.f32.mrf.mxu1 }
 0x5d4   :  { %v18192_v33 = vpop.f32.mrf.mxu0 }
 0x5d5   :  { %21656 = vst [vmem:[#allocation118_spill] sm:$0xff] %v18192_v33  ;;  %v6189_v38 = vpop.f32.mrf.mxu1  ;;  %v5802_v33 = vadd.f32 %v14247_v35, %v5615_v58  ;;  %v5818_v35 = vadd.f32 %v18142_v12, %v5629_v24  ;;  %v5850_v24 = vadd.f32 %v18158_v62, %v5657_v36  ;;  %v5490_v62 = vadd.f32 %v18122_v14, %v5269_v4  ;;  %v21664_v36 = vld [vmem:[#allocation113_spill] sm:$0xff] }
 0x5d6   :  { %v18195_v61 = vpop.f32.mrf.mxu0 }
 0x5d7   :  { %21657 = vst [vmem:[#allocation119_spill] sm:$0xff] %v18195_v61  ;;  %v14333_v50 = vpop.f32.mrf.mxu1  ;;  %v5460_v61 = vadd.f32 %v18106_v16, %v5219_v48  ;;  %v5810_v16 = vadd.f32 %v18146_v60, %v5622_v2 }
 0x5d8   :  { %v18201_v28 = vpop.f32.mrf.mxu0 }
 0x5d9   :  { %v6201_v42 = vpop.f32.mrf.mxu1  ;;  %v5643_v55 = vadd.f32 %v14213_v59, %v5460_v61  ;;  %v5466_v59 = vadd.f32 %v18112_v63, %v5229_v29 }
 0x5da   :  { %v14287_v54 = vpop.f32.mrf.mxu0 }
 0x5db   :  { %v6015_v51 = vadd.f32 %v14287_v54, %v5802_v33  ;;  %v14336_v56 = vpop.f32.mrf.mxu1  ;;  %v5636_v33 = vadd.f32 %v5635_v18, %v5454_v20  ;;  %v5834_v6 = vadd.f32 %v18150_v10, %v5643_v55  ;;  %v5650_v26 = vadd.f32 %v18172_v7, %v5466_v59 }
 0x5dc   :  { %v6008_v21 = vpop.f32.mrf.mxu0  ;;  %v21658_v55 = vld [vmem:[#allocation118_spill] sm:$0xff] }
 0x5dd   :  { %v6184_v1 = vadd.f32 %v14327_v32, %v6015_v51  ;;  %v6009_v22 = vadd.f32 %v6008_v21, %v5794_v44  ;;  %v6213_v58 = vpop.f32.mrf.mxu1  ;;  %v5826_v47 = vadd.f32 %v18154_v40, %v5636_v33  ;;  %v5842_v54 = vadd.f32 %v18160_v39, %v5650_v26 }
 0x5de   :  { %v14290_v49 = vpop.f32.mrf.mxu0  ;;  %v5664_v40 = vadd.f32 %v18180_v53, %v5478_v8  ;;  %v5309_v51 = vadd.f32 1e-05, %v18152_v3  ;;  %v5678_v39 = vadd.f32 %v18186_v43, %v5490_v62  ;;  %v5502_v53 = vadd.f32 %v18128_v17, %v5289_v13  ;;  %v18239_v43 = vld [vmem:[%s20879_s1 + $0x167] ss:$0 sm:$0xff]  ;;  %v21668_v8 = vld [vmem:[#allocation72_spill] sm:$0xff] }
 0x5df   :  { %15270 = vrsqrt.f32 %v6184_v1  ;;  %v6178_v0 = vadd.f32 %v6177_v31, %v6009_v22  ;;  %v6027_v48 = vadd.f32 %v14290_v49, %v5818_v35  ;;  %v14339_v45 = vpop.f32.mrf.mxu1  ;;  %v21659_v1 = vld [vmem:[#allocation110_spill] sm:$0xff]  ;;  %v21662_v49 = vld [vmem:[#allocation119_spill] sm:$0xff] }
 0x5e0   :  { %v6020_v32 = vpop.f32.mrf.mxu0  ;;  %v5858_v14 = vadd.f32 %v18164_v41, %v5664_v40  ;;  %v5514_v22 = vadd.f32 %v21659_v1, %v5309_v51  ;;  %v5874_v59 = vadd.f32 %v21664_v36, %v5678_v39  ;;  %v21677_v1 = vld [vmem:[#allocation50_spill] sm:$0xff] }
 0x5e1   :  { %15272 = vrsqrt.f32 %v6178_v0  ;;  %v6196_v61 = vadd.f32 %v14330_v11, %v6027_v48  ;;  %v6021_v12 = vadd.f32 %v6020_v32, %v5810_v16  ;;  %v6225_v60 = vpop.f32.mrf.mxu1  ;;  %v5671_v11 = vadd.f32 %v18176_v30, %v18134_v57  ;;  %v21663_v0 = vld [vmem:[#allocation112_spill] sm:$0xff]  ;;  %v21665_v32 = vld [vmem:[#allocation83_spill] sm:$0xff] }
 0x5e2   :  { %v14293_v37 = vpop.f32.mrf.mxu0  ;;  %v5713_v16 = vadd.f32 %v21662_v49, %v21661_v34  ;;  %v5882_v48 = vadd.f32 %v21663_v0, %v5685_v25 }
 0x5e3   :  { %15274 = vrsqrt.f32 %v6196_v61  ;;  %v6190_v18 = vadd.f32 %v6189_v38, %v6021_v12  ;;  %v6039_v31 = vadd.f32 %v14293_v37, %v5834_v6  ;;  %v14342_v38 = vpop.f32.mrf.mxu1  ;;  %v5866_v30 = vadd.f32 %v18162_v15, %v5671_v11  ;;  %v21666_v37 = vld [vmem:[#allocation114_spill] sm:$0xff] }
 0x5e4   :  { %v6032_v63 = vpop.f32.mrf.mxu0  ;;  %v5692_v15 = vadd.f32 %v21658_v55, %v5502_v53  ;;  %v21675_v53 = vld [vmem:[#allocation73_spill] sm:$0xff] }
 0x5e5   :  { %15276 = vrsqrt.f32 %v6190_v18  ;;  %v6208_v10 = vadd.f32 %v14333_v50, %v6039_v31  ;;  %v6033_v7 = vadd.f32 %v6032_v63, %v5826_v47  ;;  %v6237_v29 = vpop.f32.mrf.mxu1  ;;  %v21667_v31 = vld [vmem:[#allocation115_spill] sm:$0xff] }
 0x5e6   :  { %v14296_v2 = vpop.f32.mrf.mxu0  ;;  %v5890_v47 = vadd.f32 %v21667_v31, %v5692_v15  ;;  %v21686_v31 = vld [vmem:[#allocation45_spill] sm:$0xff] }
 0x5e7   :  { %15278 = vrsqrt.f32 %v6208_v10  ;;  %v6202_v52 = vadd.f32 %v6201_v42, %v6033_v7  ;;  %v6051_v46 = vadd.f32 %v14296_v2, %v5850_v24  ;;  %v14345_v33 = vpop.f32.mrf.mxu1  ;;  %v21669_v2 = vld [vmem:[#allocation116_spill] sm:$0xff] }
 0x5e8   :  { %v6044_v44 = vpop.f32.mrf.mxu0 }
 0x5e9   :  { %15280 = vrsqrt.f32 %v6202_v52  ;;  %v6220_v57 = vadd.f32 %v14336_v56, %v6051_v46  ;;  %v6045_v50 = vadd.f32 %v6044_v44, %v5842_v54  ;;  %v5699_v56 = vadd.f32 %v18188_v23, %v18148_v27  ;;  %v18248_v27 = vld [vmem:[%s20879_s1 + $0x168] ss:$0 sm:$0xff]  ;;  %v6249_v10 = vpop.f32.mrf.mxu1  ;;  %v21671_v46 = vld [vmem:[#allocation57_spill] sm:$0xff] }
 0x5ea   :  { %v14299_v42 = vpop.f32.mrf.mxu0  ;;  %v5706_v23 = vadd.f32 %v18201_v28, %v5514_v22  ;;  %v5914_v54 = vadd.f32 %v21669_v2, %v5713_v16 }
 0x5eb   :  { %15282 = vrsqrt.f32 %v6220_v57  ;;  %v6214_v20 = vadd.f32 %v6213_v58, %v6045_v50  ;;  %v6063_v3 = vadd.f32 %v14299_v42, %v5866_v30  ;;  %v5898_v18 = vadd.f32 %v21666_v37, %v5699_v56  ;;  %v21672_v57 = vld [vmem:[#allocation37_spill] sm:$0xff]  ;;  %v14348_v55 = vpop.f32.mrf.mxu1  ;;  %v21684_v37 = vld [vmem:[#allocation40_spill] sm:$0xff] }
 0x5ec   :  { %v15271_v21 = vpop.eup %15270  ;;  %v6056_v17 = vpop.f32.mrf.mxu0 }
 0x5ed   :  { %v6288_v19 = vmul.f32 %v15271_v21, %v21660_v5  ;;  %15284 = vrsqrt.f32 %v6214_v20  ;;  %v6232_v35 = vadd.f32 %v14339_v45, %v6063_v3  ;;  %v6057_v58 = vadd.f32 %v6056_v17, %v5858_v14  ;;  %v21676_v3 = vld [vmem:[#allocation70_spill] sm:$0xff] }
 0x5ee   :  { %v15273_v41 = vpop.eup %15272  ;;  %v14302_v9 = vpop.f32.mrf.mxu0 }
 0x5ef   :  { %v6308_v45 = vmul.f32 %v18239_v43, %v6288_v19  ;;  %v6287_v61 = vmul.f32 %v15273_v41, %v21665_v32  ;;  %15286 = vrsqrt.f32 %v6232_v35  ;;  %v6226_v12 = vadd.f32 %v6225_v60, %v6057_v58  ;;  %v21670_v60 = vld [vmem:[#allocation117_spill] sm:$0xff] }
 0x5f0   :  { %v15275_v6 = vpop.eup %15274  ;;  %v6075_v26 = vadd.f32 %v14302_v9, %v5882_v48  ;;  %v6068_v28 = vpop.f32.mrf.mxu0  ;;  %v5906_v40 = vadd.f32 %v21670_v60, %v5706_v23  ;;  %v21679_v35 = vld [vmem:[#allocation41_spill] sm:$0xff]  ;;  %v21680_v23 = vld [vmem:[#allocation74_spill] sm:$0xff]  ;;  %v21689_v60 = vld [vmem:[#allocation71_spill] sm:$0xff] }
 0x5f1   :  { %v6328_v4 = vadd.f32 %v18248_v27, %v6308_v45  ;;  %v6290_v63 = vmul.f32 %v15275_v6, %v21668_v8  ;;  %15288 = vrsqrt.f32 %v6226_v12  ;;  %v6069_v24 = vadd.f32 %v6068_v28, %v5874_v59  ;;  %v21681_v9 = vld [vmem:[#allocation54_spill] sm:$0xff]  ;;  %v21683_v59 = vld [vmem:[#allocation48_spill] sm:$0xff]  ;;  %v6261_v6 = vpop.f32.mrf.mxu1 }
 0x5f2   :  { %v15277_v11 = vpop.eup %15276  ;;  %v6244_v7 = vadd.f32 %v14342_v38, %v6075_v26  ;;  %v14305_v13 = vpop.f32.mrf.mxu0  ;;  %v6307_v52 = vmul.f32 %v18239_v43, %v6287_v61 }
 0x5f3   :  { %v6289_v51 = vmul.f32 %v15277_v11, %v21671_v46  ;;  %v6238_v62 = vadd.f32 %v6237_v29, %v6069_v24  ;;  %v6087_v44 = vadd.f32 %v14305_v13, %v5898_v18  ;;  %v18265_v30 = vsel %vm2621_vm2, %v6328_v4, %v21672_v57  ;;  %v21687_v4 = vld [vmem:[#allocation62_spill] sm:$0xff] }
 0x5f4   :  { %21674 = vst [vmem:[#allocation118_spill] sm:$0xff] %v18265_v30  ;;  %v15279_v25 = vpop.eup %15278  ;;  %15290 = vrsqrt.f32 %v6244_v7  ;;  %v6080_v39 = vpop.f32.mrf.mxu0  ;;  %v6327_v38 = vadd.f32 %v18248_v27, %v6307_v52  ;;  %v6360_v42 = vmul.f32 %v18265_v30, %v21675_v53  ;;  %v6310_v20 = vmul.f32 %v18239_v43, %v6290_v63 }
 0x5f5   :  { %v6292_v14 = vmul.f32 %v15279_v25, %v21676_v3  ;;  %15292 = vrsqrt.f32 %v6238_v62  ;;  %v6256_v29 = vadd.f32 %v14345_v33, %v6087_v44  ;;  %v6081_v21 = vadd.f32 %v6080_v39, %v5890_v47  ;;  %v21690_v39 = vld [vmem:[#allocation60_spill] sm:$0xff]  ;;  %v21691_v3 = vld [vmem:[#allocation86_spill] sm:$0xff] }
 0x5f6   :  { %v15281_v56 = vpop.eup %15280  ;;  %v14308_v15 = vpop.f32.mrf.mxu0  ;;  %v18275_v22 = vsel %vm2621_vm2, %v6327_v38, %v21677_v1  ;;  %v6384_v17 = vsel %vm74_vm0, %v6360_v42, 0  ;;  %v6309_v5 = vmul.f32 %v18239_v43, %v6289_v51  ;;  %v6330_v19 = vadd.f32 %v18248_v27, %v6310_v20 }
 0x5f7   :  { %21678 = vst [vmem:[#allocation110_spill] sm:$0xff] %v18275_v22  ;;  %v6291_v58 = vmul.f32 %v15281_v56, %v21679_v35  ;;  %15294 = vrsqrt.f32 %v6256_v29  ;;  %v6250_v41 = vadd.f32 %v6249_v10, %v6081_v21  ;;  %v6099_v34 = vadd.f32 %v14308_v15, %v5914_v54  ;;  %v21688_v10 = vld [vmem:[#allocation49_spill] sm:$0xff]  ;;  %v21692_v29 = vld [vmem:[#allocation52_spill] sm:$0xff] }
 0x5f8   :  { %v15283_v49 = vpop.eup %15282  ;;  %v6092_v16 = vpop.f32.mrf.mxu0  ;;  %v6359_v33 = vmul.f32 %v18275_v22, %v21680_v23  ;;  %v18283_v0 = vand.u32 4294901760, %v6384_v17  ;;  %v6329_v48 = vadd.f32 %v18248_v27, %v6309_v5  ;;  %v18289_v36 = vsel %vm2621_vm2, %v6330_v19, %v21681_v9  ;;  %v21694_v15 = vld [vmem:[#allocation88_spill] sm:$0xff]  ;;  %v21695_v5 = vld [vmem:[#allocation61_spill] sm:$0xff]  ;;  %v21699_v9 = vld [vmem:[#allocation59_spill] sm:$0xff] }
 0x5f9   :  { %21682 = vst [vmem:[#allocation81_spill] sm:$0xff] %v18289_v36  ;;  %v6294_v45 = vmul.f32 %v15283_v49, %v21683_v59  ;;  %15296 = vrsqrt.f32 %v6250_v41  ;;  %v6268_v32 = vadd.f32 %v14348_v55, %v6099_v34  ;;  %v6093_v61 = vadd.f32 %v6092_v16, %v5906_v40  ;;  %v21696_v34 = vld [vmem:[#allocation46_spill] sm:$0xff] }
 0x5fa   :  { %v15285_v12 = vpop.eup %15284  ;;  %v6381_v26 = vsel %vm74_vm0, %v6359_v33, 0  ;;  %v18294_v28 = vsub.f32 %v6384_v17, %v18283_v0  ;;  %v18299_v18 = vsel %vm2621_vm2, %v6329_v48, %v21684_v37  ;;  %v6362_v47 = vmul.f32 %v18289_v36, %v21686_v31  ;;  %v21697_v16 = vld [vmem:[#allocation66_spill] sm:$0xff] }
 0x5fb   :  { %21685 = vst [vmem:[#allocation111_spill] sm:$0xff] %v18299_v18  ;;  %v6293_v8 = vmul.f32 %v15285_v12, %v21687_v4  ;;  %15298 = vrsqrt.f32 %v6268_v32  ;;  %v6262_v63 = vadd.f32 %v6261_v6, %v6093_v61  ;;  %v18304_v24 = vand.u32 4294901760, %v6381_v26  ;;  %v21700_v12 = vld [vmem:[#allocation64_spill] sm:$0xff]  ;;  %v21702_v4 = vld [vmem:[#allocation38_spill] sm:$0xff] }
 0x5fc   :  { %v15287_v11 = vpop.eup %15286  ;;  %v6361_v7 = vmul.f32 %v18299_v18, %v21688_v10  ;;  %v6390_v13 = vsel %vm74_vm0, %v6362_v47, 0  ;;  %v6311_v2 = vmul.f32 %v18239_v43, %v6291_v58  ;;  %v21154_v54 = vand.u32 4294901760, %v18294_v28 }
 0x5fd   :  { %v18312_v40 = vmul.f32 %v15287_v11, %v21689_v60  ;;  %15300 = vrsqrt.f32 %v6262_v63  ;;  %14405 = vmatprep.mubr.f32.mxu1 %v18304_v24  ;;  %v18315_v52 = vand.u32 4294901760, %v6390_v13  ;;  %v18318_v46 = vsub.f32 %v6381_v26, %v18304_v24  ;;  %v21701_v26 = vld [vmem:[#allocation91_spill] sm:$0xff]  ;;  %v21706_v60 = vld [vmem:[#allocation94_spill] sm:$0xff] }
 0x5fe   :  { %v15289_v51 = vpop.eup %15288  ;;  %14406 = vmatmul.mubr.f32.vlgmr.msra.gmra.mxu1 %v18283_v0  ;;  %v6387_v62 = vsel %vm74_vm0, %v6361_v7, 0  ;;  %v6331_v44 = vadd.f32 %v18248_v27, %v6311_v2  ;;  %v6514_v57 = vsub.f32 %v18294_v28, %v21154_v54  ;;  %v6312_v25 = vmul.f32 %v18239_v43, %v6292_v14  ;;  %v21704_v63 = vld [vmem:[#allocation43_spill] sm:$0xff]  ;;  %v21741_v54 = vld [vmem:[#allocation106_spill] sm:$0xff] }
 0x5ff   :  { %v6295_v38 = vmul.f32 %v15289_v51, %v21690_v39  ;;  %v18328_v53 = vand.u32 4294901760, %v6387_v62  ;;  %v18331_v42 = vsub.f32 %v6390_v13, %v18315_v52  ;;  %v21155_v20 = vand.u32 4294901760, %v18318_v46  ;;  %14470 = vmatpush3.msra.mxu1 %v21691_v3  ;;  %v21705_v7 = vld [vmem:[#allocation47_spill] sm:$0xff]  ;;  %v21707_v39 = vld [vmem:[#allocation82_spill] sm:$0xff] }
 0x600   :  { %v18338_v21 = vsel %vm2621_vm2, %v6331_v44, %v21692_v29  ;;  %v6515_v56 = vand.u32 4294901760, %v6514_v57  ;;  %v6332_v55 = vadd.f32 %v18248_v27, %v6312_v25  ;;  %v6313_v14 = vmul.f32 %v18239_v43, %v6293_v8  ;;  %14471 = vmatprep.subr.mxu1 %v21694_v15 }
 0x601   :  { %21693 = vst [vmem:[#allocation119_spill] sm:$0xff] %v18338_v21  ;;  %v15291_v1 = vpop.eup %15290  ;;  %14408 = vmatprep.mubr.f32.mxu1 %v18328_v53  ;;  %v6504_v17 = vsub.f32 %v18318_v46, %v21155_v20  ;;  %v6363_v19 = vmul.f32 %v18338_v21, %v21695_v5  ;;  %v18350_v35 = vsub.f32 %v6387_v62, %v18328_v53  ;;  %v21152_v58 = vand.u32 4294901760, %v18331_v42  ;;  %v21745_v20 = vld [vmem:[#allocation78_spill] sm:$0xff] }
 0x602   :  { %14472 = vmatpush3.msra.mxu1 %v21694_v15  ;;  %v15293_v41 = vpop.eup %15292  ;;  %v18355_v49 = vmul.f32 %v15291_v1, %v21696_v34  ;;  %v18361_v23 = vsel %vm2621_vm2, %v6332_v55, %v21697_v16  ;;  %v6333_v33 = vadd.f32 %v18248_v27, %v6313_v14  ;;  %v6314_v48 = vmul.f32 %v18239_v43, %v6294_v45  ;;  %v21708_v55 = vld [vmem:[#allocation87_spill] sm:$0xff]  ;;  %v21709_v1 = vld [vmem:[#allocation42_spill] sm:$0xff] }
 0x603   :  { %14409 = vmatmul.mubr.f32.gmra.mxu1 %v18315_v52  ;;  %21698 = vst [vmem:[#allocation112_spill] sm:$0xff] %v18361_v23  ;;  %v6297_v59 = vmul.f32 %v15293_v41, %v21699_v9  ;;  %v6505_v32 = vand.u32 4294901760, %v6504_v17  ;;  %v6393_v61 = vsel %vm74_vm0, %v6363_v19, 0  ;;  %v6364_v6 = vmul.f32 %v18361_v23, %v21700_v12  ;;  %14473 = vmatprep.subr.mxu1 %v21701_v26  ;;  %v21711_v16 = vld [vmem:[#allocation75_spill] sm:$0xff] }
 0x604   :  { %v15295_v37 = vpop.eup %15294  ;;  %v18370_v31 = vand.u32 4294901760, %v6393_v61  ;;  %v21153_v47 = vand.u32 4294901760, %v18350_v35  ;;  %v18376_v8 = vsel %vm2621_vm2, %v6333_v33, %v21702_v4  ;;  %v6534_v45 = vsub.f32 %v18331_v42, %v21152_v58  ;;  %14474 = vmatpush3.msra.mxu1 %v21701_v26  ;;  %v21713_v9 = vld [vmem:[#allocation79_spill] sm:$0xff] }
 0x605   :  { %21703 = vst [vmem:[#allocation113_spill] sm:$0xff] %v18376_v8  ;;  %v18383_v11 = vmul.f32 %v15295_v37, %v21704_v63  ;;  %14365 = vmatprep.mubr.f32.mxu0 %v6505_v32  ;;  %v6396_v10 = vsel %vm74_vm0, %v6364_v6, 0  ;;  %v6365_v13 = vmul.f32 %v18376_v8, %v21705_v7  ;;  %v6334_v2 = vadd.f32 %v18248_v27, %v6314_v48  ;;  %v21712_v48 = vld [vmem:[#allocation90_spill] sm:$0xff]  ;;  %v21714_v6 = vld [vmem:[#allocation97_spill] sm:$0xff]  ;;  %v21715_v7 = vld [vmem:[#allocation84_spill] sm:$0xff] }
 0x606   :  { %14475 = vmatprep.subr.mxu1 %v21706_v60  ;;  %v15297_v51 = vpop.eup %15296  ;;  %14411 = vmatprep.mubr.f32.mxu1 %v18370_v31  ;;  %v18391_v62 = vand.u32 4294901760, %v6396_v10  ;;  %v6524_v44 = vsub.f32 %v18350_v35, %v21153_v47  ;;  %v6535_v57 = vand.u32 4294901760, %v6534_v45  ;;  %v18397_v25 = vsub.f32 %v6393_v61, %v18370_v31 }
 0x607   :  { %14366 = vmatmul.mubr.f32.vlgmr.msra.gmra.mxu0 %v6515_v56  ;;  %v6299_v29 = vmul.f32 %v15297_v51, %v21707_v39  ;;  %v6399_v14 = vsel %vm74_vm0, %v6365_v13, 0  ;;  %v18405_v56 = vsel %vm2621_vm2, %v6334_v2, %v21709_v1  ;;  %v6315_v17 = vmul.f32 %v18239_v43, %v6295_v38  ;;  %14476 = vmatpush3.msra.mxu1 %v21706_v60  ;;  %v21716_v51 = vld [vmem:[#allocation56_spill] sm:$0xff]  ;;  %v21718_v39 = vld [vmem:[#allocation93_spill] sm:$0xff] }
 0x608   :  { %14430 = vmatpush3.msra.mxu0 %v21708_v55  ;;  %21710 = vst [vmem:[#allocation83_spill] sm:$0xff] %v18405_v56  ;;  %v15299_v5 = vpop.eup %15298  ;;  %v18410_v19 = vsub.f32 %v6396_v10, %v18391_v62  ;;  %14412 = vmatmul.mubr.f32.gmra.mxu1 %v18391_v62  ;;  %v6525_v41 = vand.u32 4294901760, %v6524_v44  ;;  %v18413_v34 = vand.u32 4294901760, %v6399_v14  ;;  %v6366_v33 = vmul.f32 %v18405_v56, %v21711_v16  ;;  %v21719_v55 = vld [vmem:[#allocation65_spill] sm:$0xff] }
 0x609   :  { %14431 = vmatprep.subr.mxu0 %v21712_v48  ;;  %v18419_v32 = vmul.f32 %v15299_v5, %v21713_v9  ;;  %v21150_v38 = vand.u32 4294901760, %v18397_v25  ;;  %v6335_v61 = vadd.f32 %v18248_v27, %v6315_v17  ;;  %v6316_v12 = vmul.f32 %v18239_v43, %v18312_v40  ;;  %14477 = vmatprep.subr.mxu1 %v21714_v6 }
 0x60a   :  { %14432 = vmatpush3.msra.mxu0 %v21712_v48  ;;  %v15301_v37 = vpop.eup %15300  ;;  %14368 = vmatprep.mubr.f32.mxu0 %v6525_v41  ;;  %v6402_v4 = vsel %vm74_vm0, %v6366_v33, 0  ;;  %v21149_v45 = vand.u32 4294901760, %v18410_v19  ;;  %v18431_v63 = vsub.f32 %v6399_v14, %v18413_v34  ;;  %v6317_v10 = vmul.f32 %v18239_v43, %v6297_v59  ;;  %v21720_v33 = vld [vmem:[#allocation96_spill] sm:$0xff] }
 0x60b   :  { %14414 = vmatprep.mubr.f32.mxu1 %v18413_v34  ;;  %v6301_v13 = vmul.f32 %v15301_v37, %v21715_v7  ;;  %14369 = vmatmul.mubr.f32.gmra.mxu0 %v6535_v57  ;;  %v18435_v2 = vand.u32 4294901760, %v6402_v4  ;;  %v6544_v40 = vsub.f32 %v18397_v25, %v21150_v38  ;;  %v18443_v44 = vsel %vm2621_vm2, %v6335_v61, %v21716_v51  ;;  %v21721_v61 = vld [vmem:[#allocation53_spill] sm:$0xff] }
 0x60c   :  { %21717 = vst [vmem:[#allocation114_spill] sm:$0xff] %v18443_v44  ;;  %14433 = vmatprep.subr.mxu0 %v21718_v39  ;;  %v6367_v14 = vmul.f32 %v18443_v44, %v21719_v55  ;;  %v6554_v59 = vsub.f32 %v18410_v19, %v21149_v45  ;;  %v6336_v57 = vadd.f32 %v18248_v27, %v6316_v12  ;;  %v21148_v1 = vand.u32 4294901760, %v18431_v63  ;;  %v21727_v55 = vld [vmem:[#allocation100_spill] sm:$0xff] }
 0x60d   :  { %14434 = vmatpush3.msra.mxu0 %v21718_v39  ;;  %14478 = vmatpush3.msra.mxu1 %v21714_v6  ;;  %v18456_v17 = vsub.f32 %v6402_v4, %v18435_v2  ;;  %v6545_v5 = vand.u32 4294901760, %v6544_v40  ;;  %v6337_v41 = vadd.f32 %v18248_v27, %v6317_v10  ;;  %v6318_v16 = vmul.f32 %v18239_v43, %v18355_v49  ;;  %v21723_v4 = vld [vmem:[#allocation99_spill] sm:$0xff]  ;;  %v21725_v40 = vld [vmem:[#allocation68_spill] sm:$0xff] }
 0x60e   :  { %14415 = vmatmul.mubr.f32.gmra.mxu1 %v18435_v2  ;;  %14435 = vmatprep.subr.mxu0 %v21720_v33  ;;  %v6405_v48 = vsel %vm74_vm0, %v6367_v14, 0  ;;  %v6555_v9 = vand.u32 4294901760, %v6554_v59  ;;  %v18467_v12 = vsel %vm2621_vm2, %v6336_v57, %v21721_v61  ;;  %v6564_v37 = vsub.f32 %v18431_v63, %v21148_v1  ;;  %v21724_v10 = vld [vmem:[#allocation51_spill] sm:$0xff] }
 0x60f   :  { %21722 = vst [vmem:[#allocation115_spill] sm:$0xff] %v18467_v12  ;;  %14436 = vmatpush3.msra.mxu0 %v21720_v33  ;;  %14479 = vmatprep.subr.mxu1 %v21723_v4  ;;  %v18474_v49 = vand.u32 4294901760, %v6405_v48  ;;  %v6368_v7 = vmul.f32 %v18467_v12, %v21724_v10  ;;  %v18481_v51 = vsel %vm2621_vm2, %v6337_v41, %v21725_v40  ;;  %v21147_v39 = vand.u32 4294901760, %v18456_v17  ;;  %v21728_v59 = vld [vmem:[#allocation63_spill] sm:$0xff] }
 0x610   :  { %14371 = vmatprep.mubr.f32.mxu0 %v6545_v5  ;;  %21726 = vst [vmem:[#allocation72_spill] sm:$0xff] %v18481_v51  ;;  %14437 = vmatprep.subr.mxu0 %v21727_v55  ;;  %v6565_v14 = vand.u32 4294901760, %v6564_v37  ;;  %v6369_v57 = vmul.f32 %v18481_v51, %v21728_v59  ;;  %v6338_v5 = vadd.f32 %v18248_v27, %v6318_v16  ;;  %v21729_v10 = vld [vmem:[#allocation39_spill] sm:$0xff]  ;;  %v21731_v59 = vld [vmem:[#allocation101_spill] sm:$0xff] }
 0x611   :  { %14372 = vmatmul.mubr.f32.gmra.mxu0 %v6555_v9  ;;  %v6319_v33 = vmul.f32 %v18239_v43, %v6299_v29  ;;  %14480 = vmatpush3.msra.mxu1 %v21723_v4  ;;  %v6408_v41 = vsel %vm74_vm0, %v6368_v7, 0  ;;  %v6574_v61 = vsub.f32 %v18456_v17, %v21147_v39  ;;  %v18496_v9 = vsub.f32 %v6405_v48, %v18474_v49 }
 0x612   :  { %14417 = vmatprep.mubr.f32.mxu1 %v18474_v49  ;;  %v6320_v37 = vmul.f32 %v18239_v43, %v18383_v11  ;;  %14438 = vmatpush3.msra.mxu0 %v21727_v55  ;;  %v18501_v16 = vand.u32 4294901760, %v6408_v41  ;;  %v6411_v29 = vsel %vm74_vm0, %v6369_v57, 0  ;;  %v18507_v7 = vsel %vm2621_vm2, %v6338_v5, %v21729_v10  ;;  %v21732_v11 = vld [vmem:[#allocation80_spill] sm:$0xff] }
 0x613   :  { %14374 = vmatprep.mubr.f32.mxu0 %v6565_v14  ;;  %21730 = vst [vmem:[#allocation116_spill] sm:$0xff] %v18507_v7  ;;  %v6339_v40 = vadd.f32 %v18248_v27, %v6319_v33  ;;  %14439 = vmatprep.subr.mxu0 %v21731_v59  ;;  %v18511_v48 = vand.u32 4294901760, %v6411_v29  ;;  %v6575_v39 = vand.u32 4294901760, %v6574_v61  ;;  %v6370_v55 = vmul.f32 %v18507_v7, %v21732_v11  ;;  %v21733_v14 = vld [vmem:[#allocation102_spill] sm:$0xff]  ;;  %v21734_v5 = vld [vmem:[#allocation44_spill] sm:$0xff] }
 0x614   :  { %v21151_v1 = vand.u32 4294901760, %v18496_v9  ;;  %14481 = vmatprep.subr.mxu1 %v21733_v14  ;;  %14440 = vmatpush3.msra.mxu0 %v21731_v59  ;;  %v18519_v57 = vsub.f32 %v6408_v41, %v18501_v16  ;;  %v6340_v61 = vadd.f32 %v18248_v27, %v6320_v37  ;;  %v6321_v10 = vmul.f32 %v18239_v43, %v6301_v13  ;;  %v21736_v59 = vld [vmem:[#allocation77_spill] sm:$0xff]  ;;  %v21737_v13 = vld [vmem:[#allocation58_spill] sm:$0xff] }
 0x615   :  { %14418 = vmatmul.mubr.f32.gmra.mxu1 %v18501_v16  ;;  %v18525_v33 = vsel %vm2621_vm2, %v6339_v40, %v21734_v5  ;;  %14375 = vmatmul.mubr.f32.gmra.mxu0 %v6575_v39  ;;  %v6414_v11 = vsel %vm74_vm0, %v6370_v55, 0  ;;  %v18537_v38 = vsub.f32 %v6411_v29, %v18511_v48  ;;  %v21739_v5 = vld [vmem:[#allocation105_spill] sm:$0xff]  ;;  %v21740_v29 = vld [vmem:[#allocation76_spill] sm:$0xff] }
 0x616   :  { %21735 = vst [vmem:[#allocation117_spill] sm:$0xff] %v18525_v33  ;;  %14420 = vmatprep.mubr.f32.mxu1 %v18511_v48  ;;  %v6584_v41 = vsub.f32 %v18496_v9, %v21151_v1  ;;  %v6371_v45 = vmul.f32 %v18525_v33, %v21736_v59  ;;  %v18539_v40 = vand.u32 4294901760, %v6414_v11  ;;  %v21157_v37 = vand.u32 4294901760, %v18519_v57  ;;  %14482 = vmatpush3.msra.mxu1 %v21733_v14 }
 0x617   :  { %v18545_v39 = vsel %vm2621_vm2, %v6340_v61, %v21737_v13  ;;  %v6341_v55 = vadd.f32 %v18248_v27, %v6321_v10  ;;  %14441 = vmatprep.subr.mxu0 %v21739_v5  ;;  %v21158_v47 = vand.u32 4294901760, %v18537_v38  ;;  %14483 = vmatprep.subr.mxu1 %v21741_v54 }
 0x618   :  { %21738 = vst [vmem:[#allocation57_spill] sm:$0xff] %v18545_v39  ;;  %v6585_v1 = vand.u32 4294901760, %v6584_v41  ;;  %v6417_v59 = vsel %vm74_vm0, %v6371_v45, 0  ;;  %v6372_v58 = vmul.f32 %v18545_v39, %v21740_v29  ;;  %14442 = vmatpush3.msra.mxu0 %v21739_v5  ;;  %v18557_v61 = vsub.f32 %v6414_v11, %v18539_v40  ;;  %v21742_v41 = vld [vmem:[#allocation55_spill] sm:$0xff]  ;;  %v21744_v29 = vld [vmem:[#allocation108_spill] sm:$0xff]  ;;  %14484 = vmatpush3.msra.mxu1 %v21741_v54 }
 0x619   :  { %14421 = vmatmul.mubr.f32.gmra.mxu1 %v18539_v40  ;;  %v18560_v10 = vand.u32 4294901760, %v6417_v59  ;;  %v6594_v45 = vsub.f32 %v18519_v57, %v21157_v37  ;;  %v18568_v13 = vsel %vm2621_vm2, %v6341_v55, %v21742_v41  ;;  %14443 = vmatprep.subr.mxu0 %v21744_v29  ;;  %v6604_v11 = vsub.f32 %v18537_v38, %v21158_v47 }
 0x61a   :  { %21743 = vst [vmem:[#allocation37_spill] sm:$0xff] %v18568_v13  ;;  %14377 = vmatprep.mubr.f32.mxu0 %v6585_v1  ;;  %v6420_v5 = vsel %vm74_vm0, %v6372_v58, 0  ;;  %v6373_v39 = vmul.f32 %v18568_v13, %v21745_v20  ;;  %v6322_v37 = vmul.f32 %v18239_v43, %v18419_v32  ;;  %v21160_v1 = vand.u32 4294901760, %v18557_v61  ;;  %14444 = vmatpush3.msra.mxu0 %v21744_v29  ;;  %v21746_v43 = vld [vmem:[#allocation89_spill] sm:$0xff] }
 0x61b   :  { %14423 = vmatprep.mubr.f32.mxu1 %v18560_v10  ;;  %v6595_v55 = vand.u32 4294901760, %v6594_v45  ;;  %v18581_v41 = vand.u32 4294901760, %v6420_v5  ;;  %v18585_v58 = vsub.f32 %v6417_v59, %v18560_v10  ;;  %v6605_v47 = vand.u32 4294901760, %v6604_v11  ;;  %14509 = vmatprep.subr.mxu0 %v21746_v43 }
 0x61c   :  { %v6423_v20 = vsel %vm74_vm0, %v6373_v39, 0  ;;  %v6342_v7 = vadd.f32 %v18248_v27, %v6322_v37  ;;  %14549 = vmatprep.subr.mxu1 %v21691_v3  ;;  %v6614_v59 = vsub.f32 %v18557_v61, %v21160_v1  ;;  %v21747_v27 = vld [vmem:[#allocation69_spill] sm:$0xff] }
 0x61d   :  { %14378 = vmatmul.mubr.f32.gmra.mxu0 %v6595_v55  ;;  %v18593_v32 = vsub.f32 %v6420_v5, %v18581_v41  ;;  %14424 = vmatmul.mubr.f32.gmra.mxu1 %v18581_v41  ;;  %v18596_v45 = vand.u32 4294901760, %v6423_v20  ;;  %v21163_v39 = vand.u32 4294901760, %v18585_v58  ;;  %v21749_v5 = vld [vmem:[#allocation67_spill] sm:$0xff] }
 0x61e   :  { %14380 = vmatprep.mubr.f32.mxu0 %v6605_v47  ;;  %v18605_v37 = vsel %vm2621_vm2, %v6342_v7, %v21747_v27  ;;  %v6615_v29 = vand.u32 4294901760, %v6614_v59 }
 0x61f   :  { %21748 = vst [vmem:[#allocation85_spill] sm:$0xff] %v18605_v37  ;;  %14426 = vmatprep.mubr.f32.mxu1 %v18596_v45  ;;  %v6374_v11 = vmul.f32 %v18605_v37, %v21749_v5  ;;  %v6624_v55 = vsub.f32 %v18585_v58, %v21163_v39  ;;  %v21164_v1 = vand.u32 4294901760, %v18593_v32  ;;  %v18615_v13 = vsub.f32 %v6423_v20, %v18596_v45 }
 0x621   :  { %14381 = vmatmul.mubr.f32.gmra.mxu0 %v6615_v29  ;;  %v6426_v50 = vsel %vm74_vm0, %v6374_v11, 0  ;;  %v6625_v47 = vand.u32 4294901760, %v6624_v55  ;;  %v6634_v7 = vsub.f32 %v18593_v32, %v21164_v1  ;;  %v6643_v27 = vand.u32 4294901760, %v18615_v13 }
 0x622   :  { %v18621_v59 = vand.u32 4294901760, %v6426_v50  ;;  %v21750_v29 = vand.u32 4294901760, %v18318_v46  ;;  %v21751_v1 = vand.u32 4294901760, %v18294_v28 }
 0x623   :  { %14383 = vmatprep.mubr.f32.mxu0 %v6625_v47  ;;  %v6635_v37 = vand.u32 4294901760, %v6634_v7  ;;  %v6644_v20 = vsub.f32 %v18615_v13, %v6643_v27 }
 0x624   :  { %v18625_v39 = vsub.f32 %v6426_v50, %v18621_v59  ;;  %14427 = vmatmul.mubr.f32.gmra.mxu1 %v18621_v59  ;;  %v21752_v50 = vand.u32 4294901760, %v18350_v35 }
 0x625   :  { %14485 = vmatprep.mubr.f32.mxu1 %v21750_v29  ;;  %14384 = vmatmul.mubr.f32.gmra.mxu0 %v6635_v37  ;;  %v6645_v11 = vand.u32 4294901760, %v6644_v20  ;;  %v21753_v37 = vand.u32 4294901760, %v18331_v42 }
 0x626   :  { %v6653_v55 = vand.u32 4294901760, %v18625_v39 }
 0x627   :  { %14386 = vmatprep.mubr.f32.mxu0 %v6645_v11 }
 0x628   :  { %14486 = vmatmul.mubr.f32.vlgmr.msra.gmra.mxu1 %v21751_v1  ;;  %v6654_v47 = vsub.f32 %v18625_v39, %v6653_v55  ;;  %v21754_v1 = vand.u32 4294901760, %v18397_v25 }
 0x629   :  { %14488 = vmatprep.mubr.f32.mxu1 %v21752_v50  ;;  %14550 = vmatpush3.msra.mxu1 %v21691_v3  ;;  %v21755_v3 = vand.u32 4294901760, %v18410_v19 }
 0x62a   :  { %v6655_v7 = vand.u32 4294901760, %v6654_v47  ;;  %14551 = vmatprep.subr.mxu1 %v21694_v15 }
 0x62b   :  { %14552 = vmatpush3.msra.mxu1 %v21694_v15  ;;  %v21756_v15 = vand.u32 4294901760, %v18431_v63 }
 0x62c   :  { %14387 = vmatmul.mubr.f32.gmra.mxu0 %v6655_v7  ;;  %14489 = vmatmul.mubr.f32.gmra.mxu1 %v21753_v37 }
 0x62d   :  { %14445 = vmatprep.mubr.f32.mxu0 %v18318_v46  ;;  %14491 = vmatprep.mubr.f32.mxu1 %v21754_v1  ;;  %v21757_v46 = vld [vmem:[#allocation92_spill] sm:$0xff] }
 0x62e   :  { %14553 = vmatprep.subr.mxu1 %v21701_v26 }
 0x62f   :  { %14554 = vmatpush3.msra.mxu1 %v21701_v26  ;;  %v21760_v26 = vld [vmem:[#allocation95_spill] sm:$0xff] }
 0x630   :  { %14446 = vmatmul.mubr.f32.vlgmr.msra.gmra.mxu0 %v18294_v28  ;;  %14492 = vmatmul.mubr.f32.gmra.mxu1 %v21755_v3  ;;  %v21758_v28 = vand.u32 4294901760, %v18456_v17 }
 0x631   :  { %14448 = vmatprep.mubr.f32.mxu0 %v18350_v35  ;;  %14494 = vmatprep.mubr.f32.mxu1 %v21756_v15  ;;  %v21759_v35 = vand.u32 4294901760, %v18496_v9 }
 0x632   :  { %14510 = vmatpush3.msra.mxu0 %v21746_v43  ;;  %14555 = vmatprep.subr.mxu1 %v21706_v60 }
 0x633   :  { %14511 = vmatprep.subr.mxu0 %v21757_v46  ;;  %14556 = vmatpush3.msra.mxu1 %v21706_v60  ;;  %v21762_v60 = vand.u32 4294901760, %v18537_v38 }
 0x634   :  { %14449 = vmatmul.mubr.f32.gmra.mxu0 %v18331_v42  ;;  %14495 = vmatmul.mubr.f32.gmra.mxu1 %v21758_v28  ;;  %v21761_v42 = vand.u32 4294901760, %v18519_v57 }
 0x635   :  { %14451 = vmatprep.mubr.f32.mxu0 %v18397_v25  ;;  %14497 = vmatprep.mubr.f32.mxu1 %v21759_v35  ;;  %v21763_v25 = vld [vmem:[#allocation98_spill] sm:$0xff] }
 0x636   :  { %14512 = vmatpush3.msra.mxu0 %v21757_v46  ;;  %14557 = vmatprep.subr.mxu1 %v21714_v6 }
 0x637   :  { %14513 = vmatprep.subr.mxu0 %v21760_v26  ;;  %14558 = vmatpush3.msra.mxu1 %v21714_v6  ;;  %v21765_v6 = vand.u32 4294901760, %v18585_v58 }
 0x638   :  { %14452 = vmatmul.mubr.f32.gmra.mxu0 %v18410_v19  ;;  %14498 = vmatmul.mubr.f32.gmra.mxu1 %v21761_v42  ;;  %v21764_v19 = vand.u32 4294901760, %v18557_v61 }
 0x639   :  { %14454 = vmatprep.mubr.f32.mxu0 %v18431_v63  ;;  %14500 = vmatprep.mubr.f32.mxu1 %v21762_v60  ;;  %v21766_v63 = vld [vmem:[#allocation103_spill] sm:$0xff] }
 0x63a   :  { %14514 = vmatpush3.msra.mxu0 %v21760_v26  ;;  %14559 = vmatprep.subr.mxu1 %v21723_v4 }
 0x63b   :  { %14515 = vmatprep.subr.mxu0 %v21763_v25  ;;  %14560 = vmatpush3.msra.mxu1 %v21723_v4  ;;  %v21768_v4 = vld [vmem:[#allocation104_spill] sm:$0xff] }
 0x63c   :  { %14455 = vmatmul.mubr.f32.gmra.mxu0 %v18456_v17  ;;  %14501 = vmatmul.mubr.f32.gmra.mxu1 %v21764_v19  ;;  %v21767_v17 = vand.u32 4294901760, %v18593_v32 }
 0x63d   :  { %14457 = vmatprep.mubr.f32.mxu0 %v18496_v9  ;;  %14503 = vmatprep.mubr.f32.mxu1 %v21765_v6  ;;  %v21769_v9 = vld [vmem:[#allocation107_spill] sm:$0xff] }
 0x63e   :  { %14516 = vmatpush3.msra.mxu0 %v21763_v25  ;;  %14561 = vmatprep.subr.mxu1 %v21733_v14 }
 0x63f   :  { %14517 = vmatprep.subr.mxu0 %v21766_v63  ;;  %14562 = vmatpush3.msra.mxu1 %v21733_v14  ;;  %v21772_v14 = vld [vmem:[#allocation18_spill] sm:$0xff] }
 0x640   :  { %14458 = vmatmul.mubr.f32.gmra.mxu0 %v18519_v57  ;;  %14504 = vmatmul.mubr.f32.gmra.mxu1 %v21767_v17  ;;  %v21773_v57 = vld [vmem:[#allocation5_spill] sm:$0xff] }
 0x641   :  { %14460 = vmatprep.mubr.f32.mxu0 %v18537_v38  ;;  %14506 = vmatprep.mubr.f32.mxu1 %v6643_v27  ;;  %v21770_v38 = vld [vmem:[#allocation14_spill] sm:$0xff] }
 0x642   :  { %14518 = vmatpush3.msra.mxu0 %v21766_v63  ;;  %14563 = vmatprep.subr.mxu1 %v21741_v54 }
 0x643   :  { %14519 = vmatprep.subr.mxu0 %v21768_v4  ;;  %14564 = vmatpush3.msra.mxu1 %v21741_v54  ;;  %v21771_v54 = vld [vmem:[#allocation109_spill] sm:$0xff] }
 0x644   :  { %14461 = vmatmul.mubr.f32.gmra.mxu0 %v18557_v61  ;;  %14507 = vmatmul.mubr.f32.gmra.mxu1 %v6653_v55  ;;  %v21774_v61 = vld [vmem:[#allocation22_spill] sm:$0xff] }
 0x645   :  { %14463 = vmatprep.mubr.f32.mxu0 %v18585_v58  ;;  %14520 = vmatpush3.msra.mxu0 %v21768_v4 }
 0x646   :  { %14565 = vmatprep.mubr.f32.mxu1 %v18304_v24  ;;  %14521 = vmatprep.subr.mxu0 %v21769_v9 }
 0x647   :  { %14522 = vmatpush3.msra.mxu0 %v21769_v9  ;;  %14629 = vmatprep.subr.mxu1 %v21770_v38 }
 0x648   :  { %14464 = vmatmul.mubr.f32.gmra.mxu0 %v18593_v32  ;;  %14566 = vmatmul.mubr.f32.vlgmr.msra.gmra.mxu1 %v18283_v0 }
 0x649   :  { %14466 = vmatprep.mubr.f32.mxu0 %v18615_v13  ;;  %14568 = vmatprep.mubr.f32.mxu1 %v18328_v53  ;;  %v21776_v13 = vld [vmem:[#allocation26_spill] sm:$0xff] }
 0x64a   :  { %14523 = vmatprep.subr.mxu0 %v21771_v54  ;;  %14630 = vmatpush3.msra.mxu1 %v21770_v38  ;;  %v11969_v38 = vld [vmem:[%s20879_s1 + $0x162] ss:$0 sm:$0xff] }
 0x64b   :  { %14524 = vmatpush3.msra.mxu0 %v21771_v54  ;;  %14631 = vmatprep.subr.mxu1 %v21772_v14 }
 0x64c   :  { %14467 = vmatmul.mubr.f32.gmra.mxu0 %v18625_v39  ;;  %14569 = vmatmul.mubr.f32.gmra.mxu1 %v18315_v52 }
 0x64d   :  { %14525 = vmatprep.mubr.f32.mxu0 %v18304_v24  ;;  %14571 = vmatprep.mubr.f32.mxu1 %v18370_v31  ;;  %v21775_v24 = vld [vmem:[#allocation7_spill] sm:$0xff] }
 0x64e   :  { %14589 = vmatprep.subr.mxu0 %v21773_v57  ;;  %14632 = vmatpush3.msra.mxu1 %v21772_v14 }
 0x64f   :  { %14633 = vmatprep.subr.mxu1 %v21774_v61 }
 0x650   :  { %14526 = vmatmul.mubr.f32.vlgmr.msra.gmra.mxu0 %v18283_v0  ;;  %14572 = vmatmul.mubr.f32.gmra.mxu1 %v18391_v62  ;;  %v21777_v0 = vld [vmem:[#allocation10_spill] sm:$0xff] }
 0x651   :  { %14528 = vmatprep.mubr.f32.mxu0 %v18328_v53  ;;  %14574 = vmatprep.mubr.f32.mxu1 %v18413_v34  ;;  %v21778_v53 = vld [vmem:[#allocation32_spill] sm:$0xff] }
 0x652   :  { %14590 = vmatpush3.msra.mxu0 %v21773_v57  ;;  %14634 = vmatpush3.msra.mxu1 %v21774_v61 }
 0x653   :  { %14591 = vmatprep.subr.mxu0 %v21775_v24  ;;  %14635 = vmatprep.subr.mxu1 %v21776_v13 }
 0x654   :  { %14529 = vmatmul.mubr.f32.gmra.mxu0 %v18315_v52  ;;  %14575 = vmatmul.mubr.f32.gmra.mxu1 %v18435_v2  ;;  %v21779_v52 = vld [vmem:[#allocation13_spill] sm:$0xff] }
 0x655   :  { %14531 = vmatprep.mubr.f32.mxu0 %v18370_v31  ;;  %14577 = vmatprep.mubr.f32.mxu1 %v18474_v49  ;;  %v21780_v31 = vld [vmem:[#allocation33_spill] sm:$0xff] }
 0x656   :  { %14592 = vmatpush3.msra.mxu0 %v21775_v24  ;;  %14636 = vmatpush3.msra.mxu1 %v21776_v13 }
 0x657   :  { %14593 = vmatprep.subr.mxu0 %v21777_v0  ;;  %14637 = vmatprep.subr.mxu1 %v21778_v53 }
 0x658   :  { %14532 = vmatmul.mubr.f32.gmra.mxu0 %v18391_v62  ;;  %14578 = vmatmul.mubr.f32.gmra.mxu1 %v18501_v16  ;;  %v21781_v62 = vld [vmem:[#allocation17_spill] sm:$0xff] }
 0x659   :  { %14534 = vmatprep.mubr.f32.mxu0 %v18413_v34  ;;  %14580 = vmatprep.mubr.f32.mxu1 %v18511_v48  ;;  %v21782_v34 = vld [vmem:[#allocation35_spill] sm:$0xff] }
 0x65a   :  { %14594 = vmatpush3.msra.mxu0 %v21777_v0  ;;  %14638 = vmatpush3.msra.mxu1 %v21778_v53 }
 0x65b   :  { %14595 = vmatprep.subr.mxu0 %v21779_v52  ;;  %14639 = vmatprep.subr.mxu1 %v21780_v31 }
 0x65c   :  { %14535 = vmatmul.mubr.f32.gmra.mxu0 %v18435_v2  ;;  %14581 = vmatmul.mubr.f32.gmra.mxu1 %v18539_v40  ;;  %v21783_v2 = vld [vmem:[#allocation20_spill] sm:$0xff] }
 0x65d   :  { %14537 = vmatprep.mubr.f32.mxu0 %v18474_v49  ;;  %14583 = vmatprep.mubr.f32.mxu1 %v18560_v10  ;;  %v21784_v49 = vld [vmem:[#allocation36_spill] sm:$0xff] }
 0x65e   :  { %14596 = vmatpush3.msra.mxu0 %v21779_v52  ;;  %14640 = vmatpush3.msra.mxu1 %v21780_v31 }
 0x65f   :  { %14597 = vmatprep.subr.mxu0 %v21781_v62  ;;  %14641 = vmatprep.subr.mxu1 %v21782_v34 }
 0x660   :  { %14538 = vmatmul.mubr.f32.gmra.mxu0 %v18501_v16  ;;  %14584 = vmatmul.mubr.f32.gmra.mxu1 %v18581_v41  ;;  %v21785_v16 = vld [vmem:[#allocation24_spill] sm:$0xff] }
 0x661   :  { %14540 = vmatprep.mubr.f32.mxu0 %v18511_v48  ;;  %14586 = vmatprep.mubr.f32.mxu1 %v18596_v45  ;;  %v21786_v48 = vld [vmem:[#allocation29_spill] sm:$0xff] }
 0x662   :  { %14598 = vmatpush3.msra.mxu0 %v21781_v62  ;;  %14642 = vmatpush3.msra.mxu1 %v21782_v34 }
 0x663   :  { %14599 = vmatprep.subr.mxu0 %v21783_v2  ;;  %14643 = vmatprep.subr.mxu1 %v21784_v49 }
 0x664   :  { %14541 = vmatmul.mubr.f32.gmra.mxu0 %v18539_v40  ;;  %14587 = vmatmul.mubr.f32.gmra.mxu1 %v18621_v59  ;;  %v21787_v40 = vld [vmem:[#allocation6_spill] sm:$0xff] }
 0x665   :  { %14543 = vmatprep.mubr.f32.mxu0 %v18560_v10  ;;  %14600 = vmatpush3.msra.mxu0 %v21783_v2 }
 0x666   :  { %14644 = vmatpush3.msra.mxu1 %v21784_v49  ;;  %14601 = vmatprep.subr.mxu0 %v21785_v16 }
 0x667   :  { %14602 = vmatpush3.msra.mxu0 %v21785_v16  ;;  %14709 = vmatprep.subr.mxu1 %v21773_v57 }
 0x668   :  { %14544 = vmatmul.mubr.f32.gmra.mxu0 %v18581_v41  ;;  %14603 = vmatprep.subr.mxu0 %v21786_v48 }
 0x669   :  { %14546 = vmatprep.mubr.f32.mxu0 %v18596_v45  ;;  %14604 = vmatpush3.msra.mxu0 %v21786_v48 }
 0x66a   :  { %14669 = vmatprep.subr.mxu0 %v21787_v40 }
 0x66c   :  { %14547 = vmatmul.mubr.f32.gmra.mxu0 %v18621_v59 }
 0x6be   :  { %v18771_v10 = vpop.f32.mrf.mxu1 }
 0x6c0   :  { %v18773_v58 = vpop.f32.mrf.mxu1 }
 0x6c3   :  { %v18775_v43 = vpop.f32.mrf.mxu1 }
 0x6c5   :  { %v18777_v32 = vpop.f32.mrf.mxu1 }
 0x6c7   :  { %v14367_v39 = vpop.f32.mrf.mxu0 }
 0x6c8   :  { %v18779_v41 = vpop.f32.mrf.mxu1  ;;  %v6518_v40 = vadd.f32 %v14367_v39, %v11969_v38 }
 0x6c9   :  { %v6507_v27 = vpop.f32.mrf.mxu0 }
 0x6ca   :  { %v18781_v20 = vpop.f32.mrf.mxu1  ;;  %v6508_v52 = vadd.f32 %v11969_v38, %v6507_v27 }
 0x6cb   :  { %v14370_v45 = vpop.f32.mrf.mxu0 }
 0x6cc   :  { %v6538_v0 = vadd.f32 %v14370_v45, %v11969_v38 }
 0x6cd   :  { %v6527_v11 = vpop.f32.mrf.mxu0 }
 0x6ce   :  { %v18783_v29 = vpop.f32.mrf.mxu1  ;;  %v6528_v24 = vadd.f32 %v11969_v38, %v6527_v11  ;;  %v6787_v27 = vadd.f32 %v18775_v43, %v6538_v0 }
 0x6d0   :  { %v18785_v55 = vpop.f32.mrf.mxu1  ;;  %v6781_v45 = vadd.f32 %v18777_v32, %v6528_v24 }
 0x6d1   :  { %v14373_v59 = vpop.f32.mrf.mxu0 }
 0x6d3   :  { %v6547_v47 = vpop.f32.mrf.mxu0 }
 0x6d5   :  { %v18787_v50 = vpop.f32.mrf.mxu1  ;;  %v14376_v7 = vpop.f32.mrf.mxu0 }
 0x6d7   :  { %v18789_v37 = vpop.f32.mrf.mxu1  ;;  %v6567_v3 = vpop.f32.mrf.mxu0 }
 0x6d9   :  { %v18791_v1 = vpop.f32.mrf.mxu1 }
 0x6db   :  { %v18793_v15 = vpop.f32.mrf.mxu1 }
 0x6dd   :  { %v14379_v46 = vpop.f32.mrf.mxu0  ;;  %v18795_v28 = vpop.f32.mrf.mxu1 }
 0x6df   :  { %v6587_v35 = vpop.f32.mrf.mxu0  ;;  %v18797_v26 = vpop.f32.mrf.mxu1 }
 0x6e1   :  { %v14382_v42 = vpop.f32.mrf.mxu0 }
 0x6e3   :  { %v6607_v60 = vpop.f32.mrf.mxu0 }
 0x6e4   :  { %v18799_v25 = vpop.f32.mrf.mxu1  ;;  %v6608_v39 = vadd.f32 %v11969_v38, %v6607_v60 }
 0x6e5   :  { %v14385_v19 = vpop.f32.mrf.mxu0 }
 0x6e6   :  { %v18801_v6 = vpop.f32.mrf.mxu1 }
 0x6e7   :  { %v6627_v17 = vpop.f32.mrf.mxu0 }
 0x6e8   :  { %v18803_v63 = vpop.f32.mrf.mxu1 }
 0x6ea   :  { %v18805_v4 = vpop.f32.mrf.mxu1 }
 0x6ec   :  { %v14388_v9 = vpop.f32.mrf.mxu0  ;;  %v18807_v54 = vpop.f32.mrf.mxu1 }
 0x6ee   :  { %v6647_v33 = vpop.f32.mrf.mxu0  ;;  %v18809_v12 = vpop.f32.mrf.mxu1 }
 0x6ef   :  { %21788 = vst [vmem:[#allocation73_spill] sm:$0xff] %v18809_v12  ;;  %v6769_v12 = vadd.f32 %v18773_v58, %v6508_v52 }
 0x6f0   :  { %v14447_v56 = vpop.f32.mrf.mxu0  ;;  %v18811_v51 = vpop.f32.mrf.mxu1 }
 0x6f1   :  { %21789 = vst [vmem:[#allocation70_spill] sm:$0xff] %v18811_v51  ;;  %v6588_v51 = vadd.f32 %v11969_v38, %v6587_v35  ;;  %v6658_v35 = vadd.f32 %v14388_v9, %v11969_v38 }
 0x6f2   :  { %v6946_v23 = vpop.f32.mrf.mxu0  ;;  %v18813_v44 = vpop.f32.mrf.mxu1 }
 0x6f3   :  { %21790 = vst [vmem:[#allocation50_spill] sm:$0xff] %v18813_v44  ;;  %v6598_v44 = vadd.f32 %v14379_v46, %v11969_v38  ;;  %v6628_v46 = vadd.f32 %v11969_v38, %v6627_v17  ;;  %v6947_v0 = vadd.f32 %v6946_v23, %v6769_v12  ;;  %v6817_v43 = vadd.f32 %v18789_v37, %v6588_v51 }
 0x6f4   :  { %v14450_v36 = vpop.f32.mrf.mxu0  ;;  %v18815_v5 = vpop.f32.mrf.mxu1  ;;  %v6859_v12 = vadd.f32 %v18799_v25, %v6658_v35 }
 0x6f5   :  { %21791 = vst [vmem:[#allocation41_spill] sm:$0xff] %v18815_v5  ;;  %v6823_v24 = vadd.f32 %v18787_v50, %v6598_v44  ;;  %v6968_v32 = vadd.f32 %v14450_v36, %v6787_v27  ;;  %v6841_v44 = vadd.f32 %v18797_v26, %v6628_v46 }
 0x6f6   :  { %v6960_v8 = vpop.f32.mrf.mxu0  ;;  %v18817_v21 = vpop.f32.mrf.mxu1 }
 0x6f7   :  { %21792 = vst [vmem:[#allocation74_spill] sm:$0xff] %v18817_v21 }
 0x6f8   :  { %v14453_v22 = vpop.f32.mrf.mxu0  ;;  %v18819_v18 = vpop.f32.mrf.mxu1  ;;  %v21803_v26 = vld [vmem:[#allocation70_spill] sm:$0xff] }
 0x6f9   :  { %21793 = vst [vmem:[#allocation54_spill] sm:$0xff] %v18819_v18  ;;  %v6568_v18 = vadd.f32 %v11969_v38, %v6567_v3 }
 0x6fa   :  { %v6974_v30 = vpop.f32.mrf.mxu0  ;;  %v18821_v49 = vpop.f32.mrf.mxu1  ;;  %v21804_v25 = vld [vmem:[#allocation50_spill] sm:$0xff] }
 0x6fb   :  { %21794 = vst [vmem:[#allocation48_spill] sm:$0xff] %v18821_v49  ;;  %v6548_v49 = vadd.f32 %v11969_v38, %v6547_v47  ;;  %v6805_v52 = vadd.f32 %v18785_v55, %v6568_v18  ;;  %v7133_v55 = vadd.f32 %v18805_v4, %v6947_v0 }
 0x6fc   :  { %v14456_v34 = vpop.f32.mrf.mxu0  ;;  %v18823_v31 = vpop.f32.mrf.mxu1  ;;  %v21805_v4 = vld [vmem:[#allocation41_spill] sm:$0xff] }
 0x6fd   :  { %21795 = vst [vmem:[#allocation40_spill] sm:$0xff] %v18823_v31  ;;  %v6793_v3 = vadd.f32 %v18781_v20, %v6548_v49  ;;  %v6829_v49 = vadd.f32 %v18793_v15, %v6608_v39 }
 0x6fe   :  { %v6988_v53 = vpop.f32.mrf.mxu0  ;;  %v18825_v13 = vpop.f32.mrf.mxu1 }
 0x6ff   :  { %21796 = vst [vmem:[#allocation45_spill] sm:$0xff] %v18825_v13  ;;  %v6558_v13 = vadd.f32 %v14373_v59, %v11969_v38  ;;  %v6638_v59 = vadd.f32 %v14385_v19, %v11969_v38  ;;  %v6989_v23 = vadd.f32 %v6988_v53, %v6805_v52 }
 0x700   :  { %v14459_v61 = vpop.f32.mrf.mxu0  ;;  %v18827_v14 = vpop.f32.mrf.mxu1  ;;  %v21808_v27 = vld [vmem:[#allocation54_spill] sm:$0xff] }
 0x701   :  { %21797 = vst [vmem:[#allocation62_spill] sm:$0xff] %v18827_v14  ;;  %v6578_v14 = vadd.f32 %v14376_v7, %v11969_v38  ;;  %v6799_v7 = vadd.f32 %v18779_v41, %v6558_v13  ;;  %v6847_v18 = vadd.f32 %v18795_v28, %v6638_v59  ;;  %v7010_v51 = vadd.f32 %v14459_v61, %v6823_v24 }
 0x702   :  { %v7002_v48 = vpop.f32.mrf.mxu0  ;;  %v18832_v16 = vpop.f32.mrf.mxu1 }
 0x703   :  { %21798 = vst [vmem:[#allocation49_spill] sm:$0xff] %v18832_v16  ;;  %v6775_v16 = vadd.f32 %v18771_v10, %v6518_v40  ;;  %v6811_v40 = vadd.f32 %v18783_v29, %v6578_v14  ;;  %v6982_v20 = vadd.f32 %v14453_v22, %v6799_v7  ;;  %v6975_v14 = vadd.f32 %v6974_v30, %v6793_v3  ;;  %v21809_v7 = vld [vmem:[#allocation48_spill] sm:$0xff] }
 0x704   :  { %v14462_v2 = vpop.f32.mrf.mxu0  ;;  %v18834_v62 = vpop.f32.mrf.mxu1  ;;  %v7003_v22 = vadd.f32 %v7002_v48, %v6817_v43  ;;  %v21810_v46 = vld [vmem:[#allocation40_spill] sm:$0xff] }
 0x705   :  { %21799 = vst [vmem:[#allocation71_spill] sm:$0xff] %v18834_v62  ;;  %v6618_v62 = vadd.f32 %v14382_v42, %v11969_v38  ;;  %v6954_v47 = vadd.f32 %v14447_v56, %v6775_v16  ;;  %v6648_v42 = vadd.f32 %v11969_v38, %v6647_v33  ;;  %v6961_v56 = vadd.f32 %v6960_v8, %v6781_v45 }
 0x706   :  { %v7016_v57 = vpop.f32.mrf.mxu0  ;;  %v18836_v31 = vpop.f32.mrf.mxu1  ;;  %v6996_v33 = vadd.f32 %v14456_v34, %v6811_v40  ;;  %v21801_v34 = vld [vmem:[#allocation73_spill] sm:$0xff]  ;;  %v7173_v60 = vadd.f32 %v21803_v26, %v6982_v20  ;;  %v7165_v61 = vadd.f32 %v21804_v25, %v6975_v14  ;;  %v18869_v45 = vadd.f32 %v21808_v27, %v7010_v51  ;;  %v21823_v27 = vld [vmem:[#allocation10_spill] sm:$0xff] }
 0x707   :  { %21800 = vst [vmem:[#allocation60_spill] sm:$0xff] %v18836_v31  ;;  %v6835_v13 = vadd.f32 %v18791_v1, %v6618_v62  ;;  %v7141_v29 = vadd.f32 %v18803_v63, %v6954_v47  ;;  %v6853_v38 = vadd.f32 %v18801_v6, %v6648_v42  ;;  %v7157_v1 = vadd.f32 %v18807_v54, %v6968_v32  ;;  %v21812_v32 = vld [vmem:[#allocation45_spill] sm:$0xff] }
 0x708   :  { %v14465_v21 = vpop.f32.mrf.mxu0  ;;  %v14567_v5 = vpop.f32.mrf.mxu1  ;;  %v7149_v53 = vadd.f32 %v21801_v34, %v6961_v56  ;;  %v7017_v19 = vadd.f32 %v7016_v57, %v6829_v49  ;;  %v7189_v48 = vadd.f32 %v21805_v4, %v6996_v33  ;;  %v18874_v3 = vadd.f32 %v21809_v7, %v7003_v22  ;;  %v21818_v34 = vld [vmem:[#allocation5_spill] sm:$0xff] }
 0x709   :  { %v7024_v30 = vadd.f32 %v14462_v2, %v6835_v13  ;;  %v7038_v6 = vadd.f32 %v14465_v21, %v6847_v18  ;;  %v21806_v2 = vld [vmem:[#allocation74_spill] sm:$0xff] }
 0x70a   :  { %v7030_v11 = vpop.f32.mrf.mxu0  ;;  %v7516_v31 = vpop.f32.mrf.mxu1  ;;  %v7181_v9 = vadd.f32 %v21806_v2, %v6989_v23  ;;  %v18891_v56 = vadd.f32 %v21812_v32, %v7017_v19  ;;  %v21813_v13 = vld [vmem:[#allocation62_spill] sm:$0xff]  ;;  %v21825_v32 = vld [vmem:[#allocation13_spill] sm:$0xff] }
 0x70b   :  { %v7031_v59 = vadd.f32 %v7030_v11, %v6841_v44  ;;  %v18877_v35 = vadd.f32 %v21810_v46, %v7024_v30  ;;  %v18894_v49 = vadd.f32 %v21813_v13, %v7038_v6 }
 0x70c   :  { %v14468_v10 = vpop.f32.mrf.mxu0  ;;  %v14570_v58 = vpop.f32.mrf.mxu1 }
 0x70d   :  { %v7052_v40 = vadd.f32 %v14468_v10, %v6859_v12  ;;  %v21815_v12 = vld [vmem:[#allocation49_spill] sm:$0xff] }
 0x70e   :  { %v7044_v16 = vpop.f32.mrf.mxu0  ;;  %v7528_v41 = vpop.f32.mrf.mxu1  ;;  %v21821_v25 = vld [vmem:[#allocation60_spill] sm:$0xff] }
 0x70f   :  { %v7045_v10 = vadd.f32 %v7044_v16, %v6853_v38  ;;  %v18910_v16 = vadd.f32 %v21815_v12, %v7031_v59  ;;  %v21817_v38 = vld [vmem:[#allocation71_spill] sm:$0xff] }
 0x710   :  { %v14527_v36 = vpop.f32.mrf.mxu0  ;;  %v14573_v8 = vpop.f32.mrf.mxu1 }
 0x711   :  { %v7354_v62 = vadd.f32 %v14527_v36, %v7141_v29 }
 0x712   :  { %v7347_v50 = vpop.f32.mrf.mxu0  ;;  %v7540_v37 = vpop.f32.mrf.mxu1 }
 0x713   :  { %v18858_v15 = vadd.f32 %v14567_v5, %v7354_v62  ;;  %v7348_v28 = vadd.f32 %v7347_v50, %v7133_v55  ;;  %v18918_v62 = vadd.f32 %v21817_v38, %v7052_v40 }
 0x714   :  { %v14530_v63 = vpop.f32.mrf.mxu0  ;;  %v14576_v17 = vpop.f32.mrf.mxu1 }
 0x715   :  { %21802 = vst [vmem:[#allocation86_spill] sm:$0xff] %v18858_v15  ;;  %v7616_v54 = vsel %vm74_vm0, %v18858_v15, 0  ;;  %v18866_v39 = vadd.f32 %v7516_v31, %v7348_v28  ;;  %v7366_v5 = vadd.f32 %v14530_v63, %v7157_v1 }
 0x716   :  { %v18871_v47 = vand.u32 4294901760, %v7616_v54  ;;  %v7359_v57 = vpop.f32.mrf.mxu0  ;;  %v7552_v21 = vpop.f32.mrf.mxu1 }
 0x717   :  { %21807 = vst [vmem:[#allocation52_spill] sm:$0xff] %v18866_v39  ;;  %v7613_v31 = vsel %vm74_vm0, %v18866_v39, 0  ;;  %v18881_v52 = vadd.f32 %v14570_v58, %v7366_v5  ;;  %v7360_v42 = vadd.f32 %v7359_v57, %v7149_v53 }
 0x718   :  { %v18884_v0 = vsub.f32 %v7616_v54, %v18871_v47  ;;  %v18886_v11 = vand.u32 4294901760, %v7613_v31  ;;  %v14533_v24 = vpop.f32.mrf.mxu0  ;;  %v18888_v43 = vpop.f32.mrf.mxu1 }
 0x719   :  { %21811 = vst [vmem:[#allocation88_spill] sm:$0xff] %v18881_v52  ;;  %v7622_v58 = vsel %vm74_vm0, %v18881_v52, 0  ;;  %v18898_v20 = vadd.f32 %v7528_v41, %v7360_v42  ;;  %v7378_v14 = vadd.f32 %v14533_v24, %v7173_v60  ;;  %v21820_v60 = vld [vmem:[#allocation7_spill] sm:$0xff] }
 0x71a   :  { %v21199_v18 = vand.u32 4294901760, %v18884_v0  ;;  %v18902_v29 = vsub.f32 %v7613_v31, %v18886_v11  ;;  %v18904_v33 = vand.u32 4294901760, %v7622_v58  ;;  %v7371_v23 = vpop.f32.mrf.mxu0  ;;  %v18906_v44 = vpop.f32.mrf.mxu1  ;;  %14645 = vmatprep.mubr.f32.mxu1 %v18886_v11 }
 0x71b   :  { %21814 = vst [vmem:[#allocation61_spill] sm:$0xff] %v18898_v20  ;;  %v7619_v41 = vsel %vm74_vm0, %v18898_v20, 0  ;;  %v18914_v36 = vadd.f32 %v14573_v8, %v7378_v14  ;;  %v7372_v51 = vadd.f32 %v7371_v23, %v7165_v61  ;;  %14646 = vmatmul.mubr.f32.vlgmr.msra.gmra.mxu1 %v18871_v47  ;;  %v18938_v61 = vadd.f32 %v21821_v25, %v7045_v10 }
 0x71c   :  { %v7746_v55 = vsub.f32 %v18884_v0, %v21199_v18  ;;  %v18924_v22 = vsub.f32 %v7622_v58, %v18904_v33  ;;  %v18926_v30 = vand.u32 4294901760, %v7619_v41  ;;  %v14536_v50 = vpop.f32.mrf.mxu0  ;;  %v18928_v1 = vpop.f32.mrf.mxu1  ;;  %v21200_v8 = vand.u32 4294901760, %v18902_v29  ;;  %14710 = vmatpush3.msra.mxu1 %v21818_v34 }
 0x71d   :  { %21816 = vst [vmem:[#allocation46_spill] sm:$0xff] %v18914_v36  ;;  %v7628_v53 = vsel %vm74_vm0, %v18914_v36, 0  ;;  %v18934_v28 = vadd.f32 %v7540_v37, %v7372_v51  ;;  %v7390_v26 = vadd.f32 %v14536_v50, %v7189_v48  ;;  %14711 = vmatprep.subr.mxu1 %v21820_v60 }
 0x71e   :  { %v7747_v19 = vand.u32 4294901760, %v7746_v55  ;;  %v18941_v6 = vsub.f32 %v7619_v41, %v18926_v30  ;;  %v18943_v63 = vand.u32 4294901760, %v7628_v53  ;;  %v7383_v4 = vpop.f32.mrf.mxu0  ;;  %14648 = vmatprep.mubr.f32.mxu1 %v18926_v30  ;;  %v7736_v37 = vsub.f32 %v18902_v29, %v21200_v8  ;;  %14712 = vmatpush3.msra.mxu1 %v21820_v60  ;;  %v7576_v7 = vpop.f32.mrf.mxu1 }
 0x71f   :  { %21819 = vst [vmem:[#allocation66_spill] sm:$0xff] %v18934_v28  ;;  %v7625_v48 = vsel %vm74_vm0, %v18934_v28, 0  ;;  %v18952_v2 = vadd.f32 %v14576_v17, %v7390_v26  ;;  %v7384_v54 = vadd.f32 %v7383_v4, %v7181_v9  ;;  %14649 = vmatmul.mubr.f32.gmra.mxu1 %v18904_v33  ;;  %v21196_v5 = vand.u32 4294901760, %v18924_v22  ;;  %14713 = vmatprep.subr.mxu1 %v21823_v27  ;;  %v21829_v4 = vld [vmem:[#allocation9_spill] sm:$0xff] }
 0x720   :  { %v18958_v59 = vsub.f32 %v7628_v53, %v18943_v63  ;;  %v18960_v57 = vand.u32 4294901760, %v7625_v48  ;;  %v14539_v46 = vpop.f32.mrf.mxu0  ;;  %v7737_v40 = vand.u32 4294901760, %v7736_v37  ;;  %v21197_v31 = vand.u32 4294901760, %v18941_v6  ;;  %14714 = vmatpush3.msra.mxu1 %v21823_v27  ;;  %v14585_v55 = vpop.f32.mrf.mxu1  ;;  %v21827_v53 = vld [vmem:[#allocation6_spill] sm:$0xff] }
 0x721   :  { %21822 = vst [vmem:[#allocation59_spill] sm:$0xff] %v18952_v2  ;;  %v7634_v17 = vsel %vm74_vm0, %v18952_v2, 0  ;;  %v18966_v9 = vadd.f32 %v7552_v21, %v7384_v54  ;;  %v7402_v42 = vadd.f32 %v14539_v46, %v18869_v45  ;;  %v7766_v24 = vsub.f32 %v18924_v22, %v21196_v5  ;;  %14715 = vmatprep.subr.mxu1 %v21825_v32 }
 0x722   :  { %v18974_v13 = vsub.f32 %v7625_v48, %v18960_v57  ;;  %v18976_v10 = vand.u32 4294901760, %v7634_v17  ;;  %v7395_v58 = vpop.f32.mrf.mxu0  ;;  %14605 = vmatprep.mubr.f32.mxu0 %v7737_v40  ;;  %14651 = vmatprep.mubr.f32.mxu1 %v18960_v57  ;;  %v7756_v21 = vsub.f32 %v18941_v6, %v21197_v31  ;;  %v21193_v45 = vand.u32 4294901760, %v18958_v59  ;;  %v21830_v48 = vld [vmem:[#allocation17_spill] sm:$0xff] }
 0x723   :  { %21824 = vst [vmem:[#allocation64_spill] sm:$0xff] %v18966_v9  ;;  %v7631_v14 = vsel %vm74_vm0, %v18966_v9, 0  ;;  %v18986_v23 = vadd.f32 %v18888_v43, %v7402_v42  ;;  %v7396_v12 = vadd.f32 %v7395_v58, %v18874_v3  ;;  %14606 = vmatmul.mubr.f32.vlgmr.msra.gmra.mxu0 %v7747_v19  ;;  %14652 = vmatmul.mubr.f32.gmra.mxu1 %v18943_v63  ;;  %v7767_v41 = vand.u32 4294901760, %v7766_v24 }
 0x724   :  { %v18991_v51 = vsub.f32 %v7634_v17, %v18976_v10  ;;  %v18993_v38 = vand.u32 4294901760, %v7631_v14  ;;  %v14542_v50 = vpop.f32.mrf.mxu0  ;;  %14670 = vmatpush3.msra.mxu0 %v21827_v53  ;;  %v7757_v26 = vand.u32 4294901760, %v7756_v21  ;;  %v21194_v25 = vand.u32 4294901760, %v18974_v13  ;;  %14716 = vmatpush3.msra.mxu1 %v21825_v32 }
 0x725   :  { %21826 = vst [vmem:[#allocation91_spill] sm:$0xff] %v18986_v23  ;;  %v7640_v3 = vsel %vm74_vm0, %v18986_v23, 0  ;;  %v19001_v43 = vadd.f32 %v18906_v44, %v7396_v12  ;;  %v7414_v19 = vadd.f32 %v14542_v50, %v18877_v35  ;;  %14671 = vmatprep.subr.mxu0 %v21829_v4  ;;  %v7786_v37 = vsub.f32 %v18958_v59, %v21193_v45  ;;  %v7588_v12 = vpop.f32.mrf.mxu1 }
 0x726   :  { %14717 = vmatprep.subr.mxu1 %v21830_v48  ;;  %v19010_v54 = vsub.f32 %v7631_v14, %v18993_v38  ;;  %v19012_v46 = vand.u32 4294901760, %v7640_v3  ;;  %v7407_v40 = vpop.f32.mrf.mxu0  ;;  %14608 = vmatprep.mubr.f32.mxu0 %v7757_v26  ;;  %v7776_v35 = vsub.f32 %v18974_v13, %v21194_v25  ;;  %v21195_v44 = vand.u32 4294901760, %v18991_v51 }
 0x727   :  { %21828 = vst [vmem:[#allocation38_spill] sm:$0xff] %v19001_v43  ;;  %14654 = vmatprep.mubr.f32.mxu1 %v18993_v38  ;;  %v7637_v17 = vsel %vm74_vm0, %v19001_v43, 0  ;;  %v19022_v42 = vadd.f32 %v18928_v1, %v7414_v19  ;;  %v7408_v24 = vadd.f32 %v7407_v40, %v18891_v56  ;;  %14609 = vmatmul.mubr.f32.gmra.mxu0 %v7767_v41  ;;  %v7787_v58 = vand.u32 4294901760, %v7786_v37  ;;  %v21834_v37 = vld [vmem:[#allocation20_spill] sm:$0xff]  ;;  %v14588_v5 = vpop.f32.mrf.mxu1 }
 0x728   :  { %14655 = vmatmul.mubr.f32.gmra.mxu1 %v18976_v10  ;;  %v19027_v21 = vsub.f32 %v7640_v3, %v19012_v46  ;;  %v19029_v14 = vand.u32 4294901760, %v7637_v17  ;;  %v14545_v50 = vpop.f32.mrf.mxu0  ;;  %14672 = vmatpush3.msra.mxu0 %v21829_v4  ;;  %v7777_v26 = vand.u32 4294901760, %v7776_v35  ;;  %v21198_v45 = vand.u32 4294901760, %v19010_v54  ;;  %v21833_v3 = vld [vmem:[#allocation12_spill] sm:$0xff] }
 0x729   :  { %21831 = vst [vmem:[#allocation43_spill] sm:$0xff] %v19022_v42  ;;  %14718 = vmatpush3.msra.mxu1 %v21830_v48  ;;  %v7646_v56 = vsel %vm74_vm0, %v19022_v42, 0  ;;  %v19036_v1 = vadd.f32 %v7576_v7, %v7408_v24  ;;  %v7426_v41 = vadd.f32 %v14545_v50, %v18894_v49  ;;  %14673 = vmatprep.subr.mxu0 %v21833_v3  ;;  %v21849_v4 = vld [vmem:[#allocation28_spill] sm:$0xff] }
 0x72a   :  { %v7806_v19 = vsub.f32 %v18991_v51, %v21195_v44  ;;  %14719 = vmatprep.subr.mxu1 %v21834_v37  ;;  %v19045_v40 = vsub.f32 %v7637_v17, %v19029_v14  ;;  %v19047_v35 = vand.u32 4294901760, %v7646_v56  ;;  %v7419_v25 = vpop.f32.mrf.mxu0  ;;  %14611 = vmatprep.mubr.f32.mxu0 %v7777_v26  ;;  %v7796_v49 = vsub.f32 %v19010_v54, %v21198_v45 }
 0x72b   :  { %21832 = vst [vmem:[#allocation47_spill] sm:$0xff] %v19036_v1  ;;  %14657 = vmatprep.mubr.f32.mxu1 %v19029_v14  ;;  %v21201_v7 = vand.u32 4294901760, %v19027_v21  ;;  %v7643_v24 = vsel %vm74_vm0, %v19036_v1, 0  ;;  %v19056_v50 = vadd.f32 %v14585_v55, %v7426_v41  ;;  %v7420_v17 = vadd.f32 %v7419_v25, %v18910_v16  ;;  %14612 = vmatmul.mubr.f32.gmra.mxu0 %v7787_v58  ;;  %v21837_v58 = vld [vmem:[#allocation16_spill] sm:$0xff] }
 0x72c   :  { %14658 = vmatmul.mubr.f32.gmra.mxu1 %v19012_v46  ;;  %v7807_v44 = vand.u32 4294901760, %v7806_v19  ;;  %v19061_v26 = vsub.f32 %v7646_v56, %v19047_v35  ;;  %v19063_v31 = vand.u32 4294901760, %v7643_v24  ;;  %v14548_v45 = vpop.f32.mrf.mxu0  ;;  %14674 = vmatpush3.msra.mxu0 %v21833_v3  ;;  %v7797_v18 = vand.u32 4294901760, %v7796_v49  ;;  %v21838_v41 = vld [vmem:[#allocation24_spill] sm:$0xff] }
 0x72d   :  { %21835 = vst [vmem:[#allocation94_spill] sm:$0xff] %v19056_v50  ;;  %14720 = vmatpush3.msra.mxu1 %v21834_v37  ;;  %v7652_v16 = vsel %vm74_vm0, %v19056_v50, 0  ;;  %v19070_v55 = vadd.f32 %v7588_v12, %v7420_v17  ;;  %v7438_v25 = vadd.f32 %v14548_v45, %v18918_v62  ;;  %14675 = vmatprep.subr.mxu0 %v21837_v58  ;;  %v21839_v12 = vand.u32 4294901760, %v19045_v40  ;;  %v7600_v50 = vpop.f32.mrf.mxu1 }
 0x72e   :  { %v7826_v56 = vsub.f32 %v19027_v21, %v21201_v7  ;;  %14721 = vmatprep.subr.mxu1 %v21838_v41  ;;  %v19079_v19 = vsub.f32 %v7643_v24, %v19063_v31  ;;  %v19081_v49 = vand.u32 4294901760, %v7652_v16  ;;  %v7431_v8 = vpop.f32.mrf.mxu0  ;;  %14614 = vmatprep.mubr.f32.mxu0 %v7797_v18 }
 0x72f   :  { %21836 = vst [vmem:[#allocation82_spill] sm:$0xff] %v19070_v55  ;;  %14660 = vmatprep.mubr.f32.mxu1 %v19063_v31  ;;  %v7816_v62 = vsub.f32 %v19045_v40, %v21839_v12  ;;  %v7649_v17 = vsel %vm74_vm0, %v19070_v55, 0  ;;  %v19090_v7 = vadd.f32 %v14588_v5, %v7438_v25  ;;  %v7432_v24 = vadd.f32 %v7431_v8, %v18938_v61  ;;  %v21844_v55 = vld [vmem:[#allocation29_spill] sm:$0xff] }
 0x730   :  { %14615 = vmatmul.mubr.f32.gmra.mxu0 %v7807_v44  ;;  %14661 = vmatmul.mubr.f32.gmra.mxu1 %v19047_v35  ;;  %v19095_v18 = vsub.f32 %v7652_v16, %v19081_v49  ;;  %v19097_v3 = vand.u32 4294901760, %v7649_v17  ;;  %v7827_v61 = vand.u32 4294901760, %v7826_v56  ;;  %v21842_v44 = vld [vmem:[#allocation21_spill] sm:$0xff]  ;;  %v21843_v16 = vand.u32 4294901760, %v19061_v26 }
 0x731   :  { %21840 = vst [vmem:[#allocation87_spill] sm:$0xff] %v19090_v7  ;;  %14676 = vmatpush3.msra.mxu0 %v21837_v58  ;;  %v7817_v12 = vand.u32 4294901760, %v7816_v62  ;;  %14722 = vmatpush3.msra.mxu1 %v21838_v41  ;;  %v7658_v5 = vsel %vm74_vm0, %v19090_v7, 0  ;;  %v19104_v8 = vadd.f32 %v7600_v50, %v7432_v24  ;;  %v21845_v50 = vand.u32 4294901760, %v19079_v19  ;;  %v21846_v24 = vld [vmem:[#allocation23_spill] sm:$0xff] }
 0x732   :  { %14677 = vmatprep.subr.mxu0 %v21842_v44  ;;  %v7846_v25 = vsub.f32 %v19061_v26, %v21843_v16  ;;  %14723 = vmatprep.subr.mxu1 %v21844_v55  ;;  %v19112_v62 = vsub.f32 %v7649_v17, %v19097_v3  ;;  %v19114_v45 = vand.u32 4294901760, %v7658_v5 }
 0x733   :  { %21841 = vst [vmem:[#allocation42_spill] sm:$0xff] %v19104_v8  ;;  %14617 = vmatprep.mubr.f32.mxu0 %v7817_v12  ;;  %14663 = vmatprep.mubr.f32.mxu1 %v19097_v3  ;;  %v7836_v56 = vsub.f32 %v19079_v19, %v21845_v50  ;;  %v7655_v7 = vsel %vm74_vm0, %v19104_v8, 0  ;;  %v21847_v8 = vand.u32 4294901760, %v19095_v18 }
 0x734   :  { %14618 = vmatmul.mubr.f32.gmra.mxu0 %v7827_v61  ;;  %14664 = vmatmul.mubr.f32.gmra.mxu1 %v19081_v49  ;;  %v19125_v17 = vsub.f32 %v7658_v5, %v19114_v45  ;;  %v19127_v16 = vand.u32 4294901760, %v7655_v7  ;;  %v21210_v58 = vand.u32 4294901760, %v19112_v62  ;;  %v7847_v50 = vand.u32 4294901760, %v7846_v25 }
 0x735   :  { %14678 = vmatpush3.msra.mxu0 %v21842_v44  ;;  %v7837_v12 = vand.u32 4294901760, %v7836_v56  ;;  %14724 = vmatpush3.msra.mxu1 %v21844_v55  ;;  %v7866_v61 = vsub.f32 %v19095_v18, %v21847_v8  ;;  %v21848_v8 = vand.u32 4294901760, %v18902_v29 }
 0x736   :  { %14679 = vmatprep.subr.mxu0 %v21846_v24  ;;  %14789 = vmatprep.subr.mxu1 %v21818_v34  ;;  %v19138_v5 = vsub.f32 %v7655_v7, %v19127_v16  ;;  %v7856_v56 = vsub.f32 %v19112_v62, %v21210_v58  ;;  %v7885_v25 = vand.u32 4294901760, %v19125_v17 }
 0x737   :  { %14620 = vmatprep.mubr.f32.mxu0 %v7837_v12  ;;  %14666 = vmatprep.mubr.f32.mxu1 %v19127_v16  ;;  %v7867_v12 = vand.u32 4294901760, %v7866_v61  ;;  %v21852_v61 = vld [vmem:[#allocation31_spill] sm:$0xff] }
 0x738   :  { %14621 = vmatmul.mubr.f32.gmra.mxu0 %v7847_v50  ;;  %14667 = vmatmul.mubr.f32.gmra.mxu1 %v19114_v45  ;;  %v7857_v44 = vand.u32 4294901760, %v7856_v56  ;;  %v7875_v7 = vand.u32 4294901760, %v19138_v5  ;;  %v7886_v58 = vsub.f32 %v19125_v17, %v7885_v25  ;;  %v21851_v56 = vand.u32 4294901760, %v18941_v6 }
 0x739   :  { %14680 = vmatpush3.msra.mxu0 %v21846_v24  ;;  %14725 = vmatprep.mubr.f32.mxu1 %v21848_v8  ;;  %v21850_v24 = vand.u32 4294901760, %v18884_v0 }
 0x73a   :  { %14681 = vmatprep.subr.mxu0 %v21849_v4  ;;  %14623 = vmatprep.mubr.f32.mxu0 %v7857_v44  ;;  %v7876_v50 = vsub.f32 %v19138_v5, %v7875_v7  ;;  %v7887_v1 = vand.u32 4294901760, %v7886_v58  ;;  %v21853_v44 = vld [vmem:[#allocation8_spill] sm:$0xff]  ;;  %v21856_v58 = vand.u32 4294901760, %v18958_v59 }
 0x73b   :  { %14682 = vmatpush3.msra.mxu0 %v21849_v4 }
 0x73c   :  { %14624 = vmatmul.mubr.f32.gmra.mxu0 %v7867_v12  ;;  %14726 = vmatmul.mubr.f32.vlgmr.msra.gmra.mxu1 %v21850_v24  ;;  %v7877_v8 = vand.u32 4294901760, %v7876_v50  ;;  %v21854_v12 = vand.u32 4294901760, %v18924_v22  ;;  %v21855_v24 = vand.u32 4294901760, %v18974_v13  ;;  %v21861_v50 = vld [vmem:[#allocation15_spill] sm:$0xff] }
 0x73d   :  { %14728 = vmatprep.mubr.f32.mxu1 %v21851_v56  ;;  %14683 = vmatprep.subr.mxu0 %v21852_v61  ;;  %v21864_v56 = vld [vmem:[#allocation19_spill] sm:$0xff] }
 0x73e   :  { %14684 = vmatpush3.msra.mxu0 %v21852_v61  ;;  %14790 = vmatpush3.msra.mxu1 %v21818_v34 }
 0x73f   :  { %14626 = vmatprep.mubr.f32.mxu0 %v7877_v8  ;;  %14749 = vmatprep.subr.mxu0 %v21853_v44  ;;  %v21867_v8 = vld [vmem:[#allocation25_spill] sm:$0xff] }
 0x740   :  { %14627 = vmatmul.mubr.f32.gmra.mxu0 %v7887_v1  ;;  %14729 = vmatmul.mubr.f32.gmra.mxu1 %v21854_v12  ;;  %v21857_v1 = vand.u32 4294901760, %v19010_v54 }
 0x741   :  { %14685 = vmatprep.mubr.f32.mxu0 %v18902_v29  ;;  %14731 = vmatprep.mubr.f32.mxu1 %v21855_v24  ;;  %v21858_v29 = vld [vmem:[#allocation11_spill] sm:$0xff] }
 0x742   :  { %14791 = vmatprep.subr.mxu1 %v21820_v60 }
 0x743   :  { %14792 = vmatpush3.msra.mxu1 %v21820_v60 }
 0x744   :  { %14686 = vmatmul.mubr.f32.vlgmr.msra.gmra.mxu0 %v18884_v0  ;;  %14732 = vmatmul.mubr.f32.gmra.mxu1 %v21856_v58  ;;  %v21859_v0 = vand.u32 4294901760, %v18991_v51 }
 0x745   :  { %14688 = vmatprep.mubr.f32.mxu0 %v18941_v6  ;;  %14734 = vmatprep.mubr.f32.mxu1 %v21857_v1  ;;  %v21860_v6 = vand.u32 4294901760, %v19045_v40 }
 0x746   :  { %14750 = vmatpush3.msra.mxu0 %v21853_v44  ;;  %14793 = vmatprep.subr.mxu1 %v21823_v27 }
 0x747   :  { %14751 = vmatprep.subr.mxu0 %v21858_v29  ;;  %14794 = vmatpush3.msra.mxu1 %v21823_v27 }
 0x748   :  { %14689 = vmatmul.mubr.f32.gmra.mxu0 %v18924_v22  ;;  %14735 = vmatmul.mubr.f32.gmra.mxu1 %v21859_v0  ;;  %v21862_v22 = vand.u32 4294901760, %v19027_v21 }
 0x749   :  { %14691 = vmatprep.mubr.f32.mxu0 %v18974_v13  ;;  %14737 = vmatprep.mubr.f32.mxu1 %v21860_v6  ;;  %v21863_v13 = vand.u32 4294901760, %v19079_v19 }
 0x74a   :  { %14752 = vmatpush3.msra.mxu0 %v21858_v29  ;;  %14795 = vmatprep.subr.mxu1 %v21825_v32 }
 0x74b   :  { %14753 = vmatprep.subr.mxu0 %v21861_v50  ;;  %14796 = vmatpush3.msra.mxu1 %v21825_v32 }
 0x74c   :  { %14692 = vmatmul.mubr.f32.gmra.mxu0 %v18958_v59  ;;  %14738 = vmatmul.mubr.f32.gmra.mxu1 %v21862_v22  ;;  %v21865_v59 = vand.u32 4294901760, %v19061_v26 }
 0x74d   :  { %14694 = vmatprep.mubr.f32.mxu0 %v19010_v54  ;;  %14740 = vmatprep.mubr.f32.mxu1 %v21863_v13  ;;  %v21866_v54 = vand.u32 4294901760, %v19112_v62 }
 0x74e   :  { %14754 = vmatpush3.msra.mxu0 %v21861_v50  ;;  %14797 = vmatprep.subr.mxu1 %v21830_v48 }
 0x74f   :  { %14755 = vmatprep.subr.mxu0 %v21864_v56  ;;  %14798 = vmatpush3.msra.mxu1 %v21830_v48 }
 0x750   :  { %14695 = vmatmul.mubr.f32.gmra.mxu0 %v18991_v51  ;;  %14741 = vmatmul.mubr.f32.gmra.mxu1 %v21865_v59  ;;  %v21868_v51 = vand.u32 4294901760, %v19095_v18 }
 0x751   :  { %14697 = vmatprep.mubr.f32.mxu0 %v19045_v40  ;;  %14743 = vmatprep.mubr.f32.mxu1 %v21866_v54  ;;  %v21869_v40 = vld [vmem:[#allocation27_spill] sm:$0xff] }
 0x752   :  { %14756 = vmatpush3.msra.mxu0 %v21864_v56  ;;  %14799 = vmatprep.subr.mxu1 %v21834_v37 }
 0x753   :  { %14757 = vmatprep.subr.mxu0 %v21867_v8  ;;  %14800 = vmatpush3.msra.mxu1 %v21834_v37 }
 0x754   :  { %14698 = vmatmul.mubr.f32.gmra.mxu0 %v19027_v21  ;;  %14744 = vmatmul.mubr.f32.gmra.mxu1 %v21868_v51  ;;  %v21870_v21 = vld [vmem:[#allocation30_spill] sm:$0xff] }
 0x755   :  { %14700 = vmatprep.mubr.f32.mxu0 %v19079_v19  ;;  %14746 = vmatprep.mubr.f32.mxu1 %v7875_v7  ;;  %v21872_v19 = vld [vmem:[#allocation14_spill] sm:$0xff] }
 0x756   :  { %14758 = vmatpush3.msra.mxu0 %v21867_v8  ;;  %14801 = vmatprep.subr.mxu1 %v21838_v41 }
 0x757   :  { %14759 = vmatprep.subr.mxu0 %v21869_v40  ;;  %14802 = vmatpush3.msra.mxu1 %v21838_v41 }
 0x758   :  { %14701 = vmatmul.mubr.f32.gmra.mxu0 %v19061_v26  ;;  %14747 = vmatmul.mubr.f32.gmra.mxu1 %v7885_v25  ;;  %v21871_v26 = vld [vmem:[#allocation34_spill] sm:$0xff] }
 0x759   :  { %14703 = vmatprep.mubr.f32.mxu0 %v19112_v62  ;;  %14760 = vmatpush3.msra.mxu0 %v21869_v40 }
 0x75a   :  { %14805 = vmatprep.mubr.f32.mxu1 %v18886_v11  ;;  %14803 = vmatprep.subr.mxu1 %v21844_v55 }
 0x75b   :  { %14804 = vmatpush3.msra.mxu1 %v21844_v55  ;;  %14761 = vmatprep.subr.mxu0 %v21870_v21 }
 0x75c   :  { %14704 = vmatmul.mubr.f32.gmra.mxu0 %v19095_v18  ;;  %14806 = vmatmul.mubr.f32.vlgmr.msra.gmra.mxu1 %v18871_v47  ;;  %v21873_v18 = vld [vmem:[#allocation18_spill] sm:$0xff] }
 0x75d   :  { %14706 = vmatprep.mubr.f32.mxu0 %v19138_v5  ;;  %14762 = vmatpush3.msra.mxu0 %v21870_v21 }
 0x75e   :  { %14808 = vmatprep.mubr.f32.mxu1 %v18926_v30  ;;  %14763 = vmatprep.subr.mxu0 %v21871_v26 }
 0x75f   :  { %14764 = vmatpush3.msra.mxu0 %v21871_v26  ;;  %14869 = vmatprep.subr.mxu1 %v21872_v19 }
 0x760   :  { %14707 = vmatmul.mubr.f32.gmra.mxu0 %v19125_v17  ;;  %14809 = vmatmul.mubr.f32.gmra.mxu1 %v18904_v33 }
 0x761   :  { %14765 = vmatprep.mubr.f32.mxu0 %v18886_v11  ;;  %14811 = vmatprep.mubr.f32.mxu1 %v18960_v57  ;;  %v21874_v11 = vld [vmem:[#allocation22_spill] sm:$0xff] }
 0x762   :  { %14829 = vmatprep.subr.mxu0 %v21818_v34  ;;  %14870 = vmatpush3.msra.mxu1 %v21872_v19 }
 0x763   :  { %14871 = vmatprep.subr.mxu1 %v21873_v18 }
 0x764   :  { %14766 = vmatmul.mubr.f32.vlgmr.msra.gmra.mxu0 %v18871_v47  ;;  %14812 = vmatmul.mubr.f32.gmra.mxu1 %v18943_v63  ;;  %v21875_v47 = vld [vmem:[#allocation26_spill] sm:$0xff] }
 0x765   :  { %14768 = vmatprep.mubr.f32.mxu0 %v18926_v30  ;;  %14814 = vmatprep.mubr.f32.mxu1 %v18993_v38  ;;  %v21877_v30 = vld [vmem:[#allocation33_spill] sm:$0xff] }
 0x766   :  { %14830 = vmatpush3.msra.mxu0 %v21818_v34  ;;  %14872 = vmatpush3.msra.mxu1 %v21873_v18 }
 0x767   :  { %14831 = vmatprep.subr.mxu0 %v21820_v60  ;;  %14873 = vmatprep.subr.mxu1 %v21874_v11 }
 0x768   :  { %14769 = vmatmul.mubr.f32.gmra.mxu0 %v18904_v33  ;;  %14815 = vmatmul.mubr.f32.gmra.mxu1 %v18976_v10  ;;  %v21876_v33 = vld [vmem:[#allocation32_spill] sm:$0xff] }
 0x769   :  { %14771 = vmatprep.mubr.f32.mxu0 %v18960_v57  ;;  %14817 = vmatprep.mubr.f32.mxu1 %v19029_v14  ;;  %v21879_v57 = vld [vmem:[#allocation36_spill] sm:$0xff] }
 0x76a   :  { %14832 = vmatpush3.msra.mxu0 %v21820_v60  ;;  %14874 = vmatpush3.msra.mxu1 %v21874_v11 }
 0x76b   :  { %14833 = vmatprep.subr.mxu0 %v21823_v27  ;;  %14875 = vmatprep.subr.mxu1 %v21875_v47 }
 0x76c   :  { %14772 = vmatmul.mubr.f32.gmra.mxu0 %v18943_v63  ;;  %14818 = vmatmul.mubr.f32.gmra.mxu1 %v19012_v46  ;;  %v21878_v63 = vld [vmem:[#allocation35_spill] sm:$0xff] }
 0x76d   :  { %14774 = vmatprep.mubr.f32.mxu0 %v18993_v38  ;;  %14820 = vmatprep.mubr.f32.mxu1 %v19063_v31 }
 0x76e   :  { %14834 = vmatpush3.msra.mxu0 %v21823_v27  ;;  %14876 = vmatpush3.msra.mxu1 %v21875_v47 }
 0x76f   :  { %14835 = vmatprep.subr.mxu0 %v21825_v32  ;;  %14877 = vmatprep.subr.mxu1 %v21876_v33 }
 0x770   :  { %14775 = vmatmul.mubr.f32.gmra.mxu0 %v18976_v10  ;;  %14821 = vmatmul.mubr.f32.gmra.mxu1 %v19047_v35 }
 0x771   :  { %14777 = vmatprep.mubr.f32.mxu0 %v19029_v14  ;;  %14823 = vmatprep.mubr.f32.mxu1 %v19097_v3 }
 0x772   :  { %14836 = vmatpush3.msra.mxu0 %v21825_v32  ;;  %14878 = vmatpush3.msra.mxu1 %v21876_v33 }
 0x773   :  { %14837 = vmatprep.subr.mxu0 %v21830_v48  ;;  %14879 = vmatprep.subr.mxu1 %v21877_v30 }
 0x774   :  { %14778 = vmatmul.mubr.f32.gmra.mxu0 %v19012_v46  ;;  %14824 = vmatmul.mubr.f32.gmra.mxu1 %v19081_v49 }
 0x775   :  { %14780 = vmatprep.mubr.f32.mxu0 %v19063_v31  ;;  %14826 = vmatprep.mubr.f32.mxu1 %v19127_v16 }
 0x776   :  { %14838 = vmatpush3.msra.mxu0 %v21830_v48  ;;  %14880 = vmatpush3.msra.mxu1 %v21877_v30 }
 0x777   :  { %14839 = vmatprep.subr.mxu0 %v21834_v37  ;;  %14881 = vmatprep.subr.mxu1 %v21878_v63 }
 0x778   :  { %14781 = vmatmul.mubr.f32.gmra.mxu0 %v19047_v35  ;;  %14827 = vmatmul.mubr.f32.gmra.mxu1 %v19114_v45 }
 0x779   :  { %14783 = vmatprep.mubr.f32.mxu0 %v19097_v3  ;;  %14840 = vmatpush3.msra.mxu0 %v21834_v37 }
 0x77a   :  { %14882 = vmatpush3.msra.mxu1 %v21878_v63  ;;  %14841 = vmatprep.subr.mxu0 %v21838_v41 }
 0x77b   :  { %14883 = vmatprep.subr.mxu1 %v21879_v57  ;;  %14842 = vmatpush3.msra.mxu0 %v21838_v41 }
 0x77c   :  { %14784 = vmatmul.mubr.f32.gmra.mxu0 %v19081_v49  ;;  %14884 = vmatpush3.msra.mxu1 %v21879_v57 }
 0x77d   :  { %14786 = vmatprep.mubr.f32.mxu0 %v19127_v16  ;;  %14843 = vmatprep.subr.mxu0 %v21844_v55 }
 0x77e   :  { %14844 = vmatpush3.msra.mxu0 %v21844_v55  ;;  %14949 = vmatprep.subr.mxu1 %v21818_v34 }
 0x77f   :  { %14909 = vmatprep.subr.mxu0 %v21827_v53 }
 0x780   :  { %14787 = vmatmul.mubr.f32.gmra.mxu0 %v19114_v45 }
 0x7db   :  { %v14647_v31 = vpop.f32.mrf.mxu1 }
 0x7dd   :  { %v19299_v10 = vpop.f32.mrf.mxu1 }
 0x7df   :  { %v19301_v38 = vpop.f32.mrf.mxu1 }
 0x7e1   :  { %v19303_v46 = vpop.f32.mrf.mxu1 }
 0x7e3   :  { %v14607_v14 = vpop.f32.mrf.mxu0  ;;  %v19305_v3 = vpop.f32.mrf.mxu1 }
 0x7e4   :  { %v8007_v39 = vadd.f32 %v14647_v31, %v14607_v14 }
 0x7e5   :  { %v7739_v35 = vpop.f32.mrf.mxu0  ;;  %v19307_v49 = vpop.f32.mrf.mxu1 }
 0x7e7   :  { %v14610_v62 = vpop.f32.mrf.mxu0 }
 0x7e8   :  { %v19309_v17 = vpop.f32.mrf.mxu1 }
 0x7e9   :  { %v7759_v16 = vpop.f32.mrf.mxu0 }
 0x7ea   :  { %v19311_v5 = vpop.f32.mrf.mxu1 }
 0x7eb   :  { %v14613_v45 = vpop.f32.mrf.mxu0 }
 0x7ec   :  { %v14659_v25 = vpop.f32.mrf.mxu1 }
 0x7ed   :  { %v7779_v7 = vpop.f32.mrf.mxu0 }
 0x7ee   :  { %v8048_v12 = vpop.f32.mrf.mxu1  ;;  %v8025_v15 = vadd.f32 %v19307_v49, %v7779_v7 }
 0x7f0   :  { %v14616_v24 = vpop.f32.mrf.mxu0  ;;  %v14662_v58 = vpop.f32.mrf.mxu1 }
 0x7f2   :  { %v7799_v1 = vpop.f32.mrf.mxu0  ;;  %v19313_v0 = vpop.f32.mrf.mxu1 }
 0x7f4   :  { %v14619_v6 = vpop.f32.mrf.mxu0  ;;  %v19315_v22 = vpop.f32.mrf.mxu1 }
 0x7f5   :  { %v8055_v31 = vadd.f32 %v14659_v25, %v14619_v6 }
 0x7f6   :  { %v7819_v13 = vpop.f32.mrf.mxu0  ;;  %v19317_v59 = vpop.f32.mrf.mxu1 }
 0x7f8   :  { %v14622_v54 = vpop.f32.mrf.mxu0  ;;  %v19319_v51 = vpop.f32.mrf.mxu1 }
 0x7fa   :  { %v7839_v19 = vpop.f32.mrf.mxu0  ;;  %v19321_v18 = vpop.f32.mrf.mxu1 }
 0x7fc   :  { %v14625_v11 = vpop.f32.mrf.mxu0  ;;  %v14727_v47 = vpop.f32.mrf.mxu1 }
 0x7fd   :  { %v8079_v49 = vadd.f32 %v19315_v22, %v14625_v11 }
 0x7fe   :  { %v7859_v33 = vpop.f32.mrf.mxu0  ;;  %v19323_v30 = vpop.f32.mrf.mxu1 }
 0x800   :  { %v14628_v63 = vpop.f32.mrf.mxu0  ;;  %v19325_v57 = vpop.f32.mrf.mxu1 }
 0x802   :  { %v7879_v26 = vpop.f32.mrf.mxu0  ;;  %v19327_v21 = vpop.f32.mrf.mxu1 }
 0x803   :  { %21880 = vst [vmem:[#allocation75_spill] sm:$0xff] %v19327_v21  ;;  %v8067_v21 = vadd.f32 %v14662_v58, %v14622_v54 }
 0x804   :  { %v14687_v40 = vpop.f32.mrf.mxu0  ;;  %v19329_v8 = vpop.f32.mrf.mxu1 }
 0x805   :  { %21881 = vst [vmem:[#allocation90_spill] sm:$0xff] %v19329_v8  ;;  %v8049_v8 = vadd.f32 %v8048_v12, %v7819_v13 }
 0x806   :  { %v8178_v56 = vpop.f32.mrf.mxu0  ;;  %v19331_v50 = vpop.f32.mrf.mxu1 }
 0x807   :  { %21882 = vst [vmem:[#allocation79_spill] sm:$0xff] %v19331_v50  ;;  %v8037_v50 = vadd.f32 %v19311_v5, %v7799_v1 }
 0x808   :  { %v14690_v29 = vpop.f32.mrf.mxu0  ;;  %v19333_v44 = vpop.f32.mrf.mxu1 }
 0x809   :  { %21883 = vst [vmem:[#allocation97_spill] sm:$0xff] %v19333_v44 }
 0x80a   :  { %v8192_v61 = vpop.f32.mrf.mxu0  ;;  %v19335_v4 = vpop.f32.mrf.mxu1 }
 0x80b   :  { %21884 = vst [vmem:[#allocation84_spill] sm:$0xff] %v19335_v4  ;;  %v8019_v4 = vadd.f32 %v19301_v38, %v14610_v62 }
 0x80c   :  { %v14693_v55 = vpop.f32.mrf.mxu0  ;;  %v19337_v41 = vpop.f32.mrf.mxu1 }
 0x80d   :  { %21885 = vst [vmem:[#allocation56_spill] sm:$0xff] %v19337_v41  ;;  %v8001_v41 = vadd.f32 %v19299_v10, %v7739_v35  ;;  %v8200_v10 = vadd.f32 %v14690_v29, %v8019_v4 }
 0x80e   :  { %v8206_v37 = vpop.f32.mrf.mxu0  ;;  %v19339_v48 = vpop.f32.mrf.mxu1 }
 0x80f   :  { %21886 = vst [vmem:[#allocation93_spill] sm:$0xff] %v19339_v48  ;;  %v8179_v14 = vadd.f32 %v8178_v56, %v8001_v41  ;;  %v8085_v56 = vadd.f32 %v19321_v18, %v7879_v26 }
 0x810   :  { %v14696_v53 = vpop.f32.mrf.mxu0  ;;  %v19341_v42 = vpop.f32.mrf.mxu1  ;;  %v21896_v6 = vld [vmem:[#allocation97_spill] sm:$0xff] }
 0x811   :  { %21887 = vst [vmem:[#allocation65_spill] sm:$0xff] %v19341_v42 }
 0x812   :  { %v8220_v43 = vpop.f32.mrf.mxu0  ;;  %v19343_v32 = vpop.f32.mrf.mxu1 }
 0x813   :  { %21888 = vst [vmem:[#allocation96_spill] sm:$0xff] %v19343_v32  ;;  %v8186_v32 = vadd.f32 %v14687_v40, %v8007_v39  ;;  %v8221_v4 = vadd.f32 %v8220_v43, %v8037_v50 }
 0x814   :  { %v14699_v23 = vpop.f32.mrf.mxu0  ;;  %v19345_v27 = vpop.f32.mrf.mxu1  ;;  %v21899_v11 = vld [vmem:[#allocation56_spill] sm:$0xff] }
 0x815   :  { %21889 = vst [vmem:[#allocation53_spill] sm:$0xff] %v19345_v27  ;;  %v8013_v27 = vadd.f32 %v19303_v46, %v7759_v16  ;;  %v8061_v46 = vadd.f32 %v19313_v0, %v7839_v19  ;;  %v8373_v62 = vadd.f32 %v14727_v47, %v8186_v32  ;;  %v8073_v16 = vadd.f32 %v19317_v59, %v7859_v33  ;;  %v21898_v59 = vld [vmem:[#allocation84_spill] sm:$0xff] }
 0x816   :  { %v8234_v9 = vpop.f32.mrf.mxu0  ;;  %v19347_v60 = vpop.f32.mrf.mxu1  ;;  %v8242_v29 = vadd.f32 %v14699_v23, %v8055_v31  ;;  %v8389_v32 = vadd.f32 %v19325_v57, %v8200_v10  ;;  %v8413_v54 = vadd.f32 %v21898_v59, %v8221_v4 }
 0x817   :  { %21890 = vst [vmem:[#allocation99_spill] sm:$0xff] %v19347_v60  ;;  %v8031_v60 = vadd.f32 %v19305_v3, %v14613_v45  ;;  %v8193_v39 = vadd.f32 %v8192_v61, %v8013_v27  ;;  %v8207_v3 = vadd.f32 %v8206_v37, %v8025_v15  ;;  %v8365_v61 = vadd.f32 %v19323_v30, %v8179_v14  ;;  %v21893_v37 = vld [vmem:[#allocation75_spill] sm:$0xff] }
 0x818   :  { %v14702_v2 = vpop.f32.mrf.mxu0  ;;  %v19349_v34 = vpop.f32.mrf.mxu1  ;;  %v8235_v25 = vadd.f32 %v8234_v9, %v8049_v8  ;;  %v21897_v9 = vld [vmem:[#allocation86_spill] sm:$0xff]  ;;  %v8437_v47 = vadd.f32 %v21899_v11, %v8242_v29  ;;  %v21910_v29 = vld [vmem:[#allocation61_spill] sm:$0xff] }
 0x819   :  { %21891 = vst [vmem:[#allocation51_spill] sm:$0xff] %v19349_v34  ;;  %v8214_v35 = vadd.f32 %v14693_v55, %v8031_v60  ;;  %v8381_v55 = vadd.f32 %v21893_v37, %v8193_v39  ;;  %v8256_v1 = vadd.f32 %v14702_v2, %v8067_v21  ;;  %v21900_v2 = vld [vmem:[#allocation93_spill] sm:$0xff]  ;;  %v21901_v21 = vld [vmem:[#allocation52_spill] sm:$0xff] }
 0x81a   :  { %v8248_v28 = vpop.f32.mrf.mxu0  ;;  %v19351_v36 = vpop.f32.mrf.mxu1  ;;  %v21904_v14 = vld [vmem:[#allocation96_spill] sm:$0xff] }
 0x81b   :  { %21892 = vst [vmem:[#allocation68_spill] sm:$0xff] %v19351_v36  ;;  %v8043_v36 = vadd.f32 %v19309_v17, %v14616_v24  ;;  %v8091_v17 = vadd.f32 %v19319_v51, %v14628_v63  ;;  %v21894_v24 = vld [vmem:[#allocation90_spill] sm:$0xff]  ;;  %v8249_v26 = vadd.f32 %v8248_v28, %v8061_v46  ;;  %v19377_v28 = vadd.f32 %v21900_v2, %v8235_v25 }
 0x81c   :  { %v14705_v20 = vpop.f32.mrf.mxu0  ;;  %v14807_v52 = vpop.f32.mrf.mxu1  ;;  %v21905_v39 = vld [vmem:[#allocation53_spill] sm:$0xff] }
 0x81d   :  { %v8228_v5 = vadd.f32 %v14696_v53, %v8043_v36  ;;  %v8405_v36 = vadd.f32 %v21894_v24, %v8214_v35  ;;  %v21895_v53 = vld [vmem:[#allocation79_spill] sm:$0xff]  ;;  %v8270_v43 = vadd.f32 %v14705_v20, %v8079_v49  ;;  %v19388_v10 = vadd.f32 %v21904_v14, %v8249_v26 }
 0x81e   :  { %v8262_v48 = vpop.f32.mrf.mxu0  ;;  %v8748_v42 = vpop.f32.mrf.mxu1  ;;  %v8397_v58 = vadd.f32 %v21895_v53, %v8207_v3 }
 0x81f   :  { %v8421_v23 = vadd.f32 %v21896_v6, %v8228_v5  ;;  %v19391_v46 = vadd.f32 %v21905_v39, %v8270_v43 }
 0x820   :  { %v14708_v34 = vpop.f32.mrf.mxu0  ;;  %v14810_v44 = vpop.f32.mrf.mxu1  ;;  %v21909_v4 = vld [vmem:[#allocation51_spill] sm:$0xff] }
 0x821   :  { %v8284_v51 = vadd.f32 %v14708_v34, %v8091_v17 }
 0x822   :  { %v8276_v40 = vpop.f32.mrf.mxu0  ;;  %v8760_v38 = vpop.f32.mrf.mxu1  ;;  %v21912_v24 = vld [vmem:[#allocation68_spill] sm:$0xff] }
 0x823   :  { %v8277_v63 = vadd.f32 %v8276_v40, %v8085_v56 }
 0x824   :  { %v14767_v45 = vpop.f32.mrf.mxu0  ;;  %v14813_v41 = vpop.f32.mrf.mxu1 }
 0x825   :  { %v8586_v27 = vadd.f32 %v14767_v45, %v8373_v62  ;;  %v21906_v62 = vld [vmem:[#allocation88_spill] sm:$0xff]  ;;  %v21908_v45 = vld [vmem:[#allocation99_spill] sm:$0xff] }
 0x826   :  { %v8579_v60 = vpop.f32.mrf.mxu0  ;;  %v8772_v15 = vpop.f32.mrf.mxu1 }
 0x827   :  { %v8755_v7 = vadd.f32 %v14807_v52, %v8586_v27  ;;  %v8580_v12 = vadd.f32 %v8579_v60, %v8365_v61  ;;  %v8263_v52 = vadd.f32 %v8262_v48, %v8073_v16  ;;  %v21903_v48 = vld [vmem:[#allocation65_spill] sm:$0xff]  ;;  %v19405_v27 = vadd.f32 %v21909_v4, %v8284_v51 }
 0x828   :  { %v14770_v50 = vpop.f32.mrf.mxu0  ;;  %v14816_v0 = vpop.f32.mrf.mxu1  ;;  %v19385_v34 = vadd.f32 %v21903_v48, %v8256_v1  ;;  %v21920_v48 = vld [vmem:[#allocation7_spill] sm:$0xff] }
 0x829   :  { %v19372_v8 = vsub.f32 %v21897_v9, %v8755_v7  ;;  %v8749_v22 = vadd.f32 %v8748_v42, %v8580_v12  ;;  %v8598_v13 = vadd.f32 %v14770_v50, %v8389_v32  ;;  %v19402_v56 = vadd.f32 %v21908_v45, %v8263_v52  ;;  %v21913_v50 = vld [vmem:[#allocation46_spill] sm:$0xff] }
 0x82a   :  { %v8591_v19 = vpop.f32.mrf.mxu0  ;;  %v8784_v18 = vpop.f32.mrf.mxu1 }
 0x82b   :  { %v8859_v20 = vmul.f32 %v19372_v8, %v19372_v8  ;;  %v19382_v33 = vsub.f32 %v21901_v21, %v8749_v22  ;;  %v8767_v30 = vadd.f32 %v14810_v44, %v8598_v13  ;;  %v8592_v42 = vadd.f32 %v8591_v19, %v8381_v55  ;;  %v21915_v13 = vld [vmem:[#allocation66_spill] sm:$0xff] }
 0x82c   :  { %v14773_v57 = vpop.f32.mrf.mxu0  ;;  %v14819_v31 = vpop.f32.mrf.mxu1 }
 0x82d   :  { %21902 = vst [vmem:[#allocation100_spill] sm:$0xff] %v19382_v33  ;;  %v8878_v35 = vsel %vm74_vm0, %v8859_v20, 0  ;;  %v8858_v3 = vmul.f32 %v19382_v33, %v19382_v33  ;;  %v19397_v44 = vsub.f32 %v21906_v62, %v8767_v30  ;;  %v8761_v40 = vadd.f32 %v8760_v38, %v8592_v42  ;;  %v21918_v30 = vld [vmem:[#allocation59_spill] sm:$0xff] }
 0x82e   :  { %v19399_v49 = vand.u32 4294901760, %v8878_v35  ;;  %v8610_v16 = vadd.f32 %v14773_v57, %v8405_v36  ;;  %v8603_v17 = vpop.f32.mrf.mxu0  ;;  %v8796_v5 = vpop.f32.mrf.mxu1  ;;  %v19419_v36 = vadd.f32 %v21912_v24, %v8277_v63 }
 0x82f   :  { %21907 = vst [vmem:[#allocation63_spill] sm:$0xff] %v19397_v44  ;;  %v8861_v61 = vmul.f32 %v19397_v44, %v19397_v44  ;;  %v19410_v25 = vsub.f32 %v21910_v29, %v8761_v40  ;;  %v8604_v60 = vadd.f32 %v8603_v17, %v8397_v58  ;;  %v8875_v38 = vsel %vm74_vm0, %v8858_v3, 0 }
 0x830   :  { %v19414_v32 = vsub.f32 %v8878_v35, %v19399_v49  ;;  %v8779_v37 = vadd.f32 %v14813_v41, %v8610_v16  ;;  %v14776_v55 = vpop.f32.mrf.mxu0  ;;  %v14822_v7 = vpop.f32.mrf.mxu1  ;;  %v19416_v12 = vand.u32 4294901760, %v8875_v38 }
 0x831   :  { %21911 = vst [vmem:[#allocation39_spill] sm:$0xff] %v19410_v25  ;;  %v8860_v53 = vmul.f32 %v19410_v25, %v19410_v25  ;;  %v8773_v1 = vadd.f32 %v8772_v15, %v8604_v60  ;;  %v8622_v26 = vadd.f32 %v14776_v55, %v8421_v23  ;;  %v8884_v58 = vsel %vm74_vm0, %v8861_v61, 0 }
 0x832   :  { %v21249_v43 = vand.u32 4294901760, %v19414_v32  ;;  %v19426_v6 = vsub.f32 %v21913_v50, %v8779_v37  ;;  %v8615_v41 = vpop.f32.mrf.mxu0  ;;  %14885 = vmatprep.mubr.f32.mxu1 %v19416_v12  ;;  %v19429_v9 = vand.u32 4294901760, %v8884_v58  ;;  %v19432_v22 = vsub.f32 %v8875_v38, %v19416_v12  ;;  %v8808_v11 = vpop.f32.mrf.mxu1  ;;  %v21923_v37 = vld [vmem:[#allocation10_spill] sm:$0xff] }
 0x833   :  { %v19435_v59 = vsub.f32 %v21915_v13, %v8773_v1  ;;  %v8791_v15 = vadd.f32 %v14816_v0, %v8622_v26  ;;  %v8616_v23 = vadd.f32 %v8615_v41, %v8413_v54  ;;  %14886 = vmatmul.mubr.f32.vlgmr.msra.gmra.mxu1 %v19399_v49  ;;  %v8881_v52 = vsel %vm74_vm0, %v8860_v53, 0  ;;  %v21917_v0 = vld [vmem:[#allocation5_spill] sm:$0xff] }
 0x834   :  { %21914 = vst [vmem:[#allocation101_spill] sm:$0xff] %v19426_v6  ;;  %v9008_v51 = vsub.f32 %v19414_v32, %v21249_v43  ;;  %v8863_v19 = vmul.f32 %v19426_v6, %v19426_v6  ;;  %v14779_v2 = vpop.f32.mrf.mxu0  ;;  %v19444_v20 = vand.u32 4294901760, %v8881_v52  ;;  %v19447_v21 = vsub.f32 %v8884_v58, %v19429_v9  ;;  %14950 = vmatpush3.msra.mxu1 %v21917_v0  ;;  %v14825_v45 = vpop.f32.mrf.mxu1  ;;  %v21926_v13 = vld [vmem:[#allocation13_spill] sm:$0xff] }
 0x835   :  { %21916 = vst [vmem:[#allocation80_spill] sm:$0xff] %v19435_v59  ;;  %v8862_v54 = vmul.f32 %v19435_v59, %v19435_v59  ;;  %v19453_v42 = vsub.f32 %v21918_v30, %v8791_v15  ;;  %v8785_v63 = vadd.f32 %v8784_v18, %v8616_v23  ;;  %v8634_v57 = vadd.f32 %v14779_v2, %v8437_v47  ;;  %v21921_v18 = vld [vmem:[#allocation64_spill] sm:$0xff]  ;;  %v21927_v15 = vld [vmem:[#allocation38_spill] sm:$0xff] }
 0x836   :  { %14951 = vmatprep.subr.mxu1 %v21920_v48  ;;  %v9009_v14 = vand.u32 4294901760, %v9008_v51  ;;  %v8627_v39 = vpop.f32.mrf.mxu0  ;;  %14888 = vmatprep.mubr.f32.mxu1 %v19444_v20  ;;  %v21251_v35 = vand.u32 4294901760, %v19432_v22  ;;  %v8890_v3 = vsel %vm74_vm0, %v8863_v19, 0  ;;  %v19460_v62 = vsub.f32 %v8881_v52, %v19444_v20  ;;  %v8820_v51 = vpop.f32.mrf.mxu1 }
 0x837   :  { %21919 = vst [vmem:[#allocation102_spill] sm:$0xff] %v19453_v42  ;;  %14952 = vmatpush3.msra.mxu1 %v21920_v48  ;;  %v8865_v40 = vmul.f32 %v19453_v42, %v19453_v42  ;;  %v19466_v47 = vsub.f32 %v21921_v18, %v8785_v63  ;;  %v8803_v16 = vadd.f32 %v14819_v31, %v8634_v57  ;;  %v8887_v29 = vsel %vm74_vm0, %v8862_v54, 0 }
 0x838   :  { %v8628_v17 = vadd.f32 %v8627_v39, %v19377_v28  ;;  %14889 = vmatmul.mubr.f32.gmra.mxu1 %v19429_v9  ;;  %v14782_v4 = vpop.f32.mrf.mxu0  ;;  %v8998_v61 = vsub.f32 %v19432_v22, %v21251_v35  ;;  %v19474_v60 = vand.u32 4294901760, %v8890_v3  ;;  %v21248_v38 = vand.u32 4294901760, %v19460_v62  ;;  %14953 = vmatprep.subr.mxu1 %v21923_v37  ;;  %v21924_v28 = vld [vmem:[#allocation91_spill] sm:$0xff]  ;;  %v21950_v35 = vld [vmem:[#allocation29_spill] sm:$0xff] }
 0x839   :  { %21922 = vst [vmem:[#allocation44_spill] sm:$0xff] %v19466_v47  ;;  %v8864_v31 = vmul.f32 %v19466_v47, %v19466_v47  ;;  %v19481_v55 = vsub.f32 %v21924_v28, %v8803_v16  ;;  %v8646_v53 = vadd.f32 %v14782_v4, %v19385_v34  ;;  %14954 = vmatpush3.msra.mxu1 %v21923_v37  ;;  %v19485_v58 = vand.u32 4294901760, %v8887_v29  ;;  %v21931_v16 = vld [vmem:[#allocation6_spill] sm:$0xff]  ;;  %v21934_v28 = vld [vmem:[#allocation9_spill] sm:$0xff] }
 0x83a   :  { %v8797_v24 = vadd.f32 %v8796_v5, %v8628_v17  ;;  %v8639_v1 = vpop.f32.mrf.mxu0  ;;  %v8999_v26 = vand.u32 4294901760, %v8998_v61  ;;  %v19488_v50 = vsub.f32 %v8890_v3, %v19474_v60  ;;  %v9018_v41 = vsub.f32 %v19460_v62, %v21248_v38  ;;  %14955 = vmatprep.subr.mxu1 %v21926_v13  ;;  %v21949_v38 = vld [vmem:[#allocation23_spill] sm:$0xff] }
 0x83b   :  { %21925 = vst [vmem:[#allocation77_spill] sm:$0xff] %v19481_v55  ;;  %v8867_v5 = vmul.f32 %v19481_v55, %v19481_v55  ;;  %v8815_v23 = vadd.f32 %v14822_v7, %v8646_v53  ;;  %v8640_v52 = vadd.f32 %v8639_v1, %v19388_v10  ;;  %14956 = vmatpush3.msra.mxu1 %v21926_v13  ;;  %v8893_v54 = vsel %vm74_vm0, %v8864_v31, 0  ;;  %v21929_v7 = vld [vmem:[#allocation43_spill] sm:$0xff]  ;;  %v14828_v53 = vpop.f32.mrf.mxu1 }
 0x83c   :  { %v19497_v34 = vsub.f32 %v21927_v15, %v8797_v24  ;;  %14845 = vmatprep.mubr.f32.mxu0 %v8999_v26  ;;  %14891 = vmatprep.mubr.f32.mxu1 %v19485_v58  ;;  %v14785_v19 = vpop.f32.mrf.mxu0  ;;  %v9019_v2 = vand.u32 4294901760, %v9018_v41  ;;  %v21247_v30 = vand.u32 4294901760, %v19447_v21  ;;  %v8896_v63 = vsel %vm74_vm0, %v8865_v40, 0 }
 0x83d   :  { %v19508_v39 = vsub.f32 %v21929_v7, %v8815_v23  ;;  %v8809_v10 = vadd.f32 %v8808_v11, %v8640_v52  ;;  %14846 = vmatmul.mubr.f32.vlgmr.msra.gmra.mxu0 %v9009_v14  ;;  %14892 = vmatmul.mubr.f32.gmra.mxu1 %v19474_v60  ;;  %v19511_v3 = vand.u32 4294901760, %v8893_v54  ;;  %v8658_v18 = vadd.f32 %v14785_v19, %v19391_v46  ;;  %v21932_v14 = vld [vmem:[#allocation47_spill] sm:$0xff]  ;;  %v21935_v23 = vld [vmem:[#allocation17_spill] sm:$0xff] }
 0x83e   :  { %21928 = vst [vmem:[#allocation58_spill] sm:$0xff] %v19497_v34  ;;  %v8866_v57 = vmul.f32 %v19497_v34, %v19497_v34  ;;  %14910 = vmatpush3.msra.mxu0 %v21931_v16  ;;  %v8651_v17 = vpop.f32.mrf.mxu0  ;;  %14848 = vmatprep.mubr.f32.mxu0 %v9019_v2  ;;  %v9028_v40 = vsub.f32 %v19447_v21, %v21247_v30  ;;  %v19518_v4 = vand.u32 4294901760, %v8896_v63  ;;  %v21936_v2 = vld [vmem:[#allocation12_spill] sm:$0xff] }
 0x83f   :  { %21930 = vst [vmem:[#allocation105_spill] sm:$0xff] %v19508_v39  ;;  %v19521_v61 = vsub.f32 %v8887_v29, %v19485_v58  ;;  %v8869_v11 = vmul.f32 %v19508_v39, %v19508_v39  ;;  %v19526_v31 = vsub.f32 %v21932_v14, %v8809_v10  ;;  %v8652_v46 = vadd.f32 %v8651_v17, %v19402_v56 }
 0x840   :  { %14894 = vmatprep.mubr.f32.mxu1 %v19511_v3  ;;  %14911 = vmatprep.subr.mxu0 %v21934_v28  ;;  %v8899_v24 = vsel %vm74_vm0, %v8866_v57, 0  ;;  %v8827_v1 = vadd.f32 %v14825_v45, %v8658_v18  ;;  %v9029_v26 = vand.u32 4294901760, %v9028_v40  ;;  %v19533_v29 = vsub.f32 %v8896_v63, %v19518_v4  ;;  %v14788_v41 = vpop.f32.mrf.mxu0  ;;  %v21937_v63 = vld [vmem:[#allocation94_spill] sm:$0xff] }
 0x841   :  { %21933 = vst [vmem:[#allocation76_spill] sm:$0xff] %v19526_v31  ;;  %14912 = vmatpush3.msra.mxu0 %v21934_v28  ;;  %v21246_v15 = vand.u32 4294901760, %v19521_v61  ;;  %14957 = vmatprep.subr.mxu1 %v21935_v23  ;;  %v8868_v56 = vmul.f32 %v19526_v31, %v19526_v31  ;;  %v8821_v52 = vadd.f32 %v8820_v51, %v8652_v46  ;;  %v19542_v45 = vand.u32 4294901760, %v8899_v24  ;;  %v8832_v46 = vpop.f32.mrf.mxu1  ;;  %v21955_v31 = vld [vmem:[#allocation8_spill] sm:$0xff] }
 0x842   :  { %14895 = vmatmul.mubr.f32.gmra.mxu1 %v19518_v4  ;;  %v8670_v19 = vadd.f32 %v14788_v41, %v19405_v27  ;;  %14913 = vmatprep.subr.mxu0 %v21936_v2  ;;  %v19546_v57 = vsub.f32 %v21937_v63, %v8827_v1  ;;  %v8663_v7 = vpop.f32.mrf.mxu0  ;;  %v21244_v18 = vand.u32 4294901760, %v19488_v50  ;;  %v8902_v51 = vsel %vm74_vm0, %v8867_v5, 0  ;;  %v21939_v27 = vld [vmem:[#allocation82_spill] sm:$0xff] }
 0x843   :  { %14849 = vmatmul.mubr.f32.gmra.mxu0 %v9029_v26  ;;  %v9038_v10 = vsub.f32 %v19521_v61, %v21246_v15  ;;  %14958 = vmatpush3.msra.mxu1 %v21935_v23  ;;  %v19555_v16 = vsub.f32 %v21939_v27, %v8821_v52  ;;  %v8664_v40 = vadd.f32 %v8663_v7, %v19419_v36  ;;  %v19559_v14 = vand.u32 4294901760, %v8902_v51  ;;  %v21942_v36 = vld [vmem:[#allocation20_spill] sm:$0xff]  ;;  %v21943_v52 = vld [vmem:[#allocation87_spill] sm:$0xff] }
 0x844   :  { %21938 = vst [vmem:[#allocation106_spill] sm:$0xff] %v19546_v57  ;;  %v8839_v17 = vadd.f32 %v14828_v53, %v8670_v19  ;;  %14897 = vmatprep.mubr.f32.mxu1 %v19542_v45  ;;  %14914 = vmatpush3.msra.mxu0 %v21936_v2  ;;  %v8871_v28 = vmul.f32 %v19546_v57, %v19546_v57  ;;  %v21941_v53 = vld [vmem:[#allocation16_spill] sm:$0xff]  ;;  %v21245_v27 = vand.u32 4294901760, %v19533_v29 }
 0x845   :  { %21940 = vst [vmem:[#allocation55_spill] sm:$0xff] %v19555_v16  ;;  %v9039_v1 = vand.u32 4294901760, %v9038_v10  ;;  %v9048_v5 = vsub.f32 %v19488_v50, %v21244_v18  ;;  %v19568_v26 = vsub.f32 %v8893_v54, %v19511_v3  ;;  %14915 = vmatprep.subr.mxu0 %v21941_v53  ;;  %14959 = vmatprep.subr.mxu1 %v21942_v36  ;;  %v8905_v10 = vsel %vm74_vm0, %v8868_v56, 0 }
 0x846   :  { %v8870_v41 = vmul.f32 %v19555_v16, %v19555_v16  ;;  %v19575_v19 = vsub.f32 %v21943_v52, %v8839_v17  ;;  %v8833_v2 = vadd.f32 %v8832_v46, %v8664_v40  ;;  %v19578_v63 = vsub.f32 %v8902_v51, %v19559_v14  ;;  %14898 = vmatmul.mubr.f32.gmra.mxu1 %v19559_v14  ;;  %v21945_v52 = vld [vmem:[#allocation42_spill] sm:$0xff] }
 0x847   :  { %14851 = vmatprep.mubr.f32.mxu0 %v9039_v1  ;;  %v9049_v7 = vand.u32 4294901760, %v9048_v5  ;;  %v21243_v54 = vand.u32 4294901760, %v19568_v26  ;;  %14916 = vmatpush3.msra.mxu0 %v21941_v53  ;;  %v19590_v51 = vand.u32 4294901760, %v8905_v10  ;;  %v8908_v46 = vsel %vm74_vm0, %v8869_v11, 0  ;;  %v21947_v1 = vld [vmem:[#allocation21_spill] sm:$0xff] }
 0x848   :  { %21944 = vst [vmem:[#allocation108_spill] sm:$0xff] %v19575_v19  ;;  %v8873_v17 = vmul.f32 %v19575_v19, %v19575_v19  ;;  %v19588_v40 = vsub.f32 %v21945_v52, %v8833_v2  ;;  %14917 = vmatprep.subr.mxu0 %v21947_v1  ;;  %14960 = vmatpush3.msra.mxu1 %v21942_v36  ;;  %v19601_v53 = vand.u32 4294901760, %v8908_v46  ;;  %v21948_v52 = vld [vmem:[#allocation24_spill] sm:$0xff]  ;;  %v8914_v18 = vsel %vm74_vm0, %v8871_v28, 0 }
 0x849   :  { %14852 = vmatmul.mubr.f32.gmra.mxu0 %v9049_v7  ;;  %v9058_v56 = vsub.f32 %v19568_v26, %v21243_v54  ;;  %v9068_v5 = vsub.f32 %v19533_v29, %v21245_v27  ;;  %v19604_v2 = vsub.f32 %v8899_v24, %v19542_v45  ;;  %14961 = vmatprep.subr.mxu1 %v21948_v52  ;;  %v8911_v7 = vsel %vm74_vm0, %v8870_v41, 0 }
 0x84a   :  { %21946 = vst [vmem:[#allocation78_spill] sm:$0xff] %v19588_v40  ;;  %v8872_v11 = vmul.f32 %v19588_v40, %v19588_v40  ;;  %14900 = vmatprep.mubr.f32.mxu1 %v19590_v51  ;;  %v21250_v54 = vand.u32 4294901760, %v19578_v63  ;;  %14918 = vmatpush3.msra.mxu0 %v21947_v1  ;;  %v19615_v24 = vsub.f32 %v8908_v46, %v19601_v53  ;;  %v19620_v43 = vand.u32 4294901760, %v8911_v7 }
 0x84b   :  { %v9059_v27 = vand.u32 4294901760, %v9058_v56  ;;  %v9069_v15 = vand.u32 4294901760, %v9068_v5  ;;  %14901 = vmatmul.mubr.f32.gmra.mxu1 %v19601_v53  ;;  %v21253_v30 = vand.u32 4294901760, %v19604_v2  ;;  %14919 = vmatprep.subr.mxu0 %v21949_v38  ;;  %v19625_v28 = vand.u32 4294901760, %v8914_v18  ;;  %v21951_v5 = vld [vmem:[#allocation28_spill] sm:$0xff] }
 0x84c   :  { %v9088_v41 = vsub.f32 %v19578_v63, %v21250_v54  ;;  %v19628_v1 = vsub.f32 %v8905_v10, %v19590_v51  ;;  %14920 = vmatpush3.msra.mxu0 %v21949_v38  ;;  %14962 = vmatpush3.msra.mxu1 %v21948_v52  ;;  %v8917_v56 = vsel %vm74_vm0, %v8872_v11, 0  ;;  %v8920_v54 = vsel %vm74_vm0, %v8873_v17, 0 }
 0x84d   :  { %14854 = vmatprep.mubr.f32.mxu0 %v9059_v27  ;;  %v9078_v46 = vsub.f32 %v19604_v2, %v21253_v30  ;;  %14963 = vmatprep.subr.mxu1 %v21950_v35  ;;  %v19641_v38 = vsub.f32 %v8914_v18, %v19625_v28  ;;  %v19644_v27 = vand.u32 4294901760, %v8917_v56  ;;  %v19647_v11 = vand.u32 4294901760, %v8920_v54 }
 0x84e   :  { %14855 = vmatmul.mubr.f32.gmra.mxu0 %v9069_v15  ;;  %14903 = vmatprep.mubr.f32.mxu1 %v19620_v43  ;;  %v21256_v10 = vand.u32 4294901760, %v19628_v1  ;;  %v9089_v30 = vand.u32 4294901760, %v9088_v41  ;;  %v19650_v17 = vsub.f32 %v8911_v7, %v19620_v43  ;;  %v21952_v18 = vand.u32 4294901760, %v19615_v24 }
 0x84f   :  { %v9079_v19 = vand.u32 4294901760, %v9078_v46  ;;  %14904 = vmatmul.mubr.f32.gmra.mxu1 %v19625_v28  ;;  %14921 = vmatprep.subr.mxu0 %v21951_v5  ;;  %v9127_v41 = vand.u32 4294901760, %v19641_v38  ;;  %v19663_v40 = vsub.f32 %v8917_v56, %v19644_v27  ;;  %v19666_v7 = vsub.f32 %v8920_v54, %v19647_v11 }
 0x850   :  { %v9098_v15 = vsub.f32 %v19628_v1, %v21256_v10  ;;  %14906 = vmatprep.mubr.f32.mxu1 %v19644_v27  ;;  %v9108_v46 = vsub.f32 %v19615_v24, %v21952_v18  ;;  %14964 = vmatpush3.msra.mxu1 %v21950_v35  ;;  %v9117_v57 = vand.u32 4294901760, %v19650_v17  ;;  %v21953_v18 = vld [vmem:[#allocation31_spill] sm:$0xff]  ;;  %v21954_v54 = vand.u32 4294901760, %v19432_v22 }
 0x851   :  { %14857 = vmatprep.mubr.f32.mxu0 %v9079_v19  ;;  %14922 = vmatpush3.msra.mxu0 %v21951_v5  ;;  %v21260_v16 = vand.u32 4294901760, %v19663_v40 }
 0x852   :  { %14858 = vmatmul.mubr.f32.gmra.mxu0 %v9089_v30  ;;  %v9099_v10 = vand.u32 4294901760, %v9098_v15  ;;  %14923 = vmatprep.subr.mxu0 %v21953_v18  ;;  %v9118_v56 = vsub.f32 %v19650_v17, %v9117_v57  ;;  %v9109_v19 = vand.u32 4294901760, %v9108_v46  ;;  %v9128_v30 = vsub.f32 %v19641_v38, %v9127_v41 }
 0x853   :  { %14907 = vmatmul.mubr.f32.gmra.mxu1 %v19647_v11  ;;  %14924 = vmatpush3.msra.mxu0 %v21953_v18  ;;  %v9138_v5 = vsub.f32 %v19663_v40, %v21260_v16  ;;  %v9147_v15 = vand.u32 4294901760, %v19666_v7 }
 0x854   :  { %14860 = vmatprep.mubr.f32.mxu0 %v9099_v10  ;;  %14965 = vmatprep.mubr.f32.mxu1 %v21954_v54  ;;  %v9119_v39 = vand.u32 4294901760, %v9118_v56  ;;  %v21956_v10 = vand.u32 4294901760, %v19414_v32  ;;  %v9129_v18 = vand.u32 4294901760, %v9128_v30  ;;  %v21957_v54 = vand.u32 4294901760, %v19460_v62 }
 0x855   :  { %14989 = vmatprep.subr.mxu0 %v21955_v31  ;;  %15029 = vmatprep.subr.mxu1 %v21917_v0  ;;  %v9139_v46 = vand.u32 4294901760, %v9138_v5  ;;  %v9148_v16 = vsub.f32 %v19666_v7, %v9147_v15 }
 0x856   :  { %14861 = vmatmul.mubr.f32.gmra.mxu0 %v9109_v19  ;;  %v21959_v19 = vand.u32 4294901760, %v19521_v61 }
 0x857   :  { %14863 = vmatprep.mubr.f32.mxu0 %v9119_v39  ;;  %14966 = vmatmul.mubr.f32.vlgmr.msra.gmra.mxu1 %v21956_v10  ;;  %v21958_v39 = vand.u32 4294901760, %v19447_v21  ;;  %v9149_v56 = vand.u32 4294901760, %v9148_v16  ;;  %v21964_v16 = vand.u32 4294901760, %v19604_v2 }
 0x858   :  { %14968 = vmatprep.mubr.f32.mxu1 %v21957_v54  ;;  %15030 = vmatpush3.msra.mxu1 %v21917_v0  ;;  %v21960_v0 = vand.u32 4294901760, %v19488_v50 }
 0x859   :  { %15031 = vmatprep.subr.mxu1 %v21920_v48 }
 0x85a   :  { %14864 = vmatmul.mubr.f32.gmra.mxu0 %v9129_v18  ;;  %15032 = vmatpush3.msra.mxu1 %v21920_v48  ;;  %v21961_v48 = vand.u32 4294901760, %v19568_v26 }
 0x85b   :  { %14866 = vmatprep.mubr.f32.mxu0 %v9139_v46  ;;  %14969 = vmatmul.mubr.f32.gmra.mxu1 %v21958_v39 }
 0x85c   :  { %14971 = vmatprep.mubr.f32.mxu1 %v21959_v19  ;;  %15033 = vmatprep.subr.mxu1 %v21923_v37 }
 0x85d   :  { %15034 = vmatpush3.msra.mxu1 %v21923_v37  ;;  %v21963_v37 = vld [vmem:[#allocation11_spill] sm:$0xff] }
 0x85e   :  { %14867 = vmatmul.mubr.f32.gmra.mxu0 %v9149_v56  ;;  %15035 = vmatprep.subr.mxu1 %v21926_v13 }
 0x85f   :  { %14925 = vmatprep.mubr.f32.mxu0 %v19432_v22  ;;  %14972 = vmatmul.mubr.f32.gmra.mxu1 %v21960_v0  ;;  %v21962_v22 = vand.u32 4294901760, %v19533_v29 }
 0x860   :  { %14974 = vmatprep.mubr.f32.mxu1 %v21961_v48  ;;  %15036 = vmatpush3.msra.mxu1 %v21926_v13  ;;  %v21965_v13 = vld [vmem:[#allocation15_spill] sm:$0xff] }
 0x861   :  { %15037 = vmatprep.subr.mxu1 %v21935_v23 }
 0x862   :  { %14926 = vmatmul.mubr.f32.vlgmr.msra.gmra.mxu0 %v19414_v32  ;;  %15038 = vmatpush3.msra.mxu1 %v21935_v23  ;;  %v21966_v32 = vand.u32 4294901760, %v19578_v63  ;;  %v21969_v23 = vld [vmem:[#allocation25_spill] sm:$0xff] }
 0x863   :  { %14928 = vmatprep.mubr.f32.mxu0 %v19460_v62  ;;  %14990 = vmatpush3.msra.mxu0 %v21955_v31  ;;  %v21967_v62 = vld [vmem:[#allocation19_spill] sm:$0xff]  ;;  %v21968_v31 = vand.u32 4294901760, %v19628_v1 }
 0x864   :  { %14975 = vmatmul.mubr.f32.gmra.mxu1 %v21962_v22  ;;  %14991 = vmatprep.subr.mxu0 %v21963_v37 }
 0x865   :  { %14977 = vmatprep.mubr.f32.mxu1 %v21964_v16  ;;  %14992 = vmatpush3.msra.mxu0 %v21963_v37 }
 0x866   :  { %14929 = vmatmul.mubr.f32.gmra.mxu0 %v19447_v21  ;;  %14993 = vmatprep.subr.mxu0 %v21965_v13  ;;  %v21970_v21 = vand.u32 4294901760, %v19615_v24 }
 0x867   :  { %14931 = vmatprep.mubr.f32.mxu0 %v19521_v61  ;;  %14994 = vmatpush3.msra.mxu0 %v21965_v13  ;;  %v21971_v61 = vld [vmem:[#allocation27_spill] sm:$0xff] }
 0x868   :  { %14978 = vmatmul.mubr.f32.gmra.mxu1 %v21966_v32  ;;  %14995 = vmatprep.subr.mxu0 %v21967_v62 }
 0x869   :  { %14980 = vmatprep.mubr.f32.mxu1 %v21968_v31  ;;  %14996 = vmatpush3.msra.mxu0 %v21967_v62 }
 0x86a   :  { %14932 = vmatmul.mubr.f32.gmra.mxu0 %v19488_v50  ;;  %14997 = vmatprep.subr.mxu0 %v21969_v23  ;;  %v21972_v50 = vand.u32 4294901760, %v19663_v40 }
 0x86b   :  { %14934 = vmatprep.mubr.f32.mxu0 %v19568_v26  ;;  %14998 = vmatpush3.msra.mxu0 %v21969_v23 }
 0x86c   :  { %14981 = vmatmul.mubr.f32.gmra.mxu1 %v21970_v21  ;;  %15039 = vmatprep.subr.mxu1 %v21942_v36 }
 0x86d   :  { %14983 = vmatprep.mubr.f32.mxu1 %v9117_v57  ;;  %15040 = vmatpush3.msra.mxu1 %v21942_v36  ;;  %v21974_v57 = vld [vmem:[#allocation34_spill] sm:$0xff] }
 0x86e   :  { %14935 = vmatmul.mubr.f32.gmra.mxu0 %v19533_v29  ;;  %14999 = vmatprep.subr.mxu0 %v21971_v61  ;;  %v21973_v29 = vld [vmem:[#allocation30_spill] sm:$0xff] }
 0x86f   :  { %14937 = vmatprep.mubr.f32.mxu0 %v19604_v2  ;;  %15041 = vmatprep.subr.mxu1 %v21948_v52 }
 0x870   :  { %14984 = vmatmul.mubr.f32.gmra.mxu1 %v9127_v41  ;;  %15000 = vmatpush3.msra.mxu0 %v21971_v61 }
 0x871   :  { %14986 = vmatprep.mubr.f32.mxu1 %v21972_v50  ;;  %15042 = vmatpush3.msra.mxu1 %v21948_v52 }
 0x872   :  { %14938 = vmatmul.mubr.f32.gmra.mxu0 %v19578_v63  ;;  %15043 = vmatprep.subr.mxu1 %v21950_v35 }
 0x873   :  { %14940 = vmatprep.mubr.f32.mxu0 %v19628_v1  ;;  %15044 = vmatpush3.msra.mxu1 %v21950_v35 }
 0x874   :  { %14987 = vmatmul.mubr.f32.gmra.mxu1 %v9147_v15  ;;  %15001 = vmatprep.subr.mxu0 %v21973_v29 }
 0x875   :  { %15045 = vmatprep.mubr.f32.mxu1 %v19416_v12  ;;  %15002 = vmatpush3.msra.mxu0 %v21973_v29 }
 0x876   :  { %14941 = vmatmul.mubr.f32.gmra.mxu0 %v19615_v24  ;;  %15003 = vmatprep.subr.mxu0 %v21974_v57 }
 0x877   :  { %14943 = vmatprep.mubr.f32.mxu0 %v19650_v17  ;;  %15004 = vmatpush3.msra.mxu0 %v21974_v57 }
 0x878   :  { %15046 = vmatmul.mubr.f32.vlgmr.msra.gmra.mxu1 %v19399_v49 }
 0x879   :  { %15048 = vmatprep.mubr.f32.mxu1 %v19444_v20 }
 0x87a   :  { %14944 = vmatmul.mubr.f32.gmra.mxu0 %v19641_v38 }
 0x87b   :  { %14946 = vmatprep.mubr.f32.mxu0 %v19663_v40 }
 0x87c   :  { %15049 = vmatmul.mubr.f32.gmra.mxu1 %v19429_v9 }
 0x87d   :  { %15051 = vmatprep.mubr.f32.mxu1 %v19485_v58 }
 0x87e   :  { %14947 = vmatmul.mubr.f32.gmra.mxu0 %v19666_v7 }
 0x87f   :  { %15005 = vmatprep.mubr.f32.mxu0 %v19416_v12 }
 0x880   :  { %15052 = vmatmul.mubr.f32.gmra.mxu1 %v19474_v60 }
 0x881   :  { %15054 = vmatprep.mubr.f32.mxu1 %v19511_v3 }
 0x882   :  { %15006 = vmatmul.mubr.f32.vlgmr.msra.gmra.mxu0 %v19399_v49 }
 0x883   :  { %15008 = vmatprep.mubr.f32.mxu0 %v19444_v20 }
 0x884   :  { %15055 = vmatmul.mubr.f32.gmra.mxu1 %v19518_v4 }
 0x885   :  { %15057 = vmatprep.mubr.f32.mxu1 %v19542_v45 }
 0x886   :  { %15009 = vmatmul.mubr.f32.gmra.mxu0 %v19429_v9 }
 0x887   :  { %15011 = vmatprep.mubr.f32.mxu0 %v19485_v58 }
 0x888   :  { %15058 = vmatmul.mubr.f32.gmra.mxu1 %v19559_v14 }
 0x889   :  { %15060 = vmatprep.mubr.f32.mxu1 %v19590_v51 }
 0x88a   :  { %15012 = vmatmul.mubr.f32.gmra.mxu0 %v19474_v60 }
 0x88b   :  { %15014 = vmatprep.mubr.f32.mxu0 %v19511_v3 }
 0x88c   :  { %15061 = vmatmul.mubr.f32.gmra.mxu1 %v19601_v53 }
 0x88d   :  { %15063 = vmatprep.mubr.f32.mxu1 %v19620_v43 }
 0x88e   :  { %15015 = vmatmul.mubr.f32.gmra.mxu0 %v19518_v4 }
 0x88f   :  { %15017 = vmatprep.mubr.f32.mxu0 %v19542_v45 }
 0x890   :  { %15064 = vmatmul.mubr.f32.gmra.mxu1 %v19625_v28 }
 0x891   :  { %15066 = vmatprep.mubr.f32.mxu1 %v19644_v27 }
 0x892   :  { %15018 = vmatmul.mubr.f32.gmra.mxu0 %v19559_v14 }
 0x893   :  { %15020 = vmatprep.mubr.f32.mxu0 %v19590_v51 }
 0x894   :  { %15067 = vmatmul.mubr.f32.gmra.mxu1 %v19647_v11 }
 0x896   :  { %15021 = vmatmul.mubr.f32.gmra.mxu0 %v19601_v53 }
 0x897   :  { %15023 = vmatprep.mubr.f32.mxu0 %v19620_v43 }
 0x89a   :  { %15024 = vmatmul.mubr.f32.gmra.mxu0 %v19625_v28 }
 0x89b   :  { %15026 = vmatprep.mubr.f32.mxu0 %v19644_v27 }
 0x89e   :  { %15027 = vmatmul.mubr.f32.gmra.mxu0 %v19647_v11 }
 0x8f3   :  { %v19799_v49 = vpop.f32.mrf.mxu1 }
 0x8f5   :  { %v19801_v12 = vpop.f32.mrf.mxu1 }
 0x8f8   :  { %v14890_v9 = vpop.f32.mrf.mxu1 }
 0x8fa   :  { %v19803_v20 = vpop.f32.mrf.mxu1 }
 0x8fd   :  { %v19805_v35 = vpop.f32.mrf.mxu0  ;;  %v14893_v60 = vpop.f32.mrf.mxu1 }
 0x8ff   :  { %v19807_v58 = vpop.f32.mrf.mxu0  ;;  %v19809_v3 = vpop.f32.mrf.mxu1 }
 0x900   :  { %v9002_v55 = vadd.f32 1e-05, %v19807_v58 }
 0x902   :  { %v14896_v43 = vpop.f32.mrf.mxu1 }
 0x903   :  { %v14850_v4 = vpop.f32.mrf.mxu0 }
 0x904   :  { %v9032_v45 = vadd.f32 1e-05, %v14850_v4  ;;  %v19811_v14 = vpop.f32.mrf.mxu1 }
 0x905   :  { %v19813_v26 = vpop.f32.mrf.mxu0 }
 0x906   :  { %v14899_v36 = vpop.f32.mrf.mxu1  ;;  %v19815_v63 = vadd.f32 %v14890_v9, %v9032_v45  ;;  %v9022_v6 = vadd.f32 1e-05, %v19813_v26 }
 0x908   :  { %v19817_v40 = vpop.f32.mrf.mxu1  ;;  %v9275_v58 = vadd.f32 %v19803_v20, %v9022_v6 }
 0x909   :  { %v14853_v51 = vpop.f32.mrf.mxu0 }
 0x90a   :  { %v9052_v53 = vadd.f32 1e-05, %v14853_v51 }
 0x90b   :  { %v19819_v2 = vpop.f32.mrf.mxu0  ;;  %v14902_v52 = vpop.f32.mrf.mxu1 }
 0x90c   :  { %v19821_v24 = vadd.f32 %v14893_v60, %v9052_v53 }
 0x90d   :  { %v19823_v28 = vpop.f32.mrf.mxu1 }
 0x90e   :  { %v14856_v1 = vpop.f32.mrf.mxu0 }
 0x90f   :  { %v9072_v38 = vadd.f32 1e-05, %v14856_v1  ;;  %v14905_v27 = vpop.f32.mrf.mxu1 }
 0x910   :  { %v19825_v11 = vpop.f32.mrf.mxu0 }
 0x911   :  { %v19827_v17 = vpop.f32.mrf.mxu1  ;;  %v19829_v41 = vadd.f32 %v14896_v43, %v9072_v38 }
 0x912   :  { %v14859_v7 = vpop.f32.mrf.mxu0 }
 0x913   :  { %v9092_v30 = vadd.f32 1e-05, %v14859_v7  ;;  %v14908_v5 = vpop.f32.mrf.mxu1 }
 0x914   :  { %v19831_v15 = vpop.f32.mrf.mxu0 }
 0x915   :  { %v19833_v10 = vpop.f32.mrf.mxu1  ;;  %v19835_v46 = vadd.f32 %v14899_v36, %v9092_v30 }
 0x916   :  { %21975 = vst [vmem:[#allocation89_spill] sm:$0xff] %v19833_v10  ;;  %v14862_v18 = vpop.f32.mrf.mxu0 }
 0x917   :  { %v9112_v54 = vadd.f32 1e-05, %v14862_v18  ;;  %v14967_v39 = vpop.f32.mrf.mxu1 }
 0x918   :  { %v19837_v56 = vpop.f32.mrf.mxu0 }
 0x919   :  { %v9626_v19 = vpop.f32.mrf.mxu1  ;;  %v19839_v0 = vadd.f32 %v14902_v52, %v9112_v54 }
 0x91a   :  { %v14865_v48 = vpop.f32.mrf.mxu0 }
 0x91b   :  { %v9132_v22 = vadd.f32 1e-05, %v14865_v48  ;;  %v19841_v37 = vpop.f32.mrf.mxu1 }
 0x91c   :  { %v19843_v16 = vpop.f32.mrf.mxu0 }
 0x91d   :  { %v19845_v13 = vpop.f32.mrf.mxu1  ;;  %v19847_v32 = vadd.f32 %v14905_v27, %v9132_v22 }
 0x91e   :  { %v14868_v62 = vpop.f32.mrf.mxu0 }
 0x91f   :  { %v9152_v31 = vadd.f32 1e-05, %v14868_v62  ;;  %v19849_v23 = vpop.f32.mrf.mxu1  ;;  %v9012_v62 = vadd.f32 1e-05, %v19805_v35 }
 0x920   :  { %v19851_v21 = vpop.f32.mrf.mxu0 }
 0x921   :  { %v19853_v61 = vpop.f32.mrf.mxu1  ;;  %v19855_v50 = vadd.f32 %v14908_v5, %v9152_v31  ;;  %v9269_v59 = vadd.f32 %v19799_v49, %v9012_v62 }
 0x922   :  { %v14927_v29 = vpop.f32.mrf.mxu0 }
 0x923   :  { %21976 = vst [vmem:[#allocation69_spill] sm:$0xff] %v19855_v50  ;;  %v9448_v44 = vadd.f32 %v14927_v29, %v9269_v59  ;;  %v9042_v50 = vadd.f32 1e-05, %v19819_v2 }
 0x924   :  { %v9440_v57 = vpop.f32.mrf.mxu0  ;;  %v19857_v9 = vpop.f32.mrf.mxu1 }
 0x925   :  { %v9635_v26 = vadd.f32 %v14967_v39, %v9448_v44 }
 0x926   :  { %v14930_v60 = vpop.f32.mrf.mxu0  ;;  %v19859_v43 = vpop.f32.mrf.mxu1 }
 0x927   :  { %v9462_v49 = vadd.f32 %v14930_v60, %v19815_v63 }
 0x928   :  { %v9454_v4 = vpop.f32.mrf.mxu0  ;;  %v19861_v45 = vpop.f32.mrf.mxu1 }
 0x929   :  { %v9455_v62 = vadd.f32 %v9454_v4, %v9275_v58 }
 0x92a   :  { %v14933_v36 = vpop.f32.mrf.mxu0  ;;  %v19863_v51 = vpop.f32.mrf.mxu1 }
 0x92b   :  { %v9476_v2 = vadd.f32 %v14933_v36, %v19821_v24  ;;  %v9643_v44 = vadd.f32 %v19845_v13, %v9455_v62 }
 0x92c   :  { %v9468_v53 = vpop.f32.mrf.mxu0  ;;  %v19865_v52 = vpop.f32.mrf.mxu1 }
 0x92e   :  { %v14936_v1 = vpop.f32.mrf.mxu0  ;;  %v19867_v38 = vpop.f32.mrf.mxu1 }
 0x92f   :  { %21977 = vst [vmem:[#allocation92_spill] sm:$0xff] %v19867_v38 }
 0x930   :  { %v9482_v27 = vpop.f32.mrf.mxu0  ;;  %v19869_v7 = vpop.f32.mrf.mxu1 }
 0x931   :  { %21978 = vst [vmem:[#allocation95_spill] sm:$0xff] %v19869_v7 }
 0x932   :  { %v19871_v30 = vpop.f32.mrf.mxu0  ;;  %v19873_v5 = vpop.f32.mrf.mxu1 }
 0x933   :  { %21979 = vst [vmem:[#allocation98_spill] sm:$0xff] %v19873_v5 }
 0x934   :  { %v19875_v18 = vpop.f32.mrf.mxu0  ;;  %v19877_v54 = vpop.f32.mrf.mxu1 }
 0x935   :  { %21980 = vst [vmem:[#allocation103_spill] sm:$0xff] %v19877_v54 }
 0x936   :  { %v19879_v48 = vpop.f32.mrf.mxu0  ;;  %v19881_v22 = vpop.f32.mrf.mxu1 }
 0x937   :  { %21981 = vst [vmem:[#allocation104_spill] sm:$0xff] %v19881_v22  ;;  %v9263_v22 = vadd.f32 %v19801_v12, %v9002_v55  ;;  %v9062_v55 = vadd.f32 1e-05, %v19825_v11  ;;  %v9287_v12 = vadd.f32 %v19809_v3, %v9042_v50  ;;  %v9082_v11 = vadd.f32 1e-05, %v19831_v15 }
 0x938   :  { %v19884_v31 = vpop.f32.mrf.mxu0  ;;  %v15047_v34 = vpop.f32.mrf.mxu1  ;;  %v9490_v3 = vadd.f32 %v14936_v1, %v19829_v41  ;;  %v9504_v15 = vadd.f32 %v19871_v30, %v19835_v46  ;;  %v9122_v46 = vadd.f32 1e-05, %v19843_v16 }
 0x939   :  { %v9441_v7 = vadd.f32 %v9440_v57, %v9263_v22  ;;  %v9469_v39 = vadd.f32 %v9468_v53, %v9287_v12  ;;  %v9299_v50 = vadd.f32 %v19811_v14, %v9062_v55 }
 0x93a   :  { %v19887_v42 = vpop.f32.mrf.mxu0  ;;  %v10010_v47 = vpop.f32.mrf.mxu1  ;;  %v9683_v14 = vadd.f32 %v19857_v9, %v9490_v3  ;;  %v9699_v62 = vadd.f32 %v19861_v45, %v9504_v15  ;;  %v9142_v45 = vadd.f32 1e-05, %v19851_v21  ;;  %v19949_v15 = vld [vmem:[%s20879_s1 + $0x164] ss:$0 sm:$0xff] }
 0x93b   :  { %v9627_v29 = vadd.f32 %v9626_v19, %v9441_v7 }
 0x93c   :  { %v19891_v5 = vpop.f32.mrf.mxu0  ;;  %v15050_v54 = vpop.f32.mrf.mxu1 }
 0x93d   :  { %21982 = vst [vmem:[#allocation107_spill] sm:$0xff] %v19891_v5 }
 0x93e   :  { %v19894_v25 = vpop.f32.mrf.mxu0  ;;  %v10022_v35 = vpop.f32.mrf.mxu1 }
 0x93f   :  { %21983 = vst [vmem:[#allocation109_spill] sm:$0xff] %v19894_v25 }
 0x940   :  { %v19898_v33 = vpop.f32.mrf.mxu0  ;;  %v15053_v10 = vpop.f32.mrf.mxu1 }
 0x941   :  { %21984 = vst [vmem:[#allocation73_spill] sm:$0xff] %v19898_v33  ;;  %v9651_v33 = vadd.f32 %v19841_v37, %v9462_v49  ;;  %v9667_v37 = vadd.f32 %v19849_v23, %v9476_v2  ;;  %v9102_v23 = vadd.f32 1e-05, %v19837_v56 }
 0x942   :  { %v15007_v38 = vpop.f32.mrf.mxu0  ;;  %v10034_v5 = vpop.f32.mrf.mxu1 }
 0x943   :  { %v9848_v59 = vadd.f32 %v15007_v38, %v9635_v26  ;;  %v9483_v38 = vadd.f32 %v9482_v27, %v9299_v50  ;;  %v9323_v56 = vadd.f32 %v19823_v28, %v9102_v23  ;;  %v9532_v28 = vadd.f32 %v19887_v42, %v19847_v32  ;;  %v21986_v42 = vld [vmem:[#allocation92_spill] sm:$0xff]  ;;  %v21989_v50 = vld [vmem:[#allocation69_spill] sm:$0xff] }
 0x944   :  { %v9841_v57 = vpop.f32.mrf.mxu0  ;;  %v15056_v22 = vpop.f32.mrf.mxu1 }
 0x945   :  { %v10017_v6 = vadd.f32 %v15047_v34, %v9848_v59  ;;  %v9842_v20 = vadd.f32 %v9841_v57, %v9627_v29  ;;  %v9511_v12 = vadd.f32 %v19884_v31, %v9323_v56 }
 0x946   :  { %v15010_v25 = vpop.f32.mrf.mxu0  ;;  %v10046_v63 = vpop.f32.mrf.mxu1 }
 0x947   :  { %15302 = vrsqrt.f32 %v10017_v6  ;;  %v10011_v60 = vadd.f32 %v10010_v47, %v9842_v20  ;;  %v9860_v19 = vadd.f32 %v15010_v25, %v9651_v33  ;;  %v9659_v47 = vadd.f32 %v19853_v61, %v9469_v39 }
 0x948   :  { %v9853_v4 = vpop.f32.mrf.mxu0  ;;  %v15059_v24 = vpop.f32.mrf.mxu1  ;;  %v9311_v25 = vadd.f32 %v19817_v40, %v9082_v11  ;;  %v9707_v32 = vadd.f32 %v21986_v42, %v9511_v12  ;;  %v21988_v11 = vld [vmem:[#allocation100_spill] sm:$0xff] }
 0x949   :  { %15304 = vrsqrt.f32 %v10011_v60  ;;  %v10029_v34 = vadd.f32 %v15050_v54, %v9860_v19  ;;  %v9854_v36 = vadd.f32 %v9853_v4, %v9643_v44  ;;  %v21985_v44 = vld [vmem:[#allocation107_spill] sm:$0xff]  ;;  %v21987_v19 = vld [vmem:[#allocation89_spill] sm:$0xff] }
 0x94a   :  { %v15013_v13 = vpop.f32.mrf.mxu0  ;;  %v10058_v33 = vpop.f32.mrf.mxu1  ;;  %v9497_v61 = vadd.f32 %v19875_v18, %v9311_v25  ;;  %v21990_v4 = vld [vmem:[#allocation109_spill] sm:$0xff] }
 0x94b   :  { %v10023_v7 = vadd.f32 %v10022_v35, %v9854_v36  ;;  %v9872_v53 = vadd.f32 %v15013_v13, %v9667_v37  ;;  %15306 = vrsqrt.f32 %v10029_v34  ;;  %v9675_v35 = vadd.f32 %v19859_v43, %v9483_v38  ;;  %v21991_v37 = vld [vmem:[#allocation95_spill] sm:$0xff] }
 0x94c   :  { %v9865_v41 = vpop.f32.mrf.mxu0  ;;  %v15062_v49 = vpop.f32.mrf.mxu1  ;;  %v9731_v38 = vadd.f32 %v21991_v37, %v9532_v28  ;;  %v22002_v37 = vld [vmem:[#allocation77_spill] sm:$0xff] }
 0x94d   :  { %15308 = vrsqrt.f32 %v10023_v7  ;;  %v10041_v1 = vadd.f32 %v15053_v10, %v9872_v53  ;;  %v9866_v54 = vadd.f32 %v9865_v41, %v9659_v47  ;;  %v9518_v10 = vadd.f32 %v19879_v48, %v19839_v0  ;;  %v21992_v7 = vld [vmem:[#allocation73_spill] sm:$0xff] }
 0x94e   :  { %v15016_v27 = vpop.f32.mrf.mxu0  ;;  %v10070_v18 = vpop.f32.mrf.mxu1  ;;  %v9335_v0 = vadd.f32 %v19827_v17, %v9122_v46 }
 0x94f   :  { %15310 = vrsqrt.f32 %v10041_v1  ;;  %v10035_v58 = vadd.f32 %v10034_v5, %v9866_v54  ;;  %v9884_v40 = vadd.f32 %v15016_v27, %v9683_v14  ;;  %v9691_v5 = vadd.f32 %v19863_v51, %v9497_v61  ;;  %v21994_v1 = vld [vmem:[#allocation63_spill] sm:$0xff] }
 0x950   :  { %v9877_v26 = vpop.f32.mrf.mxu0  ;;  %v9715_v48 = vadd.f32 %v19865_v52, %v9518_v10  ;;  %v15065_v31 = vpop.f32.mrf.mxu1  ;;  %v9525_v21 = vadd.f32 %v21985_v44, %v9335_v0  ;;  %v9347_v52 = vadd.f32 %v21987_v19, %v9142_v45  ;;  %v21997_v10 = vld [vmem:[#allocation103_spill] sm:$0xff] }
 0x951   :  { %15312 = vrsqrt.f32 %v10035_v58  ;;  %v9878_v9 = vadd.f32 %v9877_v26, %v9675_v35  ;;  %v10053_v30 = vadd.f32 %v15056_v22, %v9884_v40  ;;  %v21995_v35 = vld [vmem:[#allocation98_spill] sm:$0xff] }
 0x952   :  { %v15019_v43 = vpop.f32.mrf.mxu0  ;;  %v9539_v53 = vadd.f32 %v21992_v7, %v9347_v52  ;;  %v10082_v41 = vpop.f32.mrf.mxu1  ;;  %v9723_v61 = vadd.f32 %v21995_v35, %v9525_v21 }
 0x953   :  { %v10047_v59 = vadd.f32 %v10046_v63, %v9878_v9  ;;  %v9896_v29 = vadd.f32 %v15019_v43, %v9699_v62  ;;  %v19935_v63 = vld [vmem:[%s20879_s1 + $0x163] ss:$0 sm:$0xff] }
 0x954   :  { %v15303_v55 = vpop.eup %15302  ;;  %v9889_v57 = vpop.f32.mrf.mxu0  ;;  %v21996_v9 = vld [vmem:[#allocation101_spill] sm:$0xff] }
 0x955   :  { %15314 = vrsqrt.f32 %v10047_v59  ;;  %v10065_v16 = vadd.f32 %v15059_v24, %v9896_v29  ;;  %v9890_v2 = vadd.f32 %v9889_v57, %v9691_v5  ;;  %v10121_v51 = vmul.f32 %v15303_v55, %v19372_v8  ;;  %v21998_v59 = vld [vmem:[#allocation80_spill] sm:$0xff]  ;;  %v15068_v29 = vpop.f32.mrf.mxu1 }
 0x956   :  { %v15305_v6 = vpop.eup %15304  ;;  %15316 = vrsqrt.f32 %v10053_v30  ;;  %v15022_v22 = vpop.f32.mrf.mxu0  ;;  %v9546_v24 = vadd.f32 %v21990_v4, %v21989_v50  ;;  %v21999_v5 = vld [vmem:[#allocation104_spill] sm:$0xff]  ;;  %v22001_v4 = vld [vmem:[#allocation102_spill] sm:$0xff] }
 0x957   :  { %15318 = vrsqrt.f32 %v10065_v16  ;;  %v10059_v20 = vadd.f32 %v10058_v33, %v9890_v2  ;;  %v9908_v39 = vadd.f32 %v15022_v22, %v9715_v48  ;;  %v10120_v3 = vmul.f32 %v15305_v6, %v21988_v11  ;;  %v21993_v33 = vld [vmem:[#allocation39_spill] sm:$0xff]  ;;  %v10094_v42 = vpop.f32.mrf.mxu1 }
 0x958   :  { %v9901_v17 = vpop.f32.mrf.mxu0  ;;  %v15307_v60 = vpop.eup %15306  ;;  %v10141_v47 = vmul.f32 %v19935_v63, %v10121_v51  ;;  %v9747_v56 = vadd.f32 %v21997_v10, %v9546_v24  ;;  %v9739_v55 = vadd.f32 %v21999_v5, %v9539_v53  ;;  %v22006_v10 = vld [vmem:[#allocation55_spill] sm:$0xff] }
 0x959   :  { %15320 = vrsqrt.f32 %v10059_v20  ;;  %v10077_v34 = vadd.f32 %v15062_v49, %v9908_v39  ;;  %v9902_v36 = vadd.f32 %v9901_v17, %v9707_v32  ;;  %v10123_v54 = vmul.f32 %v15307_v60, %v21994_v1  ;;  %v22000_v39 = vld [vmem:[#allocation44_spill] sm:$0xff] }
 0x95a   :  { %v15309_v8 = vpop.eup %15308  ;;  %v15025_v13 = vpop.f32.mrf.mxu0  ;;  %v10140_v40 = vmul.f32 %v19935_v63, %v10120_v3  ;;  %v10161_v43 = vadd.f32 %v19949_v15, %v10141_v47 }
 0x95b   :  { %v10122_v25 = vmul.f32 %v15309_v8, %v21993_v33  ;;  %v10071_v23 = vadd.f32 %v10070_v18, %v9902_v36  ;;  %v9920_v27 = vadd.f32 %v15025_v13, %v9731_v38  ;;  %15322 = vrsqrt.f32 %v10077_v34  ;;  %v22003_v13 = vld [vmem:[#allocation58_spill] sm:$0xff] }
 0x95c   :  { %v15311_v14 = vpop.eup %15310  ;;  %v9913_v58 = vpop.f32.mrf.mxu0  ;;  %v10143_v12 = vmul.f32 %v19935_v63, %v10123_v54  ;;  %v10160_v6 = vadd.f32 %v19949_v15, %v10140_v40  ;;  %v11973_v17 = vmul.f32 -1.442695, %v10161_v43 }
 0x95d   :  { %v10142_v49 = vmul.f32 %v19935_v63, %v10122_v25  ;;  %v10125_v62 = vmul.f32 %v15311_v14, %v21996_v9  ;;  %15324 = vrsqrt.f32 %v10071_v23  ;;  %v9914_v46 = vadd.f32 %v9913_v58, %v9723_v61  ;;  %v22005_v58 = vld [vmem:[#allocation105_spill] sm:$0xff] }
 0x95e   :  { %v15313_v26 = vpop.eup %15312  ;;  %v15028_v30 = vpop.f32.mrf.mxu0  ;;  %v10089_v57 = vadd.f32 %v15065_v31, %v9920_v27  ;;  %v10163_v60 = vadd.f32 %v19949_v15, %v10143_v12  ;;  %v11972_v52 = vmul.f32 -1.442695, %v10160_v6  ;;  %v22004_v27 = vld [vmem:[#allocation76_spill] sm:$0xff]  ;;  %v22007_v12 = vld [vmem:[#allocation106_spill] sm:$0xff] }
 0x95f   :  { %v10124_v18 = vmul.f32 %v15313_v26, %v21998_v59  ;;  %v10083_v45 = vadd.f32 %v10082_v41, %v9914_v46  ;;  %v9932_v16 = vadd.f32 %v15028_v30, %v9747_v56  ;;  %v10162_v28 = vadd.f32 %v19949_v15, %v10142_v49 }
 0x960   :  { %v9925_v2 = vpop.f32.mrf.mxu0  ;;  %v10145_v22 = vmul.f32 %v19935_v63, %v10125_v62  ;;  %v11975_v53 = vmul.f32 -1.442695, %v10163_v60 }
 0x961   :  { %v10144_v0 = vmul.f32 %v19935_v63, %v10124_v18  ;;  %15326 = vrsqrt.f32 %v10083_v45  ;;  %v10101_v51 = vadd.f32 %v15068_v29, %v9932_v16  ;;  %v9926_v20 = vadd.f32 %v9925_v2, %v9739_v55  ;;  %v22008_v16 = vld [vmem:[#allocation78_spill] sm:$0xff] }
 0x962   :  { %v15315_v48 = vpop.eup %15314  ;;  %15328 = vrsqrt.f32 %v10089_v57  ;;  %v11974_v8 = vmul.f32 -1.442695, %v10162_v28  ;;  %v10165_v50 = vadd.f32 %v19949_v15, %v10145_v22 }
 0x963   :  { %v15317_v44 = vpop.eup %15316  ;;  %v10164_v21 = vadd.f32 %v19949_v15, %v10144_v0  ;;  %v10126_v31 = vmul.f32 %v15315_v48, %v22000_v39  ;;  %v10095_v19 = vadd.f32 %v10094_v42, %v9926_v20  ;;  %15330 = vrsqrt.f32 %v10101_v51  ;;  %v22009_v48 = vld [vmem:[#allocation108_spill] sm:$0xff] }
 0x964   :  { %v15319_v32 = vpop.eup %15318  ;;  %v10127_v24 = vmul.f32 %v15317_v44, %v22001_v4  ;;  %v11977_v41 = vmul.f32 -1.442695, %v10165_v50 }
 0x965   :  { %v10146_v11 = vmul.f32 %v19935_v63, %v10126_v31  ;;  %15332 = vrsqrt.f32 %v10095_v19  ;;  %v11976_v34 = vmul.f32 -1.442695, %v10164_v21  ;;  %v10129_v38 = vmul.f32 %v15319_v32, %v22002_v37 }
 0x966   :  { %v15321_v3 = vpop.eup %15320  ;;  %15334 = vpow2.f32 %v11973_v17  ;;  %v10147_v14 = vmul.f32 %v19935_v63, %v10127_v24 }
 0x967   :  { %v10166_v36 = vadd.f32 %v19949_v15, %v10146_v11  ;;  %v10128_v7 = vmul.f32 %v15321_v3, %v22003_v13  ;;  %15336 = vpow2.f32 %v11972_v52  ;;  %v10149_v54 = vmul.f32 %v19935_v63, %v10129_v38 }
 0x968   :  { %v15323_v25 = vpop.eup %15322  ;;  %15338 = vpow2.f32 %v11974_v8  ;;  %v10167_v49 = vadd.f32 %v19949_v15, %v10147_v14 }
 0x969   :  { %v11978_v47 = vmul.f32 -1.442695, %v10166_v36  ;;  %v10148_v33 = vmul.f32 %v19935_v63, %v10128_v7  ;;  %15340 = vpow2.f32 %v11976_v34  ;;  %v10131_v40 = vmul.f32 %v15323_v25, %v22005_v58 }
 0x96a   :  { %v15325_v1 = vpop.eup %15324  ;;  %15342 = vpow2.f32 %v11975_v53  ;;  %v10169_v62 = vadd.f32 %v19949_v15, %v10149_v54  ;;  %v11979_v18 = vmul.f32 -1.442695, %v10167_v49  ;;  %v22012_v49 = vld [vmem:[#allocation110_spill] sm:$0xff] }
 0x96b   :  { %v10168_v23 = vadd.f32 %v19949_v15, %v10148_v33  ;;  %v10130_v35 = vmul.f32 %v15325_v1, %v22004_v27  ;;  %15344 = vpow2.f32 %v11978_v47  ;;  %v10151_v43 = vmul.f32 %v19935_v63, %v10131_v40 }
 0x96c   :  { %15346 = vpow2.f32 %v11977_v41  ;;  %v11981_v55 = vmul.f32 -1.442695, %v10169_v62 }
 0x96d   :  { %v11980_v61 = vmul.f32 -1.442695, %v10168_v23  ;;  %v10150_v26 = vmul.f32 %v19935_v63, %v10130_v35  ;;  %v10171_v28 = vadd.f32 %v19949_v15, %v10151_v43 }
 0x96e   :  { %v15327_v9 = vpop.eup %15326 }
 0x96f   :  { %15348 = vpow2.f32 %v11980_v61  ;;  %v10170_v46 = vadd.f32 %v19949_v15, %v10150_v26  ;;  %v10132_v56 = vmul.f32 %v15327_v9, %v22006_v10  ;;  %v15329_v30 = vpop.eup %15328  ;;  %v11983_v60 = vmul.f32 -1.442695, %v10171_v28  ;;  %v22011_v61 = vld [vmem:[#allocation111_spill] sm:$0xff] }
 0x970   :  { %v15331_v59 = vpop.eup %15330  ;;  %v10133_v57 = vmul.f32 %v15329_v30, %v22007_v12  ;;  %v22013_v9 = vld [vmem:[#allocation119_spill] sm:$0xff] }
 0x971   :  { %v11982_v29 = vmul.f32 -1.442695, %v10170_v46  ;;  %v10152_v45 = vmul.f32 %v19935_v63, %v10132_v56  ;;  %v10135_v22 = vmul.f32 %v15331_v59, %v22009_v48 }
 0x972   :  { %v15333_v5 = vpop.eup %15332  ;;  %v10153_v31 = vmul.f32 %v19935_v63, %v10133_v57  ;;  %v22015_v57 = vld [vmem:[#allocation67_spill] sm:$0xff] }
 0x973   :  { %v10134_v2 = vmul.f32 %v15333_v5, %v22008_v16  ;;  %v15335_v6 = vpop.eup %15334  ;;  %15350 = vpow2.f32 %v11982_v29  ;;  %v10172_v42 = vadd.f32 %v19949_v15, %v10152_v45  ;;  %v10155_v11 = vmul.f32 %v19935_v63, %v10135_v22 }
 0x974   :  { %v15337_v0 = vpop.eup %15336  ;;  %v10225_v20 = vadd.f32 1.0, %v15335_v6  ;;  %15352 = vpow2.f32 %v11979_v18  ;;  %v10173_v34 = vadd.f32 %v19949_v15, %v10153_v31  ;;  %v22014_v18 = vld [vmem:[#allocation113_spill] sm:$0xff] }
 0x975   :  { %v10154_v51 = vmul.f32 %v19935_v63, %v10134_v2  ;;  %v15339_v44 = vpop.eup %15338  ;;  %v10224_v21 = vadd.f32 1.0, %v15337_v0  ;;  %15354 = vpow2.f32 %v11981_v55  ;;  %v11984_v36 = vmul.f32 -1.442695, %v10172_v42  ;;  %v22016_v6 = vld [vmem:[#allocation81_spill] sm:$0xff]  ;;  %v22017_v0 = vld [vmem:[#allocation114_spill] sm:$0xff] }
 0x976   :  { %v15341_v39 = vpop.eup %15340  ;;  %15356 = vrcp.f32 %v10225_v20  ;;  %v10226_v32 = vadd.f32 1.0, %v15339_v44  ;;  %v10175_v38 = vadd.f32 %v19949_v15, %v10155_v11  ;;  %v11985_v63 = vmul.f32 -1.442695, %v10173_v34  ;;  %v22018_v20 = vld [vmem:[#allocation112_spill] sm:$0xff]  ;;  %v22021_v11 = vld [vmem:[#allocation115_spill] sm:$0xff] }
 0x977   :  { %v15343_v17 = vpop.eup %15342  ;;  %15358 = vrcp.f32 %v10224_v21  ;;  %v10228_v19 = vadd.f32 1.0, %v15341_v39  ;;  %v10174_v3 = vadd.f32 %v19949_v15, %v10154_v51  ;;  %v22010_v15 = vld [vmem:[#allocation118_spill] sm:$0xff]  ;;  %v22019_v21 = vld [vmem:[#allocation72_spill] sm:$0xff] }
 0x978   :  { %v15345_v52 = vpop.eup %15344  ;;  %15360 = vrcp.f32 %v10226_v32  ;;  %v10227_v50 = vadd.f32 1.0, %v15343_v17  ;;  %v11987_v47 = vmul.f32 -1.442695, %v10175_v38  ;;  %v22020_v32 = vld [vmem:[#allocation83_spill] sm:$0xff]  ;;  %v22024_v38 = vld [vmem:[#allocation116_spill] sm:$0xff] }
 0x979   :  { %v15347_v8 = vpop.eup %15346  ;;  %15362 = vrcp.f32 %v10228_v19  ;;  %v10230_v4 = vadd.f32 1.0, %v15345_v52  ;;  %v11986_v13 = vmul.f32 -1.442695, %v10174_v3 }
 0x97a   :  { %15364 = vpow2.f32 %v11983_v60  ;;  %v10229_v7 = vadd.f32 1.0, %v15347_v8  ;;  %v22022_v8 = vld [vmem:[#allocation117_spill] sm:$0xff] }
 0x97b   :  { %15366 = vrcp.f32 %v10230_v4 }
 0x97c   :  { %v15349_v24 = vpop.eup %15348  ;;  %15368 = vrcp.f32 %v10227_v50 }
 0x97d   :  { %v10232_v37 = vadd.f32 1.0, %v15349_v24  ;;  %15370 = vpow2.f32 %v11984_v36  ;;  %v22023_v24 = vld [vmem:[#allocation37_spill] sm:$0xff]  ;;  %v39_v36 = vld [vmem:[%s20879_s1 + $0xd8] sm:$0xff] }
 0x97f   :  { %15372 = vrcp.f32 %v10232_v37  ;;  %v38_v37 = vld [vmem:[%s20879_s1 + $0xd0] sm:$0xff] }
 0x980   :  { %v15351_v53 = vpop.eup %15350  ;;  %15374 = vpow2.f32 %v11986_v13 }
 0x981   :  { %v15353_v33 = vpop.eup %15352  ;;  %15376 = vrcp.f32 %v10229_v7  ;;  %v10234_v25 = vadd.f32 1.0, %v15351_v53  ;;  %v20074_v7 = vand.u32 4294901760, %v39_v36 }
 0x982   :  { %v15355_v41 = vpop.eup %15354  ;;  %15378 = vpow2.f32 %v11985_v63  ;;  %v10231_v23 = vadd.f32 1.0, %v15353_v33  ;;  %v20076_v63 = vand.u32 4294901760, %v38_v37 }
 0x983   :  { %v19998_v14 = vpop.eup %15356  ;;  %15380 = vrcp.f32 %v10234_v25  ;;  %v10233_v46 = vadd.f32 1.0, %v15355_v41  ;;  %15069 = vmatprep.subr.mxu0 %v20074_v7  ;;  %v22025_v25 = vld [vmem:[#allocation57_spill] sm:$0xff] }
 0x984   :  { %v20000_v1 = vpop.eup %15358  ;;  %v10353_v54 = vmul.f32 %v19998_v14, %v22010_v15  ;;  %15382 = vpow2.f32 %v11987_v47  ;;  %v20083_v47 = vsub.f32 %v39_v36, %v20074_v7  ;;  %v20086_v33 = vsub.f32 %v38_v37, %v20076_v63  ;;  %15070 = vmatpush3.msra.mxu0 %v20074_v7 }
 0x985   :  { %v20004_v27 = vpop.eup %15360  ;;  %v10352_v26 = vmul.f32 %v20000_v1, %v22012_v49  ;;  %15384 = vrcp.f32 %v10231_v23  ;;  %15071 = vmatprep.subr.mxu0 %v20076_v63 }
 0x986   :  { %v20006_v35 = vpop.eup %15362  ;;  %10386 = vrot.lane.b32.xlu1 %v10353_v54, %s15452_s3  ;;  %v10354_v58 = vmul.f32 %v20004_v27, %v22011_v61  ;;  %15386 = vrcp.f32 %v10233_v46  ;;  %v20093_v15 = vand.u32 4294901760, %v20083_v47  ;;  %v20096_v54 = vand.u32 4294901760, %v20086_v33  ;;  %15072 = vmatpush3.msra.mxu0 %v20076_v63 }
 0x987   :  { %v15365_v40 = vpop.eup %15364  ;;  %v10356_v62 = vmul.f32 %v20006_v35, %v22013_v9 }
 0x988   :  { %10388 = vrot.lane.b32.xlu0 %v10354_v58, %s15452_s3  ;;  %v20016_v10 = vpop.eup %15366  ;;  %v10235_v43 = vadd.f32 1.0, %v15365_v40  ;;  %v10791_v61 = vsub.f32 %v20083_v47, %v20093_v15  ;;  %v10798_v58 = vsub.f32 %v20086_v33, %v20096_v54  ;;  %v22026_v40 = vld [vmem:[#allocation85_spill] sm:$0xff] }
 0x989   :  { %v20018_v56 = vpop.eup %15368  ;;  %v10358_v29 = vmul.f32 %v20016_v10, %v22014_v18 }
 0x98a   :  { %10384 = vrot.lane.b32.xlu1 %v10352_v26, %s15452_s3  ;;  %v15371_v30 = vpop.eup %15370  ;;  %v10355_v28 = vmul.f32 %v20018_v56, %v22016_v6  ;;  %v10792_v26 = vand.u32 4294901760, %v10791_v61  ;;  %v10799_v9 = vand.u32 4294901760, %v10798_v58  ;;  %v37_v6 = vld [vmem:[%s20879_s1 + $0xc8] sm:$0xff] }
 0x98b   :  { %v10236_v5 = vadd.f32 1.0, %v15371_v30 }
 0x98c   :  { %v20021_v59 = vpop.eup %15372  ;;  %10392 = vrot.lane.b32.xlu0 %v10356_v62, %s15452_s3  ;;  %15101 = vmatprep.subr.mxu1 %v10792_v26  ;;  %v10291_v62 = vpop.permute.xlu0 %10290 }
 0x98d   :  { %v15375_v55 = vpop.eup %15374  ;;  %15388 = vrcp.f32 %v10236_v5  ;;  %v10360_v48 = vmul.f32 %v20021_v59, %v22017_v0  ;;  %15102 = vmatpush3.msra.mxu1 %v10792_v26  ;;  %v36_v0 = vld [vmem:[%s20879_s1 + $0xc0] sm:$0xff] }
 0x98e   :  { %v20026_v12 = vpop.eup %15376  ;;  %10318 = vrot.lane.b32.xlu1 %v22015_v57, %s15452_s3  ;;  %v10238_v45 = vadd.f32 1.0, %v15375_v55  ;;  %15390 = vrcp.f32 %v10235_v43  ;;  %15103 = vmatprep.subr.mxu1 %v10799_v9  ;;  %v10295_v43 = vpop.permute.xlu1 %10294 }
 0x98f   :  { %v15379_v16 = vpop.eup %15378  ;;  %v10357_v44 = vmul.f32 %v20026_v12, %v22018_v20  ;;  %15104 = vmatpush3.msra.mxu1 %v10799_v9 }
 0x990   :  { %v20030_v2 = vpop.eup %15380  ;;  %10396 = vrot.lane.b32.xlu0 %v10358_v29, %s15452_s3  ;;  %15392 = vrcp.f32 %v10238_v45  ;;  %v10237_v22 = vadd.f32 1.0, %v15379_v16  ;;  %v10289_v46 = vpop.permute.xlu0 %10288 }
 0x991   :  { %v15383_v51 = vpop.eup %15382  ;;  %v10362_v39 = vmul.f32 %v20030_v2, %v22019_v21  ;;  %v10336_v37 = vmul.f32 %v20000_v1, %v10289_v46 }
 0x992   :  { %10390 = vrot.lane.b32.xlu1 %v10355_v28, %s15452_s3  ;;  %15394 = vrcp.f32 %v10237_v22  ;;  %v10239_v31 = vadd.f32 1.0, %v15383_v51  ;;  %v20043_v42 = vpop.eup %15384  ;;  %v10299_v29 = vpop.permute.xlu1 %10298  ;;  %v20119_v28 = vand.u32 4294901760, %v37_v6  ;;  %v20130_v51 = vand.u32 4294901760, %v36_v0 }
 0x993   :  { %v10359_v17 = vmul.f32 %v20043_v42, %v22020_v32  ;;  %v20049_v60 = vpop.eup %15386 }
 0x994   :  { %10400 = vrot.lane.b32.xlu0 %v10360_v48, %s15452_s3  ;;  %15396 = vrcp.f32 %v10239_v31  ;;  %v10361_v3 = vmul.f32 %v20049_v60, %v22021_v11  ;;  %v10293_v30 = vpop.permute.xlu0 %10292  ;;  %15073 = vmatprep.subr.mxu0 %v20119_v28  ;;  %v20128_v22 = vsub.f32 %v37_v6, %v20119_v28  ;;  %v20139_v21 = vsub.f32 %v36_v0, %v20130_v51 }
 0x995   :  { %15074 = vmatpush3.msra.mxu0 %v20119_v28 }
 0x996   :  { %10394 = vrot.lane.b32.xlu1 %v10357_v44, %s15452_s3  ;;  %v20110_v55 = vpop.permute.xlu1 %10302  ;;  %v20136_v44 = vand.u32 4294901760, %v20128_v22  ;;  %15075 = vmatprep.subr.mxu0 %v20130_v51  ;;  %v20146_v31 = vand.u32 4294901760, %v20139_v21 }
 0x997   :  { %15076 = vmatpush3.msra.mxu0 %v20130_v51 }
 0x998   :  { %10404 = vrot.lane.b32.xlu0 %v10362_v39, %s15452_s3  ;;  %v10297_v18 = vpop.permute.xlu0 %10296  ;;  %v10805_v39 = vsub.f32 %v20128_v22, %v20136_v44  ;;  %15133 = vmatprep.subr.mxu0 %v20083_v47  ;;  %v10812_v11 = vsub.f32 %v20139_v21, %v20146_v31 }
 0x99a   :  { %10398 = vrot.lane.b32.xlu1 %v10359_v17, %s15452_s3  ;;  %v20052_v19 = vpop.eup %15388  ;;  %v20112_v45 = vpop.permute.xlu1 %10306  ;;  %v10806_v17 = vand.u32 4294901760, %v10805_v39 }
 0x99b   :  { %v20054_v52 = vpop.eup %15390  ;;  %v10364_v50 = vmul.f32 %v20052_v19, %v22022_v8  ;;  %v10813_v8 = vand.u32 4294901760, %v10812_v11 }
 0x99c   :  { %v10363_v13 = vmul.f32 %v20054_v52, %v22024_v38  ;;  %v10301_v5 = vpop.permute.xlu0 %10300  ;;  %15105 = vmatprep.subr.mxu1 %v10806_v17 }
 0x99d   :  { %v20060_v4 = vpop.eup %15392  ;;  %10408 = vrot.lane.b32.xlu0 %v10364_v50, %s15452_s3  ;;  %v10337_v50 = vmul.f32 %v19998_v14, %v10291_v62  ;;  %15106 = vmatpush3.msra.mxu1 %v10806_v17  ;;  %v10342_v46 = vmul.f32 %v20016_v10, %v10301_v5 }
 0x99e   :  { %10402 = vrot.lane.b32.xlu1 %v10361_v3, %s15452_s3  ;;  %v10366_v34 = vmul.f32 %v20060_v4, %v22023_v24  ;;  %v20124_v48 = vpop.permute.xlu1 %10310  ;;  %15107 = vmatprep.subr.mxu1 %v10813_v8 }
 0x99f   :  { %v20078_v53 = vpop.eup %15394  ;;  %15108 = vmatpush3.msra.mxu1 %v10813_v8 }
 0x9a0   :  { %v10365_v41 = vmul.f32 %v20078_v53, %v22025_v25  ;;  %v10305_v57 = vpop.permute.xlu0 %10304  ;;  %15165 = vmatprep.subr.mxu1 %v20074_v7 }
 0x9a1   :  { %10412 = vrot.lane.b32.xlu0 %v10366_v34, %s15452_s3  ;;  %v20098_v23 = vpop.eup %15396 }
 0x9a2   :  { %10406 = vrot.lane.b32.xlu1 %v10363_v13, %s15452_s3  ;;  %v10367_v49 = vmul.f32 %v20098_v23, %v22026_v40  ;;  %v20149_v32 = vpop.permute.xlu1 %10314  ;;  %v10340_v40 = vmul.f32 %v20006_v35, %v10297_v18  ;;  %v10344_v18 = vmul.f32 %v20021_v59, %v10305_v57  ;;  %v10345_v59 = vmul.f32 %v20049_v60, %v20112_v45 }
 0x9a4   :  { %v20114_v16 = vpop.permute.xlu0 %10308 }
 0x9a5   :  { %v10346_v39 = vmul.f32 %v20030_v2, %v20114_v16  ;;  %v10347_v2 = vmul.f32 %v20054_v52, %v20124_v48 }
 0x9a6   :  { %10410 = vrot.lane.b32.xlu1 %v10365_v41, %s15452_s3  ;;  %v10338_v41 = vmul.f32 %v20004_v27, %v10293_v30  ;;  %v10341_v27 = vmul.f32 %v20026_v12, %v10299_v29 }
 0x9a8   :  { %v20133_v20 = vpop.permute.xlu0 %10312 }
 0x9aa   :  { %10414 = vrot.lane.b32.xlu1 %v10367_v49, %s15452_s3  ;;  %v10339_v49 = vmul.f32 %v20018_v56, %v10295_v43  ;;  %v10343_v56 = vmul.f32 %v20043_v42, %v20110_v55  ;;  %v10348_v42 = vmul.f32 %v20052_v19, %v20133_v20  ;;  %v10349_v19 = vmul.f32 %v20078_v53, %v20149_v32 }
 0x9ac   :  { %v10317_v3 = vpop.permute.xlu0 %10316 }
 0x9ad   :  { %v10350_v60 = vmul.f32 %v20060_v4, %v10317_v3 }
 0x9f8   :  { %v10387_v24 = vpop.permute.xlu1 %10386 }
 0x9f9   :  { %v10433_v34 = vadd.f32 %v10387_v24, %v10337_v50 }
 0x9fa   :  { %v10389_v36 = vpop.permute.xlu0 %10388 }
 0x9fb   :  { %10471 = vrot.lane.b32.xlu1 %v10433_v34, %s15453_s8  ;;  %v10434_v61 = vadd.f32 %v10389_v36, %v10338_v41 }
 0x9fc   :  { %v10385_v38 = vpop.permute.xlu1 %10384 }
 0x9fd   :  { %v10432_v13 = vadd.f32 %v10385_v38, %v10336_v37 }
 0x9fe   :  { %v10393_v25 = vpop.permute.xlu0 %10392 }
 0x9ff   :  { %10469 = vrot.lane.b32.xlu0 %v10432_v13, %s15453_s8  ;;  %v10436_v9 = vadd.f32 %v10393_v25, %v10340_v40 }
 0xa00   :  { %v10319_v14 = vpop.permute.xlu1 %10318 }
 0xa01   :  { %v10351_v24 = vmul.f32 %v20098_v23, %v10319_v14 }
 0xa02   :  { %v10397_v58 = vpop.permute.xlu0 %10396 }
 0xa03   :  { %10473 = vrot.lane.b32.xlu0 %v10434_v61, %s15453_s8  ;;  %v10438_v6 = vadd.f32 %v10397_v58, %v10342_v46 }
 0xa04   :  { %v10391_v26 = vpop.permute.xlu1 %10390 }
 0xa05   :  { %v10435_v62 = vadd.f32 %v10391_v26, %v10339_v49 }
 0xa06   :  { %v10401_v1 = vpop.permute.xlu0 %10400 }
 0xa07   :  { %10475 = vrot.lane.b32.xlu1 %v10435_v62, %s15453_s8  ;;  %10477 = vrot.lane.b32.xlu0 %v10436_v9, %s15453_s8  ;;  %v10440_v43 = vadd.f32 %v10401_v1, %v10344_v18 }
 0xa08   :  { %v10395_v30 = vpop.permute.xlu1 %10394 }
 0xa09   :  { %v10437_v0 = vadd.f32 %v10395_v30, %v10341_v27 }
 0xa0a   :  { %v10405_v35 = vpop.permute.xlu0 %10404 }
 0xa0b   :  { %10479 = vrot.lane.b32.xlu1 %v10437_v0, %s15453_s8  ;;  %10481 = vrot.lane.b32.xlu0 %v10438_v6, %s15453_s8  ;;  %v10442_v57 = vadd.f32 %v10405_v35, %v10346_v39 }
 0xa0c   :  { %v10399_v10 = vpop.permute.xlu1 %10398 }
 0xa0d   :  { %v10439_v5 = vadd.f32 %v10399_v10, %v10343_v56 }
 0xa0f   :  { %10483 = vrot.lane.b32.xlu1 %v10439_v5, %s15453_s8  ;;  %10485 = vrot.lane.b32.xlu0 %v10440_v43, %s15453_s8  ;;  %v10409_v29 = vpop.permute.xlu0 %10408 }
 0xa10   :  { %v10403_v12 = vpop.permute.xlu1 %10402  ;;  %v10444_v16 = vadd.f32 %v10409_v29, %v10348_v42 }
 0xa11   :  { %v10441_v17 = vadd.f32 %v10403_v12, %v10345_v59 }
 0xa13   :  { %10487 = vrot.lane.b32.xlu1 %v10441_v17, %s15453_s8  ;;  %10489 = vrot.lane.b32.xlu0 %v10442_v57, %s15453_s8  ;;  %v10413_v8 = vpop.permute.xlu0 %10412 }
 0xa14   :  { %v10407_v55 = vpop.permute.xlu1 %10406  ;;  %v10446_v20 = vadd.f32 %v10413_v8, %v10350_v60 }
 0xa15   :  { %v10443_v11 = vadd.f32 %v10407_v55, %v10347_v2 }
 0xa17   :  { %10491 = vrot.lane.b32.xlu1 %v10443_v11, %s15453_s8  ;;  %10493 = vrot.lane.b32.xlu0 %v10444_v16, %s15453_s8 }
 0xa18   :  { %v10411_v45 = vpop.permute.xlu1 %10410 }
 0xa19   :  { %v10445_v50 = vadd.f32 %v10411_v45, %v10349_v19 }
 0xa1b   :  { %10495 = vrot.lane.b32.xlu1 %v10445_v50, %s15453_s8  ;;  %10497 = vrot.lane.b32.xlu0 %v10446_v20, %s15453_s8 }
 0xa1c   :  { %v10415_v52 = vpop.permute.xlu1 %10414 }
 0xa1d   :  { %v10447_v48 = vadd.f32 %v10415_v52, %v10351_v24 }
 0xa1f   :  { %10499 = vrot.lane.b32.xlu1 %v10447_v48, %s15453_s8 }
 0xa6d   :  { %v10472_v4 = vpop.permute.xlu1 %10471 }
 0xa6e   :  { %v10504_v3 = vsel %vm10501_vm3, %v10472_v4, 0 }
 0xa6f   :  { %v20193_v34 = vand.u32 4294901760, %v10504_v3 }
 0xa71   :  { %v20196_v53 = vsub.f32 %v10504_v3, %v20193_v34  ;;  %v10470_v32 = vpop.permute.xlu0 %10469 }
 0xa72   :  { %v10502_v23 = vsel %vm10501_vm3, %v10470_v32, 0 }
 0xa73   :  { %v20199_v36 = vand.u32 4294901760, %v10502_v23  ;;  %v10615_v37 = vand.u32 4294901760, %v20196_v53 }
 0xa75   :  { %v20203_v38 = vsub.f32 %v10502_v23, %v20199_v36  ;;  %15109 = vmatprep.mubr.f32.mxu1 %v20199_v36  ;;  %v10474_v13 = vpop.permute.xlu0 %10473  ;;  %v10616_v61 = vsub.f32 %v20196_v53, %v10615_v37 }
 0xa76   :  { %v10506_v25 = vsel %vm10501_vm3, %v10474_v13, 0  ;;  %15110 = vmatmul.mubr.f32.vlgmr.msra.gmra.mxu1 %v20193_v34 }
 0xa77   :  { %v10605_v41 = vand.u32 4294901760, %v20203_v38  ;;  %v20209_v14 = vand.u32 4294901760, %v10506_v25  ;;  %15166 = vmatpush3.msra.mxu1 %v20074_v7  ;;  %v10617_v6 = vand.u32 4294901760, %v10616_v61 }
 0xa78   :  { %15167 = vmatprep.subr.mxu1 %v20076_v63 }
 0xa79   :  { %v20217_v58 = vsub.f32 %v10506_v25, %v20209_v14  ;;  %v10476_v40 = vpop.permute.xlu1 %10475  ;;  %15112 = vmatprep.mubr.f32.mxu1 %v20209_v14  ;;  %v10478_v49 = vpop.permute.xlu0 %10477  ;;  %v10606_v26 = vsub.f32 %v20203_v38, %v10605_v41  ;;  %15168 = vmatpush3.msra.mxu1 %v20076_v63 }
 0xa7a   :  { %v10508_v9 = vsel %vm10501_vm3, %v10476_v40, 0  ;;  %v10510_v62 = vsel %vm10501_vm3, %v10478_v49, 0  ;;  %15169 = vmatprep.subr.mxu1 %v20119_v28 }
 0xa7b   :  { %v10625_v1 = vand.u32 4294901760, %v20217_v58  ;;  %v20228_v46 = vand.u32 4294901760, %v10508_v9  ;;  %v20230_v27 = vand.u32 4294901760, %v10510_v62  ;;  %v10607_v30 = vand.u32 4294901760, %v10606_v26  ;;  %15170 = vmatpush3.msra.mxu1 %v20119_v28 }
 0xa7c   :  { %15171 = vmatprep.subr.mxu1 %v20130_v51 }
 0xa7d   :  { %v20235_v0 = vsub.f32 %v10508_v9, %v20228_v46  ;;  %v20238_v35 = vsub.f32 %v10510_v62, %v20230_v27  ;;  %v10480_v18 = vpop.permute.xlu1 %10479  ;;  %15077 = vmatprep.mubr.f32.mxu0 %v10607_v30  ;;  %15113 = vmatmul.mubr.f32.gmra.mxu1 %v20228_v46  ;;  %v10482_v56 = vpop.permute.xlu0 %10481  ;;  %v10626_v10 = vsub.f32 %v20217_v58, %v10625_v1 }
 0xa7e   :  { %v10512_v43 = vsel %vm10501_vm3, %v10480_v18, 0  ;;  %v10514_v5 = vsel %vm10501_vm3, %v10482_v56, 0  ;;  %15078 = vmatmul.mubr.f32.vlgmr.msra.gmra.mxu0 %v10617_v6  ;;  %15115 = vmatprep.mubr.f32.mxu1 %v20230_v27 }
 0xa7f   :  { %v10635_v39 = vand.u32 4294901760, %v20235_v0  ;;  %v10645_v59 = vand.u32 4294901760, %v20238_v35  ;;  %v20249_v12 = vand.u32 4294901760, %v10512_v43  ;;  %v20251_v29 = vand.u32 4294901760, %v10514_v5  ;;  %15134 = vmatpush3.msra.mxu0 %v20083_v47  ;;  %15172 = vmatpush3.msra.mxu1 %v20130_v51 }
 0xa80   :  { %v10627_v57 = vand.u32 4294901760, %v10626_v10  ;;  %15135 = vmatprep.subr.mxu0 %v20086_v33  ;;  %15229 = vmatprep.subr.mxu1 %v20074_v7 }
 0xa81   :  { %v10636_v17 = vsub.f32 %v20235_v0, %v10635_v39  ;;  %v20261_v42 = vsub.f32 %v10512_v43, %v20249_v12  ;;  %v20264_v2 = vsub.f32 %v10514_v5, %v20251_v29  ;;  %v10484_v55 = vpop.permute.xlu1 %10483  ;;  %15116 = vmatmul.mubr.f32.gmra.mxu1 %v20249_v12  ;;  %v10486_v47 = vpop.permute.xlu0 %10485  ;;  %v10646_v16 = vsub.f32 %v20238_v35, %v10645_v59 }
 0xa82   :  { %v10516_v11 = vsel %vm10501_vm3, %v10484_v55, 0  ;;  %15080 = vmatprep.mubr.f32.mxu0 %v10627_v57  ;;  %v10518_v8 = vsel %vm10501_vm3, %v10486_v47, 0  ;;  %15118 = vmatprep.mubr.f32.mxu1 %v20251_v29 }
 0xa83   :  { %v10637_v60 = vand.u32 4294901760, %v10636_v17  ;;  %v10655_v19 = vand.u32 4294901760, %v20261_v42  ;;  %v10665_v45 = vand.u32 4294901760, %v20264_v2  ;;  %v20275_v20 = vand.u32 4294901760, %v10516_v11  ;;  %15136 = vmatpush3.msra.mxu0 %v20086_v33 }
 0xa84   :  { %v20278_v50 = vand.u32 4294901760, %v10518_v8  ;;  %v10647_v24 = vand.u32 4294901760, %v10646_v16  ;;  %15137 = vmatprep.subr.mxu0 %v20128_v22 }
 0xa85   :  { %v10656_v52 = vsub.f32 %v20261_v42, %v10655_v19  ;;  %v20285_v48 = vsub.f32 %v10516_v11, %v20275_v20  ;;  %v10488_v4 = vpop.permute.xlu1 %10487  ;;  %15081 = vmatmul.mubr.f32.gmra.mxu0 %v10637_v60  ;;  %15119 = vmatmul.mubr.f32.gmra.mxu1 %v20275_v20  ;;  %v10490_v3 = vpop.permute.xlu0 %10489  ;;  %v10666_v33 = vsub.f32 %v20264_v2, %v10665_v45 }
 0xa86   :  { %v20292_v32 = vsub.f32 %v10518_v8, %v20278_v50  ;;  %v10520_v23 = vsel %vm10501_vm3, %v10488_v4, 0  ;;  %v10522_v13 = vsel %vm10501_vm3, %v10490_v3, 0  ;;  %15083 = vmatprep.mubr.f32.mxu0 %v10647_v24  ;;  %15121 = vmatprep.mubr.f32.mxu1 %v20278_v50 }
 0xa87   :  { %v10657_v25 = vand.u32 4294901760, %v10656_v52  ;;  %v10675_v61 = vand.u32 4294901760, %v20285_v48  ;;  %v20298_v40 = vand.u32 4294901760, %v10520_v23  ;;  %v20300_v49 = vand.u32 4294901760, %v10522_v13  ;;  %15138 = vmatpush3.msra.mxu0 %v20128_v22 }
 0xa88   :  { %v10685_v26 = vand.u32 4294901760, %v20292_v32  ;;  %v10667_v9 = vand.u32 4294901760, %v10666_v33  ;;  %15139 = vmatprep.subr.mxu0 %v20139_v21 }
 0xa89   :  { %v10676_v62 = vsub.f32 %v20285_v48, %v10675_v61  ;;  %v20309_v30 = vsub.f32 %v10520_v23, %v20298_v40  ;;  %v20312_v6 = vsub.f32 %v10522_v13, %v20300_v49  ;;  %v10492_v18 = vpop.permute.xlu1 %10491  ;;  %15084 = vmatmul.mubr.f32.gmra.mxu0 %v10657_v25  ;;  %15122 = vmatmul.mubr.f32.gmra.mxu1 %v20298_v40  ;;  %v10494_v22 = vpop.permute.xlu0 %10493 }
 0xa8a   :  { %v10524_v56 = vsel %vm10501_vm3, %v10492_v18, 0  ;;  %v10526_v10 = vsel %vm10501_vm3, %v10494_v22, 0  ;;  %15086 = vmatprep.mubr.f32.mxu0 %v10667_v9  ;;  %15124 = vmatprep.mubr.f32.mxu1 %v20300_v49  ;;  %v10686_v43 = vsub.f32 %v20292_v32, %v10685_v26 }
 0xa8b   :  { %v10677_v5 = vand.u32 4294901760, %v10676_v62  ;;  %v10695_v57 = vand.u32 4294901760, %v20309_v30  ;;  %v10705_v17 = vand.u32 4294901760, %v20312_v6  ;;  %v20323_v55 = vand.u32 4294901760, %v10524_v56  ;;  %15140 = vmatpush3.msra.mxu0 %v20139_v21 }
 0xa8c   :  { %v20326_v47 = vand.u32 4294901760, %v10526_v10  ;;  %v10687_v16 = vand.u32 4294901760, %v10686_v43  ;;  %15197 = vmatprep.subr.mxu0 %v20093_v15 }
 0xa8d   :  { %v10696_v11 = vsub.f32 %v20309_v30, %v10695_v57  ;;  %v20333_v8 = vsub.f32 %v10524_v56, %v20323_v55  ;;  %v10496_v60 = vpop.permute.xlu1 %10495  ;;  %15087 = vmatmul.mubr.f32.gmra.mxu0 %v10677_v5  ;;  %15125 = vmatmul.mubr.f32.gmra.mxu1 %v20323_v55  ;;  %v10498_v24 = vpop.permute.xlu0 %10497  ;;  %v10706_v21 = vsub.f32 %v20312_v6, %v10705_v17 }
 0xa8e   :  { %v20340_v52 = vsub.f32 %v10526_v10, %v20326_v47  ;;  %v10528_v4 = vsel %vm10501_vm3, %v10496_v60, 0  ;;  %v10530_v3 = vsel %vm10501_vm3, %v10498_v24, 0  ;;  %15089 = vmatprep.mubr.f32.mxu0 %v10687_v16  ;;  %15127 = vmatprep.mubr.f32.mxu1 %v20326_v47 }
 0xa8f   :  { %v10697_v33 = vand.u32 4294901760, %v10696_v11  ;;  %v10715_v23 = vand.u32 4294901760, %v20333_v8  ;;  %v20346_v13 = vand.u32 4294901760, %v10528_v4  ;;  %v20348_v25 = vand.u32 4294901760, %v10530_v3 }
 0xa90   :  { %v21270_v9 = vand.u32 4294901760, %v20340_v52  ;;  %v10707_v62 = vand.u32 4294901760, %v10706_v21 }
 0xa91   :  { %v10716_v18 = vsub.f32 %v20333_v8, %v10715_v23  ;;  %v20355_v22 = vsub.f32 %v10528_v4, %v20346_v13  ;;  %v20358_v56 = vsub.f32 %v10530_v3, %v20348_v25  ;;  %v10500_v10 = vpop.permute.xlu1 %10499  ;;  %15090 = vmatmul.mubr.f32.gmra.mxu0 %v10697_v33  ;;  %15128 = vmatmul.mubr.f32.gmra.mxu1 %v20346_v13 }
 0xa92   :  { %v10532_v43 = vsel %vm10501_vm3, %v10500_v10, 0  ;;  %15092 = vmatprep.mubr.f32.mxu0 %v10707_v62  ;;  %15130 = vmatprep.mubr.f32.mxu1 %v20348_v25  ;;  %v10726_v5 = vsub.f32 %v20340_v52, %v21270_v9 }
 0xa93   :  { %v10717_v16 = vand.u32 4294901760, %v10716_v18  ;;  %v10735_v11 = vand.u32 4294901760, %v20355_v22  ;;  %v10745_v60 = vand.u32 4294901760, %v20358_v56  ;;  %v20368_v24 = vand.u32 4294901760, %v10532_v43 }
 0xa94   :  { %v10727_v21 = vand.u32 4294901760, %v10726_v5 }
 0xa95   :  { %v10736_v4 = vsub.f32 %v20355_v22, %v10735_v11  ;;  %v10754_v3 = vsub.f32 %v10532_v43, %v20368_v24  ;;  %15093 = vmatmul.mubr.f32.gmra.mxu0 %v10717_v16  ;;  %15131 = vmatmul.mubr.f32.gmra.mxu1 %v20368_v24  ;;  %v10746_v33 = vsub.f32 %v20358_v56, %v10745_v60 }
 0xa96   :  { %15095 = vmatprep.mubr.f32.mxu0 %v10727_v21  ;;  %15173 = vmatprep.mubr.f32.mxu1 %v10605_v41 }
 0xa97   :  { %v10737_v62 = vand.u32 4294901760, %v10736_v4  ;;  %v10755_v18 = vand.u32 4294901760, %v10754_v3  ;;  %v10747_v10 = vand.u32 4294901760, %v10746_v33 }
 0xa99   :  { %v10756_v9 = vsub.f32 %v10754_v3, %v10755_v18  ;;  %15096 = vmatmul.mubr.f32.gmra.mxu0 %v10737_v62  ;;  %15174 = vmatmul.mubr.f32.vlgmr.msra.gmra.mxu1 %v10615_v37 }
 0xa9a   :  { %15098 = vmatprep.mubr.f32.mxu0 %v10747_v10  ;;  %15176 = vmatprep.mubr.f32.mxu1 %v10625_v1 }
 0xa9b   :  { %v10757_v43 = vand.u32 4294901760, %v10756_v9  ;;  %15230 = vmatpush3.msra.mxu1 %v20074_v7  ;;  %v22027_v7 = vand.u32 4294901760, %v20340_v52 }
 0xa9c   :  { %15231 = vmatprep.subr.mxu1 %v20076_v63 }
 0xa9d   :  { %15099 = vmatmul.mubr.f32.gmra.mxu0 %v10757_v43  ;;  %15177 = vmatmul.mubr.f32.gmra.mxu1 %v10635_v39 }
 0xa9e   :  { %15141 = vmatprep.mubr.f32.mxu0 %v20203_v38  ;;  %15179 = vmatprep.mubr.f32.mxu1 %v10645_v59 }
 0xa9f   :  { %15232 = vmatpush3.msra.mxu1 %v20076_v63 }
 0xaa0   :  { %15233 = vmatprep.subr.mxu1 %v20119_v28 }
 0xaa1   :  { %15142 = vmatmul.mubr.f32.vlgmr.msra.gmra.mxu0 %v20196_v53  ;;  %15180 = vmatmul.mubr.f32.gmra.mxu1 %v10655_v19 }
 0xaa2   :  { %15144 = vmatprep.mubr.f32.mxu0 %v20217_v58  ;;  %15182 = vmatprep.mubr.f32.mxu1 %v10665_v45 }
 0xaa3   :  { %15198 = vmatpush3.msra.mxu0 %v20093_v15  ;;  %15234 = vmatpush3.msra.mxu1 %v20119_v28 }
 0xaa4   :  { %15199 = vmatprep.subr.mxu0 %v20096_v54  ;;  %15235 = vmatprep.subr.mxu1 %v20130_v51 }
 0xaa5   :  { %15145 = vmatmul.mubr.f32.gmra.mxu0 %v20235_v0  ;;  %15183 = vmatmul.mubr.f32.gmra.mxu1 %v10675_v61 }
 0xaa6   :  { %15147 = vmatprep.mubr.f32.mxu0 %v20238_v35  ;;  %15185 = vmatprep.mubr.f32.mxu1 %v10685_v26 }
 0xaa7   :  { %15200 = vmatpush3.msra.mxu0 %v20096_v54  ;;  %15236 = vmatpush3.msra.mxu1 %v20130_v51 }
 0xaa8   :  { %15201 = vmatprep.subr.mxu0 %v20136_v44 }
 0xaa9   :  { %15148 = vmatmul.mubr.f32.gmra.mxu0 %v20261_v42  ;;  %15186 = vmatmul.mubr.f32.gmra.mxu1 %v10695_v57 }
 0xaaa   :  { %15150 = vmatprep.mubr.f32.mxu0 %v20264_v2  ;;  %15188 = vmatprep.mubr.f32.mxu1 %v10705_v17 }
 0xaab   :  { %15202 = vmatpush3.msra.mxu0 %v20136_v44 }
 0xaac   :  { %15203 = vmatprep.subr.mxu0 %v20146_v31 }
 0xaad   :  { %15151 = vmatmul.mubr.f32.gmra.mxu0 %v20285_v48  ;;  %15189 = vmatmul.mubr.f32.gmra.mxu1 %v10715_v23 }
 0xaae   :  { %15153 = vmatprep.mubr.f32.mxu0 %v20292_v32  ;;  %15191 = vmatprep.mubr.f32.mxu1 %v22027_v7 }
 0xaaf   :  { %15204 = vmatpush3.msra.mxu0 %v20146_v31 }
 0xab1   :  { %15154 = vmatmul.mubr.f32.gmra.mxu0 %v20309_v30  ;;  %15192 = vmatmul.mubr.f32.gmra.mxu1 %v10735_v11 }
 0xab2   :  { %15156 = vmatprep.mubr.f32.mxu0 %v20312_v6  ;;  %15194 = vmatprep.mubr.f32.mxu1 %v10745_v60 }
 0xab5   :  { %15157 = vmatmul.mubr.f32.gmra.mxu0 %v20333_v8  ;;  %15195 = vmatmul.mubr.f32.gmra.mxu1 %v10755_v18 }
 0xab6   :  { %15159 = vmatprep.mubr.f32.mxu0 %v20340_v52  ;;  %15237 = vmatprep.mubr.f32.mxu1 %v20199_v36 }
 0xab9   :  { %15160 = vmatmul.mubr.f32.gmra.mxu0 %v20355_v22  ;;  %15238 = vmatmul.mubr.f32.vlgmr.msra.gmra.mxu1 %v20193_v34 }
 0xaba   :  { %15162 = vmatprep.mubr.f32.mxu0 %v20358_v56  ;;  %15240 = vmatprep.mubr.f32.mxu1 %v20209_v14 }
 0xabd   :  { %15163 = vmatmul.mubr.f32.gmra.mxu0 %v10754_v3  ;;  %15241 = vmatmul.mubr.f32.gmra.mxu1 %v20228_v46 }
 0xabe   :  { %15205 = vmatprep.mubr.f32.mxu0 %v20199_v36  ;;  %15243 = vmatprep.mubr.f32.mxu1 %v20230_v27 }
 0xac1   :  { %15206 = vmatmul.mubr.f32.vlgmr.msra.gmra.mxu0 %v20193_v34  ;;  %15244 = vmatmul.mubr.f32.gmra.mxu1 %v20249_v12 }
 0xac2   :  { %15208 = vmatprep.mubr.f32.mxu0 %v20209_v14  ;;  %15246 = vmatprep.mubr.f32.mxu1 %v20251_v29 }
 0xac5   :  { %15209 = vmatmul.mubr.f32.gmra.mxu0 %v20228_v46  ;;  %15247 = vmatmul.mubr.f32.gmra.mxu1 %v20275_v20 }
 0xac6   :  { %15211 = vmatprep.mubr.f32.mxu0 %v20230_v27  ;;  %15249 = vmatprep.mubr.f32.mxu1 %v20278_v50 }
 0xac9   :  { %15212 = vmatmul.mubr.f32.gmra.mxu0 %v20249_v12  ;;  %15250 = vmatmul.mubr.f32.gmra.mxu1 %v20298_v40 }
 0xaca   :  { %15214 = vmatprep.mubr.f32.mxu0 %v20251_v29  ;;  %15252 = vmatprep.mubr.f32.mxu1 %v20300_v49 }
 0xacd   :  { %15215 = vmatmul.mubr.f32.gmra.mxu0 %v20275_v20  ;;  %15253 = vmatmul.mubr.f32.gmra.mxu1 %v20323_v55 }
 0xace   :  { %15217 = vmatprep.mubr.f32.mxu0 %v20278_v50  ;;  %15255 = vmatprep.mubr.f32.mxu1 %v20326_v47 }
 0xad1   :  { %15218 = vmatmul.mubr.f32.gmra.mxu0 %v20298_v40  ;;  %15256 = vmatmul.mubr.f32.gmra.mxu1 %v20346_v13 }
 0xad2   :  { %15220 = vmatprep.mubr.f32.mxu0 %v20300_v49  ;;  %15258 = vmatprep.mubr.f32.mxu1 %v20348_v25 }
 0xad5   :  { %15221 = vmatmul.mubr.f32.gmra.mxu0 %v20323_v55  ;;  %15259 = vmatmul.mubr.f32.gmra.mxu1 %v20368_v24 }
 0xad6   :  { %15223 = vmatprep.mubr.f32.mxu0 %v20326_v47 }
 0xad9   :  { %15224 = vmatmul.mubr.f32.gmra.mxu0 %v20346_v13 }
 0xada   :  { %15226 = vmatprep.mubr.f32.mxu0 %v20348_v25 }
 0xadd   :  { %15227 = vmatmul.mubr.f32.gmra.mxu0 %v20368_v24  ;;  %v20546_v24 = vld [vmem:[%s20879_s1 + $0x169] ss:$0 sm:$0xff] }
 0xb36   :  { %v20461_v63 = vpop.f32.mrf.mxu1 }
 0xb38   :  { %v20463_v15 = vpop.f32.mrf.mxu1 }
 0xb3d   :  { %v20465_v54 = vpop.f32.mrf.mxu1 }
 0xb3e   :  { %v15079_v28 = vpop.f32.mrf.mxu0 }
 0xb3f   :  { %v20467_v51 = vpop.f32.mrf.mxu1  ;;  %v10620_v62 = vadd.f32 %v15079_v28, %v20546_v24 }
 0xb40   :  { %v10609_v31 = vpop.f32.mrf.mxu0 }
 0xb41   :  { %v20469_v44 = vpop.f32.mrf.mxu1  ;;  %v10610_v43 = vadd.f32 %v20546_v24, %v10609_v31 }
 0xb43   :  { %v20471_v34 = vpop.f32.mrf.mxu1  ;;  %v10851_v28 = vadd.f32 %v20463_v15, %v10610_v43 }
 0xb45   :  { %v15082_v53 = vpop.f32.mrf.mxu0  ;;  %v20473_v36 = vpop.f32.mrf.mxu1 }
 0xb47   :  { %v10629_v37 = vpop.f32.mrf.mxu0  ;;  %v20475_v38 = vpop.f32.mrf.mxu1 }
 0xb49   :  { %v20477_v41 = vpop.f32.mrf.mxu0  ;;  %v20479_v14 = vpop.f32.mrf.mxu1 }
 0xb4b   :  { %v20481_v58 = vpop.f32.mrf.mxu0  ;;  %v20483_v1 = vpop.f32.mrf.mxu1 }
 0xb4d   :  { %v20485_v46 = vpop.f32.mrf.mxu0  ;;  %v20487_v27 = vpop.f32.mrf.mxu1 }
 0xb4f   :  { %v20489_v0 = vpop.f32.mrf.mxu0  ;;  %v20491_v35 = vpop.f32.mrf.mxu1 }
 0xb51   :  { %v20493_v39 = vpop.f32.mrf.mxu0  ;;  %v20495_v59 = vpop.f32.mrf.mxu1 }
 0xb53   :  { %v20497_v12 = vpop.f32.mrf.mxu0  ;;  %v20499_v29 = vpop.f32.mrf.mxu1 }
 0xb54   :  { %22028 = vst [vmem:[#allocation70_spill] sm:$0xff] %v20499_v29 }
 0xb55   :  { %v20501_v42 = vpop.f32.mrf.mxu0  ;;  %v20503_v2 = vpop.f32.mrf.mxu1 }
 0xb56   :  { %22029 = vst [vmem:[#allocation50_spill] sm:$0xff] %v20503_v2  ;;  %v10857_v2 = vadd.f32 %v20461_v63, %v10620_v62  ;;  %v10650_v62 = vadd.f32 %v20546_v24, %v20481_v58 }
 0xb57   :  { %v20505_v19 = vpop.f32.mrf.mxu0  ;;  %v20507_v45 = vpop.f32.mrf.mxu1 }
 0xb58   :  { %22030 = vst [vmem:[#allocation41_spill] sm:$0xff] %v20507_v45  ;;  %v10640_v45 = vadd.f32 %v15082_v53, %v20546_v24 }
 0xb59   :  { %v20509_v20 = vpop.f32.mrf.mxu0  ;;  %v15175_v50 = vpop.f32.mrf.mxu1 }
 0xb5a   :  { %v10869_v31 = vadd.f32 %v20465_v54, %v10640_v45  ;;  %v10680_v54 = vadd.f32 %v20485_v46, %v20546_v24 }
 0xb5b   :  { %v20511_v48 = vpop.f32.mrf.mxu0  ;;  %v11202_v32 = vpop.f32.mrf.mxu1 }
 0xb5d   :  { %v20513_v61 = vpop.f32.mrf.mxu0  ;;  %v15178_v40 = vpop.f32.mrf.mxu1 }
 0xb5f   :  { %v20515_v49 = vpop.f32.mrf.mxu0  ;;  %v20517_v26 = vpop.f32.mrf.mxu1 }
 0xb60   :  { %22031 = vst [vmem:[#allocation74_spill] sm:$0xff] %v20515_v49 }
 0xb61   :  { %v15143_v30 = vpop.f32.mrf.mxu0  ;;  %v20519_v6 = vpop.f32.mrf.mxu1 }
 0xb63   :  { %v11020_v57 = vpop.f32.mrf.mxu0  ;;  %v20521_v17 = vpop.f32.mrf.mxu1 }
 0xb64   :  { %v11021_v49 = vadd.f32 %v11020_v57, %v10851_v28  ;;  %v10875_v28 = vadd.f32 %v20471_v34, %v10650_v62  ;;  %v10700_v34 = vadd.f32 %v20493_v39, %v20546_v24 }
 0xb65   :  { %v15146_v55 = vpop.f32.mrf.mxu0  ;;  %v20523_v47 = vpop.f32.mrf.mxu1 }
 0xb66   :  { %v11203_v57 = vadd.f32 %v11202_v32, %v11021_v49 }
 0xb67   :  { %v11034_v8 = vpop.f32.mrf.mxu0  ;;  %v20525_v52 = vpop.f32.mrf.mxu1 }
 0xb69   :  { %v15149_v23 = vpop.f32.mrf.mxu0  ;;  %v20527_v13 = vpop.f32.mrf.mxu1 }
 0xb6b   :  { %v11048_v25 = vpop.f32.mrf.mxu0  ;;  %v20529_v9 = vpop.f32.mrf.mxu1 }
 0xb6c   :  { %v11049_v46 = vadd.f32 %v11048_v25, %v10875_v28 }
 0xb6d   :  { %v20531_v22 = vpop.f32.mrf.mxu0  ;;  %v20533_v56 = vpop.f32.mrf.mxu1 }
 0xb6e   :  { %22032 = vst [vmem:[#allocation54_spill] sm:$0xff] %v20533_v56  ;;  %v11028_v56 = vadd.f32 %v15143_v30, %v10857_v2  ;;  %v11042_v2 = vadd.f32 %v15146_v55, %v10869_v31 }
 0xb6f   :  { %v20535_v5 = vpop.f32.mrf.mxu0  ;;  %v20537_v16 = vpop.f32.mrf.mxu1 }
 0xb70   :  { %22033 = vst [vmem:[#allocation48_spill] sm:$0xff] %v20537_v16  ;;  %v11211_v30 = vadd.f32 %v15175_v50, %v11028_v56  ;;  %v11227_v55 = vadd.f32 %v15178_v40, %v11042_v2  ;;  %v10893_v40 = vadd.f32 %v20473_v36, %v10680_v54  ;;  %v11235_v2 = vadd.f32 %v20521_v17, %v11049_v46 }
 0xb71   :  { %v20539_v11 = vpop.f32.mrf.mxu0  ;;  %v20541_v60 = vpop.f32.mrf.mxu1  ;;  %v10740_v17 = vadd.f32 %v20509_v20, %v20546_v24  ;;  %v10760_v46 = vadd.f32 %v20513_v61, %v20546_v24 }
 0xb72   :  { %22034 = vst [vmem:[#allocation40_spill] sm:$0xff] %v20541_v60 }
 0xb73   :  { %v20548_v21 = vpop.f32.mrf.mxu0  ;;  %v20550_v4 = vpop.f32.mrf.mxu1 }
 0xb74   :  { %22035 = vst [vmem:[#allocation45_spill] sm:$0xff] %v20550_v4  ;;  %v10630_v4 = vadd.f32 %v20546_v24, %v10629_v37 }
 0xb75   :  { %v20552_v3 = vpop.f32.mrf.mxu0  ;;  %v20554_v33 = vpop.f32.mrf.mxu1 }
 0xb76   :  { %22036 = vst [vmem:[#allocation62_spill] sm:$0xff] %v20554_v33  ;;  %v10863_v53 = vadd.f32 %v20467_v51, %v10630_v4 }
 0xb77   :  { %v20557_v18 = vpop.f32.mrf.mxu0  ;;  %v20559_v10 = vpop.f32.mrf.mxu1 }
 0xb78   :  { %22037 = vst [vmem:[#allocation49_spill] sm:$0xff] %v20559_v10  ;;  %v11035_v15 = vadd.f32 %v11034_v8, %v10863_v53 }
 0xb79   :  { %v20562_v7 = vpop.f32.mrf.mxu0  ;;  %v15239_v60 = vpop.f32.mrf.mxu1 }
 0xb7a   :  { %22038 = vst [vmem:[#allocation71_spill] sm:$0xff] %v20562_v7  ;;  %v10660_v7 = vadd.f32 %v20477_v41, %v20546_v24  ;;  %v10670_v41 = vadd.f32 %v20546_v24, %v20489_v0  ;;  %v11219_v32 = vadd.f32 %v20517_v26, %v11035_v15  ;;  %v10690_v26 = vadd.f32 %v20546_v24, %v20497_v12 }
 0xb7b   :  { %v20567_v16 = vpop.f32.mrf.mxu0  ;;  %v11570_v33 = vpop.f32.mrf.mxu1  ;;  %v10720_v12 = vadd.f32 %v20501_v42, %v20546_v24 }
 0xb7c   :  { %22039 = vst [vmem:[#allocation60_spill] sm:$0xff] %v20567_v16  ;;  %v10881_v51 = vadd.f32 %v20469_v44, %v10660_v7 }
 0xb7d   :  { %v20570_v29 = vpop.f32.mrf.mxu0  ;;  %v15242_v10 = vpop.f32.mrf.mxu1  ;;  %v10917_v28 = vadd.f32 %v20487_v27, %v10720_v12 }
 0xb7e   :  { %22040 = vst [vmem:[#allocation14_spill] sm:$0xff] %v20570_v29  ;;  %v11056_v8 = vadd.f32 %v15149_v23, %v10881_v51 }
 0xb7f   :  { %v20576_v63 = vpop.f32.mrf.mxu0  ;;  %v11582_v37 = vpop.f32.mrf.mxu1 }
 0xb80   :  { %v11243_v39 = vadd.f32 %v20519_v6, %v11056_v8  ;;  %v10899_v6 = vadd.f32 %v20483_v1, %v10690_v26  ;;  %v22044_v26 = vld [vmem:[#allocation54_spill] sm:$0xff] }
 0xb81   :  { %v15207_v43 = vpop.f32.mrf.mxu0  ;;  %v15245_v29 = vpop.f32.mrf.mxu1 }
 0xb82   :  { %v11412_v16 = vadd.f32 %v15207_v43, %v11211_v30  ;;  %v10710_v30 = vadd.f32 %v20546_v24, %v20505_v19  ;;  %v11077_v51 = vadd.f32 %v20548_v21, %v10899_v6  ;;  %v11098_v21 = vadd.f32 %v20552_v3, %v10917_v28 }
 0xb83   :  { %v11405_v45 = vpop.f32.mrf.mxu0  ;;  %v11594_v4 = vpop.f32.mrf.mxu1 }
 0xb84   :  { %v11406_v58 = vadd.f32 %v11405_v45, %v11203_v57  ;;  %v20586_v50 = vadd.f32 %v15239_v60, %v11412_v16  ;;  %v10887_v16 = vadd.f32 %v20475_v38, %v10670_v41  ;;  %v10911_v20 = vadd.f32 %v20491_v35, %v10710_v30  ;;  %v22048_v30 = vld [vmem:[#allocation41_spill] sm:$0xff] }
 0xb85   :  { %v15210_v56 = vpop.f32.mrf.mxu0  ;;  %v20588_v31 = vpop.f32.mrf.mxu1 }
 0xb86   :  { %v11424_v49 = vadd.f32 %v15210_v56, %v11227_v55  ;;  %v11669_v0 = vsel %vm10501_vm3, %v20586_v50, 0.0  ;;  %v20593_v44 = vadd.f32 %v11570_v33, %v11406_v58  ;;  %v11070_v33 = vadd.f32 %v20531_v22, %v10893_v40 }
 0xb87   :  { %v11606_v23 = vpop.f32.mrf.mxu1  ;;  %11670 = vadd.xlane.f32.xlu1 %v11669_v0  ;;  %v11417_v60 = vpop.f32.mrf.mxu0  ;;  %v11063_v38 = vadd.f32 %v20535_v5, %v10887_v16  ;;  %v11091_v27 = vadd.f32 %v20557_v18, %v10911_v20  ;;  %v22042_v0 = vld [vmem:[#allocation70_spill] sm:$0xff] }
 0xb88   :  { %v11418_v25 = vadd.f32 %v11417_v60, %v11219_v32  ;;  %v11666_v7 = vsel %vm10501_vm3, %v20593_v44, 0.0  ;;  %v20603_v53 = vadd.f32 %v15242_v10, %v11424_v49  ;;  %v10905_v10 = vadd.f32 %v20479_v14, %v10700_v34  ;;  %v22041_v49 = vld [vmem:[#allocation74_spill] sm:$0xff] }
 0xb89   :  { %v15213_v62 = vpop.f32.mrf.mxu0  ;;  %v20607_v36 = vpop.f32.mrf.mxu1  ;;  %11667 = vadd.xlane.f32.xlu0 %v11666_v7  ;;  %v11259_v42 = vadd.f32 %v20523_v47, %v11070_v33  ;;  %v11251_v1 = vadd.f32 %v20525_v52, %v11063_v38  ;;  %v10750_v3 = vadd.f32 %v20546_v24, %v22041_v49  ;;  %v22045_v7 = vld [vmem:[#allocation60_spill] sm:$0xff] }
 0xb8a   :  { %v11436_v15 = vadd.f32 %v15213_v62, %v11243_v39  ;;  %v11675_v54 = vsel %vm10501_vm3, %v20603_v53, 0.0  ;;  %v20619_v5 = vadd.f32 %v11582_v37, %v11418_v25  ;;  %v11084_v14 = vadd.f32 %v20539_v11, %v10905_v10  ;;  %v22046_v39 = vld [vmem:[#allocation48_spill] sm:$0xff] }
 0xb8b   :  { %v11429_v22 = vpop.f32.mrf.mxu0  ;;  %v11618_v43 = vpop.f32.mrf.mxu1  ;;  %v10730_v37 = vadd.f32 %v20546_v24, %v20511_v48  ;;  %v11291_v25 = vadd.f32 %v22044_v26, %v11098_v21  ;;  %v11283_v62 = vadd.f32 %v22046_v39, %v11091_v27  ;;  %v10935_v10 = vadd.f32 %v22048_v30, %v10750_v3  ;;  %v22053_v27 = vld [vmem:[#allocation49_spill] sm:$0xff] }
 0xb8c   :  { %v11430_v57 = vadd.f32 %v11429_v22, %v11235_v2  ;;  %v20633_v47 = vadd.f32 %v15245_v29, %v11436_v15  ;;  %v11672_v52 = vsel %vm10501_vm3, %v20619_v5, 0.0  ;;  %v11275_v35 = vadd.f32 %v20527_v13, %v11084_v14  ;;  %v22047_v2 = vld [vmem:[#allocation50_spill] sm:$0xff] }
 0xb8d   :  { %v15216_v41 = vpop.f32.mrf.mxu0  ;;  %v15254_v19 = vpop.f32.mrf.mxu1  ;;  %11676 = vadd.xlane.f32.xlu0 %v11675_v54  ;;  %v11267_v29 = vadd.f32 %v20529_v9, %v11077_v51  ;;  %v10941_v12 = vadd.f32 %v22047_v2, %v10760_v46  ;;  %v22050_v14 = vld [vmem:[#allocation14_spill] sm:$0xff] }
 0xb8e   :  { %v20627_v45 = vadd.f32 %v11594_v4, %v11430_v57  ;;  %v11448_v55 = vadd.f32 %v15216_v41, %v11259_v42  ;;  %v10929_v4 = vadd.f32 %v20495_v59, %v10740_v17  ;;  %v10923_v59 = vadd.f32 %v22042_v0, %v10730_v37  ;;  %v22049_v42 = vld [vmem:[#allocation40_spill] sm:$0xff]  ;;  %v22051_v37 = vld [vmem:[#allocation45_spill] sm:$0xff] }
 0xb8f   :  { %v11441_v58 = vpop.f32.mrf.mxu0  ;;  %v11630_v48 = vpop.f32.mrf.mxu1  ;;  %v11681_v40 = vsel %vm10501_vm3, %v20633_v47, 0.0  ;;  %v11126_v51 = vadd.f32 %v22050_v14, %v10941_v12 }
 0xb90   :  { %v11442_v8 = vadd.f32 %v11441_v58, %v11251_v1  ;;  %v11678_v11 = vsel %vm10501_vm3, %v20627_v45, 0.0  ;;  %v20656_v9 = vadd.f32 %v20588_v31, %v11448_v55  ;;  %v11105_v33 = vadd.f32 %v22045_v7, %v10923_v59 }
 0xb91   :  { %v15219_v56 = vpop.f32.mrf.mxu0  ;;  %11679 = vadd.xlane.f32.xlu1 %v11678_v11  ;;  %11673 = vadd.xlane.f32.xlu0 %v11672_v52  ;;  %v15257_v61 = vpop.f32.mrf.mxu1  ;;  %v11119_v1 = vadd.f32 %v20576_v63, %v10935_v10  ;;  %v22052_v63 = vld [vmem:[#allocation62_spill] sm:$0xff] }
 0xb92   :  { %v20644_v32 = vadd.f32 %v11606_v23, %v11442_v8  ;;  %v11460_v16 = vadd.f32 %v15219_v56, %v11275_v35  ;;  %v22043_v23 = vld [vmem:[#allocation71_spill] sm:$0xff]  ;;  %v11687_v57 = vsel %vm10501_vm3, %v20656_v9, 0.0  ;;  %v11299_v28 = vadd.f32 %v22051_v37, %v11105_v33 }
 0xb93   :  { %v11453_v34 = vpop.f32.mrf.mxu0  ;;  %v11112_v60 = vadd.f32 %v22043_v23, %v10929_v4  ;;  %v11642_v17 = vpop.f32.mrf.mxu1  ;;  %v11323_v56 = vadd.f32 %v22052_v63, %v11126_v51 }
 0xb94   :  { %v11454_v18 = vadd.f32 %v11453_v34, %v11267_v29  ;;  %v11684_v13 = vsel %vm10501_vm3, %v20644_v32, 0.0  ;;  %v20671_v54 = vadd.f32 %v20607_v36, %v11460_v16 }
 0xb95   :  { %v15222_v24 = vpop.f32.mrf.mxu0  ;;  %11685 = vadd.xlane.f32.xlu1 %v11684_v13  ;;  %11682 = vadd.xlane.f32.xlu0 %v11681_v40  ;;  %v15260_v21 = vpop.f32.mrf.mxu1 }
 0xb96   :  { %v20662_v38 = vadd.f32 %v11618_v43, %v11454_v18  ;;  %v11472_v31 = vadd.f32 %v15222_v24, %v11291_v25  ;;  %v11307_v43 = vadd.f32 %v22049_v42, %v11112_v60  ;;  %v11693_v52 = vsel %vm10501_vm3, %v20671_v54, 0.0 }
 0xb97   :  { %v11465_v15 = vpop.f32.mrf.mxu0  ;;  %v11654_v59 = vpop.f32.mrf.mxu1 }
 0xb98   :  { %v11466_v22 = vadd.f32 %v11465_v15, %v11283_v62  ;;  %v11690_v6 = vsel %vm10501_vm3, %v20662_v38, 0.0  ;;  %v20679_v55 = vadd.f32 %v15254_v19, %v11472_v31 }
 0xb99   :  { %v15225_v41 = vpop.f32.mrf.mxu0  ;;  %11691 = vadd.xlane.f32.xlu1 %v11690_v6  ;;  %11688 = vadd.xlane.f32.xlu0 %v11687_v57 }
 0xb9a   :  { %v20677_v20 = vadd.f32 %v11630_v48, %v11466_v22  ;;  %v11484_v8 = vadd.f32 %v15225_v41, %v11307_v43  ;;  %v11315_v48 = vadd.f32 %v22053_v27, %v11119_v1  ;;  %v11699_v29 = vsel %vm10501_vm3, %v20679_v55, 0.0 }
 0xb9b   :  { %v11477_v58 = vpop.f32.mrf.mxu0 }
 0xb9c   :  { %v11478_v36 = vadd.f32 %v11477_v58, %v11299_v28  ;;  %v11696_v11 = vsel %vm10501_vm3, %v20677_v20, 0.0  ;;  %v20693_v0 = vadd.f32 %v15257_v61, %v11484_v8 }
 0xb9d   :  { %v15228_v4 = vpop.f32.mrf.mxu0  ;;  %11697 = vadd.xlane.f32.xlu1 %v11696_v11  ;;  %11694 = vadd.xlane.f32.xlu0 %v11693_v52 }
 0xb9e   :  { %v20687_v35 = vadd.f32 %v11642_v17, %v11478_v36  ;;  %v11496_v46 = vadd.f32 %v15228_v4, %v11323_v56  ;;  %v11705_v40 = vsel %vm10501_vm3, %v20693_v0, 0.0 }
 0xb9f   :  { %v11489_v19 = vpop.f32.mrf.mxu0 }
 0xba0   :  { %v11490_v49 = vadd.f32 %v11489_v19, %v11315_v48  ;;  %v11702_v3 = vsel %vm10501_vm3, %v20687_v35, 0.0  ;;  %v20701_v18 = vadd.f32 %v15260_v21, %v11496_v46 }
 0xba1   :  { %11703 = vadd.xlane.f32.xlu1 %v11702_v3  ;;  %11700 = vadd.xlane.f32.xlu0 %v11699_v29 }
 0xba2   :  { %v20695_v34 = vadd.f32 %v11654_v59, %v11490_v49  ;;  %v11711_v13 = vsel %vm10501_vm3, %v20701_v18, 0.0 }
 0xba4   :  { %v11708_v16 = vsel %vm10501_vm3, %v20695_v34, 0.0 }
 0xba5   :  { %11706 = vadd.xlane.f32.xlu0 %v11705_v40  ;;  %11709 = vadd.xlane.f32.xlu1 %v11708_v16 }
 0xba9   :  { %11712 = vadd.xlane.f32.xlu0 %v11711_v13 }
 0xc10   :  { %v11671_v23 = vpop.xlane.xlu1 %11670 }
 0xc11   :  { %v11716_v60 = vmul.f32 0.03125, %v11671_v23 }
 0xc12   :  { %v11668_v61 = vpop.xlane.xlu0 %11667 }
 0xc13   :  { %v20706_v26 = vsub.f32 %v20586_v50, %v11716_v60  ;;  %v11715_v25 = vmul.f32 0.03125, %v11668_v61 }
 0xc15   :  { %v20709_v24 = vsub.f32 %v20593_v44, %v11715_v25  ;;  %v11748_v7 = vmul.f32 %v20706_v26, %v20706_v26 }
 0xc16   :  { %v11677_v33 = vpop.xlane.xlu0 %11676 }
 0xc17   :  { %v11718_v39 = vmul.f32 0.03125, %v11677_v33  ;;  %v11766_v62 = vsel %vm10501_vm3, %v11748_v7, 0.0  ;;  %v11747_v2 = vmul.f32 %v20709_v24, %v20709_v24 }
 0xc18   :  { %11767 = vadd.xlane.f32.xlu0 %v11766_v62 }
 0xc19   :  { %v20717_v12 = vsub.f32 %v20603_v53, %v11718_v39  ;;  %v11763_v50 = vsel %vm10501_vm3, %v11747_v2, 0.0 }
 0xc1a   :  { %v11680_v30 = vpop.xlane.xlu1 %11679  ;;  %v11674_v10 = vpop.xlane.xlu0 %11673  ;;  %11764 = vadd.xlane.f32.xlu1 %v11763_v50 }
 0xc1b   :  { %v11719_v44 = vmul.f32 0.03125, %v11680_v30  ;;  %v11717_v31 = vmul.f32 0.03125, %v11674_v10  ;;  %v11750_v15 = vmul.f32 %v20717_v12, %v20717_v12 }
 0xc1d   :  { %v20723_v22 = vsub.f32 %v20627_v45, %v11719_v44  ;;  %v20726_v6 = vsub.f32 %v20619_v5, %v11717_v31  ;;  %v11772_v57 = vsel %vm10501_vm3, %v11750_v15, 0.0 }
 0xc1e   :  { %v11686_v53 = vpop.xlane.xlu1 %11685  ;;  %11773 = vadd.xlane.f32.xlu0 %v11772_v57  ;;  %v11683_v17 = vpop.xlane.xlu0 %11682 }
 0xc1f   :  { %v11721_v42 = vmul.f32 0.03125, %v11686_v53  ;;  %v11720_v43 = vmul.f32 0.03125, %v11683_v17  ;;  %v11749_v41 = vmul.f32 %v20726_v6, %v20726_v6  ;;  %v11751_v5 = vmul.f32 %v20723_v22, %v20723_v22 }
 0xc21   :  { %v20732_v14 = vsub.f32 %v20644_v32, %v11721_v42  ;;  %v20735_v51 = vsub.f32 %v20633_v47, %v11720_v43  ;;  %v11769_v45 = vsel %vm10501_vm3, %v11749_v41, 0.0  ;;  %v11775_v52 = vsel %vm10501_vm3, %v11751_v5, 0.0 }
 0xc22   :  { %v11692_v1 = vpop.xlane.xlu1 %11691  ;;  %v11689_v37 = vpop.xlane.xlu0 %11688  ;;  %11770 = vadd.xlane.f32.xlu1 %v11769_v45 }
 0xc23   :  { %v11723_v28 = vmul.f32 0.03125, %v11692_v1  ;;  %v11722_v58 = vmul.f32 0.03125, %v11689_v37  ;;  %v11752_v8 = vmul.f32 %v20735_v51, %v20735_v51  ;;  %v11753_v32 = vmul.f32 %v20732_v14, %v20732_v14 }
 0xc25   :  { %v20745_v36 = vsub.f32 %v20662_v38, %v11723_v28  ;;  %v20748_v47 = vsub.f32 %v20656_v9, %v11722_v58  ;;  %v11778_v11 = vsel %vm10501_vm3, %v11752_v8, 0.0  ;;  %v11781_v48 = vsel %vm10501_vm3, %v11753_v32, 0.0 }
 0xc26   :  { %v11698_v21 = vpop.xlane.xlu1 %11697  ;;  %11779 = vadd.xlane.f32.xlu0 %v11778_v11  ;;  %v11695_v4 = vpop.xlane.xlu0 %11694  ;;  %11776 = vadd.xlane.f32.xlu1 %v11775_v52 }
 0xc27   :  { %v11725_v63 = vmul.f32 0.03125, %v11698_v21  ;;  %v11724_v56 = vmul.f32 0.03125, %v11695_v4  ;;  %v11754_v27 = vmul.f32 %v20748_v47, %v20748_v47  ;;  %v11755_v29 = vmul.f32 %v20745_v36, %v20745_v36 }
 0xc29   :  { %v20756_v38 = vsub.f32 %v20677_v20, %v11725_v63  ;;  %v20759_v9 = vsub.f32 %v20671_v54, %v11724_v56  ;;  %v11784_v19 = vsel %vm10501_vm3, %v11754_v27, 0.0  ;;  %v11787_v23 = vsel %vm10501_vm3, %v11755_v29, 0.0  ;;  %v20804_v27 = vld [vmem:[%s20879_s1 + $0x16a] ss:$0 sm:$0xff] }
 0xc2a   :  { %v11704_v46 = vpop.xlane.xlu1 %11703  ;;  %11785 = vadd.xlane.f32.xlu0 %v11784_v19  ;;  %v11701_v49 = vpop.xlane.xlu0 %11700  ;;  %11782 = vadd.xlane.f32.xlu1 %v11781_v48 }
 0xc2b   :  { %v11727_v3 = vmul.f32 0.03125, %v11704_v46  ;;  %v11726_v59 = vmul.f32 0.03125, %v11701_v49  ;;  %v11756_v40 = vmul.f32 %v20759_v9, %v20759_v9  ;;  %v11757_v20 = vmul.f32 %v20756_v38, %v20756_v38 }
 0xc2d   :  { %v20769_v54 = vsub.f32 %v20687_v35, %v11727_v3  ;;  %v20772_v16 = vsub.f32 %v20679_v55, %v11726_v59  ;;  %v11790_v13 = vsel %vm10501_vm3, %v11756_v40, 0.0  ;;  %v11793_v39 = vsel %vm10501_vm3, %v11757_v20, 0.0  ;;  %v20810_v59 = vld [vmem:[%s20879_s1 + $0x16b] ss:$0 sm:$0xff]  ;;  %s15454_s1 = smov [#allocation2]  }
 0xc2e   :  { %11791 = vadd.xlane.f32.xlu0 %v11790_v13  ;;  %v11707_v60 = vpop.xlane.xlu0 %11706  ;;  %11788 = vadd.xlane.f32.xlu1 %v11787_v23  ;;  %v11710_v61 = vpop.xlane.xlu1 %11709  ;;  %s11952_s15 = sshll.u32 %s15454_s1, 4  ;;  %s11953_s15 = int_to_ptr.vmem [resolvable:$true] %s11952_s15 }
 0xc2f   :  { %v11728_v25 = vmul.f32 0.03125, %v11707_v60  ;;  %v11729_v7 = vmul.f32 0.03125, %v11710_v61  ;;  %v11758_v33 = vmul.f32 %v20772_v16, %v20772_v16  ;;  %v11759_v2 = vmul.f32 %v20769_v54, %v20769_v54  ;;  %s15430_s16 = scalar_lea.vmem %s11953_s15, 2048  ;;  %p15435_p1 = scmp.lt.s32.totalorder %s11953_s15, %s11953_s15 }
 0xc30   :  { %p15431_p0 = scmp.ne.s32.totalorder %s11953_s15, %s15430_s16  ;;  %p15436_p2 = scmp.lt.s32.totalorder %s15430_s16, %s15430_s16 }
 0xc31   :  { %v20780_v35 = vsub.f32 %v20693_v0, %v11728_v25  ;;  %v20783_v55 = vsub.f32 %v20695_v34, %v11729_v7  ;;  %v11796_v62 = vsel %vm10501_vm3, %v11758_v33, 0.0  ;;  %v11799_v34 = vsel %vm10501_vm3, %v11759_v2, 0.0 }
 0xc32   :  { %11797 = vadd.xlane.f32.xlu0 %v11796_v62  ;;  %v11713_v50 = vpop.xlane.xlu0 %11712  ;;  %11794 = vadd.xlane.f32.xlu1 %v11793_v39  ;;  %p15437_p3 = por %p15436_p2, %p15435_p1 }
 0xc33   :  { %v11730_v30 = vmul.f32 0.03125, %v11713_v50  ;;  %v11760_v10 = vmul.f32 %v20780_v35, %v20780_v35  ;;  %v11761_v31 = vmul.f32 %v20783_v55, %v20783_v55 }
 0xc34   :  { %p15438_p4 = pnand %p15437_p3, %p15431_p0 }
 0xc35   :  { %v20791_v44 = vsub.f32 %v20701_v18, %v11730_v30  ;;  %v11802_v0 = vsel %vm10501_vm3, %v11760_v10, 0.0  ;;  %v11805_v53 = vsel %vm10501_vm3, %v11761_v31, 0.0 }
 0xc36   :  { %11803 = vadd.xlane.f32.xlu0 %v11802_v0  ;;  %11800 = vadd.xlane.f32.xlu1 %v11799_v34 }
 0xc37   :  { %v11762_v15 = vmul.f32 %v20791_v44, %v20791_v44 }
 0xc39   :  { %v11808_v57 = vsel %vm10501_vm3, %v11762_v15, 0.0 }
 0xc3a   :  { %11809 = vadd.xlane.f32.xlu0 %v11808_v57  ;;  %11806 = vadd.xlane.f32.xlu1 %v11805_v53 }
 0xca1   :  { %v11768_v18 = vpop.xlane.xlu0 %11767 }
 0xca2   :  { %v11812_v17 = vmul.f32 0.03125, %v11768_v18 }
 0xca3   :  { %v11765_v42 = vpop.xlane.xlu1 %11764 }
 0xca4   :  { %v11828_v43 = vadd.f32 1e-05, %v11812_v17  ;;  %v11811_v41 = vmul.f32 0.03125, %v11765_v42 }
 0xca6   :  { %15398 = vrsqrt.f32 %v11828_v43  ;;  %v11827_v45 = vadd.f32 1e-05, %v11811_v41 }
 0xca7   :  { %v11774_v5 = vpop.xlane.xlu0 %11773 }
 0xca8   :  { %15400 = vrsqrt.f32 %v11827_v45  ;;  %v11814_v1 = vmul.f32 0.03125, %v11774_v5 }
 0xcaa   :  { %v11830_v37 = vadd.f32 1e-05, %v11814_v1 }
 0xcab   :  { %v11771_v28 = vpop.xlane.xlu1 %11770 }
 0xcac   :  { %15402 = vrsqrt.f32 %v11830_v37  ;;  %v11813_v58 = vmul.f32 0.03125, %v11771_v28 }
 0xcae   :  { %v11829_v8 = vadd.f32 1e-05, %v11813_v58 }
 0xcaf   :  { %v11780_v32 = vpop.xlane.xlu0 %11779  ;;  %v11777_v11 = vpop.xlane.xlu1 %11776 }
 0xcb0   :  { %15404 = vrsqrt.f32 %v11829_v8  ;;  %v11816_v52 = vmul.f32 0.03125, %v11780_v32  ;;  %v11815_v21 = vmul.f32 0.03125, %v11777_v11 }
 0xcb2   :  { %v11832_v4 = vadd.f32 1e-05, %v11816_v52  ;;  %v11831_v63 = vadd.f32 1e-05, %v11815_v21 }
 0xcb3   :  { %v15399_v56 = vpop.eup %15398  ;;  %v11786_v48 = vpop.xlane.xlu0 %11785 }
 0xcb4   :  { %v11783_v19 = vpop.xlane.xlu1 %11782  ;;  %v11860_v29 = vmul.f32 %v15399_v56, %v20706_v26  ;;  %15406 = vrsqrt.f32 %v11832_v4  ;;  %v11818_v46 = vmul.f32 0.03125, %v11786_v48 }
 0xcb5   :  { %v11817_v49 = vmul.f32 0.03125, %v11783_v19  ;;  %v15401_v3 = vpop.eup %15400  ;;  %15408 = vrsqrt.f32 %v11831_v63 }
 0xcb6   :  { %v11880_v40 = vmul.f32 %v20804_v27, %v11860_v29  ;;  %v11859_v20 = vmul.f32 %v15401_v3, %v20709_v24  ;;  %v11834_v13 = vadd.f32 1e-05, %v11818_v46 }
 0xcb7   :  { %v11833_v23 = vadd.f32 1e-05, %v11817_v49  ;;  %v11792_v60 = vpop.xlane.xlu0 %11791 }
 0xcb8   :  { %v11789_v61 = vpop.xlane.xlu1 %11788  ;;  %v11900_v26 = vadd.f32 %v20810_v59, %v11880_v40  ;;  %v11879_v25 = vmul.f32 %v20804_v27, %v11859_v20  ;;  %15410 = vrsqrt.f32 %v11834_v13  ;;  %v11820_v7 = vmul.f32 0.03125, %v11792_v60 }
 0xcb9   :  { %v15403_v33 = vpop.eup %15402  ;;  %15412 = vrsqrt.f32 %v11833_v23  ;;  %v11819_v39 = vmul.f32 0.03125, %v11789_v61 }
 0xcba   :  { %v11916_v62 = vmax.f32 %v11900_v26, 0.0  ;;  %v11899_v2 = vadd.f32 %v20810_v59, %v11879_v25  ;;  %v11862_v50 = vmul.f32 %v15403_v33, %v20717_v12  ;;  %v11836_v30 = vadd.f32 1e-05, %v11820_v7 }
 0xcbb   :  { %v11835_v24 = vadd.f32 1e-05, %v11819_v39  ;;  %v11798_v10 = vpop.xlane.xlu0 %11797 }
 0xcbc   :  { %v11795_v0 = vpop.xlane.xlu1 %11794  ;;  %11932 = vst.msk [vmem:[#allocation2 + $0x8] sm:$0xff] %vm10501_vm3, %v11916_v62  ;;  %v11915_v34 = vmax.f32 %v11899_v2, 0.0  ;;  %v11882_v31 = vmul.f32 %v20804_v27, %v11862_v50  ;;  %15414 = vrsqrt.f32 %v11836_v30  ;;  %v11822_v15 = vmul.f32 0.03125, %v11798_v10 }
 0xcbd   :  { %v15405_v57 = vpop.eup %15404  ;;  %15416 = vrsqrt.f32 %v11835_v24  ;;  %v11821_v53 = vmul.f32 0.03125, %v11795_v0 }
 0xcbe   :  { %11931 = vst.msk [vmem:[#allocation2] sm:$0xff] %vm10501_vm3, %v11915_v34  ;;  %v11902_v18 = vadd.f32 %v20810_v59, %v11882_v31  ;;  %v11861_v12 = vmul.f32 %v15405_v57, %v20726_v6  ;;  %v11838_v17 = vadd.f32 1e-05, %v11822_v15 }
 0xcbf   :  { %v11837_v42 = vadd.f32 1e-05, %v11821_v53  ;;  %v11804_v43 = vpop.xlane.xlu0 %11803 }
 0xcc0   :  { %v11801_v41 = vpop.xlane.xlu1 %11800  ;;  %v11918_v45 = vmax.f32 %v11902_v18, 0.0  ;;  %v11881_v5 = vmul.f32 %v20804_v27, %v11861_v12  ;;  %15418 = vrsqrt.f32 %v11838_v17  ;;  %v11824_v1 = vmul.f32 0.03125, %v11804_v43 }
 0xcc1   :  { %v15407_v37 = vpop.eup %15406  ;;  %15420 = vrsqrt.f32 %v11837_v42  ;;  %v11823_v28 = vmul.f32 0.03125, %v11801_v41 }
 0xcc2   :  { %v15409_v58 = vpop.eup %15408  ;;  %11934 = vst.msk [vmem:[#allocation2 + $0x18] sm:$0xff] %vm10501_vm3, %v11918_v45  ;;  %v11901_v8 = vadd.f32 %v20810_v59, %v11881_v5  ;;  %v11864_v32 = vmul.f32 %v15407_v37, %v20735_v51  ;;  %v11840_v6 = vadd.f32 1e-05, %v11824_v1 }
 0xcc3   :  { %v11863_v11 = vmul.f32 %v15409_v58, %v20723_v22  ;;  %v11839_v52 = vadd.f32 1e-05, %v11823_v28  ;;  %v11810_v21 = vpop.xlane.xlu0 %11809 }
 0xcc4   :  { %v11807_v4 = vpop.xlane.xlu1 %11806  ;;  %v11917_v63 = vmax.f32 %v11901_v8, 0.0  ;;  %v11884_v56 = vmul.f32 %v20804_v27, %v11864_v32  ;;  %15422 = vrsqrt.f32 %v11840_v6  ;;  %v11826_v48 = vmul.f32 0.03125, %v11810_v21 }
 0xcc5   :  { %v15411_v19 = vpop.eup %15410  ;;  %v11883_v29 = vmul.f32 %v20804_v27, %v11863_v11  ;;  %15424 = vrsqrt.f32 %v11839_v52  ;;  %v11825_v46 = vmul.f32 0.03125, %v11807_v4 }
 0xcc6   :  { %v15413_v49 = vpop.eup %15412  ;;  %11933 = vst.msk [vmem:[#allocation2 + $0x10] sm:$0xff] %vm10501_vm3, %v11917_v63  ;;  %v11904_v51 = vadd.f32 %v20810_v59, %v11884_v56  ;;  %v11866_v22 = vmul.f32 %v15411_v19, %v20748_v47  ;;  %v11842_v3 = vadd.f32 1e-05, %v11826_v48 }
 0xcc7   :  { %v11903_v40 = vadd.f32 %v20810_v59, %v11883_v29  ;;  %v11865_v20 = vmul.f32 %v15413_v49, %v20732_v14  ;;  %v11841_v13 = vadd.f32 1e-05, %v11825_v46 }
 0xcc8   :  { %v11920_v23 = vmax.f32 %v11904_v51, 0.0  ;;  %v11886_v60 = vmul.f32 %v20804_v27, %v11866_v22  ;;  %15426 = vrsqrt.f32 %v11842_v3 }
 0xcc9   :  { %v15415_v61 = vpop.eup %15414  ;;  %v11919_v26 = vmax.f32 %v11903_v40, 0.0  ;;  %v11885_v25 = vmul.f32 %v20804_v27, %v11865_v20  ;;  %15428 = vrsqrt.f32 %v11841_v13 }
 0xcca   :  { %v15417_v7 = vpop.eup %15416  ;;  %11936 = vst.msk [vmem:[#allocation2 + $0x28] sm:$0xff] %vm10501_vm3, %v11920_v23  ;;  %v11906_v47 = vadd.f32 %v20810_v59, %v11886_v60  ;;  %v11868_v33 = vmul.f32 %v15415_v61, %v20759_v9 }
 0xccb   :  { %11935 = vst.msk [vmem:[#allocation2 + $0x20] sm:$0xff] %vm10501_vm3, %v11919_v26  ;;  %v11905_v14 = vadd.f32 %v20810_v59, %v11885_v25  ;;  %v11867_v39 = vmul.f32 %v15417_v7, %v20745_v36 }
 0xccc   :  { %v11922_v62 = vmax.f32 %v11906_v47, 0.0  ;;  %v11888_v2 = vmul.f32 %v20804_v27, %v11868_v33 }
 0xccd   :  { %v15419_v50 = vpop.eup %15418  ;;  %v11921_v30 = vmax.f32 %v11905_v14, 0.0  ;;  %v11887_v24 = vmul.f32 %v20804_v27, %v11867_v39 }
 0xcce   :  { %v15421_v10 = vpop.eup %15420  ;;  %11938 = vst.msk [vmem:[#allocation2 + $0x38] sm:$0xff] %vm10501_vm3, %v11922_v62  ;;  %v11908_v0 = vadd.f32 %v20810_v59, %v11888_v2  ;;  %v11870_v9 = vmul.f32 %v15419_v50, %v20772_v16 }
 0xccf   :  { %11937 = vst.msk [vmem:[#allocation2 + $0x30] sm:$0xff] %vm10501_vm3, %v11921_v30  ;;  %v11907_v34 = vadd.f32 %v20810_v59, %v11887_v24  ;;  %v11869_v36 = vmul.f32 %v15421_v10, %v20756_v38 }
 0xcd0   :  { %v11924_v31 = vmax.f32 %v11908_v0, 0.0  ;;  %v11890_v15 = vmul.f32 %v20804_v27, %v11870_v9 }
 0xcd1   :  { %v15423_v57 = vpop.eup %15422  ;;  %v11923_v53 = vmax.f32 %v11907_v34, 0.0  ;;  %v11889_v18 = vmul.f32 %v20804_v27, %v11869_v36 }
 0xcd2   :  { %v15425_v12 = vpop.eup %15424  ;;  %11940 = vst.msk [vmem:[#allocation2 + $0x48] sm:$0xff] %vm10501_vm3, %v11924_v31  ;;  %v11910_v17 = vadd.f32 %v20810_v59, %v11890_v15  ;;  %v11872_v16 = vmul.f32 %v15423_v57, %v20780_v35 }
 0xcd3   :  { %11939 = vst.msk [vmem:[#allocation2 + $0x40] sm:$0xff] %vm10501_vm3, %v11923_v53  ;;  %v11909_v42 = vadd.f32 %v20810_v59, %v11889_v18  ;;  %v11871_v38 = vmul.f32 %v15425_v12, %v20769_v54 }
 0xcd4   :  { %v11926_v43 = vmax.f32 %v11910_v17, 0.0  ;;  %v11892_v41 = vmul.f32 %v20804_v27, %v11872_v16 }
 0xcd5   :  { %v15427_v45 = vpop.eup %15426  ;;  %v11925_v5 = vmax.f32 %v11909_v42, 0.0  ;;  %v11891_v1 = vmul.f32 %v20804_v27, %v11871_v38 }
 0xcd6   :  { %v15429_v37 = vpop.eup %15428  ;;  %11942 = vst.msk [vmem:[#allocation2 + $0x58] sm:$0xff] %vm10501_vm3, %v11926_v43  ;;  %v11912_v28 = vadd.f32 %v20810_v59, %v11892_v41  ;;  %v11874_v35 = vmul.f32 %v15427_v45, %v20791_v44 }
 0xcd7   :  { %11941 = vst.msk [vmem:[#allocation2 + $0x50] sm:$0xff] %vm10501_vm3, %v11925_v5  ;;  %v11911_v58 = vadd.f32 %v20810_v59, %v11891_v1  ;;  %v11873_v54 = vmul.f32 %v15429_v37, %v20783_v55 }
 0xcd8   :  { %v11928_v8 = vmax.f32 %v11912_v28, 0.0  ;;  %v11894_v32 = vmul.f32 %v20804_v27, %v11874_v35 }
 0xcd9   :  { %v11927_v6 = vmax.f32 %v11911_v58, 0.0  ;;  %v11893_v11 = vmul.f32 %v20804_v27, %v11873_v54 }
 0xcda   :  { %11944 = vst.msk [vmem:[#allocation2 + $0x68] sm:$0xff] %vm10501_vm3, %v11928_v8  ;;  %v11914_v52 = vadd.f32 %v20810_v59, %v11894_v32 }
 0xcdb   :  { %11943 = vst.msk [vmem:[#allocation2 + $0x60] sm:$0xff] %vm10501_vm3, %v11927_v6  ;;  %v11913_v44 = vadd.f32 %v20810_v59, %v11893_v11 }
 0xcdc   :  { %v11930_v21 = vmax.f32 %v11914_v52, 0.0 }
 0xcdd   :  { %v11929_v4 = vmax.f32 %v11913_v44, 0.0 }
 0xcde   :  { %11946 = vst.msk [vmem:[#allocation2 + $0x78] sm:$0xff] %vm10501_vm3, %v11930_v21 }
 0xcdf   :  { %11945 = vst.msk [vmem:[#allocation2 + $0x70] sm:$0xff] %vm10501_vm3, %v11929_v4 }
 0xce0   :  { %15441 = shalt.err (!%p15438_p4)
}
 0xce1   :  { %s15455_s17 = smov 128   ;;  %s15456_s18 = smov 8  }
 0xce2   :  { %11958 = dma.vmem_to_hbm [thread:$0]  %s11953_s15, 2048, %s20880_s2, [#allocation3], %s15455_s17, %s15455_s17, %s15456_s18  }
 0xce3   :  { %15450 = dma.done.wait [#allocation3], 2048  }
 0xce4   :  { %15451 = vsyncadd [#allocation3], 4294965248 }
 0xce5   :  { %11962 = vsyncpa [#allocation3], 1 }

</bundles_post_ra>
